<compile_context>
chip_gen: v6e
topology: v6e:2x2x1
jax: 0.10.0
libtpu: 0.0.40
codegen_flags: <defaults>
</compile_context>

<pallas_src>
import functools

import jax
import jax.numpy as jnp
from jax import lax
from jax.experimental import pallas as pl
from jax.experimental.pallas import tpu as pltpu

EPS = 1e-5
_KS = (3, 5, 7)                               # pooled-map sizes of the three branches


# ------------------------------ in-kernel helpers ------------------------------ #

def _window_maxes(get, L, K):
    """Sliding-window maxima (window length L-K+1) at offsets 0..K-1 over positions 0..L-1.

    When L >= 2K-1 every window straddles position K-1, so a suffix/prefix decomposition
    reads each position exactly once instead of K full window reductions.
    """
    if L >= 2 * K - 1:
        suf = [None] * (K - 1)
        run = get(K - 2)
        suf[K - 2] = run
        for p2 in range(K - 3, -1, -1):
            run = jnp.maximum(run, get(p2))
            suf[p2] = run
        pre = {}
        run = get(K - 1)
        if K - 1 >= L - K:
            pre[K - 1] = run
        for e in range(K, L):
            run = jnp.maximum(run, get(e))
            if e >= L - K:
                pre[e] = run
        out = []
        for i in range(K):
            m = pre[i + L - K]
            if i <= K - 2:
                m = jnp.maximum(m, suf[i])
            out.append(m)
        return out
    # small-extent fallback: direct per-window reduction
    out = []
    for i in range(K):
        run = get(i)
        for p2 in range(i + 1, i + L - K + 1):
            run = jnp.maximum(run, get(p2))
        out.append(run)
    return out


def _pool_grid(row, H, W, K):
    """KxK output of a stride-1 max-pool with kernel (H-K+1, W-K+1).

    `row(r)` returns the (W, C) slab of image row r.  Result is (K*K, C) with row index
    j*K + i  (i = pooled row / kernel kh, j = pooled col / kernel kw).
    """
    rmax = _window_maxes(row, H, K)                          # K x (W, C)
    stacked = jnp.stack(rmax, axis=0)                        # (K, W, C)
    cols = _window_maxes(lambda c: stacked[:, c, :], W, K)   # K x (K, C)
    return jnp.concatenate(cols, axis=0)                     # (K*K, C)


def _branches_fc(row, H, W, wpw_ref, bpw_ref, wc_refs, bc_ref, flat_refs):
    """fc1_out + fc2_out + fc3_out as a (1, 64) vector.

    One compact (83,64)@(64,48) PWConv dot (BN scale folded) + a direct flatten of each
    branch's per-tap activations into a small VMEM scratch row + three compact KxK-conv
    dots (BN scale folded).  No widened weights, no selection masks, no big intermediates.
    """
    pools = [_pool_grid(row, H, W, K) for K in _KS]          # (9,64) (25,64) (49,64)
    pool_all = jnp.concatenate(pools, axis=0)                # (83, 64)
    y = jnp.dot(pool_all, wpw_ref[...], preferred_element_type=jnp.float32)
    y = jnp.maximum(y + bpw_ref[...], 0.0)                   # (83, 48)

    fc = jnp.zeros((1, 64), jnp.float32)
    r0 = 0
    for bi, K in enumerate(_KS):
        nt = K * K
        yb = y[r0:r0 + nt, bi * 16:(bi + 1) * 16]            # (nt, 16)
        fr = flat_refs[bi]                                   # (1, nt*16) VMEM scratch
        for t in range(nt):                                  # direct flatten (tiny stores)
            fr[:, t * 16:(t + 1) * 16] = yb[t:t + 1, :]
        z = jnp.dot(fr[...], wc_refs[bi][...], preferred_element_type=jnp.float32)
        z = jnp.maximum(z + bc_ref[:, bi * 64:(bi + 1) * 64], 0.0)
        fc = fc + z
        r0 += nt
    return fc                                                # (1, 64)


def _row_consts(fc, w3_ref, blast_ref, *, W):
    """Three (W,128) row vectors (top / interior / bottom) of Conv3X3+BN+ReLU applied to
    the spatially-constant expand_as(fc) input with zero padding.  slast is folded into
    w3's columns, blast into the tap sum, so no per-element scale/bias remains."""
    taps = jnp.dot(fc, w3_ref[...], preferred_element_type=jnp.float32)     # (1, 1152)
    tp = [taps[:, t * 128:(t + 1) * 128] for t in range(9)]                  # 9 x (1,128)
    full = (tp[0] + tp[1] + tp[2] + tp[3] + tp[4] + tp[5] + tp[6] + tp[7] + tp[8]
            + blast_ref[...])
    top_m, bot_m = tp[0] + tp[1] + tp[2], tp[6] + tp[7] + tp[8]
    left_m, right_m = tp[0] + tp[3] + tp[6], tp[2] + tp[5] + tp[8]

    cidx = lax.broadcasted_iota(jnp.int32, (W, 1), 0)
    is_l, is_r = cidx == 0, cidx == W - 1

    def build(base, lcorr, rcorr):
        v = base - jnp.where(is_l, lcorr, 0.0) - jnp.where(is_r, rcorr, 0.0)
        return jnp.maximum(v, 0.0)                                           # (W, 128)

    mid = build(full, left_m, right_m)
    top = build(full - top_m, left_m - tp[0], right_m - tp[2])
    bot = build(full - bot_m, left_m - tp[6], right_m - tp[8])
    return top, mid, bot


# ----------------------------------- kernels ----------------------------------- #

def fused_kernel(x_ref, wpw_ref, bpw_ref, wc1_ref, wc2_ref, wc3_ref, bc_ref,
                 w3_ref, bl_ref, out_ref, f1_ref, f2_ref, f3_ref, *, H, W, bt):
    wc_refs = (wc1_ref, wc2_ref, wc3_ref)
    flat_refs = (f1_ref, f2_ref, f3_ref)
    for b in range(bt):
        fc = _branches_fc(lambda r, _b=b: x_ref[_b, r], H, W,
                          wpw_ref, bpw_ref, wc_refs, bc_ref, flat_refs)
        top, mid, bot = _row_consts(fc, w3_ref, bl_ref, W=W)
        out_ref[b] = jnp.broadcast_to(mid, (H, W, 128))      # interior everywhere
        out_ref[b, 0] = top                                  # first image row
        out_ref[b, H - 1] = bot                              # last image row


def rows_kernel(x_ref, wpw_ref, bpw_ref, wc1_ref, wc2_ref, wc3_ref, bc_ref,
                w3_ref, bl_ref, rows_ref, f1_ref, f2_ref, f3_ref, *, H, W, bt):
    wc_refs = (wc1_ref, wc2_ref, wc3_ref)
    flat_refs = (f1_ref, f2_ref, f3_ref)
    for b in range(bt):
        fc = _branches_fc(lambda r, _b=b: x_ref[_b, r], H, W,
                          wpw_ref, bpw_ref, wc_refs, bc_ref, flat_refs)
        top, mid, bot = _row_consts(fc, w3_ref, bl_ref, W=W)
        rows_ref[b, 0] = top
        rows_ref[b, 1] = mid
        rows_ref[b, 2] = bot


def fill_kernel(rows_ref, out_ref, *, H, W, tile_h):
    """Write one (tile_h, W, 128) output tile: broadcast the interior row; overwrite the
    top / bottom image rows only when this tile contains them (ragged tiles supported)."""
    row_start = pl.program_id(1) * tile_h
    mid = rows_ref[0, 1]                                     # (W, 128)
    out_ref[...] = jnp.broadcast_to(mid, (1, tile_h, W, 128))

    @pl.when(row_start == 0)
    def _():
        out_ref[0, 0] = rows_ref[0, 0]

    last_local = (H - 1) - row_start

    @pl.when((last_local >= 0) & (last_local < tile_h))
    def _():
        out_ref[0, pl.ds(last_local, 1)] = rows_ref[0, 2:3]


# -------------------------------- JAX-side glue -------------------------------- #

def _fold_bn(gamma, beta, mean, var):
    scale = gamma / jnp.sqrt(var + EPS)
    bias = beta - mean * scale
    return scale, bias


def init_params(key):
    keys = jax.random.split(key, 40)
    it = iter(keys)

    def nrm(shape, scale=0.1):
        return jax.random.normal(next(it), shape, dtype=jnp.float32) * scale

    def bn(c):
        gamma = jax.random.uniform(next(it), (c,), dtype=jnp.float32, minval=0.5, maxval=1.5)
        beta = nrm((c,))
        mean = nrm((c,))
        var = jax.random.uniform(next(it), (c,), dtype=jnp.float32, minval=0.5, maxval=1.5)
        return _fold_bn(gamma, beta, mean, var)

    p = {}
    for i, K in zip((1, 2, 3), _KS):
        p[f"wpw{i}"] = nrm((16, 64, 1, 1))        # PWConv weight, OIHW
        p[f"spw{i}"], p[f"bpw{i}"] = bn(16)
        p[f"wc{i}"] = nrm((64, 16, K, K))         # KxK conv weight, OIHW
        p[f"sc{i}"], p[f"bc{i}"] = bn(64)
    p["wlast"] = nrm((128, 64, 3, 3))             # Conv3X3 weight, OIHW
    p["slast"], p["blast"] = bn(128)
    return p


def _prepare_params(p):
    """Rearrange PyTorch-layout weights into compact, BN-folded kernel layouts."""
    wpw_cols, bpw_cols, wcs, bcs = [], [], [], []
    for bi, K in enumerate(_KS):
        i = bi + 1
        wpw = p[f"wpw{i}"].reshape(16, 64).T * p[f"spw{i}"][None, :]         # (64, 16)
        wpw_cols.append(wpw)
        bpw_cols.append(p[f"bpw{i}"].reshape(1, 16))
        # KxK conv weight flattened with row order (kw*K + kh)*16 + f (matches pool rows)
        wc = jnp.transpose(p[f"wc{i}"], (3, 2, 1, 0)).reshape(K * K * 16, 64)
        wcs.append(wc * p[f"sc{i}"][None, :])
        bcs.append(p[f"bc{i}"].reshape(1, 64))
    w3 = jnp.transpose(p["wlast"], (1, 2, 3, 0)).reshape(64, 9 * 128)
    w3 = w3 * jnp.tile(p["slast"], (9,))[None, :]                            # slast folded
    return (
        jnp.concatenate(wpw_cols, axis=1),        # (64, 48)
        jnp.concatenate(bpw_cols, axis=1),        # (1, 48)
        wcs[0], wcs[1], wcs[2],                   # (144,64) (400,64) (784,64)
        jnp.concatenate(bcs, axis=1),             # (1, 192)
        w3,                                       # (64, 1152)
        p["blast"].reshape(1, 128),               # (1, 128)
    )


def _const_spec(a):
    return pl.BlockSpec(a.shape, lambda *_, _nd=a.ndim: (0,) * _nd)


def _vmem_capacity_bytes():
    try:
        return int(pltpu.get_tpu_info().vmem_capacity_bytes)
    except Exception:
        return 64 << 20                                       # v7x-safe fallback


def _compiler_params(semantics, vmem_limit):
    return pltpu.CompilerParams(dimension_semantics=semantics,
                                vmem_limit_bytes=int(vmem_limit))


def _pick_bt(n, per_image_bytes, budget):
    bt = 1
    for c in range(1, min(n, 8) + 1):
        if n % c == 0 and c * per_image_bytes <= budget:
            bt = c
    return bt


def _pick_tile_h(H, W, override, budget):
    if override is not None:
        return max(1, min(int(override), H))
    target = min(4 << 20, max(budget // 4, 1 << 20))          # ~4 MiB output tiles
    return int(max(1, min(H, target // (W * 128 * 4))))


def full_image_enc(x_nchw, p, *, force_two_stage=False, last_tile_rows=None):
    N, C, H, W = x_nchw.shape
    assert C == 64, "FullImageEnc expects 64 input channels"
    assert H >= 7 and W >= 7, "spatial dims must be >= 7 (pool3 kernel)"
    x = jnp.transpose(x_nchw, (0, 2, 3, 1)).astype(jnp.float32)              # NHWC

    params = _prepare_params(p)
    pspecs = [_const_spec(a) for a in params]
    pbytes = sum(int(a.size) * 4 for a in params)
    scratch = [pltpu.VMEM((1, K * K * 16), jnp.float32) for K in _KS]

    cap = _vmem_capacity_bytes()
    vmem_limit = max(32 << 20, min((cap * 3) // 4, 100 << 20))               # gen-aware
    budget = vmem_limit - 2 * pbytes - (2 << 20)                             # block budget

    x_img = H * W * 128 * 4            # 64-channel input lane-pads to 128 lanes in VMEM
    out_img = H * W * 128 * 4
    rows_img = 3 * W * 128 * 4
    small_vmem = cap <= (64 << 20)     # v7x-like: 2 TCs, 64 MiB VMEM

    # TODO(synk): strip-tile the pooling input over H for images whose (lane-padded,
    # double-buffered) input block exceeds the VMEM budget.
    assert 2 * x_img <= budget, "image too large for whole-image pooling block"

    use_fused = (not force_two_stage) and (2 * (x_img + out_img) <= budget) and \
        not (small_vmem and N <= 2 and out_img > (2 << 20))

    if use_fused:
        bt = _pick_bt(N, 2 * (x_img + out_img), budget)
        out = pl.pallas_call(
            functools.partial(fused_kernel, H=H, W=W, bt=bt),
            out_shape=jax.ShapeDtypeStruct((N, H, W, 128), jnp.float32),
            grid=(N // bt,),
            in_specs=[pl.BlockSpec((bt, H, W, 64), lambda g: (g, 0, 0, 0))] + pspecs,
            out_specs=pl.BlockSpec((bt, H, W, 128), lambda g: (g, 0, 0, 0)),
            scratch_shapes=scratch,
            compiler_params=_compiler_params(("parallel",), vmem_limit),
        )(x, *params)
    else:
        bt = _pick_bt(N, 2 * (x_img + rows_img), budget)
        rows = pl.pallas_call(
            functools.partial(rows_kernel, H=H, W=W, bt=bt),
            out_shape=jax.ShapeDtypeStruct((N, 3, W, 128), jnp.float32),
            grid=(N // bt,),
            in_specs=[pl.BlockSpec((bt, H, W, 64), lambda g: (g, 0, 0, 0))] + pspecs,
            out_specs=pl.BlockSpec((bt, 3, W, 128), lambda g: (g, 0, 0, 0)),
            scratch_shapes=scratch,
            compiler_params=_compiler_params(("parallel",), vmem_limit),
        )(x, *params)

        tile_h = _pick_tile_h(H, W, last_tile_rows, budget)
        out = pl.pallas_call(
            functools.partial(fill_kernel, H=H, W=W, tile_h=tile_h),
            out_shape=jax.ShapeDtypeStruct((N, H, W, 128), jnp.float32),
            grid=(N, pl.cdiv(H, tile_h)),
            in_specs=[pl.BlockSpec((1, 3, W, 128), lambda n, t: (n, 0, 0, 0))],
            out_specs=pl.BlockSpec((1, tile_h, W, 128), lambda n, t: (n, t, 0, 0)),
            compiler_params=_compiler_params(("parallel", "parallel"), vmem_limit),
        )(rows)
    return jnp.transpose(out, (0, 3, 1, 2))                                  # back to NCHW


def ref_forward(x, p):
    """Pure-XLA reference (NCHW), mirrors the PyTorch forward (eval-mode BN)."""
    def bn(v, s, b):
        return v * s[None, :, None, None] + b[None, :, None, None]

    def conv(v, w, pad):
        return lax.conv_general_dilated(v, w, (1, 1), pad,
                                        dimension_numbers=("NCHW", "OIHW", "NCHW"))

    N, C, H, W = x.shape

    def mpool(kh, kw):
        return lax.reduce_window(x, -jnp.inf, lax.max,
                                 (1, 1, kh, kw), (1, 1, 1, 1), "VALID")

    def branch(xp, i):
        y = jax.nn.relu(bn(conv(xp, p[f"wpw{i}"], "VALID"), p[f"spw{i}"], p[f"bpw{i}"]))
        return jax.nn.relu(bn(conv(y, p[f"wc{i}"], "VALID"), p[f"sc{i}"], p[f"bc{i}"]))

    f1 = branch(mpool(H - 2, W - 2), 1)
    f2 = branch(mpool(H - 4, W - 4), 2)
    f3 = branch(mpool(H - 6, W - 6), 3)
    fcv = f1 + f2 + f3                                       # (N, 64, 1, 1)
    exp = jnp.broadcast_to(fcv, (N, 64, H, W))               # expand_as(head_out)
    return jax.nn.relu(bn(conv(exp, p["wlast"], ((1, 1), (1, 1))), p["slast"], p["blast"]))


if __name__ == "__main__":
    key = jax.random.PRNGKey(0)
    kx, kp = jax.random.split(key)
    x = jax.random.normal(kx, (2, 64, 16, 16), dtype=jnp.float32)   # NCHW, like PyTorch
    params = init_params(kp)

    out = jax.block_until_ready(full_image_enc(x, params))          # fused single-kernel path
    assert out.shape == (2, 128, 16, 16), out.shape

    out_tiled = jax.block_until_ready(                               # two-stage, row-tiled path
        full_image_enc(x, params, force_two_stage=True, last_tile_rows=4))

    ref = jax.block_until_ready(ref_forward(x, params))
    tol = 1e-3 * max(1.0, float(jnp.max(jnp.abs(ref))))
    err_f = float(jnp.max(jnp.abs(out - ref)))
    err_t = float(jnp.max(jnp.abs(out_tiled - ref)))
    assert err_f < tol, f"fused path max abs err {err_f} (tol {tol})"
    assert err_t < tol, f"two-stage path max abs err {err_t} (tol {tol})"
    print("KERNEL_OK")
</pallas_src>

<mosaic_0001>
module attributes {stable_mosaic.version = 11 : i64} {
  func.func @fused_kernel(%arg0: i32, %arg1: memref<2x16x16x64xf32, #tpu.memory_space<vmem>>, %arg2: memref<64x48xf32, #tpu.memory_space<vmem>>, %arg3: memref<1x48xf32, #tpu.memory_space<vmem>>, %arg4: memref<144x64xf32, #tpu.memory_space<vmem>>, %arg5: memref<400x64xf32, #tpu.memory_space<vmem>>, %arg6: memref<784x64xf32, #tpu.memory_space<vmem>>, %arg7: memref<1x192xf32, #tpu.memory_space<vmem>>, %arg8: memref<64x1152xf32, #tpu.memory_space<vmem>>, %arg9: memref<1x128xf32, #tpu.memory_space<vmem>>, %arg10: memref<2x16x16x128xf32, #tpu.memory_space<vmem>>, %arg11: memref<1x144xf32, #tpu.memory_space<vmem>>, %arg12: memref<1x400xf32, #tpu.memory_space<vmem>>, %arg13: memref<1x784xf32, #tpu.memory_space<vmem>>) attributes {dimension_semantics = [#tpu.dimension_semantics<parallel>], iteration_bounds = array<i64: 1>, scalar_prefetch = 0 : i64, scratch_operands = 3 : i64, tpu.core_type = #tpu.core_type<tc>, window_params = [{transform_indices = @transform_0, window_bounds = array<i64: 2, 16, 16, 64>}, {pipeline_mode = #tpu.pipeline_mode<synchronous>, transform_indices = @transform_1, window_bounds = array<i64: 64, 48>}, {pipeline_mode = #tpu.pipeline_mode<synchronous>, transform_indices = @transform_2, window_bounds = array<i64: 1, 48>}, {pipeline_mode = #tpu.pipeline_mode<synchronous>, transform_indices = @transform_3, window_bounds = array<i64: 144, 64>}, {pipeline_mode = #tpu.pipeline_mode<synchronous>, transform_indices = @transform_4, window_bounds = array<i64: 400, 64>}, {pipeline_mode = #tpu.pipeline_mode<synchronous>, transform_indices = @transform_5, window_bounds = array<i64: 784, 64>}, {pipeline_mode = #tpu.pipeline_mode<synchronous>, transform_indices = @transform_6, window_bounds = array<i64: 1, 192>}, {pipeline_mode = #tpu.pipeline_mode<synchronous>, transform_indices = @transform_7, window_bounds = array<i64: 64, 1152>}, {pipeline_mode = #tpu.pipeline_mode<synchronous>, transform_indices = @transform_8, window_bounds = array<i64: 1, 128>}, {transform_indices = @transform_9, window_bounds = array<i64: 2, 16, 16, 128>}]} {
    %c0 = arith.constant 0 : index
    %c1 = arith.constant 1 : index
    %c0_0 = arith.constant 0 : index
    %c0_1 = arith.constant 0 : index
    %0 = vector.load %arg1[%c0, %c1, %c0_0, %c0_1] : memref<2x16x16x64xf32, #tpu.memory_space<vmem>>, vector<1x1x16x64xf32>
    %1 = vector.shape_cast %0 : vector<1x1x16x64xf32> to vector<16x64xf32>
    %c0_2 = arith.constant 0 : index
    %c0_3 = arith.constant 0 : index
    %c0_4 = arith.constant 0 : index
    %c0_5 = arith.constant 0 : index
    %2 = vector.load %arg1[%c0_2, %c0_3, %c0_4, %c0_5] : memref<2x16x16x64xf32, #tpu.memory_space<vmem>>, vector<1x1x16x64xf32>
    %3 = vector.shape_cast %2 : vector<1x1x16x64xf32> to vector<16x64xf32>
    %4 = arith.maximumf %1, %3 : vector<16x64xf32>
    %c0_6 = arith.constant 0 : index
    %c2 = arith.constant 2 : index
    %c0_7 = arith.constant 0 : index
    %c0_8 = arith.constant 0 : index
    %5 = vector.load %arg1[%c0_6, %c2, %c0_7, %c0_8] : memref<2x16x16x64xf32, #tpu.memory_space<vmem>>, vector<1x1x16x64xf32>
    %6 = vector.shape_cast %5 : vector<1x1x16x64xf32> to vector<16x64xf32>
    %c0_9 = arith.constant 0 : index
    %c3 = arith.constant 3 : index
    %c0_10 = arith.constant 0 : index
    %c0_11 = arith.constant 0 : index
    %7 = vector.load %arg1[%c0_9, %c3, %c0_10, %c0_11] : memref<2x16x16x64xf32, #tpu.memory_space<vmem>>, vector<1x1x16x64xf32>
    %8 = vector.shape_cast %7 : vector<1x1x16x64xf32> to vector<16x64xf32>
    %9 = arith.maximumf %6, %8 : vector<16x64xf32>
    %c0_12 = arith.constant 0 : index
    %c4 = arith.constant 4 : index
    %c0_13 = arith.constant 0 : index
    %c0_14 = arith.constant 0 : index
    %10 = vector.load %arg1[%c0_12, %c4, %c0_13, %c0_14] : memref<2x16x16x64xf32, #tpu.memory_space<vmem>>, vector<1x1x16x64xf32>
    %11 = vector.shape_cast %10 : vector<1x1x16x64xf32> to vector<16x64xf32>
    %12 = arith.maximumf %9, %11 : vector<16x64xf32>
    %c0_15 = arith.constant 0 : index
    %c5 = arith.constant 5 : index
    %c0_16 = arith.constant 0 : index
    %c0_17 = arith.constant 0 : index
    %13 = vector.load %arg1[%c0_15, %c5, %c0_16, %c0_17] : memref<2x16x16x64xf32, #tpu.memory_space<vmem>>, vector<1x1x16x64xf32>
    %14 = vector.shape_cast %13 : vector<1x1x16x64xf32> to vector<16x64xf32>
    %15 = arith.maximumf %12, %14 : vector<16x64xf32>
    %c0_18 = arith.constant 0 : index
    %c6 = arith.constant 6 : index
    %c0_19 = arith.constant 0 : index
    %c0_20 = arith.constant 0 : index
    %16 = vector.load %arg1[%c0_18, %c6, %c0_19, %c0_20] : memref<2x16x16x64xf32, #tpu.memory_space<vmem>>, vector<1x1x16x64xf32>
    %17 = vector.shape_cast %16 : vector<1x1x16x64xf32> to vector<16x64xf32>
    %18 = arith.maximumf %15, %17 : vector<16x64xf32>
    %c0_21 = arith.constant 0 : index
    %c7 = arith.constant 7 : index
    %c0_22 = arith.constant 0 : index
    %c0_23 = arith.constant 0 : index
    %19 = vector.load %arg1[%c0_21, %c7, %c0_22, %c0_23] : memref<2x16x16x64xf32, #tpu.memory_space<vmem>>, vector<1x1x16x64xf32>
    %20 = vector.shape_cast %19 : vector<1x1x16x64xf32> to vector<16x64xf32>
    %21 = arith.maximumf %18, %20 : vector<16x64xf32>
    %c0_24 = arith.constant 0 : index
    %c8 = arith.constant 8 : index
    %c0_25 = arith.constant 0 : index
    %c0_26 = arith.constant 0 : index
    %22 = vector.load %arg1[%c0_24, %c8, %c0_25, %c0_26] : memref<2x16x16x64xf32, #tpu.memory_space<vmem>>, vector<1x1x16x64xf32>
    %23 = vector.shape_cast %22 : vector<1x1x16x64xf32> to vector<16x64xf32>
    %24 = arith.maximumf %21, %23 : vector<16x64xf32>
    %c0_27 = arith.constant 0 : index
    %c9 = arith.constant 9 : index
    %c0_28 = arith.constant 0 : index
    %c0_29 = arith.constant 0 : index
    %25 = vector.load %arg1[%c0_27, %c9, %c0_28, %c0_29] : memref<2x16x16x64xf32, #tpu.memory_space<vmem>>, vector<1x1x16x64xf32>
    %26 = vector.shape_cast %25 : vector<1x1x16x64xf32> to vector<16x64xf32>
    %27 = arith.maximumf %24, %26 : vector<16x64xf32>
    %c0_30 = arith.constant 0 : index
    %c10 = arith.constant 10 : index
    %c0_31 = arith.constant 0 : index
    %c0_32 = arith.constant 0 : index
    %28 = vector.load %arg1[%c0_30, %c10, %c0_31, %c0_32] : memref<2x16x16x64xf32, #tpu.memory_space<vmem>>, vector<1x1x16x64xf32>
    %29 = vector.shape_cast %28 : vector<1x1x16x64xf32> to vector<16x64xf32>
    %30 = arith.maximumf %27, %29 : vector<16x64xf32>
    %c0_33 = arith.constant 0 : index
    %c11 = arith.constant 11 : index
    %c0_34 = arith.constant 0 : index
    %c0_35 = arith.constant 0 : index
    %31 = vector.load %arg1[%c0_33, %c11, %c0_34, %c0_35] : memref<2x16x16x64xf32, #tpu.memory_space<vmem>>, vector<1x1x16x64xf32>
    %32 = vector.shape_cast %31 : vector<1x1x16x64xf32> to vector<16x64xf32>
    %33 = arith.maximumf %30, %32 : vector<16x64xf32>
    %c0_36 = arith.constant 0 : index
    %c12 = arith.constant 12 : index
    %c0_37 = arith.constant 0 : index
    %c0_38 = arith.constant 0 : index
    %34 = vector.load %arg1[%c0_36, %c12, %c0_37, %c0_38] : memref<2x16x16x64xf32, #tpu.memory_space<vmem>>, vector<1x1x16x64xf32>
    %35 = vector.shape_cast %34 : vector<1x1x16x64xf32> to vector<16x64xf32>
    %36 = arith.maximumf %33, %35 : vector<16x64xf32>
    %c0_39 = arith.constant 0 : index
    %c13 = arith.constant 13 : index
    %c0_40 = arith.constant 0 : index
    %c0_41 = arith.constant 0 : index
    %37 = vector.load %arg1[%c0_39, %c13, %c0_40, %c0_41] : memref<2x16x16x64xf32, #tpu.memory_space<vmem>>, vector<1x1x16x64xf32>
    %38 = vector.shape_cast %37 : vector<1x1x16x64xf32> to vector<16x64xf32>
    %39 = arith.maximumf %36, %38 : vector<16x64xf32>
    %c0_42 = arith.constant 0 : index
    %c14 = arith.constant 14 : index
    %c0_43 = arith.constant 0 : index
    %c0_44 = arith.constant 0 : index
    %40 = vector.load %arg1[%c0_42, %c14, %c0_43, %c0_44] : memref<2x16x16x64xf32, #tpu.memory_space<vmem>>, vector<1x1x16x64xf32>
    %41 = vector.shape_cast %40 : vector<1x1x16x64xf32> to vector<16x64xf32>
    %42 = arith.maximumf %39, %41 : vector<16x64xf32>
    %c0_45 = arith.constant 0 : index
    %c15 = arith.constant 15 : index
    %c0_46 = arith.constant 0 : index
    %c0_47 = arith.constant 0 : index
    %43 = vector.load %arg1[%c0_45, %c15, %c0_46, %c0_47] : memref<2x16x16x64xf32, #tpu.memory_space<vmem>>, vector<1x1x16x64xf32>
    %44 = vector.shape_cast %43 : vector<1x1x16x64xf32> to vector<16x64xf32>
    %45 = arith.maximumf %42, %44 : vector<16x64xf32>
    %46 = arith.maximumf %39, %4 : vector<16x64xf32>
    %47 = arith.maximumf %42, %1 : vector<16x64xf32>
    %48 = vector.shape_cast %46 : vector<16x64xf32> to vector<1x16x64xf32>
    %49 = vector.shape_cast %47 : vector<16x64xf32> to vector<1x16x64xf32>
    %50 = vector.shape_cast %45 : vector<16x64xf32> to vector<1x16x64xf32>
    %51 = tpu.concatenate %48, %49, %50 in 0 : vector<1x16x64xf32>, vector<1x16x64xf32>, vector<1x16x64xf32> -> vector<3x16x64xf32>
    %52 = vector.extract_strided_slice %51 {offsets = [0, 1, 0], sizes = [3, 1, 64], strides = [1, 1, 1]} : vector<3x16x64xf32> to vector<3x1x64xf32>
    %53 = vector.shape_cast %52 : vector<3x1x64xf32> to vector<3x64xf32>
    %54 = vector.extract_strided_slice %51 {offsets = [0, 0, 0], sizes = [3, 1, 64], strides = [1, 1, 1]} : vector<3x16x64xf32> to vector<3x1x64xf32>
    %55 = vector.shape_cast %54 : vector<3x1x64xf32> to vector<3x64xf32>
    %56 = arith.maximumf %53, %55 : vector<3x64xf32>
    %57 = vector.extract_strided_slice %51 {offsets = [0, 2, 0], sizes = [3, 1, 64], strides = [1, 1, 1]} : vector<3x16x64xf32> to vector<3x1x64xf32>
    %58 = vector.shape_cast %57 : vector<3x1x64xf32> to vector<3x64xf32>
    %59 = vector.extract_strided_slice %51 {offsets = [0, 3, 0], sizes = [3, 1, 64], strides = [1, 1, 1]} : vector<3x16x64xf32> to vector<3x1x64xf32>
    %60 = vector.shape_cast %59 : vector<3x1x64xf32> to vector<3x64xf32>
    %61 = arith.maximumf %58, %60 : vector<3x64xf32>
    %62 = vector.extract_strided_slice %51 {offsets = [0, 4, 0], sizes = [3, 1, 64], strides = [1, 1, 1]} : vector<3x16x64xf32> to vector<3x1x64xf32>
    %63 = vector.shape_cast %62 : vector<3x1x64xf32> to vector<3x64xf32>
    %64 = arith.maximumf %61, %63 : vector<3x64xf32>
    %65 = vector.extract_strided_slice %51 {offsets = [0, 5, 0], sizes = [3, 1, 64], strides = [1, 1, 1]} : vector<3x16x64xf32> to vector<3x1x64xf32>
    %66 = vector.shape_cast %65 : vector<3x1x64xf32> to vector<3x64xf32>
    %67 = arith.maximumf %64, %66 : vector<3x64xf32>
    %68 = vector.extract_strided_slice %51 {offsets = [0, 6, 0], sizes = [3, 1, 64], strides = [1, 1, 1]} : vector<3x16x64xf32> to vector<3x1x64xf32>
    %69 = vector.shape_cast %68 : vector<3x1x64xf32> to vector<3x64xf32>
    %70 = arith.maximumf %67, %69 : vector<3x64xf32>
    %71 = vector.extract_strided_slice %51 {offsets = [0, 7, 0], sizes = [3, 1, 64], strides = [1, 1, 1]} : vector<3x16x64xf32> to vector<3x1x64xf32>
    %72 = vector.shape_cast %71 : vector<3x1x64xf32> to vector<3x64xf32>
    %73 = arith.maximumf %70, %72 : vector<3x64xf32>
    %74 = vector.extract_strided_slice %51 {offsets = [0, 8, 0], sizes = [3, 1, 64], strides = [1, 1, 1]} : vector<3x16x64xf32> to vector<3x1x64xf32>
    %75 = vector.shape_cast %74 : vector<3x1x64xf32> to vector<3x64xf32>
    %76 = arith.maximumf %73, %75 : vector<3x64xf32>
    %77 = vector.extract_strided_slice %51 {offsets = [0, 9, 0], sizes = [3, 1, 64], strides = [1, 1, 1]} : vector<3x16x64xf32> to vector<3x1x64xf32>
    %78 = vector.shape_cast %77 : vector<3x1x64xf32> to vector<3x64xf32>
    %79 = arith.maximumf %76, %78 : vector<3x64xf32>
    %80 = vector.extract_strided_slice %51 {offsets = [0, 10, 0], sizes = [3, 1, 64], strides = [1, 1, 1]} : vector<3x16x64xf32> to vector<3x1x64xf32>
    %81 = vector.shape_cast %80 : vector<3x1x64xf32> to vector<3x64xf32>
    %82 = arith.maximumf %79, %81 : vector<3x64xf32>
    %83 = vector.extract_strided_slice %51 {offsets = [0, 11, 0], sizes = [3, 1, 64], strides = [1, 1, 1]} : vector<3x16x64xf32> to vector<3x1x64xf32>
    %84 = vector.shape_cast %83 : vector<3x1x64xf32> to vector<3x64xf32>
    %85 = arith.maximumf %82, %84 : vector<3x64xf32>
    %86 = vector.extract_strided_slice %51 {offsets = [0, 12, 0], sizes = [3, 1, 64], strides = [1, 1, 1]} : vector<3x16x64xf32> to vector<3x1x64xf32>
    %87 = vector.shape_cast %86 : vector<3x1x64xf32> to vector<3x64xf32>
    %88 = arith.maximumf %85, %87 : vector<3x64xf32>
    %89 = vector.extract_strided_slice %51 {offsets = [0, 13, 0], sizes = [3, 1, 64], strides = [1, 1, 1]} : vector<3x16x64xf32> to vector<3x1x64xf32>
    %90 = vector.shape_cast %89 : vector<3x1x64xf32> to vector<3x64xf32>
    %91 = arith.maximumf %88, %90 : vector<3x64xf32>
    %92 = vector.extract_strided_slice %51 {offsets = [0, 14, 0], sizes = [3, 1, 64], strides = [1, 1, 1]} : vector<3x16x64xf32> to vector<3x1x64xf32>
    %93 = vector.shape_cast %92 : vector<3x1x64xf32> to vector<3x64xf32>
    %94 = arith.maximumf %91, %93 : vector<3x64xf32>
    %95 = vector.extract_strided_slice %51 {offsets = [0, 15, 0], sizes = [3, 1, 64], strides = [1, 1, 1]} : vector<3x16x64xf32> to vector<3x1x64xf32>
    %96 = vector.shape_cast %95 : vector<3x1x64xf32> to vector<3x64xf32>
    %97 = arith.maximumf %94, %96 : vector<3x64xf32>
    %98 = arith.maximumf %91, %56 : vector<3x64xf32>
    %99 = arith.maximumf %94, %53 : vector<3x64xf32>
    %100 = tpu.concatenate %98, %99, %97 in 0 : vector<3x64xf32>, vector<3x64xf32>, vector<3x64xf32> -> vector<9x64xf32>
    %c0_48 = arith.constant 0 : index
    %c3_49 = arith.constant 3 : index
    %c0_50 = arith.constant 0 : index
    %c0_51 = arith.constant 0 : index
    %101 = vector.load %arg1[%c0_48, %c3_49, %c0_50, %c0_51] : memref<2x16x16x64xf32, #tpu.memory_space<vmem>>, vector<1x1x16x64xf32>
    %102 = vector.shape_cast %101 : vector<1x1x16x64xf32> to vector<16x64xf32>
    %c0_52 = arith.constant 0 : index
    %c2_53 = arith.constant 2 : index
    %c0_54 = arith.constant 0 : index
    %c0_55 = arith.constant 0 : index
    %103 = vector.load %arg1[%c0_52, %c2_53, %c0_54, %c0_55] : memref<2x16x16x64xf32, #tpu.memory_space<vmem>>, vector<1x1x16x64xf32>
    %104 = vector.shape_cast %103 : vector<1x1x16x64xf32> to vector<16x64xf32>
    %105 = arith.maximumf %102, %104 : vector<16x64xf32>
    %c0_56 = arith.constant 0 : index
    %c1_57 = arith.constant 1 : index
    %c0_58 = arith.constant 0 : index
    %c0_59 = arith.constant 0 : index
    %106 = vector.load %arg1[%c0_56, %c1_57, %c0_58, %c0_59] : memref<2x16x16x64xf32, #tpu.memory_space<vmem>>, vector<1x1x16x64xf32>
    %107 = vector.shape_cast %106 : vector<1x1x16x64xf32> to vector<16x64xf32>
    %108 = arith.maximumf %105, %107 : vector<16x64xf32>
    %c0_60 = arith.constant 0 : index
    %c0_61 = arith.constant 0 : index
    %c0_62 = arith.constant 0 : index
    %c0_63 = arith.constant 0 : index
    %109 = vector.load %arg1[%c0_60, %c0_61, %c0_62, %c0_63] : memref<2x16x16x64xf32, #tpu.memory_space<vmem>>, vector<1x1x16x64xf32>
    %110 = vector.shape_cast %109 : vector<1x1x16x64xf32> to vector<16x64xf32>
    %111 = arith.maximumf %108, %110 : vector<16x64xf32>
    %c0_64 = arith.constant 0 : index
    %c4_65 = arith.constant 4 : index
    %c0_66 = arith.constant 0 : index
    %c0_67 = arith.constant 0 : index
    %112 = vector.load %arg1[%c0_64, %c4_65, %c0_66, %c0_67] : memref<2x16x16x64xf32, #tpu.memory_space<vmem>>, vector<1x1x16x64xf32>
    %113 = vector.shape_cast %112 : vector<1x1x16x64xf32> to vector<16x64xf32>
    %c0_68 = arith.constant 0 : index
    %c5_69 = arith.constant 5 : index
    %c0_70 = arith.constant 0 : index
    %c0_71 = arith.constant 0 : index
    %114 = vector.load %arg1[%c0_68, %c5_69, %c0_70, %c0_71] : memref<2x16x16x64xf32, #tpu.memory_space<vmem>>, vector<1x1x16x64xf32>
    %115 = vector.shape_cast %114 : vector<1x1x16x64xf32> to vector<16x64xf32>
    %116 = arith.maximumf %113, %115 : vector<16x64xf32>
    %c0_72 = arith.constant 0 : index
    %c6_73 = arith.constant 6 : index
    %c0_74 = arith.constant 0 : index
    %c0_75 = arith.constant 0 : index
    %117 = vector.load %arg1[%c0_72, %c6_73, %c0_74, %c0_75] : memref<2x16x16x64xf32, #tpu.memory_space<vmem>>, vector<1x1x16x64xf32>
    %118 = vector.shape_cast %117 : vector<1x1x16x64xf32> to vector<16x64xf32>
    %119 = arith.maximumf %116, %118 : vector<16x64xf32>
    %c0_76 = arith.constant 0 : index
    %c7_77 = arith.constant 7 : index
    %c0_78 = arith.constant 0 : index
    %c0_79 = arith.constant 0 : index
    %120 = vector.load %arg1[%c0_76, %c7_77, %c0_78, %c0_79] : memref<2x16x16x64xf32, #tpu.memory_space<vmem>>, vector<1x1x16x64xf32>
    %121 = vector.shape_cast %120 : vector<1x1x16x64xf32> to vector<16x64xf32>
    %122 = arith.maximumf %119, %121 : vector<16x64xf32>
    %c0_80 = arith.constant 0 : index
    %c8_81 = arith.constant 8 : index
    %c0_82 = arith.constant 0 : index
    %c0_83 = arith.constant 0 : index
    %123 = vector.load %arg1[%c0_80, %c8_81, %c0_82, %c0_83] : memref<2x16x16x64xf32, #tpu.memory_space<vmem>>, vector<1x1x16x64xf32>
    %124 = vector.shape_cast %123 : vector<1x1x16x64xf32> to vector<16x64xf32>
    %125 = arith.maximumf %122, %124 : vector<16x64xf32>
    %c0_84 = arith.constant 0 : index
    %c9_85 = arith.constant 9 : index
    %c0_86 = arith.constant 0 : index
    %c0_87 = arith.constant 0 : index
    %126 = vector.load %arg1[%c0_84, %c9_85, %c0_86, %c0_87] : memref<2x16x16x64xf32, #tpu.memory_space<vmem>>, vector<1x1x16x64xf32>
    %127 = vector.shape_cast %126 : vector<1x1x16x64xf32> to vector<16x64xf32>
    %128 = arith.maximumf %125, %127 : vector<16x64xf32>
    %c0_88 = arith.constant 0 : index
    %c10_89 = arith.constant 10 : index
    %c0_90 = arith.constant 0 : index
    %c0_91 = arith.constant 0 : index
    %129 = vector.load %arg1[%c0_88, %c10_89, %c0_90, %c0_91] : memref<2x16x16x64xf32, #tpu.memory_space<vmem>>, vector<1x1x16x64xf32>
    %130 = vector.shape_cast %129 : vector<1x1x16x64xf32> to vector<16x64xf32>
    %131 = arith.maximumf %128, %130 : vector<16x64xf32>
    %c0_92 = arith.constant 0 : index
    %c11_93 = arith.constant 11 : index
    %c0_94 = arith.constant 0 : index
    %c0_95 = arith.constant 0 : index
    %132 = vector.load %arg1[%c0_92, %c11_93, %c0_94, %c0_95] : memref<2x16x16x64xf32, #tpu.memory_space<vmem>>, vector<1x1x16x64xf32>
    %133 = vector.shape_cast %132 : vector<1x1x16x64xf32> to vector<16x64xf32>
    %134 = arith.maximumf %131, %133 : vector<16x64xf32>
    %c0_96 = arith.constant 0 : index
    %c12_97 = arith.constant 12 : index
    %c0_98 = arith.constant 0 : index
    %c0_99 = arith.constant 0 : index
    %135 = vector.load %arg1[%c0_96, %c12_97, %c0_98, %c0_99] : memref<2x16x16x64xf32, #tpu.memory_space<vmem>>, vector<1x1x16x64xf32>
    %136 = vector.shape_cast %135 : vector<1x1x16x64xf32> to vector<16x64xf32>
    %137 = arith.maximumf %134, %136 : vector<16x64xf32>
    %c0_100 = arith.constant 0 : index
    %c13_101 = arith.constant 13 : index
    %c0_102 = arith.constant 0 : index
    %c0_103 = arith.constant 0 : index
    %138 = vector.load %arg1[%c0_100, %c13_101, %c0_102, %c0_103] : memref<2x16x16x64xf32, #tpu.memory_space<vmem>>, vector<1x1x16x64xf32>
    %139 = vector.shape_cast %138 : vector<1x1x16x64xf32> to vector<16x64xf32>
    %140 = arith.maximumf %137, %139 : vector<16x64xf32>
    %c0_104 = arith.constant 0 : index
    %c14_105 = arith.constant 14 : index
    %c0_106 = arith.constant 0 : index
    %c0_107 = arith.constant 0 : index
    %141 = vector.load %arg1[%c0_104, %c14_105, %c0_106, %c0_107] : memref<2x16x16x64xf32, #tpu.memory_space<vmem>>, vector<1x1x16x64xf32>
    %142 = vector.shape_cast %141 : vector<1x1x16x64xf32> to vector<16x64xf32>
    %143 = arith.maximumf %140, %142 : vector<16x64xf32>
    %c0_108 = arith.constant 0 : index
    %c15_109 = arith.constant 15 : index
    %c0_110 = arith.constant 0 : index
    %c0_111 = arith.constant 0 : index
    %144 = vector.load %arg1[%c0_108, %c15_109, %c0_110, %c0_111] : memref<2x16x16x64xf32, #tpu.memory_space<vmem>>, vector<1x1x16x64xf32>
    %145 = vector.shape_cast %144 : vector<1x1x16x64xf32> to vector<16x64xf32>
    %146 = arith.maximumf %143, %145 : vector<16x64xf32>
    %147 = arith.maximumf %134, %111 : vector<16x64xf32>
    %148 = arith.maximumf %137, %108 : vector<16x64xf32>
    %149 = arith.maximumf %140, %105 : vector<16x64xf32>
    %150 = arith.maximumf %143, %102 : vector<16x64xf32>
    %151 = vector.shape_cast %147 : vector<16x64xf32> to vector<1x16x64xf32>
    %152 = vector.shape_cast %148 : vector<16x64xf32> to vector<1x16x64xf32>
    %153 = vector.shape_cast %149 : vector<16x64xf32> to vector<1x16x64xf32>
    %154 = vector.shape_cast %150 : vector<16x64xf32> to vector<1x16x64xf32>
    %155 = vector.shape_cast %146 : vector<16x64xf32> to vector<1x16x64xf32>
    %156 = tpu.concatenate %151, %152, %153, %154, %155 in 0 : vector<1x16x64xf32>, vector<1x16x64xf32>, vector<1x16x64xf32>, vector<1x16x64xf32>, vector<1x16x64xf32> -> vector<5x16x64xf32>
    %157 = vector.extract_strided_slice %156 {offsets = [0, 3, 0], sizes = [5, 1, 64], strides = [1, 1, 1]} : vector<5x16x64xf32> to vector<5x1x64xf32>
    %158 = vector.shape_cast %157 : vector<5x1x64xf32> to vector<5x64xf32>
    %159 = vector.extract_strided_slice %156 {offsets = [0, 2, 0], sizes = [5, 1, 64], strides = [1, 1, 1]} : vector<5x16x64xf32> to vector<5x1x64xf32>
    %160 = vector.shape_cast %159 : vector<5x1x64xf32> to vector<5x64xf32>
    %161 = arith.maximumf %158, %160 : vector<5x64xf32>
    %162 = vector.extract_strided_slice %156 {offsets = [0, 1, 0], sizes = [5, 1, 64], strides = [1, 1, 1]} : vector<5x16x64xf32> to vector<5x1x64xf32>
    %163 = vector.shape_cast %162 : vector<5x1x64xf32> to vector<5x64xf32>
    %164 = arith.maximumf %161, %163 : vector<5x64xf32>
    %165 = vector.extract_strided_slice %156 {offsets = [0, 0, 0], sizes = [5, 1, 64], strides = [1, 1, 1]} : vector<5x16x64xf32> to vector<5x1x64xf32>
    %166 = vector.shape_cast %165 : vector<5x1x64xf32> to vector<5x64xf32>
    %167 = arith.maximumf %164, %166 : vector<5x64xf32>
    %168 = vector.extract_strided_slice %156 {offsets = [0, 4, 0], sizes = [5, 1, 64], strides = [1, 1, 1]} : vector<5x16x64xf32> to vector<5x1x64xf32>
    %169 = vector.shape_cast %168 : vector<5x1x64xf32> to vector<5x64xf32>
    %170 = vector.extract_strided_slice %156 {offsets = [0, 5, 0], sizes = [5, 1, 64], strides = [1, 1, 1]} : vector<5x16x64xf32> to vector<5x1x64xf32>
    %171 = vector.shape_cast %170 : vector<5x1x64xf32> to vector<5x64xf32>
    %172 = arith.maximumf %169, %171 : vector<5x64xf32>
    %173 = vector.extract_strided_slice %156 {offsets = [0, 6, 0], sizes = [5, 1, 64], strides = [1, 1, 1]} : vector<5x16x64xf32> to vector<5x1x64xf32>
    %174 = vector.shape_cast %173 : vector<5x1x64xf32> to vector<5x64xf32>
    %175 = arith.maximumf %172, %174 : vector<5x64xf32>
    %176 = vector.extract_strided_slice %156 {offsets = [0, 7, 0], sizes = [5, 1, 64], strides = [1, 1, 1]} : vector<5x16x64xf32> to vector<5x1x64xf32>
    %177 = vector.shape_cast %176 : vector<5x1x64xf32> to vector<5x64xf32>
    %178 = arith.maximumf %175, %177 : vector<5x64xf32>
    %179 = vector.extract_strided_slice %156 {offsets = [0, 8, 0], sizes = [5, 1, 64], strides = [1, 1, 1]} : vector<5x16x64xf32> to vector<5x1x64xf32>
    %180 = vector.shape_cast %179 : vector<5x1x64xf32> to vector<5x64xf32>
    %181 = arith.maximumf %178, %180 : vector<5x64xf32>
    %182 = vector.extract_strided_slice %156 {offsets = [0, 9, 0], sizes = [5, 1, 64], strides = [1, 1, 1]} : vector<5x16x64xf32> to vector<5x1x64xf32>
    %183 = vector.shape_cast %182 : vector<5x1x64xf32> to vector<5x64xf32>
    %184 = arith.maximumf %181, %183 : vector<5x64xf32>
    %185 = vector.extract_strided_slice %156 {offsets = [0, 10, 0], sizes = [5, 1, 64], strides = [1, 1, 1]} : vector<5x16x64xf32> to vector<5x1x64xf32>
    %186 = vector.shape_cast %185 : vector<5x1x64xf32> to vector<5x64xf32>
    %187 = arith.maximumf %184, %186 : vector<5x64xf32>
    %188 = vector.extract_strided_slice %156 {offsets = [0, 11, 0], sizes = [5, 1, 64], strides = [1, 1, 1]} : vector<5x16x64xf32> to vector<5x1x64xf32>
    %189 = vector.shape_cast %188 : vector<5x1x64xf32> to vector<5x64xf32>
    %190 = arith.maximumf %187, %189 : vector<5x64xf32>
    %191 = vector.extract_strided_slice %156 {offsets = [0, 12, 0], sizes = [5, 1, 64], strides = [1, 1, 1]} : vector<5x16x64xf32> to vector<5x1x64xf32>
    %192 = vector.shape_cast %191 : vector<5x1x64xf32> to vector<5x64xf32>
    %193 = arith.maximumf %190, %192 : vector<5x64xf32>
    %194 = vector.extract_strided_slice %156 {offsets = [0, 13, 0], sizes = [5, 1, 64], strides = [1, 1, 1]} : vector<5x16x64xf32> to vector<5x1x64xf32>
    %195 = vector.shape_cast %194 : vector<5x1x64xf32> to vector<5x64xf32>
    %196 = arith.maximumf %193, %195 : vector<5x64xf32>
    %197 = vector.extract_strided_slice %156 {offsets = [0, 14, 0], sizes = [5, 1, 64], strides = [1, 1, 1]} : vector<5x16x64xf32> to vector<5x1x64xf32>
    %198 = vector.shape_cast %197 : vector<5x1x64xf32> to vector<5x64xf32>
    %199 = arith.maximumf %196, %198 : vector<5x64xf32>
    %200 = vector.extract_strided_slice %156 {offsets = [0, 15, 0], sizes = [5, 1, 64], strides = [1, 1, 1]} : vector<5x16x64xf32> to vector<5x1x64xf32>
    %201 = vector.shape_cast %200 : vector<5x1x64xf32> to vector<5x64xf32>
    %202 = arith.maximumf %199, %201 : vector<5x64xf32>
    %203 = arith.maximumf %190, %167 : vector<5x64xf32>
    %204 = arith.maximumf %193, %164 : vector<5x64xf32>
    %205 = arith.maximumf %196, %161 : vector<5x64xf32>
    %206 = arith.maximumf %199, %158 : vector<5x64xf32>
    %207 = tpu.concatenate %203, %204, %205, %206, %202 in 0 : vector<5x64xf32>, vector<5x64xf32>, vector<5x64xf32>, vector<5x64xf32>, vector<5x64xf32> -> vector<25x64xf32>
    %c0_112 = arith.constant 0 : index
    %c5_113 = arith.constant 5 : index
    %c0_114 = arith.constant 0 : index
    %c0_115 = arith.constant 0 : index
    %208 = vector.load %arg1[%c0_112, %c5_113, %c0_114, %c0_115] : memref<2x16x16x64xf32, #tpu.memory_space<vmem>>, vector<1x1x16x64xf32>
    %209 = vector.shape_cast %208 : vector<1x1x16x64xf32> to vector<16x64xf32>
    %c0_116 = arith.constant 0 : index
    %c4_117 = arith.constant 4 : index
    %c0_118 = arith.constant 0 : index
    %c0_119 = arith.constant 0 : index
    %210 = vector.load %arg1[%c0_116, %c4_117, %c0_118, %c0_119] : memref<2x16x16x64xf32, #tpu.memory_space<vmem>>, vector<1x1x16x64xf32>
    %211 = vector.shape_cast %210 : vector<1x1x16x64xf32> to vector<16x64xf32>
    %212 = arith.maximumf %209, %211 : vector<16x64xf32>
    %c0_120 = arith.constant 0 : index
    %c3_121 = arith.constant 3 : index
    %c0_122 = arith.constant 0 : index
    %c0_123 = arith.constant 0 : index
    %213 = vector.load %arg1[%c0_120, %c3_121, %c0_122, %c0_123] : memref<2x16x16x64xf32, #tpu.memory_space<vmem>>, vector<1x1x16x64xf32>
    %214 = vector.shape_cast %213 : vector<1x1x16x64xf32> to vector<16x64xf32>
    %215 = arith.maximumf %212, %214 : vector<16x64xf32>
    %c0_124 = arith.constant 0 : index
    %c2_125 = arith.constant 2 : index
    %c0_126 = arith.constant 0 : index
    %c0_127 = arith.constant 0 : index
    %216 = vector.load %arg1[%c0_124, %c2_125, %c0_126, %c0_127] : memref<2x16x16x64xf32, #tpu.memory_space<vmem>>, vector<1x1x16x64xf32>
    %217 = vector.shape_cast %216 : vector<1x1x16x64xf32> to vector<16x64xf32>
    %218 = arith.maximumf %215, %217 : vector<16x64xf32>
    %c0_128 = arith.constant 0 : index
    %c1_129 = arith.constant 1 : index
    %c0_130 = arith.constant 0 : index
    %c0_131 = arith.constant 0 : index
    %219 = vector.load %arg1[%c0_128, %c1_129, %c0_130, %c0_131] : memref<2x16x16x64xf32, #tpu.memory_space<vmem>>, vector<1x1x16x64xf32>
    %220 = vector.shape_cast %219 : vector<1x1x16x64xf32> to vector<16x64xf32>
    %221 = arith.maximumf %218, %220 : vector<16x64xf32>
    %c0_132 = arith.constant 0 : index
    %c0_133 = arith.constant 0 : index
    %c0_134 = arith.constant 0 : index
    %c0_135 = arith.constant 0 : index
    %222 = vector.load %arg1[%c0_132, %c0_133, %c0_134, %c0_135] : memref<2x16x16x64xf32, #tpu.memory_space<vmem>>, vector<1x1x16x64xf32>
    %223 = vector.shape_cast %222 : vector<1x1x16x64xf32> to vector<16x64xf32>
    %224 = arith.maximumf %221, %223 : vector<16x64xf32>
    %c0_136 = arith.constant 0 : index
    %c6_137 = arith.constant 6 : index
    %c0_138 = arith.constant 0 : index
    %c0_139 = arith.constant 0 : index
    %225 = vector.load %arg1[%c0_136, %c6_137, %c0_138, %c0_139] : memref<2x16x16x64xf32, #tpu.memory_space<vmem>>, vector<1x1x16x64xf32>
    %226 = vector.shape_cast %225 : vector<1x1x16x64xf32> to vector<16x64xf32>
    %c0_140 = arith.constant 0 : index
    %c7_141 = arith.constant 7 : index
    %c0_142 = arith.constant 0 : index
    %c0_143 = arith.constant 0 : index
    %227 = vector.load %arg1[%c0_140, %c7_141, %c0_142, %c0_143] : memref<2x16x16x64xf32, #tpu.memory_space<vmem>>, vector<1x1x16x64xf32>
    %228 = vector.shape_cast %227 : vector<1x1x16x64xf32> to vector<16x64xf32>
    %229 = arith.maximumf %226, %228 : vector<16x64xf32>
    %c0_144 = arith.constant 0 : index
    %c8_145 = arith.constant 8 : index
    %c0_146 = arith.constant 0 : index
    %c0_147 = arith.constant 0 : index
    %230 = vector.load %arg1[%c0_144, %c8_145, %c0_146, %c0_147] : memref<2x16x16x64xf32, #tpu.memory_space<vmem>>, vector<1x1x16x64xf32>
    %231 = vector.shape_cast %230 : vector<1x1x16x64xf32> to vector<16x64xf32>
    %232 = arith.maximumf %229, %231 : vector<16x64xf32>
    %c0_148 = arith.constant 0 : index
    %c9_149 = arith.constant 9 : index
    %c0_150 = arith.constant 0 : index
    %c0_151 = arith.constant 0 : index
    %233 = vector.load %arg1[%c0_148, %c9_149, %c0_150, %c0_151] : memref<2x16x16x64xf32, #tpu.memory_space<vmem>>, vector<1x1x16x64xf32>
    %234 = vector.shape_cast %233 : vector<1x1x16x64xf32> to vector<16x64xf32>
    %235 = arith.maximumf %232, %234 : vector<16x64xf32>
    %c0_152 = arith.constant 0 : index
    %c10_153 = arith.constant 10 : index
    %c0_154 = arith.constant 0 : index
    %c0_155 = arith.constant 0 : index
    %236 = vector.load %arg1[%c0_152, %c10_153, %c0_154, %c0_155] : memref<2x16x16x64xf32, #tpu.memory_space<vmem>>, vector<1x1x16x64xf32>
    %237 = vector.shape_cast %236 : vector<1x1x16x64xf32> to vector<16x64xf32>
    %238 = arith.maximumf %235, %237 : vector<16x64xf32>
    %c0_156 = arith.constant 0 : index
    %c11_157 = arith.constant 11 : index
    %c0_158 = arith.constant 0 : index
    %c0_159 = arith.constant 0 : index
    %239 = vector.load %arg1[%c0_156, %c11_157, %c0_158, %c0_159] : memref<2x16x16x64xf32, #tpu.memory_space<vmem>>, vector<1x1x16x64xf32>
    %240 = vector.shape_cast %239 : vector<1x1x16x64xf32> to vector<16x64xf32>
    %241 = arith.maximumf %238, %240 : vector<16x64xf32>
    %c0_160 = arith.constant 0 : index
    %c12_161 = arith.constant 12 : index
    %c0_162 = arith.constant 0 : index
    %c0_163 = arith.constant 0 : index
    %242 = vector.load %arg1[%c0_160, %c12_161, %c0_162, %c0_163] : memref<2x16x16x64xf32, #tpu.memory_space<vmem>>, vector<1x1x16x64xf32>
    %243 = vector.shape_cast %242 : vector<1x1x16x64xf32> to vector<16x64xf32>
    %244 = arith.maximumf %241, %243 : vector<16x64xf32>
    %c0_164 = arith.constant 0 : index
    %c13_165 = arith.constant 13 : index
    %c0_166 = arith.constant 0 : index
    %c0_167 = arith.constant 0 : index
    %245 = vector.load %arg1[%c0_164, %c13_165, %c0_166, %c0_167] : memref<2x16x16x64xf32, #tpu.memory_space<vmem>>, vector<1x1x16x64xf32>
    %246 = vector.shape_cast %245 : vector<1x1x16x64xf32> to vector<16x64xf32>
    %247 = arith.maximumf %244, %246 : vector<16x64xf32>
    %c0_168 = arith.constant 0 : index
    %c14_169 = arith.constant 14 : index
    %c0_170 = arith.constant 0 : index
    %c0_171 = arith.constant 0 : index
    %248 = vector.load %arg1[%c0_168, %c14_169, %c0_170, %c0_171] : memref<2x16x16x64xf32, #tpu.memory_space<vmem>>, vector<1x1x16x64xf32>
    %249 = vector.shape_cast %248 : vector<1x1x16x64xf32> to vector<16x64xf32>
    %250 = arith.maximumf %247, %249 : vector<16x64xf32>
    %c0_172 = arith.constant 0 : index
    %c15_173 = arith.constant 15 : index
    %c0_174 = arith.constant 0 : index
    %c0_175 = arith.constant 0 : index
    %251 = vector.load %arg1[%c0_172, %c15_173, %c0_174, %c0_175] : memref<2x16x16x64xf32, #tpu.memory_space<vmem>>, vector<1x1x16x64xf32>
    %252 = vector.shape_cast %251 : vector<1x1x16x64xf32> to vector<16x64xf32>
    %253 = arith.maximumf %250, %252 : vector<16x64xf32>
    %254 = arith.maximumf %235, %224 : vector<16x64xf32>
    %255 = arith.maximumf %238, %221 : vector<16x64xf32>
    %256 = arith.maximumf %241, %218 : vector<16x64xf32>
    %257 = arith.maximumf %244, %215 : vector<16x64xf32>
    %258 = arith.maximumf %247, %212 : vector<16x64xf32>
    %259 = arith.maximumf %250, %209 : vector<16x64xf32>
    %260 = vector.shape_cast %254 : vector<16x64xf32> to vector<1x16x64xf32>
    %261 = vector.shape_cast %255 : vector<16x64xf32> to vector<1x16x64xf32>
    %262 = vector.shape_cast %256 : vector<16x64xf32> to vector<1x16x64xf32>
    %263 = vector.shape_cast %257 : vector<16x64xf32> to vector<1x16x64xf32>
    %264 = vector.shape_cast %258 : vector<16x64xf32> to vector<1x16x64xf32>
    %265 = vector.shape_cast %259 : vector<16x64xf32> to vector<1x16x64xf32>
    %266 = vector.shape_cast %253 : vector<16x64xf32> to vector<1x16x64xf32>
    %267 = tpu.concatenate %260, %261, %262, %263, %264, %265, %266 in 0 : vector<1x16x64xf32>, vector<1x16x64xf32>, vector<1x16x64xf32>, vector<1x16x64xf32>, vector<1x16x64xf32>, vector<1x16x64xf32>, vector<1x16x64xf32> -> vector<7x16x64xf32>
    %268 = vector.extract_strided_slice %267 {offsets = [0, 5, 0], sizes = [7, 1, 64], strides = [1, 1, 1]} : vector<7x16x64xf32> to vector<7x1x64xf32>
    %269 = vector.shape_cast %268 : vector<7x1x64xf32> to vector<7x64xf32>
    %270 = vector.extract_strided_slice %267 {offsets = [0, 4, 0], sizes = [7, 1, 64], strides = [1, 1, 1]} : vector<7x16x64xf32> to vector<7x1x64xf32>
    %271 = vector.shape_cast %270 : vector<7x1x64xf32> to vector<7x64xf32>
    %272 = arith.maximumf %269, %271 : vector<7x64xf32>
    %273 = vector.extract_strided_slice %267 {offsets = [0, 3, 0], sizes = [7, 1, 64], strides = [1, 1, 1]} : vector<7x16x64xf32> to vector<7x1x64xf32>
    %274 = vector.shape_cast %273 : vector<7x1x64xf32> to vector<7x64xf32>
    %275 = arith.maximumf %272, %274 : vector<7x64xf32>
    %276 = vector.extract_strided_slice %267 {offsets = [0, 2, 0], sizes = [7, 1, 64], strides = [1, 1, 1]} : vector<7x16x64xf32> to vector<7x1x64xf32>
    %277 = vector.shape_cast %276 : vector<7x1x64xf32> to vector<7x64xf32>
    %278 = arith.maximumf %275, %277 : vector<7x64xf32>
    %279 = vector.extract_strided_slice %267 {offsets = [0, 1, 0], sizes = [7, 1, 64], strides = [1, 1, 1]} : vector<7x16x64xf32> to vector<7x1x64xf32>
    %280 = vector.shape_cast %279 : vector<7x1x64xf32> to vector<7x64xf32>
    %281 = arith.maximumf %278, %280 : vector<7x64xf32>
    %282 = vector.extract_strided_slice %267 {offsets = [0, 0, 0], sizes = [7, 1, 64], strides = [1, 1, 1]} : vector<7x16x64xf32> to vector<7x1x64xf32>
    %283 = vector.shape_cast %282 : vector<7x1x64xf32> to vector<7x64xf32>
    %284 = arith.maximumf %281, %283 : vector<7x64xf32>
    %285 = vector.extract_strided_slice %267 {offsets = [0, 6, 0], sizes = [7, 1, 64], strides = [1, 1, 1]} : vector<7x16x64xf32> to vector<7x1x64xf32>
    %286 = vector.shape_cast %285 : vector<7x1x64xf32> to vector<7x64xf32>
    %287 = vector.extract_strided_slice %267 {offsets = [0, 7, 0], sizes = [7, 1, 64], strides = [1, 1, 1]} : vector<7x16x64xf32> to vector<7x1x64xf32>
    %288 = vector.shape_cast %287 : vector<7x1x64xf32> to vector<7x64xf32>
    %289 = arith.maximumf %286, %288 : vector<7x64xf32>
    %290 = vector.extract_strided_slice %267 {offsets = [0, 8, 0], sizes = [7, 1, 64], strides = [1, 1, 1]} : vector<7x16x64xf32> to vector<7x1x64xf32>
    %291 = vector.shape_cast %290 : vector<7x1x64xf32> to vector<7x64xf32>
    %292 = arith.maximumf %289, %291 : vector<7x64xf32>
    %293 = vector.extract_strided_slice %267 {offsets = [0, 9, 0], sizes = [7, 1, 64], strides = [1, 1, 1]} : vector<7x16x64xf32> to vector<7x1x64xf32>
    %294 = vector.shape_cast %293 : vector<7x1x64xf32> to vector<7x64xf32>
    %295 = arith.maximumf %292, %294 : vector<7x64xf32>
    %296 = vector.extract_strided_slice %267 {offsets = [0, 10, 0], sizes = [7, 1, 64], strides = [1, 1, 1]} : vector<7x16x64xf32> to vector<7x1x64xf32>
    %297 = vector.shape_cast %296 : vector<7x1x64xf32> to vector<7x64xf32>
    %298 = arith.maximumf %295, %297 : vector<7x64xf32>
    %299 = vector.extract_strided_slice %267 {offsets = [0, 11, 0], sizes = [7, 1, 64], strides = [1, 1, 1]} : vector<7x16x64xf32> to vector<7x1x64xf32>
    %300 = vector.shape_cast %299 : vector<7x1x64xf32> to vector<7x64xf32>
    %301 = arith.maximumf %298, %300 : vector<7x64xf32>
    %302 = vector.extract_strided_slice %267 {offsets = [0, 12, 0], sizes = [7, 1, 64], strides = [1, 1, 1]} : vector<7x16x64xf32> to vector<7x1x64xf32>
    %303 = vector.shape_cast %302 : vector<7x1x64xf32> to vector<7x64xf32>
    %304 = arith.maximumf %301, %303 : vector<7x64xf32>
    %305 = vector.extract_strided_slice %267 {offsets = [0, 13, 0], sizes = [7, 1, 64], strides = [1, 1, 1]} : vector<7x16x64xf32> to vector<7x1x64xf32>
    %306 = vector.shape_cast %305 : vector<7x1x64xf32> to vector<7x64xf32>
    %307 = arith.maximumf %304, %306 : vector<7x64xf32>
    %308 = vector.extract_strided_slice %267 {offsets = [0, 14, 0], sizes = [7, 1, 64], strides = [1, 1, 1]} : vector<7x16x64xf32> to vector<7x1x64xf32>
    %309 = vector.shape_cast %308 : vector<7x1x64xf32> to vector<7x64xf32>
    %310 = arith.maximumf %307, %309 : vector<7x64xf32>
    %311 = vector.extract_strided_slice %267 {offsets = [0, 15, 0], sizes = [7, 1, 64], strides = [1, 1, 1]} : vector<7x16x64xf32> to vector<7x1x64xf32>
    %312 = vector.shape_cast %311 : vector<7x1x64xf32> to vector<7x64xf32>
    %313 = arith.maximumf %310, %312 : vector<7x64xf32>
    %314 = arith.maximumf %295, %284 : vector<7x64xf32>
    %315 = arith.maximumf %298, %281 : vector<7x64xf32>
    %316 = arith.maximumf %301, %278 : vector<7x64xf32>
    %317 = arith.maximumf %304, %275 : vector<7x64xf32>
    %318 = arith.maximumf %307, %272 : vector<7x64xf32>
    %319 = arith.maximumf %310, %269 : vector<7x64xf32>
    %320 = tpu.concatenate %314, %315, %316, %317, %318, %319, %313 in 0 : vector<7x64xf32>, vector<7x64xf32>, vector<7x64xf32>, vector<7x64xf32>, vector<7x64xf32>, vector<7x64xf32>, vector<7x64xf32> -> vector<49x64xf32>
    %321 = tpu.concatenate %100, %207, %320 in 0 : vector<9x64xf32>, vector<25x64xf32>, vector<49x64xf32> -> vector<83x64xf32>
    %c0_176 = arith.constant 0 : index
    %c0_177 = arith.constant 0 : index
    %322 = vector.load %arg2[%c0_176, %c0_177] : memref<64x48xf32, #tpu.memory_space<vmem>>, vector<64x48xf32>
    %cst = arith.constant dense<0.000000e+00> : vector<83x48xf32>
    %323 = tpu.matmul %321, %322, %cst {dimension_numbers = #tpu.dot_dimension_numbers<[1], [0], [0], [1], [0, 0, 1, 1], [], []>} : vector<83x64xf32>, vector<64x48xf32>, vector<83x48xf32> -> vector<83x48xf32>
    %c0_178 = arith.constant 0 : index
    %c0_179 = arith.constant 0 : index
    %324 = vector.load %arg3[%c0_178, %c0_179] : memref<1x48xf32, #tpu.memory_space<vmem>>, vector<1x48xf32>
    %325 = vector.broadcast %324 : vector<1x48xf32> to vector<83x48xf32>
    %326 = arith.addf %323, %325 : vector<83x48xf32>
    %cst_180 = arith.constant 0.000000e+00 : f32
    %327 = vector.broadcast %cst_180 : f32 to vector<83x48xf32>
    %328 = arith.maximumf %326, %327 : vector<83x48xf32>
    %cst_181 = arith.constant 0.000000e+00 : f32
    %329 = vector.broadcast %cst_181 : f32 to vector<1x64xf32>
    %330 = vector.extract_strided_slice %328 {offsets = [0, 0], sizes = [9, 16], strides = [1, 1]} : vector<83x48xf32> to vector<9x16xf32>
    %331 = vector.extract_strided_slice %330 {offsets = [0, 0], sizes = [1, 16], strides = [1, 1]} : vector<9x16xf32> to vector<1x16xf32>
    %c0_182 = arith.constant 0 : index
    %c0_183 = arith.constant 0 : index
    %332 = vector.load %arg11[%c0_182, %c0_183] : memref<1x144xf32, #tpu.memory_space<vmem>>, vector<1x16xf32>
    tpu.vector_store %arg11[%c0_182, %c0_183], %331 {strides = array<i32>} : memref<1x144xf32, #tpu.memory_space<vmem>>, vector<1x16xf32>,
    %333 = vector.extract_strided_slice %330 {offsets = [1, 0], sizes = [1, 16], strides = [1, 1]} : vector<9x16xf32> to vector<1x16xf32>
    %c0_184 = arith.constant 0 : index
    %c16 = arith.constant 16 : index
    %334 = vector.load %arg11[%c0_184, %c16] : memref<1x144xf32, #tpu.memory_space<vmem>>, vector<1x16xf32>
    tpu.vector_store %arg11[%c0_184, %c16], %333 {strides = array<i32>} : memref<1x144xf32, #tpu.memory_space<vmem>>, vector<1x16xf32>,
    %335 = vector.extract_strided_slice %330 {offsets = [2, 0], sizes = [1, 16], strides = [1, 1]} : vector<9x16xf32> to vector<1x16xf32>
    %c0_185 = arith.constant 0 : index
    %c32 = arith.constant 32 : index
    %336 = vector.load %arg11[%c0_185, %c32] : memref<1x144xf32, #tpu.memory_space<vmem>>, vector<1x16xf32>
    tpu.vector_store %arg11[%c0_185, %c32], %335 {strides = array<i32>} : memref<1x144xf32, #tpu.memory_space<vmem>>, vector<1x16xf32>,
    %337 = vector.extract_strided_slice %330 {offsets = [3, 0], sizes = [1, 16], strides = [1, 1]} : vector<9x16xf32> to vector<1x16xf32>
    %c0_186 = arith.constant 0 : index
    %c48 = arith.constant 48 : index
    %338 = vector.load %arg11[%c0_186, %c48] : memref<1x144xf32, #tpu.memory_space<vmem>>, vector<1x16xf32>
    tpu.vector_store %arg11[%c0_186, %c48], %337 {strides = array<i32>} : memref<1x144xf32, #tpu.memory_space<vmem>>, vector<1x16xf32>,
    %339 = vector.extract_strided_slice %330 {offsets = [4, 0], sizes = [1, 16], strides = [1, 1]} : vector<9x16xf32> to vector<1x16xf32>
    %c0_187 = arith.constant 0 : index
    %c64 = arith.constant 64 : index
    %340 = vector.load %arg11[%c0_187, %c64] : memref<1x144xf32, #tpu.memory_space<vmem>>, vector<1x16xf32>
    tpu.vector_store %arg11[%c0_187, %c64], %339 {strides = array<i32>} : memref<1x144xf32, #tpu.memory_space<vmem>>, vector<1x16xf32>,
    %341 = vector.extract_strided_slice %330 {offsets = [5, 0], sizes = [1, 16], strides = [1, 1]} : vector<9x16xf32> to vector<1x16xf32>
    %c0_188 = arith.constant 0 : index
    %c80 = arith.constant 80 : index
    %342 = vector.load %arg11[%c0_188, %c80] : memref<1x144xf32, #tpu.memory_space<vmem>>, vector<1x16xf32>
    tpu.vector_store %arg11[%c0_188, %c80], %341 {strides = array<i32>} : memref<1x144xf32, #tpu.memory_space<vmem>>, vector<1x16xf32>,
    %343 = vector.extract_strided_slice %330 {offsets = [6, 0], sizes = [1, 16], strides = [1, 1]} : vector<9x16xf32> to vector<1x16xf32>
    %c0_189 = arith.constant 0 : index
    %c96 = arith.constant 96 : index
    %344 = vector.load %arg11[%c0_189, %c96] : memref<1x144xf32, #tpu.memory_space<vmem>>, vector<1x16xf32>
    tpu.vector_store %arg11[%c0_189, %c96], %343 {strides = array<i32>} : memref<1x144xf32, #tpu.memory_space<vmem>>, vector<1x16xf32>,
    %345 = vector.extract_strided_slice %330 {offsets = [7, 0], sizes = [1, 16], strides = [1, 1]} : vector<9x16xf32> to vector<1x16xf32>
    %c0_190 = arith.constant 0 : index
    %c112 = arith.constant 112 : index
    %346 = vector.load %arg11[%c0_190, %c112] : memref<1x144xf32, #tpu.memory_space<vmem>>, vector<1x16xf32>
    tpu.vector_store %arg11[%c0_190, %c112], %345 {strides = array<i32>} : memref<1x144xf32, #tpu.memory_space<vmem>>, vector<1x16xf32>,
    %347 = vector.extract_strided_slice %330 {offsets = [8, 0], sizes = [1, 16], strides = [1, 1]} : vector<9x16xf32> to vector<1x16xf32>
    %c0_191 = arith.constant 0 : index
    %c128 = arith.constant 128 : index
    %348 = vector.load %arg11[%c0_191, %c128] : memref<1x144xf32, #tpu.memory_space<vmem>>, vector<1x16xf32>
    tpu.vector_store %arg11[%c0_191, %c128], %347 {strides = array<i32>} : memref<1x144xf32, #tpu.memory_space<vmem>>, vector<1x16xf32>,
    %c0_192 = arith.constant 0 : index
    %c0_193 = arith.constant 0 : index
    %349 = vector.load %arg11[%c0_192, %c0_193] : memref<1x144xf32, #tpu.memory_space<vmem>>, vector<1x144xf32>
    %c0_194 = arith.constant 0 : index
    %c0_195 = arith.constant 0 : index
    %350 = vector.load %arg4[%c0_194, %c0_195] : memref<144x64xf32, #tpu.memory_space<vmem>>, vector<144x64xf32>
    %cst_196 = arith.constant dense<0.000000e+00> : vector<1x64xf32>
    %351 = tpu.matmul %349, %350, %cst_196 {dimension_numbers = #tpu.dot_dimension_numbers<[1], [0], [0], [1], [0, 0, 1, 1], [], []>} : vector<1x144xf32>, vector<144x64xf32>, vector<1x64xf32> -> vector<1x64xf32>
    %c0_197 = arith.constant 0 : index
    %c0_198 = arith.constant 0 : index
    %352 = vector.load %arg7[%c0_197, %c0_198] : memref<1x192xf32, #tpu.memory_space<vmem>>, vector<1x64xf32>
    %353 = arith.addf %351, %352 : vector<1x64xf32>
    %cst_199 = arith.constant 0.000000e+00 : f32
    %354 = vector.broadcast %cst_199 : f32 to vector<1x64xf32>
    %355 = arith.maximumf %353, %354 : vector<1x64xf32>
    %356 = arith.addf %329, %355 : vector<1x64xf32>
    %357 = vector.extract_strided_slice %328 {offsets = [9, 16], sizes = [25, 16], strides = [1, 1]} : vector<83x48xf32> to vector<25x16xf32>
    %358 = vector.extract_strided_slice %357 {offsets = [0, 0], sizes = [1, 16], strides = [1, 1]} : vector<25x16xf32> to vector<1x16xf32>
    %c0_200 = arith.constant 0 : index
    %c0_201 = arith.constant 0 : index
    %359 = vector.load %arg12[%c0_200, %c0_201] : memref<1x400xf32, #tpu.memory_space<vmem>>, vector<1x16xf32>
    tpu.vector_store %arg12[%c0_200, %c0_201], %358 {strides = array<i32>} : memref<1x400xf32, #tpu.memory_space<vmem>>, vector<1x16xf32>,
    %360 = vector.extract_strided_slice %357 {offsets = [1, 0], sizes = [1, 16], strides = [1, 1]} : vector<25x16xf32> to vector<1x16xf32>
    %c0_202 = arith.constant 0 : index
    %c16_203 = arith.constant 16 : index
    %361 = vector.load %arg12[%c0_202, %c16_203] : memref<1x400xf32, #tpu.memory_space<vmem>>, vector<1x16xf32>
    tpu.vector_store %arg12[%c0_202, %c16_203], %360 {strides = array<i32>} : memref<1x400xf32, #tpu.memory_space<vmem>>, vector<1x16xf32>,
    %362 = vector.extract_strided_slice %357 {offsets = [2, 0], sizes = [1, 16], strides = [1, 1]} : vector<25x16xf32> to vector<1x16xf32>
    %c0_204 = arith.constant 0 : index
    %c32_205 = arith.constant 32 : index
    %363 = vector.load %arg12[%c0_204, %c32_205] : memref<1x400xf32, #tpu.memory_space<vmem>>, vector<1x16xf32>
    tpu.vector_store %arg12[%c0_204, %c32_205], %362 {strides = array<i32>} : memref<1x400xf32, #tpu.memory_space<vmem>>, vector<1x16xf32>,
    %364 = vector.extract_strided_slice %357 {offsets = [3, 0], sizes = [1, 16], strides = [1, 1]} : vector<25x16xf32> to vector<1x16xf32>
    %c0_206 = arith.constant 0 : index
    %c48_207 = arith.constant 48 : index
    %365 = vector.load %arg12[%c0_206, %c48_207] : memref<1x400xf32, #tpu.memory_space<vmem>>, vector<1x16xf32>
    tpu.vector_store %arg12[%c0_206, %c48_207], %364 {strides = array<i32>} : memref<1x400xf32, #tpu.memory_space<vmem>>, vector<1x16xf32>,
    %366 = vector.extract_strided_slice %357 {offsets = [4, 0], sizes = [1, 16], strides = [1, 1]} : vector<25x16xf32> to vector<1x16xf32>
    %c0_208 = arith.constant 0 : index
    %c64_209 = arith.constant 64 : index
    %367 = vector.load %arg12[%c0_208, %c64_209] : memref<1x400xf32, #tpu.memory_space<vmem>>, vector<1x16xf32>
    tpu.vector_store %arg12[%c0_208, %c64_209], %366 {strides = array<i32>} : memref<1x400xf32, #tpu.memory_space<vmem>>, vector<1x16xf32>,
    %368 = vector.extract_strided_slice %357 {offsets = [5, 0], sizes = [1, 16], strides = [1, 1]} : vector<25x16xf32> to vector<1x16xf32>
    %c0_210 = arith.constant 0 : index
    %c80_211 = arith.constant 80 : index
    %369 = vector.load %arg12[%c0_210, %c80_211] : memref<1x400xf32, #tpu.memory_space<vmem>>, vector<1x16xf32>
    tpu.vector_store %arg12[%c0_210, %c80_211], %368 {strides = array<i32>} : memref<1x400xf32, #tpu.memory_space<vmem>>, vector<1x16xf32>,
    %370 = vector.extract_strided_slice %357 {offsets = [6, 0], sizes = [1, 16], strides = [1, 1]} : vector<25x16xf32> to vector<1x16xf32>
    %c0_212 = arith.constant 0 : index
    %c96_213 = arith.constant 96 : index
    %371 = vector.load %arg12[%c0_212, %c96_213] : memref<1x400xf32, #tpu.memory_space<vmem>>, vector<1x16xf32>
    tpu.vector_store %arg12[%c0_212, %c96_213], %370 {strides = array<i32>} : memref<1x400xf32, #tpu.memory_space<vmem>>, vector<1x16xf32>,
    %372 = vector.extract_strided_slice %357 {offsets = [7, 0], sizes = [1, 16], strides = [1, 1]} : vector<25x16xf32> to vector<1x16xf32>
    %c0_214 = arith.constant 0 : index
    %c112_215 = arith.constant 112 : index
    %373 = vector.load %arg12[%c0_214, %c112_215] : memref<1x400xf32, #tpu.memory_space<vmem>>, vector<1x16xf32>
    tpu.vector_store %arg12[%c0_214, %c112_215], %372 {strides = array<i32>} : memref<1x400xf32, #tpu.memory_space<vmem>>, vector<1x16xf32>,
    %374 = vector.extract_strided_slice %357 {offsets = [8, 0], sizes = [1, 16], strides = [1, 1]} : vector<25x16xf32> to vector<1x16xf32>
    %c0_216 = arith.constant 0 : index
    %c128_217 = arith.constant 128 : index
    %375 = vector.load %arg12[%c0_216, %c128_217] : memref<1x400xf32, #tpu.memory_space<vmem>>, vector<1x16xf32>
    tpu.vector_store %arg12[%c0_216, %c128_217], %374 {strides = array<i32>} : memref<1x400xf32, #tpu.memory_space<vmem>>, vector<1x16xf32>,
    %376 = vector.extract_strided_slice %357 {offsets = [9, 0], sizes = [1, 16], strides = [1, 1]} : vector<25x16xf32> to vector<1x16xf32>
    %c0_218 = arith.constant 0 : index
    %c144 = arith.constant 144 : index
    %377 = vector.load %arg12[%c0_218, %c144] : memref<1x400xf32, #tpu.memory_space<vmem>>, vector<1x16xf32>
    tpu.vector_store %arg12[%c0_218, %c144], %376 {strides = array<i32>} : memref<1x400xf32, #tpu.memory_space<vmem>>, vector<1x16xf32>,
    %378 = vector.extract_strided_slice %357 {offsets = [10, 0], sizes = [1, 16], strides = [1, 1]} : vector<25x16xf32> to vector<1x16xf32>
    %c0_219 = arith.constant 0 : index
    %c160 = arith.constant 160 : index
    %379 = vector.load %arg12[%c0_219, %c160] : memref<1x400xf32, #tpu.memory_space<vmem>>, vector<1x16xf32>
    tpu.vector_store %arg12[%c0_219, %c160], %378 {strides = array<i32>} : memref<1x400xf32, #tpu.memory_space<vmem>>, vector<1x16xf32>,
    %380 = vector.extract_strided_slice %357 {offsets = [11, 0], sizes = [1, 16], strides = [1, 1]} : vector<25x16xf32> to vector<1x16xf32>
    %c0_220 = arith.constant 0 : index
    %c176 = arith.constant 176 : index
    %381 = vector.load %arg12[%c0_220, %c176] : memref<1x400xf32, #tpu.memory_space<vmem>>, vector<1x16xf32>
    tpu.vector_store %arg12[%c0_220, %c176], %380 {strides = array<i32>} : memref<1x400xf32, #tpu.memory_space<vmem>>, vector<1x16xf32>,
    %382 = vector.extract_strided_slice %357 {offsets = [12, 0], sizes = [1, 16], strides = [1, 1]} : vector<25x16xf32> to vector<1x16xf32>
    %c0_221 = arith.constant 0 : index
    %c192 = arith.constant 192 : index
    %383 = vector.load %arg12[%c0_221, %c192] : memref<1x400xf32, #tpu.memory_space<vmem>>, vector<1x16xf32>
    tpu.vector_store %arg12[%c0_221, %c192], %382 {strides = array<i32>} : memref<1x400xf32, #tpu.memory_space<vmem>>, vector<1x16xf32>,
    %384 = vector.extract_strided_slice %357 {offsets = [13, 0], sizes = [1, 16], strides = [1, 1]} : vector<25x16xf32> to vector<1x16xf32>
    %c0_222 = arith.constant 0 : index
    %c208 = arith.constant 208 : index
    %385 = vector.load %arg12[%c0_222, %c208] : memref<1x400xf32, #tpu.memory_space<vmem>>, vector<1x16xf32>
    tpu.vector_store %arg12[%c0_222, %c208], %384 {strides = array<i32>} : memref<1x400xf32, #tpu.memory_space<vmem>>, vector<1x16xf32>,
    %386 = vector.extract_strided_slice %357 {offsets = [14, 0], sizes = [1, 16], strides = [1, 1]} : vector<25x16xf32> to vector<1x16xf32>
    %c0_223 = arith.constant 0 : index
    %c224 = arith.constant 224 : index
    %387 = vector.load %arg12[%c0_223, %c224] : memref<1x400xf32, #tpu.memory_space<vmem>>, vector<1x16xf32>
    tpu.vector_store %arg12[%c0_223, %c224], %386 {strides = array<i32>} : memref<1x400xf32, #tpu.memory_space<vmem>>, vector<1x16xf32>,
    %388 = vector.extract_strided_slice %357 {offsets = [15, 0], sizes = [1, 16], strides = [1, 1]} : vector<25x16xf32> to vector<1x16xf32>
    %c0_224 = arith.constant 0 : index
    %c240 = arith.constant 240 : index
    %389 = vector.load %arg12[%c0_224, %c240] : memref<1x400xf32, #tpu.memory_space<vmem>>, vector<1x16xf32>
    tpu.vector_store %arg12[%c0_224, %c240], %388 {strides = array<i32>} : memref<1x400xf32, #tpu.memory_space<vmem>>, vector<1x16xf32>,
    %390 = vector.extract_strided_slice %357 {offsets = [16, 0], sizes = [1, 16], strides = [1, 1]} : vector<25x16xf32> to vector<1x16xf32>
    %c0_225 = arith.constant 0 : index
    %c256 = arith.constant 256 : index
    %391 = vector.load %arg12[%c0_225, %c256] : memref<1x400xf32, #tpu.memory_space<vmem>>, vector<1x16xf32>
    tpu.vector_store %arg12[%c0_225, %c256], %390 {strides = array<i32>} : memref<1x400xf32, #tpu.memory_space<vmem>>, vector<1x16xf32>,
    %392 = vector.extract_strided_slice %357 {offsets = [17, 0], sizes = [1, 16], strides = [1, 1]} : vector<25x16xf32> to vector<1x16xf32>
    %c0_226 = arith.constant 0 : index
    %c272 = arith.constant 272 : index
    %393 = vector.load %arg12[%c0_226, %c272] : memref<1x400xf32, #tpu.memory_space<vmem>>, vector<1x16xf32>
    tpu.vector_store %arg12[%c0_226, %c272], %392 {strides = array<i32>} : memref<1x400xf32, #tpu.memory_space<vmem>>, vector<1x16xf32>,
    %394 = vector.extract_strided_slice %357 {offsets = [18, 0], sizes = [1, 16], strides = [1, 1]} : vector<25x16xf32> to vector<1x16xf32>
    %c0_227 = arith.constant 0 : index
    %c288 = arith.constant 288 : index
    %395 = vector.load %arg12[%c0_227, %c288] : memref<1x400xf32, #tpu.memory_space<vmem>>, vector<1x16xf32>
    tpu.vector_store %arg12[%c0_227, %c288], %394 {strides = array<i32>} : memref<1x400xf32, #tpu.memory_space<vmem>>, vector<1x16xf32>,
    %396 = vector.extract_strided_slice %357 {offsets = [19, 0], sizes = [1, 16], strides = [1, 1]} : vector<25x16xf32> to vector<1x16xf32>
    %c0_228 = arith.constant 0 : index
    %c304 = arith.constant 304 : index
    %397 = vector.load %arg12[%c0_228, %c304] : memref<1x400xf32, #tpu.memory_space<vmem>>, vector<1x16xf32>
    tpu.vector_store %arg12[%c0_228, %c304], %396 {strides = array<i32>} : memref<1x400xf32, #tpu.memory_space<vmem>>, vector<1x16xf32>,
    %398 = vector.extract_strided_slice %357 {offsets = [20, 0], sizes = [1, 16], strides = [1, 1]} : vector<25x16xf32> to vector<1x16xf32>
    %c0_229 = arith.constant 0 : index
    %c320 = arith.constant 320 : index
    %399 = vector.load %arg12[%c0_229, %c320] : memref<1x400xf32, #tpu.memory_space<vmem>>, vector<1x16xf32>
    tpu.vector_store %arg12[%c0_229, %c320], %398 {strides = array<i32>} : memref<1x400xf32, #tpu.memory_space<vmem>>, vector<1x16xf32>,
    %400 = vector.extract_strided_slice %357 {offsets = [21, 0], sizes = [1, 16], strides = [1, 1]} : vector<25x16xf32> to vector<1x16xf32>
    %c0_230 = arith.constant 0 : index
    %c336 = arith.constant 336 : index
    %401 = vector.load %arg12[%c0_230, %c336] : memref<1x400xf32, #tpu.memory_space<vmem>>, vector<1x16xf32>
    tpu.vector_store %arg12[%c0_230, %c336], %400 {strides = array<i32>} : memref<1x400xf32, #tpu.memory_space<vmem>>, vector<1x16xf32>,
    %402 = vector.extract_strided_slice %357 {offsets = [22, 0], sizes = [1, 16], strides = [1, 1]} : vector<25x16xf32> to vector<1x16xf32>
    %c0_231 = arith.constant 0 : index
    %c352 = arith.constant 352 : index
    %403 = vector.load %arg12[%c0_231, %c352] : memref<1x400xf32, #tpu.memory_space<vmem>>, vector<1x16xf32>
    tpu.vector_store %arg12[%c0_231, %c352], %402 {strides = array<i32>} : memref<1x400xf32, #tpu.memory_space<vmem>>, vector<1x16xf32>,
    %404 = vector.extract_strided_slice %357 {offsets = [23, 0], sizes = [1, 16], strides = [1, 1]} : vector<25x16xf32> to vector<1x16xf32>
    %c0_232 = arith.constant 0 : index
    %c368 = arith.constant 368 : index
    %405 = vector.load %arg12[%c0_232, %c368] : memref<1x400xf32, #tpu.memory_space<vmem>>, vector<1x16xf32>
    tpu.vector_store %arg12[%c0_232, %c368], %404 {strides = array<i32>} : memref<1x400xf32, #tpu.memory_space<vmem>>, vector<1x16xf32>,
    %406 = vector.extract_strided_slice %357 {offsets = [24, 0], sizes = [1, 16], strides = [1, 1]} : vector<25x16xf32> to vector<1x16xf32>
    %c0_233 = arith.constant 0 : index
    %c384 = arith.constant 384 : index
    %407 = vector.load %arg12[%c0_233, %c384] : memref<1x400xf32, #tpu.memory_space<vmem>>, vector<1x16xf32>
    tpu.vector_store %arg12[%c0_233, %c384], %406 {strides = array<i32>} : memref<1x400xf32, #tpu.memory_space<vmem>>, vector<1x16xf32>,
    %c0_234 = arith.constant 0 : index
    %c0_235 = arith.constant 0 : index
    %408 = vector.load %arg12[%c0_234, %c0_235] : memref<1x400xf32, #tpu.memory_space<vmem>>, vector<1x400xf32>
    %c0_236 = arith.constant 0 : index
    %c0_237 = arith.constant 0 : index
    %409 = vector.load %arg5[%c0_236, %c0_237] : memref<400x64xf32, #tpu.memory_space<vmem>>, vector<400x64xf32>
    %cst_238 = arith.constant dense<0.000000e+00> : vector<1x64xf32>
    %410 = tpu.matmul %408, %409, %cst_238 {dimension_numbers = #tpu.dot_dimension_numbers<[1], [0], [0], [1], [0, 0, 1, 1], [], []>} : vector<1x400xf32>, vector<400x64xf32>, vector<1x64xf32> -> vector<1x64xf32>
    %c0_239 = arith.constant 0 : index
    %c64_240 = arith.constant 64 : index
    %411 = vector.load %arg7[%c0_239, %c64_240] : memref<1x192xf32, #tpu.memory_space<vmem>>, vector<1x64xf32>
    %412 = arith.addf %410, %411 : vector<1x64xf32>
    %cst_241 = arith.constant 0.000000e+00 : f32
    %413 = vector.broadcast %cst_241 : f32 to vector<1x64xf32>
    %414 = arith.maximumf %412, %413 : vector<1x64xf32>
    %415 = arith.addf %356, %414 : vector<1x64xf32>
    %416 = vector.extract_strided_slice %328 {offsets = [34, 32], sizes = [49, 16], strides = [1, 1]} : vector<83x48xf32> to vector<49x16xf32>
    %417 = vector.extract_strided_slice %416 {offsets = [0, 0], sizes = [1, 16], strides = [1, 1]} : vector<49x16xf32> to vector<1x16xf32>
    %c0_242 = arith.constant 0 : index
    %c0_243 = arith.constant 0 : index
    %418 = vector.load %arg13[%c0_242, %c0_243] : memref<1x784xf32, #tpu.memory_space<vmem>>, vector<1x16xf32>
    tpu.vector_store %arg13[%c0_242, %c0_243], %417 {strides = array<i32>} : memref<1x784xf32, #tpu.memory_space<vmem>>, vector<1x16xf32>,
    %419 = vector.extract_strided_slice %416 {offsets = [1, 0], sizes = [1, 16], strides = [1, 1]} : vector<49x16xf32> to vector<1x16xf32>
    %c0_244 = arith.constant 0 : index
    %c16_245 = arith.constant 16 : index
    %420 = vector.load %arg13[%c0_244, %c16_245] : memref<1x784xf32, #tpu.memory_space<vmem>>, vector<1x16xf32>
    tpu.vector_store %arg13[%c0_244, %c16_245], %419 {strides = array<i32>} : memref<1x784xf32, #tpu.memory_space<vmem>>, vector<1x16xf32>,
    %421 = vector.extract_strided_slice %416 {offsets = [2, 0], sizes = [1, 16], strides = [1, 1]} : vector<49x16xf32> to vector<1x16xf32>
    %c0_246 = arith.constant 0 : index
    %c32_247 = arith.constant 32 : index
    %422 = vector.load %arg13[%c0_246, %c32_247] : memref<1x784xf32, #tpu.memory_space<vmem>>, vector<1x16xf32>
    tpu.vector_store %arg13[%c0_246, %c32_247], %421 {strides = array<i32>} : memref<1x784xf32, #tpu.memory_space<vmem>>, vector<1x16xf32>,
    %423 = vector.extract_strided_slice %416 {offsets = [3, 0], sizes = [1, 16], strides = [1, 1]} : vector<49x16xf32> to vector<1x16xf32>
    %c0_248 = arith.constant 0 : index
    %c48_249 = arith.constant 48 : index
    %424 = vector.load %arg13[%c0_248, %c48_249] : memref<1x784xf32, #tpu.memory_space<vmem>>, vector<1x16xf32>
    tpu.vector_store %arg13[%c0_248, %c48_249], %423 {strides = array<i32>} : memref<1x784xf32, #tpu.memory_space<vmem>>, vector<1x16xf32>,
    %425 = vector.extract_strided_slice %416 {offsets = [4, 0], sizes = [1, 16], strides = [1, 1]} : vector<49x16xf32> to vector<1x16xf32>
    %c0_250 = arith.constant 0 : index
    %c64_251 = arith.constant 64 : index
    %426 = vector.load %arg13[%c0_250, %c64_251] : memref<1x784xf32, #tpu.memory_space<vmem>>, vector<1x16xf32>
    tpu.vector_store %arg13[%c0_250, %c64_251], %425 {strides = array<i32>} : memref<1x784xf32, #tpu.memory_space<vmem>>, vector<1x16xf32>,
    %427 = vector.extract_strided_slice %416 {offsets = [5, 0], sizes = [1, 16], strides = [1, 1]} : vector<49x16xf32> to vector<1x16xf32>
    %c0_252 = arith.constant 0 : index
    %c80_253 = arith.constant 80 : index
    %428 = vector.load %arg13[%c0_252, %c80_253] : memref<1x784xf32, #tpu.memory_space<vmem>>, vector<1x16xf32>
    tpu.vector_store %arg13[%c0_252, %c80_253], %427 {strides = array<i32>} : memref<1x784xf32, #tpu.memory_space<vmem>>, vector<1x16xf32>,
    %429 = vector.extract_strided_slice %416 {offsets = [6, 0], sizes = [1, 16], strides = [1, 1]} : vector<49x16xf32> to vector<1x16xf32>
    %c0_254 = arith.constant 0 : index
    %c96_255 = arith.constant 96 : index
    %430 = vector.load %arg13[%c0_254, %c96_255] : memref<1x784xf32, #tpu.memory_space<vmem>>, vector<1x16xf32>
    tpu.vector_store %arg13[%c0_254, %c96_255], %429 {strides = array<i32>} : memref<1x784xf32, #tpu.memory_space<vmem>>, vector<1x16xf32>,
    %431 = vector.extract_strided_slice %416 {offsets = [7, 0], sizes = [1, 16], strides = [1, 1]} : vector<49x16xf32> to vector<1x16xf32>
    %c0_256 = arith.constant 0 : index
    %c112_257 = arith.constant 112 : index
    %432 = vector.load %arg13[%c0_256, %c112_257] : memref<1x784xf32, #tpu.memory_space<vmem>>, vector<1x16xf32>
    tpu.vector_store %arg13[%c0_256, %c112_257], %431 {strides = array<i32>} : memref<1x784xf32, #tpu.memory_space<vmem>>, vector<1x16xf32>,
    %433 = vector.extract_strided_slice %416 {offsets = [8, 0], sizes = [1, 16], strides = [1, 1]} : vector<49x16xf32> to vector<1x16xf32>
    %c0_258 = arith.constant 0 : index
    %c128_259 = arith.constant 128 : index
    %434 = vector.load %arg13[%c0_258, %c128_259] : memref<1x784xf32, #tpu.memory_space<vmem>>, vector<1x16xf32>
    tpu.vector_store %arg13[%c0_258, %c128_259], %433 {strides = array<i32>} : memref<1x784xf32, #tpu.memory_space<vmem>>, vector<1x16xf32>,
    %435 = vector.extract_strided_slice %416 {offsets = [9, 0], sizes = [1, 16], strides = [1, 1]} : vector<49x16xf32> to vector<1x16xf32>
    %c0_260 = arith.constant 0 : index
    %c144_261 = arith.constant 144 : index
    %436 = vector.load %arg13[%c0_260, %c144_261] : memref<1x784xf32, #tpu.memory_space<vmem>>, vector<1x16xf32>
    tpu.vector_store %arg13[%c0_260, %c144_261], %435 {strides = array<i32>} : memref<1x784xf32, #tpu.memory_space<vmem>>, vector<1x16xf32>,
    %437 = vector.extract_strided_slice %416 {offsets = [10, 0], sizes = [1, 16], strides = [1, 1]} : vector<49x16xf32> to vector<1x16xf32>
    %c0_262 = arith.constant 0 : index
    %c160_263 = arith.constant 160 : index
    %438 = vector.load %arg13[%c0_262, %c160_263] : memref<1x784xf32, #tpu.memory_space<vmem>>, vector<1x16xf32>
    tpu.vector_store %arg13[%c0_262, %c160_263], %437 {strides = array<i32>} : memref<1x784xf32, #tpu.memory_space<vmem>>, vector<1x16xf32>,
    %439 = vector.extract_strided_slice %416 {offsets = [11, 0], sizes = [1, 16], strides = [1, 1]} : vector<49x16xf32> to vector<1x16xf32>
    %c0_264 = arith.constant 0 : index
    %c176_265 = arith.constant 176 : index
    %440 = vector.load %arg13[%c0_264, %c176_265] : memref<1x784xf32, #tpu.memory_space<vmem>>, vector<1x16xf32>
    tpu.vector_store %arg13[%c0_264, %c176_265], %439 {strides = array<i32>} : memref<1x784xf32, #tpu.memory_space<vmem>>, vector<1x16xf32>,
    %441 = vector.extract_strided_slice %416 {offsets = [12, 0], sizes = [1, 16], strides = [1, 1]} : vector<49x16xf32> to vector<1x16xf32>
    %c0_266 = arith.constant 0 : index
    %c192_267 = arith.constant 192 : index
    %442 = vector.load %arg13[%c0_266, %c192_267] : memref<1x784xf32, #tpu.memory_space<vmem>>, vector<1x16xf32>
    tpu.vector_store %arg13[%c0_266, %c192_267], %441 {strides = array<i32>} : memref<1x784xf32, #tpu.memory_space<vmem>>, vector<1x16xf32>,
    %443 = vector.extract_strided_slice %416 {offsets = [13, 0], sizes = [1, 16], strides = [1, 1]} : vector<49x16xf32> to vector<1x16xf32>
    %c0_268 = arith.constant 0 : index
    %c208_269 = arith.constant 208 : index
    %444 = vector.load %arg13[%c0_268, %c208_269] : memref<1x784xf32, #tpu.memory_space<vmem>>, vector<1x16xf32>
    tpu.vector_store %arg13[%c0_268, %c208_269], %443 {strides = array<i32>} : memref<1x784xf32, #tpu.memory_space<vmem>>, vector<1x16xf32>,
    %445 = vector.extract_strided_slice %416 {offsets = [14, 0], sizes = [1, 16], strides = [1, 1]} : vector<49x16xf32> to vector<1x16xf32>
    %c0_270 = arith.constant 0 : index
    %c224_271 = arith.constant 224 : index
    %446 = vector.load %arg13[%c0_270, %c224_271] : memref<1x784xf32, #tpu.memory_space<vmem>>, vector<1x16xf32>
    tpu.vector_store %arg13[%c0_270, %c224_271], %445 {strides = array<i32>} : memref<1x784xf32, #tpu.memory_space<vmem>>, vector<1x16xf32>,
    %447 = vector.extract_strided_slice %416 {offsets = [15, 0], sizes = [1, 16], strides = [1, 1]} : vector<49x16xf32> to vector<1x16xf32>
    %c0_272 = arith.constant 0 : index
    %c240_273 = arith.constant 240 : index
    %448 = vector.load %arg13[%c0_272, %c240_273] : memref<1x784xf32, #tpu.memory_space<vmem>>, vector<1x16xf32>
    tpu.vector_store %arg13[%c0_272, %c240_273], %447 {strides = array<i32>} : memref<1x784xf32, #tpu.memory_space<vmem>>, vector<1x16xf32>,
    %449 = vector.extract_strided_slice %416 {offsets = [16, 0], sizes = [1, 16], strides = [1, 1]} : vector<49x16xf32> to vector<1x16xf32>
    %c0_274 = arith.constant 0 : index
    %c256_275 = arith.constant 256 : index
    %450 = vector.load %arg13[%c0_274, %c256_275] : memref<1x784xf32, #tpu.memory_space<vmem>>, vector<1x16xf32>
    tpu.vector_store %arg13[%c0_274, %c256_275], %449 {strides = array<i32>} : memref<1x784xf32, #tpu.memory_space<vmem>>, vector<1x16xf32>,
    %451 = vector.extract_strided_slice %416 {offsets = [17, 0], sizes = [1, 16], strides = [1, 1]} : vector<49x16xf32> to vector<1x16xf32>
    %c0_276 = arith.constant 0 : index
    %c272_277 = arith.constant 272 : index
    %452 = vector.load %arg13[%c0_276, %c272_277] : memref<1x784xf32, #tpu.memory_space<vmem>>, vector<1x16xf32>
    tpu.vector_store %arg13[%c0_276, %c272_277], %451 {strides = array<i32>} : memref<1x784xf32, #tpu.memory_space<vmem>>, vector<1x16xf32>,
    %453 = vector.extract_strided_slice %416 {offsets = [18, 0], sizes = [1, 16], strides = [1, 1]} : vector<49x16xf32> to vector<1x16xf32>
    %c0_278 = arith.constant 0 : index
    %c288_279 = arith.constant 288 : index
    %454 = vector.load %arg13[%c0_278, %c288_279] : memref<1x784xf32, #tpu.memory_space<vmem>>, vector<1x16xf32>
    tpu.vector_store %arg13[%c0_278, %c288_279], %453 {strides = array<i32>} : memref<1x784xf32, #tpu.memory_space<vmem>>, vector<1x16xf32>,
    %455 = vector.extract_strided_slice %416 {offsets = [19, 0], sizes = [1, 16], strides = [1, 1]} : vector<49x16xf32> to vector<1x16xf32>
    %c0_280 = arith.constant 0 : index
    %c304_281 = arith.constant 304 : index
    %456 = vector.load %arg13[%c0_280, %c304_281] : memref<1x784xf32, #tpu.memory_space<vmem>>, vector<1x16xf32>
    tpu.vector_store %arg13[%c0_280, %c304_281], %455 {strides = array<i32>} : memref<1x784xf32, #tpu.memory_space<vmem>>, vector<1x16xf32>,
    %457 = vector.extract_strided_slice %416 {offsets = [20, 0], sizes = [1, 16], strides = [1, 1]} : vector<49x16xf32> to vector<1x16xf32>
    %c0_282 = arith.constant 0 : index
    %c320_283 = arith.constant 320 : index
    %458 = vector.load %arg13[%c0_282, %c320_283] : memref<1x784xf32, #tpu.memory_space<vmem>>, vector<1x16xf32>
    tpu.vector_store %arg13[%c0_282, %c320_283], %457 {strides = array<i32>} : memref<1x784xf32, #tpu.memory_space<vmem>>, vector<1x16xf32>,
    %459 = vector.extract_strided_slice %416 {offsets = [21, 0], sizes = [1, 16], strides = [1, 1]} : vector<49x16xf32> to vector<1x16xf32>
    %c0_284 = arith.constant 0 : index
    %c336_285 = arith.constant 336 : index
    %460 = vector.load %arg13[%c0_284, %c336_285] : memref<1x784xf32, #tpu.memory_space<vmem>>, vector<1x16xf32>
    tpu.vector_store %arg13[%c0_284, %c336_285], %459 {strides = array<i32>} : memref<1x784xf32, #tpu.memory_space<vmem>>, vector<1x16xf32>,
    %461 = vector.extract_strided_slice %416 {offsets = [22, 0], sizes = [1, 16], strides = [1, 1]} : vector<49x16xf32> to vector<1x16xf32>
    %c0_286 = arith.constant 0 : index
    %c352_287 = arith.constant 352 : index
    %462 = vector.load %arg13[%c0_286, %c352_287] : memref<1x784xf32, #tpu.memory_space<vmem>>, vector<1x16xf32>
    tpu.vector_store %arg13[%c0_286, %c352_287], %461 {strides = array<i32>} : memref<1x784xf32, #tpu.memory_space<vmem>>, vector<1x16xf32>,
    %463 = vector.extract_strided_slice %416 {offsets = [23, 0], sizes = [1, 16], strides = [1, 1]} : vector<49x16xf32> to vector<1x16xf32>
    %c0_288 = arith.constant 0 : index
    %c368_289 = arith.constant 368 : index
    %464 = vector.load %arg13[%c0_288, %c368_289] : memref<1x784xf32, #tpu.memory_space<vmem>>, vector<1x16xf32>
    tpu.vector_store %arg13[%c0_288, %c368_289], %463 {strides = array<i32>} : memref<1x784xf32, #tpu.memory_space<vmem>>, vector<1x16xf32>,
    %465 = vector.extract_strided_slice %416 {offsets = [24, 0], sizes = [1, 16], strides = [1, 1]} : vector<49x16xf32> to vector<1x16xf32>
    %c0_290 = arith.constant 0 : index
    %c384_291 = arith.constant 384 : index
    %466 = vector.load %arg13[%c0_290, %c384_291] : memref<1x784xf32, #tpu.memory_space<vmem>>, vector<1x16xf32>
    tpu.vector_store %arg13[%c0_290, %c384_291], %465 {strides = array<i32>} : memref<1x784xf32, #tpu.memory_space<vmem>>, vector<1x16xf32>,
    %467 = vector.extract_strided_slice %416 {offsets = [25, 0], sizes = [1, 16], strides = [1, 1]} : vector<49x16xf32> to vector<1x16xf32>
    %c0_292 = arith.constant 0 : index
    %c400 = arith.constant 400 : index
    %468 = vector.load %arg13[%c0_292, %c400] : memref<1x784xf32, #tpu.memory_space<vmem>>, vector<1x16xf32>
    tpu.vector_store %arg13[%c0_292, %c400], %467 {strides = array<i32>} : memref<1x784xf32, #tpu.memory_space<vmem>>, vector<1x16xf32>,
    %469 = vector.extract_strided_slice %416 {offsets = [26, 0], sizes = [1, 16], strides = [1, 1]} : vector<49x16xf32> to vector<1x16xf32>
    %c0_293 = arith.constant 0 : index
    %c416 = arith.constant 416 : index
    %470 = vector.load %arg13[%c0_293, %c416] : memref<1x784xf32, #tpu.memory_space<vmem>>, vector<1x16xf32>
    tpu.vector_store %arg13[%c0_293, %c416], %469 {strides = array<i32>} : memref<1x784xf32, #tpu.memory_space<vmem>>, vector<1x16xf32>,
    %471 = vector.extract_strided_slice %416 {offsets = [27, 0], sizes = [1, 16], strides = [1, 1]} : vector<49x16xf32> to vector<1x16xf32>
    %c0_294 = arith.constant 0 : index
    %c432 = arith.constant 432 : index
    %472 = vector.load %arg13[%c0_294, %c432] : memref<1x784xf32, #tpu.memory_space<vmem>>, vector<1x16xf32>
    tpu.vector_store %arg13[%c0_294, %c432], %471 {strides = array<i32>} : memref<1x784xf32, #tpu.memory_space<vmem>>, vector<1x16xf32>,
    %473 = vector.extract_strided_slice %416 {offsets = [28, 0], sizes = [1, 16], strides = [1, 1]} : vector<49x16xf32> to vector<1x16xf32>
    %c0_295 = arith.constant 0 : index
    %c448 = arith.constant 448 : index
    %474 = vector.load %arg13[%c0_295, %c448] : memref<1x784xf32, #tpu.memory_space<vmem>>, vector<1x16xf32>
    tpu.vector_store %arg13[%c0_295, %c448], %473 {strides = array<i32>} : memref<1x784xf32, #tpu.memory_space<vmem>>, vector<1x16xf32>,
    %475 = vector.extract_strided_slice %416 {offsets = [29, 0], sizes = [1, 16], strides = [1, 1]} : vector<49x16xf32> to vector<1x16xf32>
    %c0_296 = arith.constant 0 : index
    %c464 = arith.constant 464 : index
    %476 = vector.load %arg13[%c0_296, %c464] : memref<1x784xf32, #tpu.memory_space<vmem>>, vector<1x16xf32>
    tpu.vector_store %arg13[%c0_296, %c464], %475 {strides = array<i32>} : memref<1x784xf32, #tpu.memory_space<vmem>>, vector<1x16xf32>,
    %477 = vector.extract_strided_slice %416 {offsets = [30, 0], sizes = [1, 16], strides = [1, 1]} : vector<49x16xf32> to vector<1x16xf32>
    %c0_297 = arith.constant 0 : index
    %c480 = arith.constant 480 : index
    %478 = vector.load %arg13[%c0_297, %c480] : memref<1x784xf32, #tpu.memory_space<vmem>>, vector<1x16xf32>
    tpu.vector_store %arg13[%c0_297, %c480], %477 {strides = array<i32>} : memref<1x784xf32, #tpu.memory_space<vmem>>, vector<1x16xf32>,
    %479 = vector.extract_strided_slice %416 {offsets = [31, 0], sizes = [1, 16], strides = [1, 1]} : vector<49x16xf32> to vector<1x16xf32>
    %c0_298 = arith.constant 0 : index
    %c496 = arith.constant 496 : index
    %480 = vector.load %arg13[%c0_298, %c496] : memref<1x784xf32, #tpu.memory_space<vmem>>, vector<1x16xf32>
    tpu.vector_store %arg13[%c0_298, %c496], %479 {strides = array<i32>} : memref<1x784xf32, #tpu.memory_space<vmem>>, vector<1x16xf32>,
    %481 = vector.extract_strided_slice %416 {offsets = [32, 0], sizes = [1, 16], strides = [1, 1]} : vector<49x16xf32> to vector<1x16xf32>
    %c0_299 = arith.constant 0 : index
    %c512 = arith.constant 512 : index
    %482 = vector.load %arg13[%c0_299, %c512] : memref<1x784xf32, #tpu.memory_space<vmem>>, vector<1x16xf32>
    tpu.vector_store %arg13[%c0_299, %c512], %481 {strides = array<i32>} : memref<1x784xf32, #tpu.memory_space<vmem>>, vector<1x16xf32>,
    %483 = vector.extract_strided_slice %416 {offsets = [33, 0], sizes = [1, 16], strides = [1, 1]} : vector<49x16xf32> to vector<1x16xf32>
    %c0_300 = arith.constant 0 : index
    %c528 = arith.constant 528 : index
    %484 = vector.load %arg13[%c0_300, %c528] : memref<1x784xf32, #tpu.memory_space<vmem>>, vector<1x16xf32>
    tpu.vector_store %arg13[%c0_300, %c528], %483 {strides = array<i32>} : memref<1x784xf32, #tpu.memory_space<vmem>>, vector<1x16xf32>,
    %485 = vector.extract_strided_slice %416 {offsets = [34, 0], sizes = [1, 16], strides = [1, 1]} : vector<49x16xf32> to vector<1x16xf32>
    %c0_301 = arith.constant 0 : index
    %c544 = arith.constant 544 : index
    %486 = vector.load %arg13[%c0_301, %c544] : memref<1x784xf32, #tpu.memory_space<vmem>>, vector<1x16xf32>
    tpu.vector_store %arg13[%c0_301, %c544], %485 {strides = array<i32>} : memref<1x784xf32, #tpu.memory_space<vmem>>, vector<1x16xf32>,
    %487 = vector.extract_strided_slice %416 {offsets = [35, 0], sizes = [1, 16], strides = [1, 1]} : vector<49x16xf32> to vector<1x16xf32>
    %c0_302 = arith.constant 0 : index
    %c560 = arith.constant 560 : index
    %488 = vector.load %arg13[%c0_302, %c560] : memref<1x784xf32, #tpu.memory_space<vmem>>, vector<1x16xf32>
    tpu.vector_store %arg13[%c0_302, %c560], %487 {strides = array<i32>} : memref<1x784xf32, #tpu.memory_space<vmem>>, vector<1x16xf32>,
    %489 = vector.extract_strided_slice %416 {offsets = [36, 0], sizes = [1, 16], strides = [1, 1]} : vector<49x16xf32> to vector<1x16xf32>
    %c0_303 = arith.constant 0 : index
    %c576 = arith.constant 576 : index
    %490 = vector.load %arg13[%c0_303, %c576] : memref<1x784xf32, #tpu.memory_space<vmem>>, vector<1x16xf32>
    tpu.vector_store %arg13[%c0_303, %c576], %489 {strides = array<i32>} : memref<1x784xf32, #tpu.memory_space<vmem>>, vector<1x16xf32>,
    %491 = vector.extract_strided_slice %416 {offsets = [37, 0], sizes = [1, 16], strides = [1, 1]} : vector<49x16xf32> to vector<1x16xf32>
    %c0_304 = arith.constant 0 : index
    %c592 = arith.constant 592 : index
    %492 = vector.load %arg13[%c0_304, %c592] : memref<1x784xf32, #tpu.memory_space<vmem>>, vector<1x16xf32>
    tpu.vector_store %arg13[%c0_304, %c592], %491 {strides = array<i32>} : memref<1x784xf32, #tpu.memory_space<vmem>>, vector<1x16xf32>,
    %493 = vector.extract_strided_slice %416 {offsets = [38, 0], sizes = [1, 16], strides = [1, 1]} : vector<49x16xf32> to vector<1x16xf32>
    %c0_305 = arith.constant 0 : index
    %c608 = arith.constant 608 : index
    %494 = vector.load %arg13[%c0_305, %c608] : memref<1x784xf32, #tpu.memory_space<vmem>>, vector<1x16xf32>
    tpu.vector_store %arg13[%c0_305, %c608], %493 {strides = array<i32>} : memref<1x784xf32, #tpu.memory_space<vmem>>, vector<1x16xf32>,
    %495 = vector.extract_strided_slice %416 {offsets = [39, 0], sizes = [1, 16], strides = [1, 1]} : vector<49x16xf32> to vector<1x16xf32>
    %c0_306 = arith.constant 0 : index
    %c624 = arith.constant 624 : index
    %496 = vector.load %arg13[%c0_306, %c624] : memref<1x784xf32, #tpu.memory_space<vmem>>, vector<1x16xf32>
    tpu.vector_store %arg13[%c0_306, %c624], %495 {strides = array<i32>} : memref<1x784xf32, #tpu.memory_space<vmem>>, vector<1x16xf32>,
    %497 = vector.extract_strided_slice %416 {offsets = [40, 0], sizes = [1, 16], strides = [1, 1]} : vector<49x16xf32> to vector<1x16xf32>
    %c0_307 = arith.constant 0 : index
    %c640 = arith.constant 640 : index
    %498 = vector.load %arg13[%c0_307, %c640] : memref<1x784xf32, #tpu.memory_space<vmem>>, vector<1x16xf32>
    tpu.vector_store %arg13[%c0_307, %c640], %497 {strides = array<i32>} : memref<1x784xf32, #tpu.memory_space<vmem>>, vector<1x16xf32>,
    %499 = vector.extract_strided_slice %416 {offsets = [41, 0], sizes = [1, 16], strides = [1, 1]} : vector<49x16xf32> to vector<1x16xf32>
    %c0_308 = arith.constant 0 : index
    %c656 = arith.constant 656 : index
    %500 = vector.load %arg13[%c0_308, %c656] : memref<1x784xf32, #tpu.memory_space<vmem>>, vector<1x16xf32>
    tpu.vector_store %arg13[%c0_308, %c656], %499 {strides = array<i32>} : memref<1x784xf32, #tpu.memory_space<vmem>>, vector<1x16xf32>,
    %501 = vector.extract_strided_slice %416 {offsets = [42, 0], sizes = [1, 16], strides = [1, 1]} : vector<49x16xf32> to vector<1x16xf32>
    %c0_309 = arith.constant 0 : index
    %c672 = arith.constant 672 : index
    %502 = vector.load %arg13[%c0_309, %c672] : memref<1x784xf32, #tpu.memory_space<vmem>>, vector<1x16xf32>
    tpu.vector_store %arg13[%c0_309, %c672], %501 {strides = array<i32>} : memref<1x784xf32, #tpu.memory_space<vmem>>, vector<1x16xf32>,
    %503 = vector.extract_strided_slice %416 {offsets = [43, 0], sizes = [1, 16], strides = [1, 1]} : vector<49x16xf32> to vector<1x16xf32>
    %c0_310 = arith.constant 0 : index
    %c688 = arith.constant 688 : index
    %504 = vector.load %arg13[%c0_310, %c688] : memref<1x784xf32, #tpu.memory_space<vmem>>, vector<1x16xf32>
    tpu.vector_store %arg13[%c0_310, %c688], %503 {strides = array<i32>} : memref<1x784xf32, #tpu.memory_space<vmem>>, vector<1x16xf32>,
    %505 = vector.extract_strided_slice %416 {offsets = [44, 0], sizes = [1, 16], strides = [1, 1]} : vector<49x16xf32> to vector<1x16xf32>
    %c0_311 = arith.constant 0 : index
    %c704 = arith.constant 704 : index
    %506 = vector.load %arg13[%c0_311, %c704] : memref<1x784xf32, #tpu.memory_space<vmem>>, vector<1x16xf32>
    tpu.vector_store %arg13[%c0_311, %c704], %505 {strides = array<i32>} : memref<1x784xf32, #tpu.memory_space<vmem>>, vector<1x16xf32>,
    %507 = vector.extract_strided_slice %416 {offsets = [45, 0], sizes = [1, 16], strides = [1, 1]} : vector<49x16xf32> to vector<1x16xf32>
    %c0_312 = arith.constant 0 : index
    %c720 = arith.constant 720 : index
    %508 = vector.load %arg13[%c0_312, %c720] : memref<1x784xf32, #tpu.memory_space<vmem>>, vector<1x16xf32>
    tpu.vector_store %arg13[%c0_312, %c720], %507 {strides = array<i32>} : memref<1x784xf32, #tpu.memory_space<vmem>>, vector<1x16xf32>,
    %509 = vector.extract_strided_slice %416 {offsets = [46, 0], sizes = [1, 16], strides = [1, 1]} : vector<49x16xf32> to vector<1x16xf32>
    %c0_313 = arith.constant 0 : index
    %c736 = arith.constant 736 : index
    %510 = vector.load %arg13[%c0_313, %c736] : memref<1x784xf32, #tpu.memory_space<vmem>>, vector<1x16xf32>
    tpu.vector_store %arg13[%c0_313, %c736], %509 {strides = array<i32>} : memref<1x784xf32, #tpu.memory_space<vmem>>, vector<1x16xf32>,
    %511 = vector.extract_strided_slice %416 {offsets = [47, 0], sizes = [1, 16], strides = [1, 1]} : vector<49x16xf32> to vector<1x16xf32>
    %c0_314 = arith.constant 0 : index
    %c752 = arith.constant 752 : index
    %512 = vector.load %arg13[%c0_314, %c752] : memref<1x784xf32, #tpu.memory_space<vmem>>, vector<1x16xf32>
    tpu.vector_store %arg13[%c0_314, %c752], %511 {strides = array<i32>} : memref<1x784xf32, #tpu.memory_space<vmem>>, vector<1x16xf32>,
    %513 = vector.extract_strided_slice %416 {offsets = [48, 0], sizes = [1, 16], strides = [1, 1]} : vector<49x16xf32> to vector<1x16xf32>
    %c0_315 = arith.constant 0 : index
    %c768 = arith.constant 768 : index
    %514 = vector.load %arg13[%c0_315, %c768] : memref<1x784xf32, #tpu.memory_space<vmem>>, vector<1x16xf32>
    tpu.vector_store %arg13[%c0_315, %c768], %513 {strides = array<i32>} : memref<1x784xf32, #tpu.memory_space<vmem>>, vector<1x16xf32>,
    %c0_316 = arith.constant 0 : index
    %c0_317 = arith.constant 0 : index
    %515 = vector.load %arg13[%c0_316, %c0_317] : memref<1x784xf32, #tpu.memory_space<vmem>>, vector<1x784xf32>
    %c0_318 = arith.constant 0 : index
    %c0_319 = arith.constant 0 : index
    %516 = vector.load %arg6[%c0_318, %c0_319] : memref<784x64xf32, #tpu.memory_space<vmem>>, vector<784x64xf32>
    %cst_320 = arith.constant dense<0.000000e+00> : vector<1x64xf32>
    %517 = tpu.matmul %515, %516, %cst_320 {dimension_numbers = #tpu.dot_dimension_numbers<[1], [0], [0], [1], [0, 0, 1, 1], [], []>} : vector<1x784xf32>, vector<784x64xf32>, vector<1x64xf32> -> vector<1x64xf32>
    %c0_321 = arith.constant 0 : index
    %c128_322 = arith.constant 128 : index
    %518 = vector.load %arg7[%c0_321, %c128_322] : memref<1x192xf32, #tpu.memory_space<vmem>>, vector<1x64xf32>
    %519 = arith.addf %517, %518 : vector<1x64xf32>
    %cst_323 = arith.constant 0.000000e+00 : f32
    %520 = vector.broadcast %cst_323 : f32 to vector<1x64xf32>
    %521 = arith.maximumf %519, %520 : vector<1x64xf32>
    %522 = arith.addf %415, %521 : vector<1x64xf32>
    %c0_324 = arith.constant 0 : index
    %c0_325 = arith.constant 0 : index
    %523 = vector.load %arg8[%c0_324, %c0_325] : memref<64x1152xf32, #tpu.memory_space<vmem>>, vector<64x1152xf32>
    %cst_326 = arith.constant dense<0.000000e+00> : vector<1x1152xf32>
    %524 = tpu.matmul %522, %523, %cst_326 {dimension_numbers = #tpu.dot_dimension_numbers<[1], [0], [0], [1], [0, 0, 1, 1], [], []>} : vector<1x64xf32>, vector<64x1152xf32>, vector<1x1152xf32> -> vector<1x1152xf32>
    %525 = vector.extract_strided_slice %524 {offsets = [0, 0], sizes = [1, 128], strides = [1, 1]} : vector<1x1152xf32> to vector<1x128xf32>
    %526 = vector.extract_strided_slice %524 {offsets = [0, 128], sizes = [1, 128], strides = [1, 1]} : vector<1x1152xf32> to vector<1x128xf32>
    %527 = vector.extract_strided_slice %524 {offsets = [0, 256], sizes = [1, 128], strides = [1, 1]} : vector<1x1152xf32> to vector<1x128xf32>
    %528 = vector.extract_strided_slice %524 {offsets = [0, 384], sizes = [1, 128], strides = [1, 1]} : vector<1x1152xf32> to vector<1x128xf32>
    %529 = vector.extract_strided_slice %524 {offsets = [0, 512], sizes = [1, 128], strides = [1, 1]} : vector<1x1152xf32> to vector<1x128xf32>
    %530 = vector.extract_strided_slice %524 {offsets = [0, 640], sizes = [1, 128], strides = [1, 1]} : vector<1x1152xf32> to vector<1x128xf32>
    %531 = vector.extract_strided_slice %524 {offsets = [0, 768], sizes = [1, 128], strides = [1, 1]} : vector<1x1152xf32> to vector<1x128xf32>
    %532 = vector.extract_strided_slice %524 {offsets = [0, 896], sizes = [1, 128], strides = [1, 1]} : vector<1x1152xf32> to vector<1x128xf32>
    %533 = vector.extract_strided_slice %524 {offsets = [0, 1024], sizes = [1, 128], strides = [1, 1]} : vector<1x1152xf32> to vector<1x128xf32>
    %534 = arith.addf %525, %526 : vector<1x128xf32>
    %535 = arith.addf %534, %527 : vector<1x128xf32>
    %536 = arith.addf %535, %528 : vector<1x128xf32>
    %537 = arith.addf %536, %529 : vector<1x128xf32>
    %538 = arith.addf %537, %530 : vector<1x128xf32>
    %539 = arith.addf %538, %531 : vector<1x128xf32>
    %540 = arith.addf %539, %532 : vector<1x128xf32>
    %541 = arith.addf %540, %533 : vector<1x128xf32>
    %c0_327 = arith.constant 0 : index
    %c0_328 = arith.constant 0 : index
    %542 = vector.load %arg9[%c0_327, %c0_328] : memref<1x128xf32, #tpu.memory_space<vmem>>, vector<1x128xf32>
    %543 = arith.addf %541, %542 : vector<1x128xf32>
    %544 = arith.addf %525, %526 : vector<1x128xf32>
    %545 = arith.addf %544, %527 : vector<1x128xf32>
    %546 = arith.addf %531, %532 : vector<1x128xf32>
    %547 = arith.addf %546, %533 : vector<1x128xf32>
    %548 = arith.addf %525, %528 : vector<1x128xf32>
    %549 = arith.addf %548, %531 : vector<1x128xf32>
    %550 = arith.addf %527, %530 : vector<1x128xf32>
    %551 = arith.addf %550, %533 : vector<1x128xf32>
    %552 = tpu.iota {dimensions = array<i32: 0>} : vector<16x1xi32>
    %c0_i32 = arith.constant 0 : i32
    %553 = vector.broadcast %c0_i32 : i32 to vector<16x1xi32>
    %554 = arith.cmpi eq, %552, %553 : vector<16x1xi32>
    %c15_i32 = arith.constant 15 : i32
    %555 = vector.broadcast %c15_i32 : i32 to vector<16x1xi32>
    %556 = arith.cmpi eq, %552, %555 : vector<16x1xi32>
    %cst_329 = arith.constant 0.000000e+00 : f32
    %557 = vector.shape_cast %554 : vector<16x1xi1> to vector<16x1xi1>
    %558 = vector.broadcast %557 : vector<16x1xi1> to vector<16x128xi1>
    %559 = vector.shape_cast %549 : vector<1x128xf32> to vector<1x128xf32>
    %560 = vector.broadcast %559 : vector<1x128xf32> to vector<16x128xf32>
    %561 = vector.broadcast %cst_329 : f32 to vector<16x128xf32>
    %562 = arith.select %558, %560, %561 : vector<16x128xi1>, vector<16x128xf32>
    %563 = vector.broadcast %543 : vector<1x128xf32> to vector<16x128xf32>
    %564 = arith.subf %563, %562 : vector<16x128xf32>
    %cst_330 = arith.constant 0.000000e+00 : f32
    %565 = vector.shape_cast %556 : vector<16x1xi1> to vector<16x1xi1>
    %566 = vector.broadcast %565 : vector<16x1xi1> to vector<16x128xi1>
    %567 = vector.shape_cast %551 : vector<1x128xf32> to vector<1x128xf32>
    %568 = vector.broadcast %567 : vector<1x128xf32> to vector<16x128xf32>
    %569 = vector.broadcast %cst_330 : f32 to vector<16x128xf32>
    %570 = arith.select %566, %568, %569 : vector<16x128xi1>, vector<16x128xf32>
    %571 = arith.subf %564, %570 : vector<16x128xf32>
    %cst_331 = arith.constant 0.000000e+00 : f32
    %572 = vector.broadcast %cst_331 : f32 to vector<16x128xf32>
    %573 = arith.maximumf %571, %572 : vector<16x128xf32>
    %574 = arith.subf %543, %545 : vector<1x128xf32>
    %575 = arith.subf %549, %525 : vector<1x128xf32>
    %576 = arith.subf %551, %527 : vector<1x128xf32>
    %cst_332 = arith.constant 0.000000e+00 : f32
    %577 = vector.shape_cast %554 : vector<16x1xi1> to vector<16x1xi1>
    %578 = vector.broadcast %577 : vector<16x1xi1> to vector<16x128xi1>
    %579 = vector.shape_cast %575 : vector<1x128xf32> to vector<1x128xf32>
    %580 = vector.broadcast %579 : vector<1x128xf32> to vector<16x128xf32>
    %581 = vector.broadcast %cst_332 : f32 to vector<16x128xf32>
    %582 = arith.select %578, %580, %581 : vector<16x128xi1>, vector<16x128xf32>
    %583 = vector.broadcast %574 : vector<1x128xf32> to vector<16x128xf32>
    %584 = arith.subf %583, %582 : vector<16x128xf32>
    %cst_333 = arith.constant 0.000000e+00 : f32
    %585 = vector.shape_cast %556 : vector<16x1xi1> to vector<16x1xi1>
    %586 = vector.broadcast %585 : vector<16x1xi1> to vector<16x128xi1>
    %587 = vector.shape_cast %576 : vector<1x128xf32> to vector<1x128xf32>
    %588 = vector.broadcast %587 : vector<1x128xf32> to vector<16x128xf32>
    %589 = vector.broadcast %cst_333 : f32 to vector<16x128xf32>
    %590 = arith.select %586, %588, %589 : vector<16x128xi1>, vector<16x128xf32>
    %591 = arith.subf %584, %590 : vector<16x128xf32>
    %cst_334 = arith.constant 0.000000e+00 : f32
    %592 = vector.broadcast %cst_334 : f32 to vector<16x128xf32>
    %593 = arith.maximumf %591, %592 : vector<16x128xf32>
    %594 = arith.subf %543, %547 : vector<1x128xf32>
    %595 = arith.subf %549, %531 : vector<1x128xf32>
    %596 = arith.subf %551, %533 : vector<1x128xf32>
    %cst_335 = arith.constant 0.000000e+00 : f32
    %597 = vector.shape_cast %554 : vector<16x1xi1> to vector<16x1xi1>
    %598 = vector.broadcast %597 : vector<16x1xi1> to vector<16x128xi1>
    %599 = vector.shape_cast %595 : vector<1x128xf32> to vector<1x128xf32>
    %600 = vector.broadcast %599 : vector<1x128xf32> to vector<16x128xf32>
    %601 = vector.broadcast %cst_335 : f32 to vector<16x128xf32>
    %602 = arith.select %598, %600, %601 : vector<16x128xi1>, vector<16x128xf32>
    %603 = vector.broadcast %594 : vector<1x128xf32> to vector<16x128xf32>
    %604 = arith.subf %603, %602 : vector<16x128xf32>
    %cst_336 = arith.constant 0.000000e+00 : f32
    %605 = vector.shape_cast %556 : vector<16x1xi1> to vector<16x1xi1>
    %606 = vector.broadcast %605 : vector<16x1xi1> to vector<16x128xi1>
    %607 = vector.shape_cast %596 : vector<1x128xf32> to vector<1x128xf32>
    %608 = vector.broadcast %607 : vector<1x128xf32> to vector<16x128xf32>
    %609 = vector.broadcast %cst_336 : f32 to vector<16x128xf32>
    %610 = arith.select %606, %608, %609 : vector<16x128xi1>, vector<16x128xf32>
    %611 = arith.subf %604, %610 : vector<16x128xf32>
    %cst_337 = arith.constant 0.000000e+00 : f32
    %612 = vector.broadcast %cst_337 : f32 to vector<16x128xf32>
    %613 = arith.maximumf %611, %612 : vector<16x128xf32>
    %614 = vector.shape_cast %573 : vector<16x128xf32> to vector<1x16x128xf32>
    %615 = vector.broadcast %614 : vector<1x16x128xf32> to vector<16x16x128xf32>
    %c0_338 = arith.constant 0 : index
    %c0_339 = arith.constant 0 : index
    %c0_340 = arith.constant 0 : index
    %c0_341 = arith.constant 0 : index
    %616 = vector.load %arg10[%c0_338, %c0_339, %c0_340, %c0_341] : memref<2x16x16x128xf32, #tpu.memory_space<vmem>>, vector<1x16x16x128xf32>
    %617 = vector.shape_cast %616 : vector<1x16x16x128xf32> to vector<16x16x128xf32>
    %618 = vector.shape_cast %615 : vector<16x16x128xf32> to vector<1x16x16x128xf32>
    tpu.vector_store %arg10[%c0_338, %c0_339, %c0_340, %c0_341], %618 {strides = array<i32>} : memref<2x16x16x128xf32, #tpu.memory_space<vmem>>, vector<1x16x16x128xf32>,
    %c0_342 = arith.constant 0 : index
    %c0_343 = arith.constant 0 : index
    %c0_344 = arith.constant 0 : index
    %c0_345 = arith.constant 0 : index
    %619 = vector.load %arg10[%c0_342, %c0_343, %c0_344, %c0_345] : memref<2x16x16x128xf32, #tpu.memory_space<vmem>>, vector<1x1x16x128xf32>
    %620 = vector.shape_cast %619 : vector<1x1x16x128xf32> to vector<16x128xf32>
    %621 = vector.shape_cast %593 : vector<16x128xf32> to vector<1x1x16x128xf32>
    tpu.vector_store %arg10[%c0_342, %c0_343, %c0_344, %c0_345], %621 {strides = array<i32>} : memref<2x16x16x128xf32, #tpu.memory_space<vmem>>, vector<1x1x16x128xf32>,
    %c0_346 = arith.constant 0 : index
    %c15_347 = arith.constant 15 : index
    %c0_348 = arith.constant 0 : index
    %c0_349 = arith.constant 0 : index
    %622 = vector.load %arg10[%c0_346, %c15_347, %c0_348, %c0_349] : memref<2x16x16x128xf32, #tpu.memory_space<vmem>>, vector<1x1x16x128xf32>
    %623 = vector.shape_cast %622 : vector<1x1x16x128xf32> to vector<16x128xf32>
    %624 = vector.shape_cast %613 : vector<16x128xf32> to vector<1x1x16x128xf32>
    tpu.vector_store %arg10[%c0_346, %c15_347, %c0_348, %c0_349], %624 {strides = array<i32>} : memref<2x16x16x128xf32, #tpu.memory_space<vmem>>, vector<1x1x16x128xf32>,
    %c1_350 = arith.constant 1 : index
    %c1_351 = arith.constant 1 : index
    %c0_352 = arith.constant 0 : index
    %c0_353 = arith.constant 0 : index
    %625 = vector.load %arg1[%c1_350, %c1_351, %c0_352, %c0_353] : memref<2x16x16x64xf32, #tpu.memory_space<vmem>>, vector<1x1x16x64xf32>
    %626 = vector.shape_cast %625 : vector<1x1x16x64xf32> to vector<16x64xf32>
    %c1_354 = arith.constant 1 : index
    %c0_355 = arith.constant 0 : index
    %c0_356 = arith.constant 0 : index
    %c0_357 = arith.constant 0 : index
    %627 = vector.load %arg1[%c1_354, %c0_355, %c0_356, %c0_357] : memref<2x16x16x64xf32, #tpu.memory_space<vmem>>, vector<1x1x16x64xf32>
    %628 = vector.shape_cast %627 : vector<1x1x16x64xf32> to vector<16x64xf32>
    %629 = arith.maximumf %626, %628 : vector<16x64xf32>
    %c1_358 = arith.constant 1 : index
    %c2_359 = arith.constant 2 : index
    %c0_360 = arith.constant 0 : index
    %c0_361 = arith.constant 0 : index
    %630 = vector.load %arg1[%c1_358, %c2_359, %c0_360, %c0_361] : memref<2x16x16x64xf32, #tpu.memory_space<vmem>>, vector<1x1x16x64xf32>
    %631 = vector.shape_cast %630 : vector<1x1x16x64xf32> to vector<16x64xf32>
    %c1_362 = arith.constant 1 : index
    %c3_363 = arith.constant 3 : index
    %c0_364 = arith.constant 0 : index
    %c0_365 = arith.constant 0 : index
    %632 = vector.load %arg1[%c1_362, %c3_363, %c0_364, %c0_365] : memref<2x16x16x64xf32, #tpu.memory_space<vmem>>, vector<1x1x16x64xf32>
    %633 = vector.shape_cast %632 : vector<1x1x16x64xf32> to vector<16x64xf32>
    %634 = arith.maximumf %631, %633 : vector<16x64xf32>
    %c1_366 = arith.constant 1 : index
    %c4_367 = arith.constant 4 : index
    %c0_368 = arith.constant 0 : index
    %c0_369 = arith.constant 0 : index
    %635 = vector.load %arg1[%c1_366, %c4_367, %c0_368, %c0_369] : memref<2x16x16x64xf32, #tpu.memory_space<vmem>>, vector<1x1x16x64xf32>
    %636 = vector.shape_cast %635 : vector<1x1x16x64xf32> to vector<16x64xf32>
    %637 = arith.maximumf %634, %636 : vector<16x64xf32>
    %c1_370 = arith.constant 1 : index
    %c5_371 = arith.constant 5 : index
    %c0_372 = arith.constant 0 : index
    %c0_373 = arith.constant 0 : index
    %638 = vector.load %arg1[%c1_370, %c5_371, %c0_372, %c0_373] : memref<2x16x16x64xf32, #tpu.memory_space<vmem>>, vector<1x1x16x64xf32>
    %639 = vector.shape_cast %638 : vector<1x1x16x64xf32> to vector<16x64xf32>
    %640 = arith.maximumf %637, %639 : vector<16x64xf32>
    %c1_374 = arith.constant 1 : index
    %c6_375 = arith.constant 6 : index
    %c0_376 = arith.constant 0 : index
    %c0_377 = arith.constant 0 : index
    %641 = vector.load %arg1[%c1_374, %c6_375, %c0_376, %c0_377] : memref<2x16x16x64xf32, #tpu.memory_space<vmem>>, vector<1x1x16x64xf32>
    %642 = vector.shape_cast %641 : vector<1x1x16x64xf32> to vector<16x64xf32>
    %643 = arith.maximumf %640, %642 : vector<16x64xf32>
    %c1_378 = arith.constant 1 : index
    %c7_379 = arith.constant 7 : index
    %c0_380 = arith.constant 0 : index
    %c0_381 = arith.constant 0 : index
    %644 = vector.load %arg1[%c1_378, %c7_379, %c0_380, %c0_381] : memref<2x16x16x64xf32, #tpu.memory_space<vmem>>, vector<1x1x16x64xf32>
    %645 = vector.shape_cast %644 : vector<1x1x16x64xf32> to vector<16x64xf32>
    %646 = arith.maximumf %643, %645 : vector<16x64xf32>
    %c1_382 = arith.constant 1 : index
    %c8_383 = arith.constant 8 : index
    %c0_384 = arith.constant 0 : index
    %c0_385 = arith.constant 0 : index
    %647 = vector.load %arg1[%c1_382, %c8_383, %c0_384, %c0_385] : memref<2x16x16x64xf32, #tpu.memory_space<vmem>>, vector<1x1x16x64xf32>
    %648 = vector.shape_cast %647 : vector<1x1x16x64xf32> to vector<16x64xf32>
    %649 = arith.maximumf %646, %648 : vector<16x64xf32>
    %c1_386 = arith.constant 1 : index
    %c9_387 = arith.constant 9 : index
    %c0_388 = arith.constant 0 : index
    %c0_389 = arith.constant 0 : index
    %650 = vector.load %arg1[%c1_386, %c9_387, %c0_388, %c0_389] : memref<2x16x16x64xf32, #tpu.memory_space<vmem>>, vector<1x1x16x64xf32>
    %651 = vector.shape_cast %650 : vector<1x1x16x64xf32> to vector<16x64xf32>
    %652 = arith.maximumf %649, %651 : vector<16x64xf32>
    %c1_390 = arith.constant 1 : index
    %c10_391 = arith.constant 10 : index
    %c0_392 = arith.constant 0 : index
    %c0_393 = arith.constant 0 : index
    %653 = vector.load %arg1[%c1_390, %c10_391, %c0_392, %c0_393] : memref<2x16x16x64xf32, #tpu.memory_space<vmem>>, vector<1x1x16x64xf32>
    %654 = vector.shape_cast %653 : vector<1x1x16x64xf32> to vector<16x64xf32>
    %655 = arith.maximumf %652, %654 : vector<16x64xf32>
    %c1_394 = arith.constant 1 : index
    %c11_395 = arith.constant 11 : index
    %c0_396 = arith.constant 0 : index
    %c0_397 = arith.constant 0 : index
    %656 = vector.load %arg1[%c1_394, %c11_395, %c0_396, %c0_397] : memref<2x16x16x64xf32, #tpu.memory_space<vmem>>, vector<1x1x16x64xf32>
    %657 = vector.shape_cast %656 : vector<1x1x16x64xf32> to vector<16x64xf32>
    %658 = arith.maximumf %655, %657 : vector<16x64xf32>
    %c1_398 = arith.constant 1 : index
    %c12_399 = arith.constant 12 : index
    %c0_400 = arith.constant 0 : index
    %c0_401 = arith.constant 0 : index
    %659 = vector.load %arg1[%c1_398, %c12_399, %c0_400, %c0_401] : memref<2x16x16x64xf32, #tpu.memory_space<vmem>>, vector<1x1x16x64xf32>
    %660 = vector.shape_cast %659 : vector<1x1x16x64xf32> to vector<16x64xf32>
    %661 = arith.maximumf %658, %660 : vector<16x64xf32>
    %c1_402 = arith.constant 1 : index
    %c13_403 = arith.constant 13 : index
    %c0_404 = arith.constant 0 : index
    %c0_405 = arith.constant 0 : index
    %662 = vector.load %arg1[%c1_402, %c13_403, %c0_404, %c0_405] : memref<2x16x16x64xf32, #tpu.memory_space<vmem>>, vector<1x1x16x64xf32>
    %663 = vector.shape_cast %662 : vector<1x1x16x64xf32> to vector<16x64xf32>
    %664 = arith.maximumf %661, %663 : vector<16x64xf32>
    %c1_406 = arith.constant 1 : index
    %c14_407 = arith.constant 14 : index
    %c0_408 = arith.constant 0 : index
    %c0_409 = arith.constant 0 : index
    %665 = vector.load %arg1[%c1_406, %c14_407, %c0_408, %c0_409] : memref<2x16x16x64xf32, #tpu.memory_space<vmem>>, vector<1x1x16x64xf32>
    %666 = vector.shape_cast %665 : vector<1x1x16x64xf32> to vector<16x64xf32>
    %667 = arith.maximumf %664, %666 : vector<16x64xf32>
    %c1_410 = arith.constant 1 : index
    %c15_411 = arith.constant 15 : index
    %c0_412 = arith.constant 0 : index
    %c0_413 = arith.constant 0 : index
    %668 = vector.load %arg1[%c1_410, %c15_411, %c0_412, %c0_413] : memref<2x16x16x64xf32, #tpu.memory_space<vmem>>, vector<1x1x16x64xf32>
    %669 = vector.shape_cast %668 : vector<1x1x16x64xf32> to vector<16x64xf32>
    %670 = arith.maximumf %667, %669 : vector<16x64xf32>
    %671 = arith.maximumf %664, %629 : vector<16x64xf32>
    %672 = arith.maximumf %667, %626 : vector<16x64xf32>
    %673 = vector.shape_cast %671 : vector<16x64xf32> to vector<1x16x64xf32>
    %674 = vector.shape_cast %672 : vector<16x64xf32> to vector<1x16x64xf32>
    %675 = vector.shape_cast %670 : vector<16x64xf32> to vector<1x16x64xf32>
    %676 = tpu.concatenate %673, %674, %675 in 0 : vector<1x16x64xf32>, vector<1x16x64xf32>, vector<1x16x64xf32> -> vector<3x16x64xf32>
    %677 = vector.extract_strided_slice %676 {offsets = [0, 1, 0], sizes = [3, 1, 64], strides = [1, 1, 1]} : vector<3x16x64xf32> to vector<3x1x64xf32>
    %678 = vector.shape_cast %677 : vector<3x1x64xf32> to vector<3x64xf32>
    %679 = vector.extract_strided_slice %676 {offsets = [0, 0, 0], sizes = [3, 1, 64], strides = [1, 1, 1]} : vector<3x16x64xf32> to vector<3x1x64xf32>
    %680 = vector.shape_cast %679 : vector<3x1x64xf32> to vector<3x64xf32>
    %681 = arith.maximumf %678, %680 : vector<3x64xf32>
    %682 = vector.extract_strided_slice %676 {offsets = [0, 2, 0], sizes = [3, 1, 64], strides = [1, 1, 1]} : vector<3x16x64xf32> to vector<3x1x64xf32>
    %683 = vector.shape_cast %682 : vector<3x1x64xf32> to vector<3x64xf32>
    %684 = vector.extract_strided_slice %676 {offsets = [0, 3, 0], sizes = [3, 1, 64], strides = [1, 1, 1]} : vector<3x16x64xf32> to vector<3x1x64xf32>
    %685 = vector.shape_cast %684 : vector<3x1x64xf32> to vector<3x64xf32>
    %686 = arith.maximumf %683, %685 : vector<3x64xf32>
    %687 = vector.extract_strided_slice %676 {offsets = [0, 4, 0], sizes = [3, 1, 64], strides = [1, 1, 1]} : vector<3x16x64xf32> to vector<3x1x64xf32>
    %688 = vector.shape_cast %687 : vector<3x1x64xf32> to vector<3x64xf32>
    %689 = arith.maximumf %686, %688 : vector<3x64xf32>
    %690 = vector.extract_strided_slice %676 {offsets = [0, 5, 0], sizes = [3, 1, 64], strides = [1, 1, 1]} : vector<3x16x64xf32> to vector<3x1x64xf32>
    %691 = vector.shape_cast %690 : vector<3x1x64xf32> to vector<3x64xf32>
    %692 = arith.maximumf %689, %691 : vector<3x64xf32>
    %693 = vector.extract_strided_slice %676 {offsets = [0, 6, 0], sizes = [3, 1, 64], strides = [1, 1, 1]} : vector<3x16x64xf32> to vector<3x1x64xf32>
    %694 = vector.shape_cast %693 : vector<3x1x64xf32> to vector<3x64xf32>
    %695 = arith.maximumf %692, %694 : vector<3x64xf32>
    %696 = vector.extract_strided_slice %676 {offsets = [0, 7, 0], sizes = [3, 1, 64], strides = [1, 1, 1]} : vector<3x16x64xf32> to vector<3x1x64xf32>
    %697 = vector.shape_cast %696 : vector<3x1x64xf32> to vector<3x64xf32>
    %698 = arith.maximumf %695, %697 : vector<3x64xf32>
    %699 = vector.extract_strided_slice %676 {offsets = [0, 8, 0], sizes = [3, 1, 64], strides = [1, 1, 1]} : vector<3x16x64xf32> to vector<3x1x64xf32>
    %700 = vector.shape_cast %699 : vector<3x1x64xf32> to vector<3x64xf32>
    %701 = arith.maximumf %698, %700 : vector<3x64xf32>
    %702 = vector.extract_strided_slice %676 {offsets = [0, 9, 0], sizes = [3, 1, 64], strides = [1, 1, 1]} : vector<3x16x64xf32> to vector<3x1x64xf32>
    %703 = vector.shape_cast %702 : vector<3x1x64xf32> to vector<3x64xf32>
    %704 = arith.maximumf %701, %703 : vector<3x64xf32>
    %705 = vector.extract_strided_slice %676 {offsets = [0, 10, 0], sizes = [3, 1, 64], strides = [1, 1, 1]} : vector<3x16x64xf32> to vector<3x1x64xf32>
    %706 = vector.shape_cast %705 : vector<3x1x64xf32> to vector<3x64xf32>
    %707 = arith.maximumf %704, %706 : vector<3x64xf32>
    %708 = vector.extract_strided_slice %676 {offsets = [0, 11, 0], sizes = [3, 1, 64], strides = [1, 1, 1]} : vector<3x16x64xf32> to vector<3x1x64xf32>
    %709 = vector.shape_cast %708 : vector<3x1x64xf32> to vector<3x64xf32>
    %710 = arith.maximumf %707, %709 : vector<3x64xf32>
    %711 = vector.extract_strided_slice %676 {offsets = [0, 12, 0], sizes = [3, 1, 64], strides = [1, 1, 1]} : vector<3x16x64xf32> to vector<3x1x64xf32>
    %712 = vector.shape_cast %711 : vector<3x1x64xf32> to vector<3x64xf32>
    %713 = arith.maximumf %710, %712 : vector<3x64xf32>
    %714 = vector.extract_strided_slice %676 {offsets = [0, 13, 0], sizes = [3, 1, 64], strides = [1, 1, 1]} : vector<3x16x64xf32> to vector<3x1x64xf32>
    %715 = vector.shape_cast %714 : vector<3x1x64xf32> to vector<3x64xf32>
    %716 = arith.maximumf %713, %715 : vector<3x64xf32>
    %717 = vector.extract_strided_slice %676 {offsets = [0, 14, 0], sizes = [3, 1, 64], strides = [1, 1, 1]} : vector<3x16x64xf32> to vector<3x1x64xf32>
    %718 = vector.shape_cast %717 : vector<3x1x64xf32> to vector<3x64xf32>
    %719 = arith.maximumf %716, %718 : vector<3x64xf32>
    %720 = vector.extract_strided_slice %676 {offsets = [0, 15, 0], sizes = [3, 1, 64], strides = [1, 1, 1]} : vector<3x16x64xf32> to vector<3x1x64xf32>
    %721 = vector.shape_cast %720 : vector<3x1x64xf32> to vector<3x64xf32>
    %722 = arith.maximumf %719, %721 : vector<3x64xf32>
    %723 = arith.maximumf %716, %681 : vector<3x64xf32>
    %724 = arith.maximumf %719, %678 : vector<3x64xf32>
    %725 = tpu.concatenate %723, %724, %722 in 0 : vector<3x64xf32>, vector<3x64xf32>, vector<3x64xf32> -> vector<9x64xf32>
    %c1_414 = arith.constant 1 : index
    %c3_415 = arith.constant 3 : index
    %c0_416 = arith.constant 0 : index
    %c0_417 = arith.constant 0 : index
    %726 = vector.load %arg1[%c1_414, %c3_415, %c0_416, %c0_417] : memref<2x16x16x64xf32, #tpu.memory_space<vmem>>, vector<1x1x16x64xf32>
    %727 = vector.shape_cast %726 : vector<1x1x16x64xf32> to vector<16x64xf32>
    %c1_418 = arith.constant 1 : index
    %c2_419 = arith.constant 2 : index
    %c0_420 = arith.constant 0 : index
    %c0_421 = arith.constant 0 : index
    %728 = vector.load %arg1[%c1_418, %c2_419, %c0_420, %c0_421] : memref<2x16x16x64xf32, #tpu.memory_space<vmem>>, vector<1x1x16x64xf32>
    %729 = vector.shape_cast %728 : vector<1x1x16x64xf32> to vector<16x64xf32>
    %730 = arith.maximumf %727, %729 : vector<16x64xf32>
    %c1_422 = arith.constant 1 : index
    %c1_423 = arith.constant 1 : index
    %c0_424 = arith.constant 0 : index
    %c0_425 = arith.constant 0 : index
    %731 = vector.load %arg1[%c1_422, %c1_423, %c0_424, %c0_425] : memref<2x16x16x64xf32, #tpu.memory_space<vmem>>, vector<1x1x16x64xf32>
    %732 = vector.shape_cast %731 : vector<1x1x16x64xf32> to vector<16x64xf32>
    %733 = arith.maximumf %730, %732 : vector<16x64xf32>
    %c1_426 = arith.constant 1 : index
    %c0_427 = arith.constant 0 : index
    %c0_428 = arith.constant 0 : index
    %c0_429 = arith.constant 0 : index
    %734 = vector.load %arg1[%c1_426, %c0_427, %c0_428, %c0_429] : memref<2x16x16x64xf32, #tpu.memory_space<vmem>>, vector<1x1x16x64xf32>
    %735 = vector.shape_cast %734 : vector<1x1x16x64xf32> to vector<16x64xf32>
    %736 = arith.maximumf %733, %735 : vector<16x64xf32>
    %c1_430 = arith.constant 1 : index
    %c4_431 = arith.constant 4 : index
    %c0_432 = arith.constant 0 : index
    %c0_433 = arith.constant 0 : index
    %737 = vector.load %arg1[%c1_430, %c4_431, %c0_432, %c0_433] : memref<2x16x16x64xf32, #tpu.memory_space<vmem>>, vector<1x1x16x64xf32>
    %738 = vector.shape_cast %737 : vector<1x1x16x64xf32> to vector<16x64xf32>
    %c1_434 = arith.constant 1 : index
    %c5_435 = arith.constant 5 : index
    %c0_436 = arith.constant 0 : index
    %c0_437 = arith.constant 0 : index
    %739 = vector.load %arg1[%c1_434, %c5_435, %c0_436, %c0_437] : memref<2x16x16x64xf32, #tpu.memory_space<vmem>>, vector<1x1x16x64xf32>
    %740 = vector.shape_cast %739 : vector<1x1x16x64xf32> to vector<16x64xf32>
    %741 = arith.maximumf %738, %740 : vector<16x64xf32>
    %c1_438 = arith.constant 1 : index
    %c6_439 = arith.constant 6 : index
    %c0_440 = arith.constant 0 : index
    %c0_441 = arith.constant 0 : index
    %742 = vector.load %arg1[%c1_438, %c6_439, %c0_440, %c0_441] : memref<2x16x16x64xf32, #tpu.memory_space<vmem>>, vector<1x1x16x64xf32>
    %743 = vector.shape_cast %742 : vector<1x1x16x64xf32> to vector<16x64xf32>
    %744 = arith.maximumf %741, %743 : vector<16x64xf32>
    %c1_442 = arith.constant 1 : index
    %c7_443 = arith.constant 7 : index
    %c0_444 = arith.constant 0 : index
    %c0_445 = arith.constant 0 : index
    %745 = vector.load %arg1[%c1_442, %c7_443, %c0_444, %c0_445] : memref<2x16x16x64xf32, #tpu.memory_space<vmem>>, vector<1x1x16x64xf32>
    %746 = vector.shape_cast %745 : vector<1x1x16x64xf32> to vector<16x64xf32>
    %747 = arith.maximumf %744, %746 : vector<16x64xf32>
    %c1_446 = arith.constant 1 : index
    %c8_447 = arith.constant 8 : index
    %c0_448 = arith.constant 0 : index
    %c0_449 = arith.constant 0 : index
    %748 = vector.load %arg1[%c1_446, %c8_447, %c0_448, %c0_449] : memref<2x16x16x64xf32, #tpu.memory_space<vmem>>, vector<1x1x16x64xf32>
    %749 = vector.shape_cast %748 : vector<1x1x16x64xf32> to vector<16x64xf32>
    %750 = arith.maximumf %747, %749 : vector<16x64xf32>
    %c1_450 = arith.constant 1 : index
    %c9_451 = arith.constant 9 : index
    %c0_452 = arith.constant 0 : index
    %c0_453 = arith.constant 0 : index
    %751 = vector.load %arg1[%c1_450, %c9_451, %c0_452, %c0_453] : memref<2x16x16x64xf32, #tpu.memory_space<vmem>>, vector<1x1x16x64xf32>
    %752 = vector.shape_cast %751 : vector<1x1x16x64xf32> to vector<16x64xf32>
    %753 = arith.maximumf %750, %752 : vector<16x64xf32>
    %c1_454 = arith.constant 1 : index
    %c10_455 = arith.constant 10 : index
    %c0_456 = arith.constant 0 : index
    %c0_457 = arith.constant 0 : index
    %754 = vector.load %arg1[%c1_454, %c10_455, %c0_456, %c0_457] : memref<2x16x16x64xf32, #tpu.memory_space<vmem>>, vector<1x1x16x64xf32>
    %755 = vector.shape_cast %754 : vector<1x1x16x64xf32> to vector<16x64xf32>
    %756 = arith.maximumf %753, %755 : vector<16x64xf32>
    %c1_458 = arith.constant 1 : index
    %c11_459 = arith.constant 11 : index
    %c0_460 = arith.constant 0 : index
    %c0_461 = arith.constant 0 : index
    %757 = vector.load %arg1[%c1_458, %c11_459, %c0_460, %c0_461] : memref<2x16x16x64xf32, #tpu.memory_space<vmem>>, vector<1x1x16x64xf32>
    %758 = vector.shape_cast %757 : vector<1x1x16x64xf32> to vector<16x64xf32>
    %759 = arith.maximumf %756, %758 : vector<16x64xf32>
    %c1_462 = arith.constant 1 : index
    %c12_463 = arith.constant 12 : index
    %c0_464 = arith.constant 0 : index
    %c0_465 = arith.constant 0 : index
    %760 = vector.load %arg1[%c1_462, %c12_463, %c0_464, %c0_465] : memref<2x16x16x64xf32, #tpu.memory_space<vmem>>, vector<1x1x16x64xf32>
    %761 = vector.shape_cast %760 : vector<1x1x16x64xf32> to vector<16x64xf32>
    %762 = arith.maximumf %759, %761 : vector<16x64xf32>
    %c1_466 = arith.constant 1 : index
    %c13_467 = arith.constant 13 : index
    %c0_468 = arith.constant 0 : index
    %c0_469 = arith.constant 0 : index
    %763 = vector.load %arg1[%c1_466, %c13_467, %c0_468, %c0_469] : memref<2x16x16x64xf32, #tpu.memory_space<vmem>>, vector<1x1x16x64xf32>
    %764 = vector.shape_cast %763 : vector<1x1x16x64xf32> to vector<16x64xf32>
    %765 = arith.maximumf %762, %764 : vector<16x64xf32>
    %c1_470 = arith.constant 1 : index
    %c14_471 = arith.constant 14 : index
    %c0_472 = arith.constant 0 : index
    %c0_473 = arith.constant 0 : index
    %766 = vector.load %arg1[%c1_470, %c14_471, %c0_472, %c0_473] : memref<2x16x16x64xf32, #tpu.memory_space<vmem>>, vector<1x1x16x64xf32>
    %767 = vector.shape_cast %766 : vector<1x1x16x64xf32> to vector<16x64xf32>
    %768 = arith.maximumf %765, %767 : vector<16x64xf32>
    %c1_474 = arith.constant 1 : index
    %c15_475 = arith.constant 15 : index
    %c0_476 = arith.constant 0 : index
    %c0_477 = arith.constant 0 : index
    %769 = vector.load %arg1[%c1_474, %c15_475, %c0_476, %c0_477] : memref<2x16x16x64xf32, #tpu.memory_space<vmem>>, vector<1x1x16x64xf32>
    %770 = vector.shape_cast %769 : vector<1x1x16x64xf32> to vector<16x64xf32>
    %771 = arith.maximumf %768, %770 : vector<16x64xf32>
    %772 = arith.maximumf %759, %736 : vector<16x64xf32>
    %773 = arith.maximumf %762, %733 : vector<16x64xf32>
    %774 = arith.maximumf %765, %730 : vector<16x64xf32>
    %775 = arith.maximumf %768, %727 : vector<16x64xf32>
    %776 = vector.shape_cast %772 : vector<16x64xf32> to vector<1x16x64xf32>
    %777 = vector.shape_cast %773 : vector<16x64xf32> to vector<1x16x64xf32>
    %778 = vector.shape_cast %774 : vector<16x64xf32> to vector<1x16x64xf32>
    %779 = vector.shape_cast %775 : vector<16x64xf32> to vector<1x16x64xf32>
    %780 = vector.shape_cast %771 : vector<16x64xf32> to vector<1x16x64xf32>
    %781 = tpu.concatenate %776, %777, %778, %779, %780 in 0 : vector<1x16x64xf32>, vector<1x16x64xf32>, vector<1x16x64xf32>, vector<1x16x64xf32>, vector<1x16x64xf32> -> vector<5x16x64xf32>
    %782 = vector.extract_strided_slice %781 {offsets = [0, 3, 0], sizes = [5, 1, 64], strides = [1, 1, 1]} : vector<5x16x64xf32> to vector<5x1x64xf32>
    %783 = vector.shape_cast %782 : vector<5x1x64xf32> to vector<5x64xf32>
    %784 = vector.extract_strided_slice %781 {offsets = [0, 2, 0], sizes = [5, 1, 64], strides = [1, 1, 1]} : vector<5x16x64xf32> to vector<5x1x64xf32>
    %785 = vector.shape_cast %784 : vector<5x1x64xf32> to vector<5x64xf32>
    %786 = arith.maximumf %783, %785 : vector<5x64xf32>
    %787 = vector.extract_strided_slice %781 {offsets = [0, 1, 0], sizes = [5, 1, 64], strides = [1, 1, 1]} : vector<5x16x64xf32> to vector<5x1x64xf32>
    %788 = vector.shape_cast %787 : vector<5x1x64xf32> to vector<5x64xf32>
    %789 = arith.maximumf %786, %788 : vector<5x64xf32>
    %790 = vector.extract_strided_slice %781 {offsets = [0, 0, 0], sizes = [5, 1, 64], strides = [1, 1, 1]} : vector<5x16x64xf32> to vector<5x1x64xf32>
    %791 = vector.shape_cast %790 : vector<5x1x64xf32> to vector<5x64xf32>
    %792 = arith.maximumf %789, %791 : vector<5x64xf32>
    %793 = vector.extract_strided_slice %781 {offsets = [0, 4, 0], sizes = [5, 1, 64], strides = [1, 1, 1]} : vector<5x16x64xf32> to vector<5x1x64xf32>
    %794 = vector.shape_cast %793 : vector<5x1x64xf32> to vector<5x64xf32>
    %795 = vector.extract_strided_slice %781 {offsets = [0, 5, 0], sizes = [5, 1, 64], strides = [1, 1, 1]} : vector<5x16x64xf32> to vector<5x1x64xf32>
    %796 = vector.shape_cast %795 : vector<5x1x64xf32> to vector<5x64xf32>
    %797 = arith.maximumf %794, %796 : vector<5x64xf32>
    %798 = vector.extract_strided_slice %781 {offsets = [0, 6, 0], sizes = [5, 1, 64], strides = [1, 1, 1]} : vector<5x16x64xf32> to vector<5x1x64xf32>
    %799 = vector.shape_cast %798 : vector<5x1x64xf32> to vector<5x64xf32>
    %800 = arith.maximumf %797, %799 : vector<5x64xf32>
    %801 = vector.extract_strided_slice %781 {offsets = [0, 7, 0], sizes = [5, 1, 64], strides = [1, 1, 1]} : vector<5x16x64xf32> to vector<5x1x64xf32>
    %802 = vector.shape_cast %801 : vector<5x1x64xf32> to vector<5x64xf32>
    %803 = arith.maximumf %800, %802 : vector<5x64xf32>
    %804 = vector.extract_strided_slice %781 {offsets = [0, 8, 0], sizes = [5, 1, 64], strides = [1, 1, 1]} : vector<5x16x64xf32> to vector<5x1x64xf32>
    %805 = vector.shape_cast %804 : vector<5x1x64xf32> to vector<5x64xf32>
    %806 = arith.maximumf %803, %805 : vector<5x64xf32>
    %807 = vector.extract_strided_slice %781 {offsets = [0, 9, 0], sizes = [5, 1, 64], strides = [1, 1, 1]} : vector<5x16x64xf32> to vector<5x1x64xf32>
    %808 = vector.shape_cast %807 : vector<5x1x64xf32> to vector<5x64xf32>
    %809 = arith.maximumf %806, %808 : vector<5x64xf32>
    %810 = vector.extract_strided_slice %781 {offsets = [0, 10, 0], sizes = [5, 1, 64], strides = [1, 1, 1]} : vector<5x16x64xf32> to vector<5x1x64xf32>
    %811 = vector.shape_cast %810 : vector<5x1x64xf32> to vector<5x64xf32>
    %812 = arith.maximumf %809, %811 : vector<5x64xf32>
    %813 = vector.extract_strided_slice %781 {offsets = [0, 11, 0], sizes = [5, 1, 64], strides = [1, 1, 1]} : vector<5x16x64xf32> to vector<5x1x64xf32>
    %814 = vector.shape_cast %813 : vector<5x1x64xf32> to vector<5x64xf32>
    %815 = arith.maximumf %812, %814 : vector<5x64xf32>
    %816 = vector.extract_strided_slice %781 {offsets = [0, 12, 0], sizes = [5, 1, 64], strides = [1, 1, 1]} : vector<5x16x64xf32> to vector<5x1x64xf32>
    %817 = vector.shape_cast %816 : vector<5x1x64xf32> to vector<5x64xf32>
    %818 = arith.maximumf %815, %817 : vector<5x64xf32>
    %819 = vector.extract_strided_slice %781 {offsets = [0, 13, 0], sizes = [5, 1, 64], strides = [1, 1, 1]} : vector<5x16x64xf32> to vector<5x1x64xf32>
    %820 = vector.shape_cast %819 : vector<5x1x64xf32> to vector<5x64xf32>
    %821 = arith.maximumf %818, %820 : vector<5x64xf32>
    %822 = vector.extract_strided_slice %781 {offsets = [0, 14, 0], sizes = [5, 1, 64], strides = [1, 1, 1]} : vector<5x16x64xf32> to vector<5x1x64xf32>
    %823 = vector.shape_cast %822 : vector<5x1x64xf32> to vector<5x64xf32>
    %824 = arith.maximumf %821, %823 : vector<5x64xf32>
    %825 = vector.extract_strided_slice %781 {offsets = [0, 15, 0], sizes = [5, 1, 64], strides = [1, 1, 1]} : vector<5x16x64xf32> to vector<5x1x64xf32>
    %826 = vector.shape_cast %825 : vector<5x1x64xf32> to vector<5x64xf32>
    %827 = arith.maximumf %824, %826 : vector<5x64xf32>
    %828 = arith.maximumf %815, %792 : vector<5x64xf32>
    %829 = arith.maximumf %818, %789 : vector<5x64xf32>
    %830 = arith.maximumf %821, %786 : vector<5x64xf32>
    %831 = arith.maximumf %824, %783 : vector<5x64xf32>
    %832 = tpu.concatenate %828, %829, %830, %831, %827 in 0 : vector<5x64xf32>, vector<5x64xf32>, vector<5x64xf32>, vector<5x64xf32>, vector<5x64xf32> -> vector<25x64xf32>
    %c1_478 = arith.constant 1 : index
    %c5_479 = arith.constant 5 : index
    %c0_480 = arith.constant 0 : index
    %c0_481 = arith.constant 0 : index
    %833 = vector.load %arg1[%c1_478, %c5_479, %c0_480, %c0_481] : memref<2x16x16x64xf32, #tpu.memory_space<vmem>>, vector<1x1x16x64xf32>
    %834 = vector.shape_cast %833 : vector<1x1x16x64xf32> to vector<16x64xf32>
    %c1_482 = arith.constant 1 : index
    %c4_483 = arith.constant 4 : index
    %c0_484 = arith.constant 0 : index
    %c0_485 = arith.constant 0 : index
    %835 = vector.load %arg1[%c1_482, %c4_483, %c0_484, %c0_485] : memref<2x16x16x64xf32, #tpu.memory_space<vmem>>, vector<1x1x16x64xf32>
    %836 = vector.shape_cast %835 : vector<1x1x16x64xf32> to vector<16x64xf32>
    %837 = arith.maximumf %834, %836 : vector<16x64xf32>
    %c1_486 = arith.constant 1 : index
    %c3_487 = arith.constant 3 : index
    %c0_488 = arith.constant 0 : index
    %c0_489 = arith.constant 0 : index
    %838 = vector.load %arg1[%c1_486, %c3_487, %c0_488, %c0_489] : memref<2x16x16x64xf32, #tpu.memory_space<vmem>>, vector<1x1x16x64xf32>
    %839 = vector.shape_cast %838 : vector<1x1x16x64xf32> to vector<16x64xf32>
    %840 = arith.maximumf %837, %839 : vector<16x64xf32>
    %c1_490 = arith.constant 1 : index
    %c2_491 = arith.constant 2 : index
    %c0_492 = arith.constant 0 : index
    %c0_493 = arith.constant 0 : index
    %841 = vector.load %arg1[%c1_490, %c2_491, %c0_492, %c0_493] : memref<2x16x16x64xf32, #tpu.memory_space<vmem>>, vector<1x1x16x64xf32>
    %842 = vector.shape_cast %841 : vector<1x1x16x64xf32> to vector<16x64xf32>
    %843 = arith.maximumf %840, %842 : vector<16x64xf32>
    %c1_494 = arith.constant 1 : index
    %c1_495 = arith.constant 1 : index
    %c0_496 = arith.constant 0 : index
    %c0_497 = arith.constant 0 : index
    %844 = vector.load %arg1[%c1_494, %c1_495, %c0_496, %c0_497] : memref<2x16x16x64xf32, #tpu.memory_space<vmem>>, vector<1x1x16x64xf32>
    %845 = vector.shape_cast %844 : vector<1x1x16x64xf32> to vector<16x64xf32>
    %846 = arith.maximumf %843, %845 : vector<16x64xf32>
    %c1_498 = arith.constant 1 : index
    %c0_499 = arith.constant 0 : index
    %c0_500 = arith.constant 0 : index
    %c0_501 = arith.constant 0 : index
    %847 = vector.load %arg1[%c1_498, %c0_499, %c0_500, %c0_501] : memref<2x16x16x64xf32, #tpu.memory_space<vmem>>, vector<1x1x16x64xf32>
    %848 = vector.shape_cast %847 : vector<1x1x16x64xf32> to vector<16x64xf32>
    %849 = arith.maximumf %846, %848 : vector<16x64xf32>
    %c1_502 = arith.constant 1 : index
    %c6_503 = arith.constant 6 : index
    %c0_504 = arith.constant 0 : index
    %c0_505 = arith.constant 0 : index
    %850 = vector.load %arg1[%c1_502, %c6_503, %c0_504, %c0_505] : memref<2x16x16x64xf32, #tpu.memory_space<vmem>>, vector<1x1x16x64xf32>
    %851 = vector.shape_cast %850 : vector<1x1x16x64xf32> to vector<16x64xf32>
    %c1_506 = arith.constant 1 : index
    %c7_507 = arith.constant 7 : index
    %c0_508 = arith.constant 0 : index
    %c0_509 = arith.constant 0 : index
    %852 = vector.load %arg1[%c1_506, %c7_507, %c0_508, %c0_509] : memref<2x16x16x64xf32, #tpu.memory_space<vmem>>, vector<1x1x16x64xf32>
    %853 = vector.shape_cast %852 : vector<1x1x16x64xf32> to vector<16x64xf32>
    %854 = arith.maximumf %851, %853 : vector<16x64xf32>
    %c1_510 = arith.constant 1 : index
    %c8_511 = arith.constant 8 : index
    %c0_512 = arith.constant 0 : index
    %c0_513 = arith.constant 0 : index
    %855 = vector.load %arg1[%c1_510, %c8_511, %c0_512, %c0_513] : memref<2x16x16x64xf32, #tpu.memory_space<vmem>>, vector<1x1x16x64xf32>
    %856 = vector.shape_cast %855 : vector<1x1x16x64xf32> to vector<16x64xf32>
    %857 = arith.maximumf %854, %856 : vector<16x64xf32>
    %c1_514 = arith.constant 1 : index
    %c9_515 = arith.constant 9 : index
    %c0_516 = arith.constant 0 : index
    %c0_517 = arith.constant 0 : index
    %858 = vector.load %arg1[%c1_514, %c9_515, %c0_516, %c0_517] : memref<2x16x16x64xf32, #tpu.memory_space<vmem>>, vector<1x1x16x64xf32>
    %859 = vector.shape_cast %858 : vector<1x1x16x64xf32> to vector<16x64xf32>
    %860 = arith.maximumf %857, %859 : vector<16x64xf32>
    %c1_518 = arith.constant 1 : index
    %c10_519 = arith.constant 10 : index
    %c0_520 = arith.constant 0 : index
    %c0_521 = arith.constant 0 : index
    %861 = vector.load %arg1[%c1_518, %c10_519, %c0_520, %c0_521] : memref<2x16x16x64xf32, #tpu.memory_space<vmem>>, vector<1x1x16x64xf32>
    %862 = vector.shape_cast %861 : vector<1x1x16x64xf32> to vector<16x64xf32>
    %863 = arith.maximumf %860, %862 : vector<16x64xf32>
    %c1_522 = arith.constant 1 : index
    %c11_523 = arith.constant 11 : index
    %c0_524 = arith.constant 0 : index
    %c0_525 = arith.constant 0 : index
    %864 = vector.load %arg1[%c1_522, %c11_523, %c0_524, %c0_525] : memref<2x16x16x64xf32, #tpu.memory_space<vmem>>, vector<1x1x16x64xf32>
    %865 = vector.shape_cast %864 : vector<1x1x16x64xf32> to vector<16x64xf32>
    %866 = arith.maximumf %863, %865 : vector<16x64xf32>
    %c1_526 = arith.constant 1 : index
    %c12_527 = arith.constant 12 : index
    %c0_528 = arith.constant 0 : index
    %c0_529 = arith.constant 0 : index
    %867 = vector.load %arg1[%c1_526, %c12_527, %c0_528, %c0_529] : memref<2x16x16x64xf32, #tpu.memory_space<vmem>>, vector<1x1x16x64xf32>
    %868 = vector.shape_cast %867 : vector<1x1x16x64xf32> to vector<16x64xf32>
    %869 = arith.maximumf %866, %868 : vector<16x64xf32>
    %c1_530 = arith.constant 1 : index
    %c13_531 = arith.constant 13 : index
    %c0_532 = arith.constant 0 : index
    %c0_533 = arith.constant 0 : index
    %870 = vector.load %arg1[%c1_530, %c13_531, %c0_532, %c0_533] : memref<2x16x16x64xf32, #tpu.memory_space<vmem>>, vector<1x1x16x64xf32>
    %871 = vector.shape_cast %870 : vector<1x1x16x64xf32> to vector<16x64xf32>
    %872 = arith.maximumf %869, %871 : vector<16x64xf32>
    %c1_534 = arith.constant 1 : index
    %c14_535 = arith.constant 14 : index
    %c0_536 = arith.constant 0 : index
    %c0_537 = arith.constant 0 : index
    %873 = vector.load %arg1[%c1_534, %c14_535, %c0_536, %c0_537] : memref<2x16x16x64xf32, #tpu.memory_space<vmem>>, vector<1x1x16x64xf32>
    %874 = vector.shape_cast %873 : vector<1x1x16x64xf32> to vector<16x64xf32>
    %875 = arith.maximumf %872, %874 : vector<16x64xf32>
    %c1_538 = arith.constant 1 : index
    %c15_539 = arith.constant 15 : index
    %c0_540 = arith.constant 0 : index
    %c0_541 = arith.constant 0 : index
    %876 = vector.load %arg1[%c1_538, %c15_539, %c0_540, %c0_541] : memref<2x16x16x64xf32, #tpu.memory_space<vmem>>, vector<1x1x16x64xf32>
    %877 = vector.shape_cast %876 : vector<1x1x16x64xf32> to vector<16x64xf32>
    %878 = arith.maximumf %875, %877 : vector<16x64xf32>
    %879 = arith.maximumf %860, %849 : vector<16x64xf32>
    %880 = arith.maximumf %863, %846 : vector<16x64xf32>
    %881 = arith.maximumf %866, %843 : vector<16x64xf32>
    %882 = arith.maximumf %869, %840 : vector<16x64xf32>
    %883 = arith.maximumf %872, %837 : vector<16x64xf32>
    %884 = arith.maximumf %875, %834 : vector<16x64xf32>
    %885 = vector.shape_cast %879 : vector<16x64xf32> to vector<1x16x64xf32>
    %886 = vector.shape_cast %880 : vector<16x64xf32> to vector<1x16x64xf32>
    %887 = vector.shape_cast %881 : vector<16x64xf32> to vector<1x16x64xf32>
    %888 = vector.shape_cast %882 : vector<16x64xf32> to vector<1x16x64xf32>
    %889 = vector.shape_cast %883 : vector<16x64xf32> to vector<1x16x64xf32>
    %890 = vector.shape_cast %884 : vector<16x64xf32> to vector<1x16x64xf32>
    %891 = vector.shape_cast %878 : vector<16x64xf32> to vector<1x16x64xf32>
    %892 = tpu.concatenate %885, %886, %887, %888, %889, %890, %891 in 0 : vector<1x16x64xf32>, vector<1x16x64xf32>, vector<1x16x64xf32>, vector<1x16x64xf32>, vector<1x16x64xf32>, vector<1x16x64xf32>, vector<1x16x64xf32> -> vector<7x16x64xf32>
    %893 = vector.extract_strided_slice %892 {offsets = [0, 5, 0], sizes = [7, 1, 64], strides = [1, 1, 1]} : vector<7x16x64xf32> to vector<7x1x64xf32>
    %894 = vector.shape_cast %893 : vector<7x1x64xf32> to vector<7x64xf32>
    %895 = vector.extract_strided_slice %892 {offsets = [0, 4, 0], sizes = [7, 1, 64], strides = [1, 1, 1]} : vector<7x16x64xf32> to vector<7x1x64xf32>
    %896 = vector.shape_cast %895 : vector<7x1x64xf32> to vector<7x64xf32>
    %897 = arith.maximumf %894, %896 : vector<7x64xf32>
    %898 = vector.extract_strided_slice %892 {offsets = [0, 3, 0], sizes = [7, 1, 64], strides = [1, 1, 1]} : vector<7x16x64xf32> to vector<7x1x64xf32>
    %899 = vector.shape_cast %898 : vector<7x1x64xf32> to vector<7x64xf32>
    %900 = arith.maximumf %897, %899 : vector<7x64xf32>
    %901 = vector.extract_strided_slice %892 {offsets = [0, 2, 0], sizes = [7, 1, 64], strides = [1, 1, 1]} : vector<7x16x64xf32> to vector<7x1x64xf32>
    %902 = vector.shape_cast %901 : vector<7x1x64xf32> to vector<7x64xf32>
    %903 = arith.maximumf %900, %902 : vector<7x64xf32>
    %904 = vector.extract_strided_slice %892 {offsets = [0, 1, 0], sizes = [7, 1, 64], strides = [1, 1, 1]} : vector<7x16x64xf32> to vector<7x1x64xf32>
    %905 = vector.shape_cast %904 : vector<7x1x64xf32> to vector<7x64xf32>
    %906 = arith.maximumf %903, %905 : vector<7x64xf32>
    %907 = vector.extract_strided_slice %892 {offsets = [0, 0, 0], sizes = [7, 1, 64], strides = [1, 1, 1]} : vector<7x16x64xf32> to vector<7x1x64xf32>
    %908 = vector.shape_cast %907 : vector<7x1x64xf32> to vector<7x64xf32>
    %909 = arith.maximumf %906, %908 : vector<7x64xf32>
    %910 = vector.extract_strided_slice %892 {offsets = [0, 6, 0], sizes = [7, 1, 64], strides = [1, 1, 1]} : vector<7x16x64xf32> to vector<7x1x64xf32>
    %911 = vector.shape_cast %910 : vector<7x1x64xf32> to vector<7x64xf32>
    %912 = vector.extract_strided_slice %892 {offsets = [0, 7, 0], sizes = [7, 1, 64], strides = [1, 1, 1]} : vector<7x16x64xf32> to vector<7x1x64xf32>
    %913 = vector.shape_cast %912 : vector<7x1x64xf32> to vector<7x64xf32>
    %914 = arith.maximumf %911, %913 : vector<7x64xf32>
    %915 = vector.extract_strided_slice %892 {offsets = [0, 8, 0], sizes = [7, 1, 64], strides = [1, 1, 1]} : vector<7x16x64xf32> to vector<7x1x64xf32>
    %916 = vector.shape_cast %915 : vector<7x1x64xf32> to vector<7x64xf32>
    %917 = arith.maximumf %914, %916 : vector<7x64xf32>
    %918 = vector.extract_strided_slice %892 {offsets = [0, 9, 0], sizes = [7, 1, 64], strides = [1, 1, 1]} : vector<7x16x64xf32> to vector<7x1x64xf32>
    %919 = vector.shape_cast %918 : vector<7x1x64xf32> to vector<7x64xf32>
    %920 = arith.maximumf %917, %919 : vector<7x64xf32>
    %921 = vector.extract_strided_slice %892 {offsets = [0, 10, 0], sizes = [7, 1, 64], strides = [1, 1, 1]} : vector<7x16x64xf32> to vector<7x1x64xf32>
    %922 = vector.shape_cast %921 : vector<7x1x64xf32> to vector<7x64xf32>
    %923 = arith.maximumf %920, %922 : vector<7x64xf32>
    %924 = vector.extract_strided_slice %892 {offsets = [0, 11, 0], sizes = [7, 1, 64], strides = [1, 1, 1]} : vector<7x16x64xf32> to vector<7x1x64xf32>
    %925 = vector.shape_cast %924 : vector<7x1x64xf32> to vector<7x64xf32>
    %926 = arith.maximumf %923, %925 : vector<7x64xf32>
    %927 = vector.extract_strided_slice %892 {offsets = [0, 12, 0], sizes = [7, 1, 64], strides = [1, 1, 1]} : vector<7x16x64xf32> to vector<7x1x64xf32>
    %928 = vector.shape_cast %927 : vector<7x1x64xf32> to vector<7x64xf32>
    %929 = arith.maximumf %926, %928 : vector<7x64xf32>
    %930 = vector.extract_strided_slice %892 {offsets = [0, 13, 0], sizes = [7, 1, 64], strides = [1, 1, 1]} : vector<7x16x64xf32> to vector<7x1x64xf32>
    %931 = vector.shape_cast %930 : vector<7x1x64xf32> to vector<7x64xf32>
    %932 = arith.maximumf %929, %931 : vector<7x64xf32>
    %933 = vector.extract_strided_slice %892 {offsets = [0, 14, 0], sizes = [7, 1, 64], strides = [1, 1, 1]} : vector<7x16x64xf32> to vector<7x1x64xf32>
    %934 = vector.shape_cast %933 : vector<7x1x64xf32> to vector<7x64xf32>
    %935 = arith.maximumf %932, %934 : vector<7x64xf32>
    %936 = vector.extract_strided_slice %892 {offsets = [0, 15, 0], sizes = [7, 1, 64], strides = [1, 1, 1]} : vector<7x16x64xf32> to vector<7x1x64xf32>
    %937 = vector.shape_cast %936 : vector<7x1x64xf32> to vector<7x64xf32>
    %938 = arith.maximumf %935, %937 : vector<7x64xf32>
    %939 = arith.maximumf %920, %909 : vector<7x64xf32>
    %940 = arith.maximumf %923, %906 : vector<7x64xf32>
    %941 = arith.maximumf %926, %903 : vector<7x64xf32>
    %942 = arith.maximumf %929, %900 : vector<7x64xf32>
    %943 = arith.maximumf %932, %897 : vector<7x64xf32>
    %944 = arith.maximumf %935, %894 : vector<7x64xf32>
    %945 = tpu.concatenate %939, %940, %941, %942, %943, %944, %938 in 0 : vector<7x64xf32>, vector<7x64xf32>, vector<7x64xf32>, vector<7x64xf32>, vector<7x64xf32>, vector<7x64xf32>, vector<7x64xf32> -> vector<49x64xf32>
    %946 = tpu.concatenate %725, %832, %945 in 0 : vector<9x64xf32>, vector<25x64xf32>, vector<49x64xf32> -> vector<83x64xf32>
    %c0_542 = arith.constant 0 : index
    %c0_543 = arith.constant 0 : index
    %947 = vector.load %arg2[%c0_542, %c0_543] : memref<64x48xf32, #tpu.memory_space<vmem>>, vector<64x48xf32>
    %cst_544 = arith.constant dense<0.000000e+00> : vector<83x48xf32>
    %948 = tpu.matmul %946, %947, %cst_544 {dimension_numbers = #tpu.dot_dimension_numbers<[1], [0], [0], [1], [0, 0, 1, 1], [], []>} : vector<83x64xf32>, vector<64x48xf32>, vector<83x48xf32> -> vector<83x48xf32>
    %c0_545 = arith.constant 0 : index
    %c0_546 = arith.constant 0 : index
    %949 = vector.load %arg3[%c0_545, %c0_546] : memref<1x48xf32, #tpu.memory_space<vmem>>, vector<1x48xf32>
    %950 = vector.broadcast %949 : vector<1x48xf32> to vector<83x48xf32>
    %951 = arith.addf %948, %950 : vector<83x48xf32>
    %cst_547 = arith.constant 0.000000e+00 : f32
    %952 = vector.broadcast %cst_547 : f32 to vector<83x48xf32>
    %953 = arith.maximumf %951, %952 : vector<83x48xf32>
    %cst_548 = arith.constant 0.000000e+00 : f32
    %954 = vector.broadcast %cst_548 : f32 to vector<1x64xf32>
    %955 = vector.extract_strided_slice %953 {offsets = [0, 0], sizes = [9, 16], strides = [1, 1]} : vector<83x48xf32> to vector<9x16xf32>
    %956 = vector.extract_strided_slice %955 {offsets = [0, 0], sizes = [1, 16], strides = [1, 1]} : vector<9x16xf32> to vector<1x16xf32>
    %c0_549 = arith.constant 0 : index
    %c0_550 = arith.constant 0 : index
    %957 = vector.load %arg11[%c0_549, %c0_550] : memref<1x144xf32, #tpu.memory_space<vmem>>, vector<1x16xf32>
    tpu.vector_store %arg11[%c0_549, %c0_550], %956 {strides = array<i32>} : memref<1x144xf32, #tpu.memory_space<vmem>>, vector<1x16xf32>,
    %958 = vector.extract_strided_slice %955 {offsets = [1, 0], sizes = [1, 16], strides = [1, 1]} : vector<9x16xf32> to vector<1x16xf32>
    %c0_551 = arith.constant 0 : index
    %c16_552 = arith.constant 16 : index
    %959 = vector.load %arg11[%c0_551, %c16_552] : memref<1x144xf32, #tpu.memory_space<vmem>>, vector<1x16xf32>
    tpu.vector_store %arg11[%c0_551, %c16_552], %958 {strides = array<i32>} : memref<1x144xf32, #tpu.memory_space<vmem>>, vector<1x16xf32>,
    %960 = vector.extract_strided_slice %955 {offsets = [2, 0], sizes = [1, 16], strides = [1, 1]} : vector<9x16xf32> to vector<1x16xf32>
    %c0_553 = arith.constant 0 : index
    %c32_554 = arith.constant 32 : index
    %961 = vector.load %arg11[%c0_553, %c32_554] : memref<1x144xf32, #tpu.memory_space<vmem>>, vector<1x16xf32>
    tpu.vector_store %arg11[%c0_553, %c32_554], %960 {strides = array<i32>} : memref<1x144xf32, #tpu.memory_space<vmem>>, vector<1x16xf32>,
    %962 = vector.extract_strided_slice %955 {offsets = [3, 0], sizes = [1, 16], strides = [1, 1]} : vector<9x16xf32> to vector<1x16xf32>
    %c0_555 = arith.constant 0 : index
    %c48_556 = arith.constant 48 : index
    %963 = vector.load %arg11[%c0_555, %c48_556] : memref<1x144xf32, #tpu.memory_space<vmem>>, vector<1x16xf32>
    tpu.vector_store %arg11[%c0_555, %c48_556], %962 {strides = array<i32>} : memref<1x144xf32, #tpu.memory_space<vmem>>, vector<1x16xf32>,
    %964 = vector.extract_strided_slice %955 {offsets = [4, 0], sizes = [1, 16], strides = [1, 1]} : vector<9x16xf32> to vector<1x16xf32>
    %c0_557 = arith.constant 0 : index
    %c64_558 = arith.constant 64 : index
    %965 = vector.load %arg11[%c0_557, %c64_558] : memref<1x144xf32, #tpu.memory_space<vmem>>, vector<1x16xf32>
    tpu.vector_store %arg11[%c0_557, %c64_558], %964 {strides = array<i32>} : memref<1x144xf32, #tpu.memory_space<vmem>>, vector<1x16xf32>,
    %966 = vector.extract_strided_slice %955 {offsets = [5, 0], sizes = [1, 16], strides = [1, 1]} : vector<9x16xf32> to vector<1x16xf32>
    %c0_559 = arith.constant 0 : index
    %c80_560 = arith.constant 80 : index
    %967 = vector.load %arg11[%c0_559, %c80_560] : memref<1x144xf32, #tpu.memory_space<vmem>>, vector<1x16xf32>
    tpu.vector_store %arg11[%c0_559, %c80_560], %966 {strides = array<i32>} : memref<1x144xf32, #tpu.memory_space<vmem>>, vector<1x16xf32>,
    %968 = vector.extract_strided_slice %955 {offsets = [6, 0], sizes = [1, 16], strides = [1, 1]} : vector<9x16xf32> to vector<1x16xf32>
    %c0_561 = arith.constant 0 : index
    %c96_562 = arith.constant 96 : index
    %969 = vector.load %arg11[%c0_561, %c96_562] : memref<1x144xf32, #tpu.memory_space<vmem>>, vector<1x16xf32>
    tpu.vector_store %arg11[%c0_561, %c96_562], %968 {strides = array<i32>} : memref<1x144xf32, #tpu.memory_space<vmem>>, vector<1x16xf32>,
    %970 = vector.extract_strided_slice %955 {offsets = [7, 0], sizes = [1, 16], strides = [1, 1]} : vector<9x16xf32> to vector<1x16xf32>
    %c0_563 = arith.constant 0 : index
    %c112_564 = arith.constant 112 : index
    %971 = vector.load %arg11[%c0_563, %c112_564] : memref<1x144xf32, #tpu.memory_space<vmem>>, vector<1x16xf32>
    tpu.vector_store %arg11[%c0_563, %c112_564], %970 {strides = array<i32>} : memref<1x144xf32, #tpu.memory_space<vmem>>, vector<1x16xf32>,
    %972 = vector.extract_strided_slice %955 {offsets = [8, 0], sizes = [1, 16], strides = [1, 1]} : vector<9x16xf32> to vector<1x16xf32>
    %c0_565 = arith.constant 0 : index
    %c128_566 = arith.constant 128 : index
    %973 = vector.load %arg11[%c0_565, %c128_566] : memref<1x144xf32, #tpu.memory_space<vmem>>, vector<1x16xf32>
    tpu.vector_store %arg11[%c0_565, %c128_566], %972 {strides = array<i32>} : memref<1x144xf32, #tpu.memory_space<vmem>>, vector<1x16xf32>,
    %c0_567 = arith.constant 0 : index
    %c0_568 = arith.constant 0 : index
    %974 = vector.load %arg11[%c0_567, %c0_568] : memref<1x144xf32, #tpu.memory_space<vmem>>, vector<1x144xf32>
    %c0_569 = arith.constant 0 : index
    %c0_570 = arith.constant 0 : index
    %975 = vector.load %arg4[%c0_569, %c0_570] : memref<144x64xf32, #tpu.memory_space<vmem>>, vector<144x64xf32>
    %cst_571 = arith.constant dense<0.000000e+00> : vector<1x64xf32>
    %976 = tpu.matmul %974, %975, %cst_571 {dimension_numbers = #tpu.dot_dimension_numbers<[1], [0], [0], [1], [0, 0, 1, 1], [], []>} : vector<1x144xf32>, vector<144x64xf32>, vector<1x64xf32> -> vector<1x64xf32>
    %c0_572 = arith.constant 0 : index
    %c0_573 = arith.constant 0 : index
    %977 = vector.load %arg7[%c0_572, %c0_573] : memref<1x192xf32, #tpu.memory_space<vmem>>, vector<1x64xf32>
    %978 = arith.addf %976, %977 : vector<1x64xf32>
    %cst_574 = arith.constant 0.000000e+00 : f32
    %979 = vector.broadcast %cst_574 : f32 to vector<1x64xf32>
    %980 = arith.maximumf %978, %979 : vector<1x64xf32>
    %981 = arith.addf %954, %980 : vector<1x64xf32>
    %982 = vector.extract_strided_slice %953 {offsets = [9, 16], sizes = [25, 16], strides = [1, 1]} : vector<83x48xf32> to vector<25x16xf32>
    %983 = vector.extract_strided_slice %982 {offsets = [0, 0], sizes = [1, 16], strides = [1, 1]} : vector<25x16xf32> to vector<1x16xf32>
    %c0_575 = arith.constant 0 : index
    %c0_576 = arith.constant 0 : index
    %984 = vector.load %arg12[%c0_575, %c0_576] : memref<1x400xf32, #tpu.memory_space<vmem>>, vector<1x16xf32>
    tpu.vector_store %arg12[%c0_575, %c0_576], %983 {strides = array<i32>} : memref<1x400xf32, #tpu.memory_space<vmem>>, vector<1x16xf32>,
    %985 = vector.extract_strided_slice %982 {offsets = [1, 0], sizes = [1, 16], strides = [1, 1]} : vector<25x16xf32> to vector<1x16xf32>
    %c0_577 = arith.constant 0 : index
    %c16_578 = arith.constant 16 : index
    %986 = vector.load %arg12[%c0_577, %c16_578] : memref<1x400xf32, #tpu.memory_space<vmem>>, vector<1x16xf32>
    tpu.vector_store %arg12[%c0_577, %c16_578], %985 {strides = array<i32>} : memref<1x400xf32, #tpu.memory_space<vmem>>, vector<1x16xf32>,
    %987 = vector.extract_strided_slice %982 {offsets = [2, 0], sizes = [1, 16], strides = [1, 1]} : vector<25x16xf32> to vector<1x16xf32>
    %c0_579 = arith.constant 0 : index
    %c32_580 = arith.constant 32 : index
    %988 = vector.load %arg12[%c0_579, %c32_580] : memref<1x400xf32, #tpu.memory_space<vmem>>, vector<1x16xf32>
    tpu.vector_store %arg12[%c0_579, %c32_580], %987 {strides = array<i32>} : memref<1x400xf32, #tpu.memory_space<vmem>>, vector<1x16xf32>,
    %989 = vector.extract_strided_slice %982 {offsets = [3, 0], sizes = [1, 16], strides = [1, 1]} : vector<25x16xf32> to vector<1x16xf32>
    %c0_581 = arith.constant 0 : index
    %c48_582 = arith.constant 48 : index
    %990 = vector.load %arg12[%c0_581, %c48_582] : memref<1x400xf32, #tpu.memory_space<vmem>>, vector<1x16xf32>
    tpu.vector_store %arg12[%c0_581, %c48_582], %989 {strides = array<i32>} : memref<1x400xf32, #tpu.memory_space<vmem>>, vector<1x16xf32>,
    %991 = vector.extract_strided_slice %982 {offsets = [4, 0], sizes = [1, 16], strides = [1, 1]} : vector<25x16xf32> to vector<1x16xf32>
    %c0_583 = arith.constant 0 : index
    %c64_584 = arith.constant 64 : index
    %992 = vector.load %arg12[%c0_583, %c64_584] : memref<1x400xf32, #tpu.memory_space<vmem>>, vector<1x16xf32>
    tpu.vector_store %arg12[%c0_583, %c64_584], %991 {strides = array<i32>} : memref<1x400xf32, #tpu.memory_space<vmem>>, vector<1x16xf32>,
    %993 = vector.extract_strided_slice %982 {offsets = [5, 0], sizes = [1, 16], strides = [1, 1]} : vector<25x16xf32> to vector<1x16xf32>
    %c0_585 = arith.constant 0 : index
    %c80_586 = arith.constant 80 : index
    %994 = vector.load %arg12[%c0_585, %c80_586] : memref<1x400xf32, #tpu.memory_space<vmem>>, vector<1x16xf32>
    tpu.vector_store %arg12[%c0_585, %c80_586], %993 {strides = array<i32>} : memref<1x400xf32, #tpu.memory_space<vmem>>, vector<1x16xf32>,
    %995 = vector.extract_strided_slice %982 {offsets = [6, 0], sizes = [1, 16], strides = [1, 1]} : vector<25x16xf32> to vector<1x16xf32>
    %c0_587 = arith.constant 0 : index
    %c96_588 = arith.constant 96 : index
    %996 = vector.load %arg12[%c0_587, %c96_588] : memref<1x400xf32, #tpu.memory_space<vmem>>, vector<1x16xf32>
    tpu.vector_store %arg12[%c0_587, %c96_588], %995 {strides = array<i32>} : memref<1x400xf32, #tpu.memory_space<vmem>>, vector<1x16xf32>,
    %997 = vector.extract_strided_slice %982 {offsets = [7, 0], sizes = [1, 16], strides = [1, 1]} : vector<25x16xf32> to vector<1x16xf32>
    %c0_589 = arith.constant 0 : index
    %c112_590 = arith.constant 112 : index
    %998 = vector.load %arg12[%c0_589, %c112_590] : memref<1x400xf32, #tpu.memory_space<vmem>>, vector<1x16xf32>
    tpu.vector_store %arg12[%c0_589, %c112_590], %997 {strides = array<i32>} : memref<1x400xf32, #tpu.memory_space<vmem>>, vector<1x16xf32>,
    %999 = vector.extract_strided_slice %982 {offsets = [8, 0], sizes = [1, 16], strides = [1, 1]} : vector<25x16xf32> to vector<1x16xf32>
    %c0_591 = arith.constant 0 : index
    %c128_592 = arith.constant 128 : index
    %1000 = vector.load %arg12[%c0_591, %c128_592] : memref<1x400xf32, #tpu.memory_space<vmem>>, vector<1x16xf32>
    tpu.vector_store %arg12[%c0_591, %c128_592], %999 {strides = array<i32>} : memref<1x400xf32, #tpu.memory_space<vmem>>, vector<1x16xf32>,
    %1001 = vector.extract_strided_slice %982 {offsets = [9, 0], sizes = [1, 16], strides = [1, 1]} : vector<25x16xf32> to vector<1x16xf32>
    %c0_593 = arith.constant 0 : index
    %c144_594 = arith.constant 144 : index
    %1002 = vector.load %arg12[%c0_593, %c144_594] : memref<1x400xf32, #tpu.memory_space<vmem>>, vector<1x16xf32>
    tpu.vector_store %arg12[%c0_593, %c144_594], %1001 {strides = array<i32>} : memref<1x400xf32, #tpu.memory_space<vmem>>, vector<1x16xf32>,
    %1003 = vector.extract_strided_slice %982 {offsets = [10, 0], sizes = [1, 16], strides = [1, 1]} : vector<25x16xf32> to vector<1x16xf32>
    %c0_595 = arith.constant 0 : index
    %c160_596 = arith.constant 160 : index
    %1004 = vector.load %arg12[%c0_595, %c160_596] : memref<1x400xf32, #tpu.memory_space<vmem>>, vector<1x16xf32>
    tpu.vector_store %arg12[%c0_595, %c160_596], %1003 {strides = array<i32>} : memref<1x400xf32, #tpu.memory_space<vmem>>, vector<1x16xf32>,
    %1005 = vector.extract_strided_slice %982 {offsets = [11, 0], sizes = [1, 16], strides = [1, 1]} : vector<25x16xf32> to vector<1x16xf32>
    %c0_597 = arith.constant 0 : index
    %c176_598 = arith.constant 176 : index
    %1006 = vector.load %arg12[%c0_597, %c176_598] : memref<1x400xf32, #tpu.memory_space<vmem>>, vector<1x16xf32>
    tpu.vector_store %arg12[%c0_597, %c176_598], %1005 {strides = array<i32>} : memref<1x400xf32, #tpu.memory_space<vmem>>, vector<1x16xf32>,
    %1007 = vector.extract_strided_slice %982 {offsets = [12, 0], sizes = [1, 16], strides = [1, 1]} : vector<25x16xf32> to vector<1x16xf32>
    %c0_599 = arith.constant 0 : index
    %c192_600 = arith.constant 192 : index
    %1008 = vector.load %arg12[%c0_599, %c192_600] : memref<1x400xf32, #tpu.memory_space<vmem>>, vector<1x16xf32>
    tpu.vector_store %arg12[%c0_599, %c192_600], %1007 {strides = array<i32>} : memref<1x400xf32, #tpu.memory_space<vmem>>, vector<1x16xf32>,
    %1009 = vector.extract_strided_slice %982 {offsets = [13, 0], sizes = [1, 16], strides = [1, 1]} : vector<25x16xf32> to vector<1x16xf32>
    %c0_601 = arith.constant 0 : index
    %c208_602 = arith.constant 208 : index
    %1010 = vector.load %arg12[%c0_601, %c208_602] : memref<1x400xf32, #tpu.memory_space<vmem>>, vector<1x16xf32>
    tpu.vector_store %arg12[%c0_601, %c208_602], %1009 {strides = array<i32>} : memref<1x400xf32, #tpu.memory_space<vmem>>, vector<1x16xf32>,
    %1011 = vector.extract_strided_slice %982 {offsets = [14, 0], sizes = [1, 16], strides = [1, 1]} : vector<25x16xf32> to vector<1x16xf32>
    %c0_603 = arith.constant 0 : index
    %c224_604 = arith.constant 224 : index
    %1012 = vector.load %arg12[%c0_603, %c224_604] : memref<1x400xf32, #tpu.memory_space<vmem>>, vector<1x16xf32>
    tpu.vector_store %arg12[%c0_603, %c224_604], %1011 {strides = array<i32>} : memref<1x400xf32, #tpu.memory_space<vmem>>, vector<1x16xf32>,
    %1013 = vector.extract_strided_slice %982 {offsets = [15, 0], sizes = [1, 16], strides = [1, 1]} : vector<25x16xf32> to vector<1x16xf32>
    %c0_605 = arith.constant 0 : index
    %c240_606 = arith.constant 240 : index
    %1014 = vector.load %arg12[%c0_605, %c240_606] : memref<1x400xf32, #tpu.memory_space<vmem>>, vector<1x16xf32>
    tpu.vector_store %arg12[%c0_605, %c240_606], %1013 {strides = array<i32>} : memref<1x400xf32, #tpu.memory_space<vmem>>, vector<1x16xf32>,
    %1015 = vector.extract_strided_slice %982 {offsets = [16, 0], sizes = [1, 16], strides = [1, 1]} : vector<25x16xf32> to vector<1x16xf32>
    %c0_607 = arith.constant 0 : index
    %c256_608 = arith.constant 256 : index
    %1016 = vector.load %arg12[%c0_607, %c256_608] : memref<1x400xf32, #tpu.memory_space<vmem>>, vector<1x16xf32>
    tpu.vector_store %arg12[%c0_607, %c256_608], %1015 {strides = array<i32>} : memref<1x400xf32, #tpu.memory_space<vmem>>, vector<1x16xf32>,
    %1017 = vector.extract_strided_slice %982 {offsets = [17, 0], sizes = [1, 16], strides = [1, 1]} : vector<25x16xf32> to vector<1x16xf32>
    %c0_609 = arith.constant 0 : index
    %c272_610 = arith.constant 272 : index
    %1018 = vector.load %arg12[%c0_609, %c272_610] : memref<1x400xf32, #tpu.memory_space<vmem>>, vector<1x16xf32>
    tpu.vector_store %arg12[%c0_609, %c272_610], %1017 {strides = array<i32>} : memref<1x400xf32, #tpu.memory_space<vmem>>, vector<1x16xf32>,
    %1019 = vector.extract_strided_slice %982 {offsets = [18, 0], sizes = [1, 16], strides = [1, 1]} : vector<25x16xf32> to vector<1x16xf32>
    %c0_611 = arith.constant 0 : index
    %c288_612 = arith.constant 288 : index
    %1020 = vector.load %arg12[%c0_611, %c288_612] : memref<1x400xf32, #tpu.memory_space<vmem>>, vector<1x16xf32>
    tpu.vector_store %arg12[%c0_611, %c288_612], %1019 {strides = array<i32>} : memref<1x400xf32, #tpu.memory_space<vmem>>, vector<1x16xf32>,
    %1021 = vector.extract_strided_slice %982 {offsets = [19, 0], sizes = [1, 16], strides = [1, 1]} : vector<25x16xf32> to vector<1x16xf32>
    %c0_613 = arith.constant 0 : index
    %c304_614 = arith.constant 304 : index
    %1022 = vector.load %arg12[%c0_613, %c304_614] : memref<1x400xf32, #tpu.memory_space<vmem>>, vector<1x16xf32>
    tpu.vector_store %arg12[%c0_613, %c304_614], %1021 {strides = array<i32>} : memref<1x400xf32, #tpu.memory_space<vmem>>, vector<1x16xf32>,
    %1023 = vector.extract_strided_slice %982 {offsets = [20, 0], sizes = [1, 16], strides = [1, 1]} : vector<25x16xf32> to vector<1x16xf32>
    %c0_615 = arith.constant 0 : index
    %c320_616 = arith.constant 320 : index
    %1024 = vector.load %arg12[%c0_615, %c320_616] : memref<1x400xf32, #tpu.memory_space<vmem>>, vector<1x16xf32>
    tpu.vector_store %arg12[%c0_615, %c320_616], %1023 {strides = array<i32>} : memref<1x400xf32, #tpu.memory_space<vmem>>, vector<1x16xf32>,
    %1025 = vector.extract_strided_slice %982 {offsets = [21, 0], sizes = [1, 16], strides = [1, 1]} : vector<25x16xf32> to vector<1x16xf32>
    %c0_617 = arith.constant 0 : index
    %c336_618 = arith.constant 336 : index
    %1026 = vector.load %arg12[%c0_617, %c336_618] : memref<1x400xf32, #tpu.memory_space<vmem>>, vector<1x16xf32>
    tpu.vector_store %arg12[%c0_617, %c336_618], %1025 {strides = array<i32>} : memref<1x400xf32, #tpu.memory_space<vmem>>, vector<1x16xf32>,
    %1027 = vector.extract_strided_slice %982 {offsets = [22, 0], sizes = [1, 16], strides = [1, 1]} : vector<25x16xf32> to vector<1x16xf32>
    %c0_619 = arith.constant 0 : index
    %c352_620 = arith.constant 352 : index
    %1028 = vector.load %arg12[%c0_619, %c352_620] : memref<1x400xf32, #tpu.memory_space<vmem>>, vector<1x16xf32>
    tpu.vector_store %arg12[%c0_619, %c352_620], %1027 {strides = array<i32>} : memref<1x400xf32, #tpu.memory_space<vmem>>, vector<1x16xf32>,
    %1029 = vector.extract_strided_slice %982 {offsets = [23, 0], sizes = [1, 16], strides = [1, 1]} : vector<25x16xf32> to vector<1x16xf32>
    %c0_621 = arith.constant 0 : index
    %c368_622 = arith.constant 368 : index
    %1030 = vector.load %arg12[%c0_621, %c368_622] : memref<1x400xf32, #tpu.memory_space<vmem>>, vector<1x16xf32>
    tpu.vector_store %arg12[%c0_621, %c368_622], %1029 {strides = array<i32>} : memref<1x400xf32, #tpu.memory_space<vmem>>, vector<1x16xf32>,
    %1031 = vector.extract_strided_slice %982 {offsets = [24, 0], sizes = [1, 16], strides = [1, 1]} : vector<25x16xf32> to vector<1x16xf32>
    %c0_623 = arith.constant 0 : index
    %c384_624 = arith.constant 384 : index
    %1032 = vector.load %arg12[%c0_623, %c384_624] : memref<1x400xf32, #tpu.memory_space<vmem>>, vector<1x16xf32>
    tpu.vector_store %arg12[%c0_623, %c384_624], %1031 {strides = array<i32>} : memref<1x400xf32, #tpu.memory_space<vmem>>, vector<1x16xf32>,
    %c0_625 = arith.constant 0 : index
    %c0_626 = arith.constant 0 : index
    %1033 = vector.load %arg12[%c0_625, %c0_626] : memref<1x400xf32, #tpu.memory_space<vmem>>, vector<1x400xf32>
    %c0_627 = arith.constant 0 : index
    %c0_628 = arith.constant 0 : index
    %1034 = vector.load %arg5[%c0_627, %c0_628] : memref<400x64xf32, #tpu.memory_space<vmem>>, vector<400x64xf32>
    %cst_629 = arith.constant dense<0.000000e+00> : vector<1x64xf32>
    %1035 = tpu.matmul %1033, %1034, %cst_629 {dimension_numbers = #tpu.dot_dimension_numbers<[1], [0], [0], [1], [0, 0, 1, 1], [], []>} : vector<1x400xf32>, vector<400x64xf32>, vector<1x64xf32> -> vector<1x64xf32>
    %c0_630 = arith.constant 0 : index
    %c64_631 = arith.constant 64 : index
    %1036 = vector.load %arg7[%c0_630, %c64_631] : memref<1x192xf32, #tpu.memory_space<vmem>>, vector<1x64xf32>
    %1037 = arith.addf %1035, %1036 : vector<1x64xf32>
    %cst_632 = arith.constant 0.000000e+00 : f32
    %1038 = vector.broadcast %cst_632 : f32 to vector<1x64xf32>
    %1039 = arith.maximumf %1037, %1038 : vector<1x64xf32>
    %1040 = arith.addf %981, %1039 : vector<1x64xf32>
    %1041 = vector.extract_strided_slice %953 {offsets = [34, 32], sizes = [49, 16], strides = [1, 1]} : vector<83x48xf32> to vector<49x16xf32>
    %1042 = vector.extract_strided_slice %1041 {offsets = [0, 0], sizes = [1, 16], strides = [1, 1]} : vector<49x16xf32> to vector<1x16xf32>
    %c0_633 = arith.constant 0 : index
    %c0_634 = arith.constant 0 : index
    %1043 = vector.load %arg13[%c0_633, %c0_634] : memref<1x784xf32, #tpu.memory_space<vmem>>, vector<1x16xf32>
    tpu.vector_store %arg13[%c0_633, %c0_634], %1042 {strides = array<i32>} : memref<1x784xf32, #tpu.memory_space<vmem>>, vector<1x16xf32>,
    %1044 = vector.extract_strided_slice %1041 {offsets = [1, 0], sizes = [1, 16], strides = [1, 1]} : vector<49x16xf32> to vector<1x16xf32>
    %c0_635 = arith.constant 0 : index
    %c16_636 = arith.constant 16 : index
    %1045 = vector.load %arg13[%c0_635, %c16_636] : memref<1x784xf32, #tpu.memory_space<vmem>>, vector<1x16xf32>
    tpu.vector_store %arg13[%c0_635, %c16_636], %1044 {strides = array<i32>} : memref<1x784xf32, #tpu.memory_space<vmem>>, vector<1x16xf32>,
    %1046 = vector.extract_strided_slice %1041 {offsets = [2, 0], sizes = [1, 16], strides = [1, 1]} : vector<49x16xf32> to vector<1x16xf32>
    %c0_637 = arith.constant 0 : index
    %c32_638 = arith.constant 32 : index
    %1047 = vector.load %arg13[%c0_637, %c32_638] : memref<1x784xf32, #tpu.memory_space<vmem>>, vector<1x16xf32>
    tpu.vector_store %arg13[%c0_637, %c32_638], %1046 {strides = array<i32>} : memref<1x784xf32, #tpu.memory_space<vmem>>, vector<1x16xf32>,
    %1048 = vector.extract_strided_slice %1041 {offsets = [3, 0], sizes = [1, 16], strides = [1, 1]} : vector<49x16xf32> to vector<1x16xf32>
    %c0_639 = arith.constant 0 : index
    %c48_640 = arith.constant 48 : index
    %1049 = vector.load %arg13[%c0_639, %c48_640] : memref<1x784xf32, #tpu.memory_space<vmem>>, vector<1x16xf32>
    tpu.vector_store %arg13[%c0_639, %c48_640], %1048 {strides = array<i32>} : memref<1x784xf32, #tpu.memory_space<vmem>>, vector<1x16xf32>,
    %1050 = vector.extract_strided_slice %1041 {offsets = [4, 0], sizes = [1, 16], strides = [1, 1]} : vector<49x16xf32> to vector<1x16xf32>
    %c0_641 = arith.constant 0 : index
    %c64_642 = arith.constant 64 : index
    %1051 = vector.load %arg13[%c0_641, %c64_642] : memref<1x784xf32, #tpu.memory_space<vmem>>, vector<1x16xf32>
    tpu.vector_store %arg13[%c0_641, %c64_642], %1050 {strides = array<i32>} : memref<1x784xf32, #tpu.memory_space<vmem>>, vector<1x16xf32>,
    %1052 = vector.extract_strided_slice %1041 {offsets = [5, 0], sizes = [1, 16], strides = [1, 1]} : vector<49x16xf32> to vector<1x16xf32>
    %c0_643 = arith.constant 0 : index
    %c80_644 = arith.constant 80 : index
    %1053 = vector.load %arg13[%c0_643, %c80_644] : memref<1x784xf32, #tpu.memory_space<vmem>>, vector<1x16xf32>
    tpu.vector_store %arg13[%c0_643, %c80_644], %1052 {strides = array<i32>} : memref<1x784xf32, #tpu.memory_space<vmem>>, vector<1x16xf32>,
    %1054 = vector.extract_strided_slice %1041 {offsets = [6, 0], sizes = [1, 16], strides = [1, 1]} : vector<49x16xf32> to vector<1x16xf32>
    %c0_645 = arith.constant 0 : index
    %c96_646 = arith.constant 96 : index
    %1055 = vector.load %arg13[%c0_645, %c96_646] : memref<1x784xf32, #tpu.memory_space<vmem>>, vector<1x16xf32>
    tpu.vector_store %arg13[%c0_645, %c96_646], %1054 {strides = array<i32>} : memref<1x784xf32, #tpu.memory_space<vmem>>, vector<1x16xf32>,
    %1056 = vector.extract_strided_slice %1041 {offsets = [7, 0], sizes = [1, 16], strides = [1, 1]} : vector<49x16xf32> to vector<1x16xf32>
    %c0_647 = arith.constant 0 : index
    %c112_648 = arith.constant 112 : index
    %1057 = vector.load %arg13[%c0_647, %c112_648] : memref<1x784xf32, #tpu.memory_space<vmem>>, vector<1x16xf32>
    tpu.vector_store %arg13[%c0_647, %c112_648], %1056 {strides = array<i32>} : memref<1x784xf32, #tpu.memory_space<vmem>>, vector<1x16xf32>,
    %1058 = vector.extract_strided_slice %1041 {offsets = [8, 0], sizes = [1, 16], strides = [1, 1]} : vector<49x16xf32> to vector<1x16xf32>
    %c0_649 = arith.constant 0 : index
    %c128_650 = arith.constant 128 : index
    %1059 = vector.load %arg13[%c0_649, %c128_650] : memref<1x784xf32, #tpu.memory_space<vmem>>, vector<1x16xf32>
    tpu.vector_store %arg13[%c0_649, %c128_650], %1058 {strides = array<i32>} : memref<1x784xf32, #tpu.memory_space<vmem>>, vector<1x16xf32>,
    %1060 = vector.extract_strided_slice %1041 {offsets = [9, 0], sizes = [1, 16], strides = [1, 1]} : vector<49x16xf32> to vector<1x16xf32>
    %c0_651 = arith.constant 0 : index
    %c144_652 = arith.constant 144 : index
    %1061 = vector.load %arg13[%c0_651, %c144_652] : memref<1x784xf32, #tpu.memory_space<vmem>>, vector<1x16xf32>
    tpu.vector_store %arg13[%c0_651, %c144_652], %1060 {strides = array<i32>} : memref<1x784xf32, #tpu.memory_space<vmem>>, vector<1x16xf32>,
    %1062 = vector.extract_strided_slice %1041 {offsets = [10, 0], sizes = [1, 16], strides = [1, 1]} : vector<49x16xf32> to vector<1x16xf32>
    %c0_653 = arith.constant 0 : index
    %c160_654 = arith.constant 160 : index
    %1063 = vector.load %arg13[%c0_653, %c160_654] : memref<1x784xf32, #tpu.memory_space<vmem>>, vector<1x16xf32>
    tpu.vector_store %arg13[%c0_653, %c160_654], %1062 {strides = array<i32>} : memref<1x784xf32, #tpu.memory_space<vmem>>, vector<1x16xf32>,
    %1064 = vector.extract_strided_slice %1041 {offsets = [11, 0], sizes = [1, 16], strides = [1, 1]} : vector<49x16xf32> to vector<1x16xf32>
    %c0_655 = arith.constant 0 : index
    %c176_656 = arith.constant 176 : index
    %1065 = vector.load %arg13[%c0_655, %c176_656] : memref<1x784xf32, #tpu.memory_space<vmem>>, vector<1x16xf32>
    tpu.vector_store %arg13[%c0_655, %c176_656], %1064 {strides = array<i32>} : memref<1x784xf32, #tpu.memory_space<vmem>>, vector<1x16xf32>,
    %1066 = vector.extract_strided_slice %1041 {offsets = [12, 0], sizes = [1, 16], strides = [1, 1]} : vector<49x16xf32> to vector<1x16xf32>
    %c0_657 = arith.constant 0 : index
    %c192_658 = arith.constant 192 : index
    %1067 = vector.load %arg13[%c0_657, %c192_658] : memref<1x784xf32, #tpu.memory_space<vmem>>, vector<1x16xf32>
    tpu.vector_store %arg13[%c0_657, %c192_658], %1066 {strides = array<i32>} : memref<1x784xf32, #tpu.memory_space<vmem>>, vector<1x16xf32>,
    %1068 = vector.extract_strided_slice %1041 {offsets = [13, 0], sizes = [1, 16], strides = [1, 1]} : vector<49x16xf32> to vector<1x16xf32>
    %c0_659 = arith.constant 0 : index
    %c208_660 = arith.constant 208 : index
    %1069 = vector.load %arg13[%c0_659, %c208_660] : memref<1x784xf32, #tpu.memory_space<vmem>>, vector<1x16xf32>
    tpu.vector_store %arg13[%c0_659, %c208_660], %1068 {strides = array<i32>} : memref<1x784xf32, #tpu.memory_space<vmem>>, vector<1x16xf32>,
    %1070 = vector.extract_strided_slice %1041 {offsets = [14, 0], sizes = [1, 16], strides = [1, 1]} : vector<49x16xf32> to vector<1x16xf32>
    %c0_661 = arith.constant 0 : index
    %c224_662 = arith.constant 224 : index
    %1071 = vector.load %arg13[%c0_661, %c224_662] : memref<1x784xf32, #tpu.memory_space<vmem>>, vector<1x16xf32>
    tpu.vector_store %arg13[%c0_661, %c224_662], %1070 {strides = array<i32>} : memref<1x784xf32, #tpu.memory_space<vmem>>, vector<1x16xf32>,
    %1072 = vector.extract_strided_slice %1041 {offsets = [15, 0], sizes = [1, 16], strides = [1, 1]} : vector<49x16xf32> to vector<1x16xf32>
    %c0_663 = arith.constant 0 : index
    %c240_664 = arith.constant 240 : index
    %1073 = vector.load %arg13[%c0_663, %c240_664] : memref<1x784xf32, #tpu.memory_space<vmem>>, vector<1x16xf32>
    tpu.vector_store %arg13[%c0_663, %c240_664], %1072 {strides = array<i32>} : memref<1x784xf32, #tpu.memory_space<vmem>>, vector<1x16xf32>,
    %1074 = vector.extract_strided_slice %1041 {offsets = [16, 0], sizes = [1, 16], strides = [1, 1]} : vector<49x16xf32> to vector<1x16xf32>
    %c0_665 = arith.constant 0 : index
    %c256_666 = arith.constant 256 : index
    %1075 = vector.load %arg13[%c0_665, %c256_666] : memref<1x784xf32, #tpu.memory_space<vmem>>, vector<1x16xf32>
    tpu.vector_store %arg13[%c0_665, %c256_666], %1074 {strides = array<i32>} : memref<1x784xf32, #tpu.memory_space<vmem>>, vector<1x16xf32>,
    %1076 = vector.extract_strided_slice %1041 {offsets = [17, 0], sizes = [1, 16], strides = [1, 1]} : vector<49x16xf32> to vector<1x16xf32>
    %c0_667 = arith.constant 0 : index
    %c272_668 = arith.constant 272 : index
    %1077 = vector.load %arg13[%c0_667, %c272_668] : memref<1x784xf32, #tpu.memory_space<vmem>>, vector<1x16xf32>
    tpu.vector_store %arg13[%c0_667, %c272_668], %1076 {strides = array<i32>} : memref<1x784xf32, #tpu.memory_space<vmem>>, vector<1x16xf32>,
    %1078 = vector.extract_strided_slice %1041 {offsets = [18, 0], sizes = [1, 16], strides = [1, 1]} : vector<49x16xf32> to vector<1x16xf32>
    %c0_669 = arith.constant 0 : index
    %c288_670 = arith.constant 288 : index
    %1079 = vector.load %arg13[%c0_669, %c288_670] : memref<1x784xf32, #tpu.memory_space<vmem>>, vector<1x16xf32>
    tpu.vector_store %arg13[%c0_669, %c288_670], %1078 {strides = array<i32>} : memref<1x784xf32, #tpu.memory_space<vmem>>, vector<1x16xf32>,
    %1080 = vector.extract_strided_slice %1041 {offsets = [19, 0], sizes = [1, 16], strides = [1, 1]} : vector<49x16xf32> to vector<1x16xf32>
    %c0_671 = arith.constant 0 : index
    %c304_672 = arith.constant 304 : index
    %1081 = vector.load %arg13[%c0_671, %c304_672] : memref<1x784xf32, #tpu.memory_space<vmem>>, vector<1x16xf32>
    tpu.vector_store %arg13[%c0_671, %c304_672], %1080 {strides = array<i32>} : memref<1x784xf32, #tpu.memory_space<vmem>>, vector<1x16xf32>,
    %1082 = vector.extract_strided_slice %1041 {offsets = [20, 0], sizes = [1, 16], strides = [1, 1]} : vector<49x16xf32> to vector<1x16xf32>
    %c0_673 = arith.constant 0 : index
    %c320_674 = arith.constant 320 : index
    %1083 = vector.load %arg13[%c0_673, %c320_674] : memref<1x784xf32, #tpu.memory_space<vmem>>, vector<1x16xf32>
    tpu.vector_store %arg13[%c0_673, %c320_674], %1082 {strides = array<i32>} : memref<1x784xf32, #tpu.memory_space<vmem>>, vector<1x16xf32>,
    %1084 = vector.extract_strided_slice %1041 {offsets = [21, 0], sizes = [1, 16], strides = [1, 1]} : vector<49x16xf32> to vector<1x16xf32>
    %c0_675 = arith.constant 0 : index
    %c336_676 = arith.constant 336 : index
    %1085 = vector.load %arg13[%c0_675, %c336_676] : memref<1x784xf32, #tpu.memory_space<vmem>>, vector<1x16xf32>
    tpu.vector_store %arg13[%c0_675, %c336_676], %1084 {strides = array<i32>} : memref<1x784xf32, #tpu.memory_space<vmem>>, vector<1x16xf32>,
    %1086 = vector.extract_strided_slice %1041 {offsets = [22, 0], sizes = [1, 16], strides = [1, 1]} : vector<49x16xf32> to vector<1x16xf32>
    %c0_677 = arith.constant 0 : index
    %c352_678 = arith.constant 352 : index
    %1087 = vector.load %arg13[%c0_677, %c352_678] : memref<1x784xf32, #tpu.memory_space<vmem>>, vector<1x16xf32>
    tpu.vector_store %arg13[%c0_677, %c352_678], %1086 {strides = array<i32>} : memref<1x784xf32, #tpu.memory_space<vmem>>, vector<1x16xf32>,
    %1088 = vector.extract_strided_slice %1041 {offsets = [23, 0], sizes = [1, 16], strides = [1, 1]} : vector<49x16xf32> to vector<1x16xf32>
    %c0_679 = arith.constant 0 : index
    %c368_680 = arith.constant 368 : index
    %1089 = vector.load %arg13[%c0_679, %c368_680] : memref<1x784xf32, #tpu.memory_space<vmem>>, vector<1x16xf32>
    tpu.vector_store %arg13[%c0_679, %c368_680], %1088 {strides = array<i32>} : memref<1x784xf32, #tpu.memory_space<vmem>>, vector<1x16xf32>,
    %1090 = vector.extract_strided_slice %1041 {offsets = [24, 0], sizes = [1, 16], strides = [1, 1]} : vector<49x16xf32> to vector<1x16xf32>
    %c0_681 = arith.constant 0 : index
    %c384_682 = arith.constant 384 : index
    %1091 = vector.load %arg13[%c0_681, %c384_682] : memref<1x784xf32, #tpu.memory_space<vmem>>, vector<1x16xf32>
    tpu.vector_store %arg13[%c0_681, %c384_682], %1090 {strides = array<i32>} : memref<1x784xf32, #tpu.memory_space<vmem>>, vector<1x16xf32>,
    %1092 = vector.extract_strided_slice %1041 {offsets = [25, 0], sizes = [1, 16], strides = [1, 1]} : vector<49x16xf32> to vector<1x16xf32>
    %c0_683 = arith.constant 0 : index
    %c400_684 = arith.constant 400 : index
    %1093 = vector.load %arg13[%c0_683, %c400_684] : memref<1x784xf32, #tpu.memory_space<vmem>>, vector<1x16xf32>
    tpu.vector_store %arg13[%c0_683, %c400_684], %1092 {strides = array<i32>} : memref<1x784xf32, #tpu.memory_space<vmem>>, vector<1x16xf32>,
    %1094 = vector.extract_strided_slice %1041 {offsets = [26, 0], sizes = [1, 16], strides = [1, 1]} : vector<49x16xf32> to vector<1x16xf32>
    %c0_685 = arith.constant 0 : index
    %c416_686 = arith.constant 416 : index
    %1095 = vector.load %arg13[%c0_685, %c416_686] : memref<1x784xf32, #tpu.memory_space<vmem>>, vector<1x16xf32>
    tpu.vector_store %arg13[%c0_685, %c416_686], %1094 {strides = array<i32>} : memref<1x784xf32, #tpu.memory_space<vmem>>, vector<1x16xf32>,
    %1096 = vector.extract_strided_slice %1041 {offsets = [27, 0], sizes = [1, 16], strides = [1, 1]} : vector<49x16xf32> to vector<1x16xf32>
    %c0_687 = arith.constant 0 : index
    %c432_688 = arith.constant 432 : index
    %1097 = vector.load %arg13[%c0_687, %c432_688] : memref<1x784xf32, #tpu.memory_space<vmem>>, vector<1x16xf32>
    tpu.vector_store %arg13[%c0_687, %c432_688], %1096 {strides = array<i32>} : memref<1x784xf32, #tpu.memory_space<vmem>>, vector<1x16xf32>,
    %1098 = vector.extract_strided_slice %1041 {offsets = [28, 0], sizes = [1, 16], strides = [1, 1]} : vector<49x16xf32> to vector<1x16xf32>
    %c0_689 = arith.constant 0 : index
    %c448_690 = arith.constant 448 : index
    %1099 = vector.load %arg13[%c0_689, %c448_690] : memref<1x784xf32, #tpu.memory_space<vmem>>, vector<1x16xf32>
    tpu.vector_store %arg13[%c0_689, %c448_690], %1098 {strides = array<i32>} : memref<1x784xf32, #tpu.memory_space<vmem>>, vector<1x16xf32>,
    %1100 = vector.extract_strided_slice %1041 {offsets = [29, 0], sizes = [1, 16], strides = [1, 1]} : vector<49x16xf32> to vector<1x16xf32>
    %c0_691 = arith.constant 0 : index
    %c464_692 = arith.constant 464 : index
    %1101 = vector.load %arg13[%c0_691, %c464_692] : memref<1x784xf32, #tpu.memory_space<vmem>>, vector<1x16xf32>
    tpu.vector_store %arg13[%c0_691, %c464_692], %1100 {strides = array<i32>} : memref<1x784xf32, #tpu.memory_space<vmem>>, vector<1x16xf32>,
    %1102 = vector.extract_strided_slice %1041 {offsets = [30, 0], sizes = [1, 16], strides = [1, 1]} : vector<49x16xf32> to vector<1x16xf32>
    %c0_693 = arith.constant 0 : index
    %c480_694 = arith.constant 480 : index
    %1103 = vector.load %arg13[%c0_693, %c480_694] : memref<1x784xf32, #tpu.memory_space<vmem>>, vector<1x16xf32>
    tpu.vector_store %arg13[%c0_693, %c480_694], %1102 {strides = array<i32>} : memref<1x784xf32, #tpu.memory_space<vmem>>, vector<1x16xf32>,
    %1104 = vector.extract_strided_slice %1041 {offsets = [31, 0], sizes = [1, 16], strides = [1, 1]} : vector<49x16xf32> to vector<1x16xf32>
    %c0_695 = arith.constant 0 : index
    %c496_696 = arith.constant 496 : index
    %1105 = vector.load %arg13[%c0_695, %c496_696] : memref<1x784xf32, #tpu.memory_space<vmem>>, vector<1x16xf32>
    tpu.vector_store %arg13[%c0_695, %c496_696], %1104 {strides = array<i32>} : memref<1x784xf32, #tpu.memory_space<vmem>>, vector<1x16xf32>,
    %1106 = vector.extract_strided_slice %1041 {offsets = [32, 0], sizes = [1, 16], strides = [1, 1]} : vector<49x16xf32> to vector<1x16xf32>
    %c0_697 = arith.constant 0 : index
    %c512_698 = arith.constant 512 : index
    %1107 = vector.load %arg13[%c0_697, %c512_698] : memref<1x784xf32, #tpu.memory_space<vmem>>, vector<1x16xf32>
    tpu.vector_store %arg13[%c0_697, %c512_698], %1106 {strides = array<i32>} : memref<1x784xf32, #tpu.memory_space<vmem>>, vector<1x16xf32>,
    %1108 = vector.extract_strided_slice %1041 {offsets = [33, 0], sizes = [1, 16], strides = [1, 1]} : vector<49x16xf32> to vector<1x16xf32>
    %c0_699 = arith.constant 0 : index
    %c528_700 = arith.constant 528 : index
    %1109 = vector.load %arg13[%c0_699, %c528_700] : memref<1x784xf32, #tpu.memory_space<vmem>>, vector<1x16xf32>
    tpu.vector_store %arg13[%c0_699, %c528_700], %1108 {strides = array<i32>} : memref<1x784xf32, #tpu.memory_space<vmem>>, vector<1x16xf32>,
    %1110 = vector.extract_strided_slice %1041 {offsets = [34, 0], sizes = [1, 16], strides = [1, 1]} : vector<49x16xf32> to vector<1x16xf32>
    %c0_701 = arith.constant 0 : index
    %c544_702 = arith.constant 544 : index
    %1111 = vector.load %arg13[%c0_701, %c544_702] : memref<1x784xf32, #tpu.memory_space<vmem>>, vector<1x16xf32>
    tpu.vector_store %arg13[%c0_701, %c544_702], %1110 {strides = array<i32>} : memref<1x784xf32, #tpu.memory_space<vmem>>, vector<1x16xf32>,
    %1112 = vector.extract_strided_slice %1041 {offsets = [35, 0], sizes = [1, 16], strides = [1, 1]} : vector<49x16xf32> to vector<1x16xf32>
    %c0_703 = arith.constant 0 : index
    %c560_704 = arith.constant 560 : index
    %1113 = vector.load %arg13[%c0_703, %c560_704] : memref<1x784xf32, #tpu.memory_space<vmem>>, vector<1x16xf32>
    tpu.vector_store %arg13[%c0_703, %c560_704], %1112 {strides = array<i32>} : memref<1x784xf32, #tpu.memory_space<vmem>>, vector<1x16xf32>,
    %1114 = vector.extract_strided_slice %1041 {offsets = [36, 0], sizes = [1, 16], strides = [1, 1]} : vector<49x16xf32> to vector<1x16xf32>
    %c0_705 = arith.constant 0 : index
    %c576_706 = arith.constant 576 : index
    %1115 = vector.load %arg13[%c0_705, %c576_706] : memref<1x784xf32, #tpu.memory_space<vmem>>, vector<1x16xf32>
    tpu.vector_store %arg13[%c0_705, %c576_706], %1114 {strides = array<i32>} : memref<1x784xf32, #tpu.memory_space<vmem>>, vector<1x16xf32>,
    %1116 = vector.extract_strided_slice %1041 {offsets = [37, 0], sizes = [1, 16], strides = [1, 1]} : vector<49x16xf32> to vector<1x16xf32>
    %c0_707 = arith.constant 0 : index
    %c592_708 = arith.constant 592 : index
    %1117 = vector.load %arg13[%c0_707, %c592_708] : memref<1x784xf32, #tpu.memory_space<vmem>>, vector<1x16xf32>
    tpu.vector_store %arg13[%c0_707, %c592_708], %1116 {strides = array<i32>} : memref<1x784xf32, #tpu.memory_space<vmem>>, vector<1x16xf32>,
    %1118 = vector.extract_strided_slice %1041 {offsets = [38, 0], sizes = [1, 16], strides = [1, 1]} : vector<49x16xf32> to vector<1x16xf32>
    %c0_709 = arith.constant 0 : index
    %c608_710 = arith.constant 608 : index
    %1119 = vector.load %arg13[%c0_709, %c608_710] : memref<1x784xf32, #tpu.memory_space<vmem>>, vector<1x16xf32>
    tpu.vector_store %arg13[%c0_709, %c608_710], %1118 {strides = array<i32>} : memref<1x784xf32, #tpu.memory_space<vmem>>, vector<1x16xf32>,
    %1120 = vector.extract_strided_slice %1041 {offsets = [39, 0], sizes = [1, 16], strides = [1, 1]} : vector<49x16xf32> to vector<1x16xf32>
    %c0_711 = arith.constant 0 : index
    %c624_712 = arith.constant 624 : index
    %1121 = vector.load %arg13[%c0_711, %c624_712] : memref<1x784xf32, #tpu.memory_space<vmem>>, vector<1x16xf32>
    tpu.vector_store %arg13[%c0_711, %c624_712], %1120 {strides = array<i32>} : memref<1x784xf32, #tpu.memory_space<vmem>>, vector<1x16xf32>,
    %1122 = vector.extract_strided_slice %1041 {offsets = [40, 0], sizes = [1, 16], strides = [1, 1]} : vector<49x16xf32> to vector<1x16xf32>
    %c0_713 = arith.constant 0 : index
    %c640_714 = arith.constant 640 : index
    %1123 = vector.load %arg13[%c0_713, %c640_714] : memref<1x784xf32, #tpu.memory_space<vmem>>, vector<1x16xf32>
    tpu.vector_store %arg13[%c0_713, %c640_714], %1122 {strides = array<i32>} : memref<1x784xf32, #tpu.memory_space<vmem>>, vector<1x16xf32>,
    %1124 = vector.extract_strided_slice %1041 {offsets = [41, 0], sizes = [1, 16], strides = [1, 1]} : vector<49x16xf32> to vector<1x16xf32>
    %c0_715 = arith.constant 0 : index
    %c656_716 = arith.constant 656 : index
    %1125 = vector.load %arg13[%c0_715, %c656_716] : memref<1x784xf32, #tpu.memory_space<vmem>>, vector<1x16xf32>
    tpu.vector_store %arg13[%c0_715, %c656_716], %1124 {strides = array<i32>} : memref<1x784xf32, #tpu.memory_space<vmem>>, vector<1x16xf32>,
    %1126 = vector.extract_strided_slice %1041 {offsets = [42, 0], sizes = [1, 16], strides = [1, 1]} : vector<49x16xf32> to vector<1x16xf32>
    %c0_717 = arith.constant 0 : index
    %c672_718 = arith.constant 672 : index
    %1127 = vector.load %arg13[%c0_717, %c672_718] : memref<1x784xf32, #tpu.memory_space<vmem>>, vector<1x16xf32>
    tpu.vector_store %arg13[%c0_717, %c672_718], %1126 {strides = array<i32>} : memref<1x784xf32, #tpu.memory_space<vmem>>, vector<1x16xf32>,
    %1128 = vector.extract_strided_slice %1041 {offsets = [43, 0], sizes = [1, 16], strides = [1, 1]} : vector<49x16xf32> to vector<1x16xf32>
    %c0_719 = arith.constant 0 : index
    %c688_720 = arith.constant 688 : index
    %1129 = vector.load %arg13[%c0_719, %c688_720] : memref<1x784xf32, #tpu.memory_space<vmem>>, vector<1x16xf32>
    tpu.vector_store %arg13[%c0_719, %c688_720], %1128 {strides = array<i32>} : memref<1x784xf32, #tpu.memory_space<vmem>>, vector<1x16xf32>,
    %1130 = vector.extract_strided_slice %1041 {offsets = [44, 0], sizes = [1, 16], strides = [1, 1]} : vector<49x16xf32> to vector<1x16xf32>
    %c0_721 = arith.constant 0 : index
    %c704_722 = arith.constant 704 : index
    %1131 = vector.load %arg13[%c0_721, %c704_722] : memref<1x784xf32, #tpu.memory_space<vmem>>, vector<1x16xf32>
    tpu.vector_store %arg13[%c0_721, %c704_722], %1130 {strides = array<i32>} : memref<1x784xf32, #tpu.memory_space<vmem>>, vector<1x16xf32>,
    %1132 = vector.extract_strided_slice %1041 {offsets = [45, 0], sizes = [1, 16], strides = [1, 1]} : vector<49x16xf32> to vector<1x16xf32>
    %c0_723 = arith.constant 0 : index
    %c720_724 = arith.constant 720 : index
    %1133 = vector.load %arg13[%c0_723, %c720_724] : memref<1x784xf32, #tpu.memory_space<vmem>>, vector<1x16xf32>
    tpu.vector_store %arg13[%c0_723, %c720_724], %1132 {strides = array<i32>} : memref<1x784xf32, #tpu.memory_space<vmem>>, vector<1x16xf32>,
    %1134 = vector.extract_strided_slice %1041 {offsets = [46, 0], sizes = [1, 16], strides = [1, 1]} : vector<49x16xf32> to vector<1x16xf32>
    %c0_725 = arith.constant 0 : index
    %c736_726 = arith.constant 736 : index
    %1135 = vector.load %arg13[%c0_725, %c736_726] : memref<1x784xf32, #tpu.memory_space<vmem>>, vector<1x16xf32>
    tpu.vector_store %arg13[%c0_725, %c736_726], %1134 {strides = array<i32>} : memref<1x784xf32, #tpu.memory_space<vmem>>, vector<1x16xf32>,
    %1136 = vector.extract_strided_slice %1041 {offsets = [47, 0], sizes = [1, 16], strides = [1, 1]} : vector<49x16xf32> to vector<1x16xf32>
    %c0_727 = arith.constant 0 : index
    %c752_728 = arith.constant 752 : index
    %1137 = vector.load %arg13[%c0_727, %c752_728] : memref<1x784xf32, #tpu.memory_space<vmem>>, vector<1x16xf32>
    tpu.vector_store %arg13[%c0_727, %c752_728], %1136 {strides = array<i32>} : memref<1x784xf32, #tpu.memory_space<vmem>>, vector<1x16xf32>,
    %1138 = vector.extract_strided_slice %1041 {offsets = [48, 0], sizes = [1, 16], strides = [1, 1]} : vector<49x16xf32> to vector<1x16xf32>
    %c0_729 = arith.constant 0 : index
    %c768_730 = arith.constant 768 : index
    %1139 = vector.load %arg13[%c0_729, %c768_730] : memref<1x784xf32, #tpu.memory_space<vmem>>, vector<1x16xf32>
    tpu.vector_store %arg13[%c0_729, %c768_730], %1138 {strides = array<i32>} : memref<1x784xf32, #tpu.memory_space<vmem>>, vector<1x16xf32>,
    %c0_731 = arith.constant 0 : index
    %c0_732 = arith.constant 0 : index
    %1140 = vector.load %arg13[%c0_731, %c0_732] : memref<1x784xf32, #tpu.memory_space<vmem>>, vector<1x784xf32>
    %c0_733 = arith.constant 0 : index
    %c0_734 = arith.constant 0 : index
    %1141 = vector.load %arg6[%c0_733, %c0_734] : memref<784x64xf32, #tpu.memory_space<vmem>>, vector<784x64xf32>
    %cst_735 = arith.constant dense<0.000000e+00> : vector<1x64xf32>
    %1142 = tpu.matmul %1140, %1141, %cst_735 {dimension_numbers = #tpu.dot_dimension_numbers<[1], [0], [0], [1], [0, 0, 1, 1], [], []>} : vector<1x784xf32>, vector<784x64xf32>, vector<1x64xf32> -> vector<1x64xf32>
    %c0_736 = arith.constant 0 : index
    %c128_737 = arith.constant 128 : index
    %1143 = vector.load %arg7[%c0_736, %c128_737] : memref<1x192xf32, #tpu.memory_space<vmem>>, vector<1x64xf32>
    %1144 = arith.addf %1142, %1143 : vector<1x64xf32>
    %cst_738 = arith.constant 0.000000e+00 : f32
    %1145 = vector.broadcast %cst_738 : f32 to vector<1x64xf32>
    %1146 = arith.maximumf %1144, %1145 : vector<1x64xf32>
    %1147 = arith.addf %1040, %1146 : vector<1x64xf32>
    %c0_739 = arith.constant 0 : index
    %c0_740 = arith.constant 0 : index
    %1148 = vector.load %arg8[%c0_739, %c0_740] : memref<64x1152xf32, #tpu.memory_space<vmem>>, vector<64x1152xf32>
    %cst_741 = arith.constant dense<0.000000e+00> : vector<1x1152xf32>
    %1149 = tpu.matmul %1147, %1148, %cst_741 {dimension_numbers = #tpu.dot_dimension_numbers<[1], [0], [0], [1], [0, 0, 1, 1], [], []>} : vector<1x64xf32>, vector<64x1152xf32>, vector<1x1152xf32> -> vector<1x1152xf32>
    %1150 = vector.extract_strided_slice %1149 {offsets = [0, 0], sizes = [1, 128], strides = [1, 1]} : vector<1x1152xf32> to vector<1x128xf32>
    %1151 = vector.extract_strided_slice %1149 {offsets = [0, 128], sizes = [1, 128], strides = [1, 1]} : vector<1x1152xf32> to vector<1x128xf32>
    %1152 = vector.extract_strided_slice %1149 {offsets = [0, 256], sizes = [1, 128], strides = [1, 1]} : vector<1x1152xf32> to vector<1x128xf32>
    %1153 = vector.extract_strided_slice %1149 {offsets = [0, 384], sizes = [1, 128], strides = [1, 1]} : vector<1x1152xf32> to vector<1x128xf32>
    %1154 = vector.extract_strided_slice %1149 {offsets = [0, 512], sizes = [1, 128], strides = [1, 1]} : vector<1x1152xf32> to vector<1x128xf32>
    %1155 = vector.extract_strided_slice %1149 {offsets = [0, 640], sizes = [1, 128], strides = [1, 1]} : vector<1x1152xf32> to vector<1x128xf32>
    %1156 = vector.extract_strided_slice %1149 {offsets = [0, 768], sizes = [1, 128], strides = [1, 1]} : vector<1x1152xf32> to vector<1x128xf32>
    %1157 = vector.extract_strided_slice %1149 {offsets = [0, 896], sizes = [1, 128], strides = [1, 1]} : vector<1x1152xf32> to vector<1x128xf32>
    %1158 = vector.extract_strided_slice %1149 {offsets = [0, 1024], sizes = [1, 128], strides = [1, 1]} : vector<1x1152xf32> to vector<1x128xf32>
    %1159 = arith.addf %1150, %1151 : vector<1x128xf32>
    %1160 = arith.addf %1159, %1152 : vector<1x128xf32>
    %1161 = arith.addf %1160, %1153 : vector<1x128xf32>
    %1162 = arith.addf %1161, %1154 : vector<1x128xf32>
    %1163 = arith.addf %1162, %1155 : vector<1x128xf32>
    %1164 = arith.addf %1163, %1156 : vector<1x128xf32>
    %1165 = arith.addf %1164, %1157 : vector<1x128xf32>
    %1166 = arith.addf %1165, %1158 : vector<1x128xf32>
    %c0_742 = arith.constant 0 : index
    %c0_743 = arith.constant 0 : index
    %1167 = vector.load %arg9[%c0_742, %c0_743] : memref<1x128xf32, #tpu.memory_space<vmem>>, vector<1x128xf32>
    %1168 = arith.addf %1166, %1167 : vector<1x128xf32>
    %1169 = arith.addf %1150, %1151 : vector<1x128xf32>
    %1170 = arith.addf %1169, %1152 : vector<1x128xf32>
    %1171 = arith.addf %1156, %1157 : vector<1x128xf32>
    %1172 = arith.addf %1171, %1158 : vector<1x128xf32>
    %1173 = arith.addf %1150, %1153 : vector<1x128xf32>
    %1174 = arith.addf %1173, %1156 : vector<1x128xf32>
    %1175 = arith.addf %1152, %1155 : vector<1x128xf32>
    %1176 = arith.addf %1175, %1158 : vector<1x128xf32>
    %1177 = tpu.iota {dimensions = array<i32: 0>} : vector<16x1xi32>
    %c0_i32_744 = arith.constant 0 : i32
    %1178 = vector.broadcast %c0_i32_744 : i32 to vector<16x1xi32>
    %1179 = arith.cmpi eq, %1177, %1178 : vector<16x1xi32>
    %c15_i32_745 = arith.constant 15 : i32
    %1180 = vector.broadcast %c15_i32_745 : i32 to vector<16x1xi32>
    %1181 = arith.cmpi eq, %1177, %1180 : vector<16x1xi32>
    %cst_746 = arith.constant 0.000000e+00 : f32
    %1182 = vector.shape_cast %1179 : vector<16x1xi1> to vector<16x1xi1>
    %1183 = vector.broadcast %1182 : vector<16x1xi1> to vector<16x128xi1>
    %1184 = vector.shape_cast %1174 : vector<1x128xf32> to vector<1x128xf32>
    %1185 = vector.broadcast %1184 : vector<1x128xf32> to vector<16x128xf32>
    %1186 = vector.broadcast %cst_746 : f32 to vector<16x128xf32>
    %1187 = arith.select %1183, %1185, %1186 : vector<16x128xi1>, vector<16x128xf32>
    %1188 = vector.broadcast %1168 : vector<1x128xf32> to vector<16x128xf32>
    %1189 = arith.subf %1188, %1187 : vector<16x128xf32>
    %cst_747 = arith.constant 0.000000e+00 : f32
    %1190 = vector.shape_cast %1181 : vector<16x1xi1> to vector<16x1xi1>
    %1191 = vector.broadcast %1190 : vector<16x1xi1> to vector<16x128xi1>
    %1192 = vector.shape_cast %1176 : vector<1x128xf32> to vector<1x128xf32>
    %1193 = vector.broadcast %1192 : vector<1x128xf32> to vector<16x128xf32>
    %1194 = vector.broadcast %cst_747 : f32 to vector<16x128xf32>
    %1195 = arith.select %1191, %1193, %1194 : vector<16x128xi1>, vector<16x128xf32>
    %1196 = arith.subf %1189, %1195 : vector<16x128xf32>
    %cst_748 = arith.constant 0.000000e+00 : f32
    %1197 = vector.broadcast %cst_748 : f32 to vector<16x128xf32>
    %1198 = arith.maximumf %1196, %1197 : vector<16x128xf32>
    %1199 = arith.subf %1168, %1170 : vector<1x128xf32>
    %1200 = arith.subf %1174, %1150 : vector<1x128xf32>
    %1201 = arith.subf %1176, %1152 : vector<1x128xf32>
    %cst_749 = arith.constant 0.000000e+00 : f32
    %1202 = vector.shape_cast %1179 : vector<16x1xi1> to vector<16x1xi1>
    %1203 = vector.broadcast %1202 : vector<16x1xi1> to vector<16x128xi1>
    %1204 = vector.shape_cast %1200 : vector<1x128xf32> to vector<1x128xf32>
    %1205 = vector.broadcast %1204 : vector<1x128xf32> to vector<16x128xf32>
    %1206 = vector.broadcast %cst_749 : f32 to vector<16x128xf32>
    %1207 = arith.select %1203, %1205, %1206 : vector<16x128xi1>, vector<16x128xf32>
    %1208 = vector.broadcast %1199 : vector<1x128xf32> to vector<16x128xf32>
    %1209 = arith.subf %1208, %1207 : vector<16x128xf32>
    %cst_750 = arith.constant 0.000000e+00 : f32
    %1210 = vector.shape_cast %1181 : vector<16x1xi1> to vector<16x1xi1>
    %1211 = vector.broadcast %1210 : vector<16x1xi1> to vector<16x128xi1>
    %1212 = vector.shape_cast %1201 : vector<1x128xf32> to vector<1x128xf32>
    %1213 = vector.broadcast %1212 : vector<1x128xf32> to vector<16x128xf32>
    %1214 = vector.broadcast %cst_750 : f32 to vector<16x128xf32>
    %1215 = arith.select %1211, %1213, %1214 : vector<16x128xi1>, vector<16x128xf32>
    %1216 = arith.subf %1209, %1215 : vector<16x128xf32>
    %cst_751 = arith.constant 0.000000e+00 : f32
    %1217 = vector.broadcast %cst_751 : f32 to vector<16x128xf32>
    %1218 = arith.maximumf %1216, %1217 : vector<16x128xf32>
    %1219 = arith.subf %1168, %1172 : vector<1x128xf32>
    %1220 = arith.subf %1174, %1156 : vector<1x128xf32>
    %1221 = arith.subf %1176, %1158 : vector<1x128xf32>
    %cst_752 = arith.constant 0.000000e+00 : f32
    %1222 = vector.shape_cast %1179 : vector<16x1xi1> to vector<16x1xi1>
    %1223 = vector.broadcast %1222 : vector<16x1xi1> to vector<16x128xi1>
    %1224 = vector.shape_cast %1220 : vector<1x128xf32> to vector<1x128xf32>
    %1225 = vector.broadcast %1224 : vector<1x128xf32> to vector<16x128xf32>
    %1226 = vector.broadcast %cst_752 : f32 to vector<16x128xf32>
    %1227 = arith.select %1223, %1225, %1226 : vector<16x128xi1>, vector<16x128xf32>
    %1228 = vector.broadcast %1219 : vector<1x128xf32> to vector<16x128xf32>
    %1229 = arith.subf %1228, %1227 : vector<16x128xf32>
    %cst_753 = arith.constant 0.000000e+00 : f32
    %1230 = vector.shape_cast %1181 : vector<16x1xi1> to vector<16x1xi1>
    %1231 = vector.broadcast %1230 : vector<16x1xi1> to vector<16x128xi1>
    %1232 = vector.shape_cast %1221 : vector<1x128xf32> to vector<1x128xf32>
    %1233 = vector.broadcast %1232 : vector<1x128xf32> to vector<16x128xf32>
    %1234 = vector.broadcast %cst_753 : f32 to vector<16x128xf32>
    %1235 = arith.select %1231, %1233, %1234 : vector<16x128xi1>, vector<16x128xf32>
    %1236 = arith.subf %1229, %1235 : vector<16x128xf32>
    %cst_754 = arith.constant 0.000000e+00 : f32
    %1237 = vector.broadcast %cst_754 : f32 to vector<16x128xf32>
    %1238 = arith.maximumf %1236, %1237 : vector<16x128xf32>
    %1239 = vector.shape_cast %1198 : vector<16x128xf32> to vector<1x16x128xf32>
    %1240 = vector.broadcast %1239 : vector<1x16x128xf32> to vector<16x16x128xf32>
    %c1_755 = arith.constant 1 : index
    %c0_756 = arith.constant 0 : index
    %c0_757 = arith.constant 0 : index
    %c0_758 = arith.constant 0 : index
    %1241 = vector.load %arg10[%c1_755, %c0_756, %c0_757, %c0_758] : memref<2x16x16x128xf32, #tpu.memory_space<vmem>>, vector<1x16x16x128xf32>
    %1242 = vector.shape_cast %1241 : vector<1x16x16x128xf32> to vector<16x16x128xf32>
    %1243 = vector.shape_cast %1240 : vector<16x16x128xf32> to vector<1x16x16x128xf32>
    tpu.vector_store %arg10[%c1_755, %c0_756, %c0_757, %c0_758], %1243 {strides = array<i32>} : memref<2x16x16x128xf32, #tpu.memory_space<vmem>>, vector<1x16x16x128xf32>,
    %c1_759 = arith.constant 1 : index
    %c0_760 = arith.constant 0 : index
    %c0_761 = arith.constant 0 : index
    %c0_762 = arith.constant 0 : index
    %1244 = vector.load %arg10[%c1_759, %c0_760, %c0_761, %c0_762] : memref<2x16x16x128xf32, #tpu.memory_space<vmem>>, vector<1x1x16x128xf32>
    %1245 = vector.shape_cast %1244 : vector<1x1x16x128xf32> to vector<16x128xf32>
    %1246 = vector.shape_cast %1218 : vector<16x128xf32> to vector<1x1x16x128xf32>
    tpu.vector_store %arg10[%c1_759, %c0_760, %c0_761, %c0_762], %1246 {strides = array<i32>} : memref<2x16x16x128xf32, #tpu.memory_space<vmem>>, vector<1x1x16x128xf32>,
    %c1_763 = arith.constant 1 : index
    %c15_764 = arith.constant 15 : index
    %c0_765 = arith.constant 0 : index
    %c0_766 = arith.constant 0 : index
    %1247 = vector.load %arg10[%c1_763, %c15_764, %c0_765, %c0_766] : memref<2x16x16x128xf32, #tpu.memory_space<vmem>>, vector<1x1x16x128xf32>
    %1248 = vector.shape_cast %1247 : vector<1x1x16x128xf32> to vector<16x128xf32>
    %1249 = vector.shape_cast %1238 : vector<16x128xf32> to vector<1x1x16x128xf32>
    tpu.vector_store %arg10[%c1_763, %c15_764, %c0_765, %c0_766], %1249 {strides = array<i32>} : memref<2x16x16x128xf32, #tpu.memory_space<vmem>>, vector<1x1x16x128xf32>,
    return
  }
  func.func @transform_0(%arg0: i32) -> (i32, i32, i32, i32) {
    %c0_i32 = arith.constant 0 : i32
    %c0_i32_0 = arith.constant 0 : i32
    %c0_i32_1 = arith.constant 0 : i32
    %c0_i32_2 = arith.constant 0 : i32
    return %arg0, %c0_i32, %c0_i32_0, %c0_i32_1 : i32, i32, i32, i32
  }
  func.func @transform_1(%arg0: i32) -> (i32, i32) {
    %c0_i32 = arith.constant 0 : i32
    %c0_i32_0 = arith.constant 0 : i32
    %c0_i32_1 = arith.constant 0 : i32
    return %c0_i32, %c0_i32_0 : i32, i32
  }
  func.func @transform_2(%arg0: i32) -> (i32, i32) {
    %c0_i32 = arith.constant 0 : i32
    %c0_i32_0 = arith.constant 0 : i32
    %c0_i32_1 = arith.constant 0 : i32
    return %c0_i32, %c0_i32_0 : i32, i32
  }
  func.func @transform_3(%arg0: i32) -> (i32, i32) {
    %c0_i32 = arith.constant 0 : i32
    %c0_i32_0 = arith.constant 0 : i32
    %c0_i32_1 = arith.constant 0 : i32
    return %c0_i32, %c0_i32_0 : i32, i32
  }
  func.func @transform_4(%arg0: i32) -> (i32, i32) {
    %c0_i32 = arith.constant 0 : i32
    %c0_i32_0 = arith.constant 0 : i32
    %c0_i32_1 = arith.constant 0 : i32
    return %c0_i32, %c0_i32_0 : i32, i32
  }
  func.func @transform_5(%arg0: i32) -> (i32, i32) {
    %c0_i32 = arith.constant 0 : i32
    %c0_i32_0 = arith.constant 0 : i32
    %c0_i32_1 = arith.constant 0 : i32
    return %c0_i32, %c0_i32_0 : i32, i32
  }
  func.func @transform_6(%arg0: i32) -> (i32, i32) {
    %c0_i32 = arith.constant 0 : i32
    %c0_i32_0 = arith.constant 0 : i32
    %c0_i32_1 = arith.constant 0 : i32
    return %c0_i32, %c0_i32_0 : i32, i32
  }
  func.func @transform_7(%arg0: i32) -> (i32, i32) {
    %c0_i32 = arith.constant 0 : i32
    %c0_i32_0 = arith.constant 0 : i32
    %c0_i32_1 = arith.constant 0 : i32
    return %c0_i32, %c0_i32_0 : i32, i32
  }
  func.func @transform_8(%arg0: i32) -> (i32, i32) {
    %c0_i32 = arith.constant 0 : i32
    %c0_i32_0 = arith.constant 0 : i32
    %c0_i32_1 = arith.constant 0 : i32
    return %c0_i32, %c0_i32_0 : i32, i32
  }
  func.func @transform_9(%arg0: i32) -> (i32, i32, i32, i32) {
    %c0_i32 = arith.constant 0 : i32
    %c0_i32_0 = arith.constant 0 : i32
    %c0_i32_1 = arith.constant 0 : i32
    %c0_i32_2 = arith.constant 0 : i32
    return %arg0, %c0_i32, %c0_i32_0, %c0_i32_1 : i32, i32, i32, i32
  }
}

</mosaic_0001>

<bundles_post_ra>
// kernel: tpu_custom_call.1
= control target key start
LH: loop header
LB: loop body
LE: loop exit
PB: predicated region body
PF: predicated region fallthrough
CT: control target
= control target key end

     0   :  { %v12684_v1 = vmov 0.0   ;;  %vm7935_vm0 = vmmov 0   ;;  %s12673_s0 = inlined_call_operand.vmem [shape: f32[2,16,16,64], index: 0, kind: input, shape index: {}]   ;;  %s12674_s1 = inlined_call_operand.vmem [shape: f32[64,48], index: 1, kind: input, shape index: {}]   ;;  %s12675_s2 = inlined_call_operand.vmem [shape: f32[1,48], index: 2, kind: input, shape index: {}]   ;;  %s12676_s3 = inlined_call_operand.vmem [shape: f32[144,64], index: 3, kind: input, shape index: {}]   ;;  %s12677_s4 = inlined_call_operand.vmem [shape: f32[400,64], index: 4, kind: input, shape index: {}]   ;;  %s12678_s5 = inlined_call_operand.vmem [shape: f32[784,64], index: 5, kind: input, shape index: {}]   ;;  %s12679_s6 = inlined_call_operand.vmem [shape: f32[1,192], index: 6, kind: input, shape index: {}]   ;;  %s12680_s7 = inlined_call_operand.vmem [shape: f32[64,1152], index: 7, kind: input, shape index: {}]   ;;  %s12681_s8 = inlined_call_operand.vmem [shape: f32[1,128], index: 8, kind: input, shape index: {}]   ;;  %s12682_s9 = inlined_call_operand.hbm [shape: f32[2,16,16,128], index: 9, kind: output, shape index: {}]  }
   0x1   :  { %v1345_v0 = vld [vmem:[%s12674_s1 + $0x38] sm:$0xff]  ;;  %7747 = vmatprep.subr.mxu0 %v12684_v1  ;;  %v1344_v2 = vld [vmem:[%s12674_s1 + $0x30] sm:$0xff]  ;;  %7763 = vmatprep.mubr.msk.f32.mxu0 %vm7935_vm0, %v12684_v1  ;;  %v1343_v3 = vld [vmem:[%s12674_s1 + $0x28] sm:$0xff] }
   0x2   :  { %7748 = vmatpush3.msra.mxu0 %v1345_v0  ;;  %v8012_v4 = vld [vmem:[%s12673_s0 + $0x10] sm:$0xff]  ;;  %1648 = vmatprep.subr.mxu1 %v12684_v1  ;;  %v1342_v5 = vld [vmem:[%s12674_s1 + $0x20] sm:$0xff]  ;;  %v8022_v6 = vld [vmem:[%s12673_s0 + $0x18] sm:$0xff] }
   0x3   :  { %7749 = vmatprep.subr.mxu0 %v12684_v1  ;;  %v8027_v7 = vld [vmem:[%s12673_s0] sm:$0xff]  ;;  %v8032_v8 = vld [vmem:[%s12673_s0 + $0x8] sm:$0xff]  ;;  %v8043_v11 = vld [vmem:[%s12673_s0 + $0x30] sm:$0xff] }
   0x4   :  { %7750 = vmatpush3.msra.mxu0 %v1344_v2  ;;  %v7299_v9 = vld [vmem:[%s12673_s0 + $0x20] sm:$0xff]  ;;  %v7300_v10 = vld [vmem:[%s12673_s0 + $0x28] sm:$0xff]  ;;  %v1341_v12 = vld [vmem:[%s12674_s1 + $0x18] sm:$0xff]  ;;  %v38_v17 = vmax.f32 %v8012_v4, %v8027_v7  ;;  %v39_v18 = vmax.f32 %v8022_v6, %v8032_v8 }
   0x5   :  { %7751 = vmatprep.subr.mxu0 %v12684_v1  ;;  %v8052_v13 = vld [vmem:[%s12673_s0 + $0x38] sm:$0xff]  ;;  %v8055_v14 = vmax.f32 %v7299_v9, %v8043_v11  ;;  %v7303_v15 = vld [vmem:[%s12673_s0 + $0x40] sm:$0xff]  ;;  %v7304_v16 = vld [vmem:[%s12673_s0 + $0x48] sm:$0xff] }
   0x6   :  { %7752 = vmatpush3.msra.mxu0 %v1343_v3  ;;  %v8068_v19 = vmax.f32 %v7300_v10, %v8052_v13  ;;  %v8073_v20 = vld [vmem:[%s12673_s0 + $0x50] sm:$0xff]  ;;  %v8078_v21 = vld [vmem:[%s12673_s0 + $0x58] sm:$0xff]  ;;  %v7307_v22 = vld [vmem:[%s12673_s0 + $0x60] sm:$0xff] }
   0x7   :  { %12829 = vst [vmem:[#allocation8_spill] sm:$0xff] %v8073_v20  ;;  %7753 = vmatprep.subr.mxu0 %v12684_v1  ;;  %v51_v23 = vmax.f32 %v8055_v14, %v7303_v15  ;;  %v7308_v24 = vld [vmem:[%s12673_s0 + $0x68] sm:$0xff]  ;;  %v7309_v25 = vld [vmem:[%s12673_s0 + $0x70] sm:$0xff]  ;;  %v7310_v26 = vld [vmem:[%s12673_s0 + $0x78] sm:$0xff]  ;;  %v8096_v27 = vmax.f32 %v8055_v14, %v8012_v4  ;;  %v8099_v28 = vmax.f32 %v7303_v15, %v8073_v20 }
   0x8   :  { %v8102_v29 = vmax.f32 %v7304_v16, %v8078_v21  ;;  %7754 = vmatpush3.msra.mxu0 %v1342_v5  ;;  %v52_v30 = vmax.f32 %v8068_v19, %v7304_v16  ;;  %v8107_v31 = vmax.f32 %v8068_v19, %v8022_v6  ;;  %v687_v32 = vmax.f32 %v7308_v24, %v7310_v26  ;;  %v1340_v34 = vld [vmem:[%s12674_s1 + $0x10] sm:$0xff]  ;;  %v7312_v36 = vld [vmem:[%s12673_s0 + $0x88] sm:$0xff]  ;;  %v7311_v46 = vld [vmem:[%s12673_s0 + $0x80] sm:$0xff] }
   0x9   :  { %12830 = vst [vmem:[#allocation9_spill] sm:$0xff] %v8099_v28  ;;  %v686_v33 = vmax.f32 %v7307_v22, %v7309_v25  ;;  %7755 = vmatprep.subr.mxu0 %v12684_v1  ;;  %v56_v35 = vmax.f32 %v51_v23, %v8073_v20  ;;  %v290_v37 = vmax.f32 %v8096_v27, %v8027_v7  ;;  %v1339_v44 = vld [vmem:[%s12674_s1 + $0x8] sm:$0xff]  ;;  %v7314_v47 = vld [vmem:[%s12673_s0 + $0x98] sm:$0xff]  ;;  %v1338_v51 = vld [vmem:[%s12674_s1] sm:$0xff] }
   0xa   :  { %v294_v38 = vmax.f32 %v8099_v28, %v7307_v22  ;;  %v295_v39 = vmax.f32 %v8102_v29, %v7308_v24  ;;  %7756 = vmatpush3.msra.mxu0 %v1341_v12  ;;  %v57_v40 = vmax.f32 %v52_v30, %v8078_v21  ;;  %v291_v41 = vmax.f32 %v8107_v31, %v8032_v8  ;;  %v7313_v57 = vld [vmem:[%s12673_s0 + $0x90] sm:$0xff]  ;;  %v7316_v58 = vld [vmem:[%s12673_s0 + $0xa8] sm:$0xff] }
   0xb   :  { %v679_v42 = vmax.f32 %v8102_v29, %v8052_v13  ;;  %v689_v43 = vmax.f32 %v687_v32, %v7312_v36  ;;  %7757 = vmatprep.subr.mxu0 %v12684_v1  ;;  %v61_v45 = vmax.f32 %v56_v35, %v7307_v22  ;;  %v8138_v50 = vmax.f32 %v8099_v28, %v8043_v11 }
   0xc   :  { %v296_v48 = vmax.f32 %v294_v38, %v7309_v25  ;;  %v297_v49 = vmax.f32 %v295_v39, %v7310_v26  ;;  %7758 = vmatpush3.msra.mxu0 %v1340_v34  ;;  %v62_v52 = vmax.f32 %v57_v40, %v7308_v24  ;;  %v688_v55 = vmax.f32 %v686_v33, %v7311_v46 }
   0xd   :  { %12831 = vst [vmem:[#allocation10_spill] sm:$0xff] %v8138_v50  ;;  %v681_v53 = vmax.f32 %v679_v42, %v7300_v10  ;;  %v8143_v54 = vmax.f32 %v689_v43, %v7314_v47  ;;  %7759 = vmatprep.subr.mxu0 %v12684_v1  ;;  %v66_v56 = vmax.f32 %v61_v45, %v7309_v25 }
   0xe   :  { %v298_v59 = vmax.f32 %v296_v48, %v7311_v46  ;;  %v299_v60 = vmax.f32 %v297_v49, %v7312_v36  ;;  %v8153_v61 = vmax.f32 %v8138_v50, %v7299_v9 }
   0xf   :  { %14 = vsyncpa [#allocation6], 0  ;;  %7760 = vmatpush3.msra.mxu0 %v1339_v44  ;;  %v67_v62 = vmax.f32 %v62_v52, %v7310_v26  ;;  %v8156_v63 = vmax.f32 %v681_v53, %v8022_v6  ;;  %v693_v0 = vmax.f32 %v8143_v54, %v7316_v58  ;;  %v690_v2 = vmax.f32 %v688_v55, %v7313_v57  ;;  %v7318_v5 = vld [vmem:[%s12673_s0 + $0xb8] sm:$0xff]  ;;  %v7315_v16 = vld [vmem:[%s12673_s0 + $0xa0] sm:$0xff]  ;;  %s7937_s28 = smov 64   ;;  %s7938_s29 = smov 16  }
  0x10   :  { %7761 = vmatprep.subr.mxu0 %v12684_v1  ;;  %v71_v3 = vmax.f32 %v66_v56, %v7311_v46  ;;  %v300_v10 = vmax.f32 %v298_v59, %v7313_v57  ;;  %v301_v12 = vmax.f32 %v299_v60, %v7314_v47  ;;  %v8165_v9 = vmax.f32 %v8153_v61, %v8012_v4  ;;  %v7320_v26 = vld [vmem:[%s12673_s0 + $0xc8] sm:$0xff]  ;;  %v7317_v35 = vld [vmem:[%s12673_s0 + $0xb0] sm:$0xff]  ;;  %v7322_v43 = vld [vmem:[%s12673_s0 + $0xd8] sm:$0xff]  ;;  %s7939_s30 = smov 32   ;;  %s7940_s10 = smov 48  }
  0x11   :  { %7762 = vmatpush3.msra.mxu0 %v1338_v51  ;;  %v72_v15 = vmax.f32 %v67_v62, %v7312_v36  ;;  %v695_v22 = vmax.f32 %v693_v0, %v7318_v5  ;;  %v8171_v23 = vmax.f32 %v693_v0, %v8156_v63  ;;  %v8185_v39 = vmax.f32 %v690_v2, %v7315_v16  ;;  %v7324_v55 = vld [vmem:[%s12673_s0 + $0xe8] sm:$0xff]  ;;  %s7941_s11 = smov 80   ;;  %s7942_s12 = smov 96  }
  0x12   :  { %v76_v25 = vmax.f32 %v71_v3, %v7313_v57  ;;  %v302_v30 = vmax.f32 %v300_v10, %v7315_v16  ;;  %v303_v32 = vmax.f32 %v301_v12, %v7316_v58  ;;  %v684_v33 = vmax.f32 %v8165_v9, %v8027_v7  ;;  %v8234_v12 = vld [vmem:[%s12673_s0 + $0xe0] sm:$0xff]  ;;  %s7943_s13 = smov 112  }
  0x13   :  { %12832 = vst [vmem:[#allocation11_spill] sm:$0xff] %v8171_v23  ;;  %v77_v34 = vmax.f32 %v72_v15, %v7314_v47  ;;  %v697_v36 = vmax.f32 %v695_v22, %v7320_v26  ;;  %v8183_v38 = vmax.f32 %v695_v22, %v681_v53  ;;  %v8195_v47 = vld [vmem:[%s12673_s0 + $0xc0] sm:$0xff]  ;;  %v8200_v52 = vmax.f32 %v8185_v39, %v7317_v35 }
  0x14   :  { %v81_v40 = vmax.f32 %v76_v25, %v7315_v16  ;;  %v304_v44 = vmax.f32 %v302_v30, %v7317_v35  ;;  %v305_v45 = vmax.f32 %v303_v32, %v7318_v5  ;;  %v8190_v46 = vmax.f32 %v690_v2, %v684_v33  ;;  %12837 = vst [vmem:[#allocation16_spill] sm:$0xff] %v8234_v12  ;;  %v8252_v30 = vld [vmem:[%s12673_s0 + $0xf0] sm:$0xff] }
  0x15   :  { %12833 = vst [vmem:[#allocation12_spill] sm:$0xff] %v8183_v38  ;;  %v82_v48 = vmax.f32 %v77_v34, %v7316_v58  ;;  %v699_v49 = vmax.f32 %v697_v36, %v7322_v43  ;;  %v8197_v51 = vmax.f32 %v697_v36, %v679_v42  ;;  %v8214_v42 = vld [vmem:[%s12673_s0 + $0xd0] sm:$0xff]  ;;  %12839 = vst [vmem:[#allocation18_spill] sm:$0xff] %v8252_v30  ;;  %vm258_vm1 = vcmask 1041409  }
  0x16   :  { %12834 = vst [vmem:[#allocation13_spill] sm:$0xff] %v8190_v46  ;;  %v86_v53 = vmax.f32 %v81_v40, %v7317_v35  ;;  %v306_v56 = vmax.f32 %v304_v44, %v8195_v47  ;;  %v307_v57 = vmax.f32 %v305_v45, %v7320_v26  ;;  %v8209_v58 = vmax.f32 %v304_v44, %v290_v37 }
  0x17   :  { %12835 = vst [vmem:[#allocation14_spill] sm:$0xff] %v8197_v51  ;;  %v87_v59 = vmax.f32 %v82_v48, %v7318_v5  ;;  %v8216_v60 = vmax.f32 %v699_v49, %v7324_v55  ;;  %v8219_v62 = vmax.f32 %v699_v49, %v8102_v29  ;;  %v8224_v0 = vmax.f32 %v305_v45, %v291_v41 }
  0x18   :  { %v91_v2 = vmax.f32 %v86_v53, %v8195_v47  ;;  %v308_v37 = vmax.f32 %v306_v56, %v8214_v42  ;;  %v309_v3 = vmax.f32 %v307_v57, %v7322_v43  ;;  %v8229_v5 = vmax.f32 %v306_v56, %v8096_v27 }
  0x19   :  { %12836 = vst [vmem:[#allocation15_spill] sm:$0xff] %v8219_v62  ;;  %v92_v10 = vmax.f32 %v87_v59, %v7320_v26  ;;  %v8238_v29 = vmax.f32 %v8216_v60, %v8078_v21  ;;  %v8241_v41 = vmax.f32 %v307_v57, %v8107_v31  ;;  %v12683_v15 = vrot.slane %v8209_v58, 7 }
  0x1a   :  { %v96_v16 = vmax.f32 %v91_v2, %v8214_v42  ;;  %v311_v22 = vmax.f32 %v309_v3, %v7324_v55  ;;  %v310_v27 = vmax.f32 %v308_v37, %v8234_v12  ;;  %v8247_v25 = vmax.f32 %v308_v37, %v8055_v14  ;;  %v8267_v14 = vld [vmem:[%s12673_s0 + $0xf8] sm:$0xff] }
  0x1b   :  { %12838 = vst [vmem:[#allocation17_spill] sm:$0xff] %v8238_v29  ;;  %v97_v26 = vmax.f32 %v92_v10, %v7322_v43  ;;  %v8255_v21 = vmax.f32 %v309_v3, %v8068_v19  ;;  %v8261_v32 = vmax.f32 %v8209_v58, %v12683_v15  ;;  %vm12744_vm2 = vcmask 1042434  }
  0x1c   :  { %v101_v33 = vmax.f32 %v96_v16, %v8234_v12  ;;  %v8272_v34 = vmax.f32 %v96_v16, %v38_v17  ;;  %v8275_v19 = vmax.f32 %v311_v22, %v8052_v13  ;;  %v8278_v35 = vmax.f32 %v310_v27, %v8252_v30 }
  0x1d   :  { %v102_v36 = vmax.f32 %v97_v26, %v7324_v55  ;;  %v8283_v40 = vmax.f32 %v97_v26, %v39_v18  ;;  %v8286_v43 = vmax.f32 %v311_v22, %v8267_v14  ;;  %v8289_v44 = vmax.f32 %v310_v27, %v8043_v11 }
  0x1e   :  { %v8292_v7 = vmax.f32 %v101_v33, %v8252_v30  ;;  %v8295_v13 = vmax.f32 %v101_v33, %v8012_v4  ;;  %v12688_v17 = vrot.slane %v8272_v34, 7  ;;  %v124_v45 = vrot.slane %v8272_v34, 1 }
  0x1f   :  { %v8300_v48 = vmax.f32 %v102_v36, %v8267_v14  ;;  %v8303_v18 = vmax.f32 %v102_v36, %v8022_v6  ;;  %v133_v49 = vrot.slane %v8272_v34, 2  ;;  %v142_v11 = vrot.slane %v8272_v34, 3 }
  0x20   :  { %v12687_v53 = vrot.slane %v8295_v13, 7  ;;  %v12686_v55 = vrot.slane %v8292_v7, 7  ;;  %v8312_v4 = vmax.f32 %v8272_v34, %v12688_v17  ;;  %v125_v56 = vrot.slane %v8295_v13, 1 }
  0x21   :  { %v126_v57 = vrot.slane %v8292_v7, 1  ;;  %v130_v6 = vmax.f32 %v8272_v34, %v124_v45  ;;  %v134_v59 = vrot.slane %v8295_v13, 2  ;;  %v135_v2 = vrot.slane %v8292_v7, 2 }
  0x22   :  { %v8322_v37 = vmax.f32 %v8295_v13, %v12687_v53  ;;  %v8327_v3 = vmax.f32 %v8292_v7, %v12686_v55  ;;  %v131_v10 = vmax.f32 %v8295_v13, %v125_v56  ;;  %v143_v16 = vrot.slane %v8295_v13, 3 }
  0x23   :  { %v132_v22 = vmax.f32 %v8292_v7, %v126_v57  ;;  %v139_v27 = vmax.f32 %v130_v6, %v133_v49  ;;  %v144_v26 = vrot.slane %v8292_v7, 3  ;;  %v151_v33 = vrot.slane %v8272_v34, 4 }
  0x24   :  { %v140_v36 = vmax.f32 %v131_v10, %v134_v59  ;;  %v152_v45 = vrot.slane %v8295_v13, 4  ;;  %v153_v24 = vrot.slane %v8292_v7, 4  ;;  %v160_v15 = vrot.slane %v8272_v34, 5 }
  0x25   :  { %v141_v1 = vmax.f32 %v132_v22, %v135_v2  ;;  %v148_v55 = vmax.f32 %v139_v27, %v142_v11  ;;  %v161_v56 = vrot.slane %v8295_v13, 5  ;;  %v162_v53 = vrot.slane %v8292_v7, 5 }
  0x26   :  { %v149_v17 = vmax.f32 %v140_v36, %v143_v16  ;;  %v172_v49 = vrot.slane %v8283_v40, 6  ;;  %v173_v57 = vrot.slane %v8303_v18, 6  ;;  %v174_v6 = vrot.slane %v8300_v48, 6 }
  0x27   :  { %v150_v59 = vmax.f32 %v141_v1, %v144_v26  ;;  %v157_v10 = vmax.f32 %v148_v55, %v151_v33  ;;  %v181_v31 = vrot.slane %v8283_v40, 7  ;;  %v182_v29 = vrot.slane %v8303_v18, 7 }
  0x28   :  { %v158_v62 = vmax.f32 %v149_v17, %v152_v45  ;;  %v183_v11 = vrot.slane %v8300_v48, 7  ;;  %v193_v2 = vrot.slane %v8283_v40, 1  ;;  %v194_v22 = vrot.slane %v8303_v18, 1 }
  0x29   :  { %v159_v16 = vmax.f32 %v150_v59, %v153_v24  ;;  %v166_v27 = vmax.f32 %v157_v10, %v160_v15  ;;  %v195_v36 = vrot.slane %v8300_v48, 1  ;;  %v202_v51 = vrot.slane %v8283_v40, 2 }
  0x2a   :  { %v167_v38 = vmax.f32 %v158_v62, %v161_v56  ;;  %v203_v1 = vrot.slane %v8303_v18, 2  ;;  %v204_v55 = vrot.slane %v8300_v48, 2  ;;  %v211_v26 = vrot.slane %v8283_v40, 3 }
  0x2b   :  { %v168_v17 = vmax.f32 %v159_v16, %v162_v53  ;;  %v178_v33 = vmax.f32 %v166_v27, %v172_v49  ;;  %v212_v45 = vrot.slane %v8303_v18, 3  ;;  %v213_v23 = vrot.slane %v8300_v48, 3 }
  0x2c   :  { %v179_v20 = vmax.f32 %v167_v38, %v173_v57  ;;  %v220_v24 = vrot.slane %v8283_v40, 4  ;;  %v221_v15 = vrot.slane %v8303_v18, 4  ;;  %v222_v59 = vrot.slane %v8300_v48, 4 }
  0x2d   :  { %v180_v62 = vmax.f32 %v168_v17, %v174_v6  ;;  %v187_v56 = vmax.f32 %v178_v33, %v181_v31  ;;  %v229_v10 = vrot.slane %v8283_v40, 5  ;;  %v230_v30 = vrot.slane %v8303_v18, 5 }
  0x2e   :  { %v188_v28 = vmax.f32 %v179_v20, %v182_v29  ;;  %v241_v53 = vrot.slane %v8312_v4, 7  ;;  %v242_v49 = vrot.slane %v8322_v37, 7  ;;  %v243_v16 = vrot.slane %v8327_v3, 7 }
  0x2f   :  { %v189_v38 = vmax.f32 %v180_v62, %v183_v11  ;;  %v190_v57 = vmax.f32 %v187_v56, %v8283_v40  ;;  %v231_v27 = vrot.slane %v8300_v48, 5  ;;  %v12700_v12 = vrot.slane %v8247_v25, 7 }
  0x30   :  { %v191_v31 = vmax.f32 %v188_v28, %v8303_v18  ;;  %v12699_v6 = vrot.slane %v8289_v44, 7  ;;  %v12698_v17 = vrot.slane %v8278_v35, 7  ;;  %v12840_v20 = vrot.slane %v8229_v5, 7 }
  0x31   :  { %v192_v4 = vmax.f32 %v189_v38, %v8300_v48  ;;  %v199_v37 = vmax.f32 %v190_v57, %v193_v2  ;;  %v8377_v40 = vmax.f32 %v8247_v25, %v12700_v12  ;;  %v342_v28 = vrot.slane %v8209_v58, 6 }
  0x32   :  { %v8371_v29 = vmax.f32 %v8229_v5, %v12840_v20  ;;  %v200_v18 = vmax.f32 %v191_v31, %v194_v22  ;;  %v8383_v3 = vmax.f32 %v8289_v44, %v12699_v6  ;;  %v8388_v48 = vmax.f32 %v8278_v35, %v12698_v17 }
  0x33   :  { %v343_v11 = vrot.slane %v8229_v5, 6  ;;  %v201_v2 = vmax.f32 %v192_v4, %v195_v36  ;;  %v208_v33 = vmax.f32 %v199_v37, %v202_v51  ;;  %vm268_vm3 = vcmask 1044484  }
  0x34   :  { %vm12742_vm4 = vcmask 1047559   ;;  %v344_v62 = vrot.slane %v8247_v25, 6  ;;  %v345_v22 = vrot.slane %v8289_v44, 6  ;;  %v209_v56 = vmax.f32 %v200_v18, %v203_v1 }
  0x35   :  { %vm12743_vm5 = vcmask 1045509   ;;  %v346_v38 = vrot.slane %v8278_v35, 6  ;;  %v8395_v57 = vmax.f32 %v8261_v32, %v342_v28  ;;  %v8398_v31 = vmax.f32 %v8371_v29, %v343_v11 }
  0x36   :  { %v210_v20 = vmax.f32 %v201_v2, %v204_v55  ;;  %v217_v17 = vmax.f32 %v208_v33, %v211_v26  ;;  %vm12741_vm6 = vcmask 1042432   ;;  %v8401_v51 = vmax.f32 %v8377_v40, %v344_v62 }
  0x37   :  { %v8404_v36 = vmax.f32 %v8383_v3, %v345_v22  ;;  %v218_v4 = vmax.f32 %v209_v56, %v212_v45  ;;  %vm12734_vm7 = vcmask 1045504   ;;  %v8407_v1 = vmax.f32 %v8388_v48, %v346_v38 }
  0x38   :  { %v357_v37 = vrot.slane %v8209_v58, 5  ;;  %v358_v28 = vrot.slane %v8229_v5, 5  ;;  %v219_v18 = vmax.f32 %v210_v20, %v213_v23  ;;  %v226_v11 = vmax.f32 %v217_v17, %v220_v24 }
  0x39   :  { %v247_v55 = vmax.f32 %v217_v17, %v241_v53  ;;  %vm12732_vm8 = vcmask 523264   ;;  %v359_v26 = vrot.slane %v8247_v25, 5  ;;  %v227_v2 = vmax.f32 %v218_v4, %v221_v15 }
  0x3a   :  { %v248_v33 = vmax.f32 %v218_v4, %v242_v49  ;;  %v360_v62 = vrot.slane %v8289_v44, 5  ;;  %v361_v45 = vrot.slane %v8278_v35, 5  ;;  %v228_v22 = vmax.f32 %v219_v18, %v222_v59 }
  0x3b   :  { %v235_v56 = vmax.f32 %v226_v11, %v229_v10  ;;  %v249_v38 = vmax.f32 %v219_v18, %v243_v16  ;;  %v12841_v6 = vrot.slane %v8272_v34, 7  ;;  %v236_v46 = vmax.f32 %v227_v2, %v230_v30 }
  0x3c   :  { %v12842_v23 = vrot.slane %v8295_v13, 7  ;;  %v256_v53 = vrot.slane %v247_v55, 2  ;;  %v257_v17 = vrot.slane %v248_v33, 1  ;;  %v12843_v20 = vrot.slane %v8292_v7, 7 }
  0x3d   :  { %v250_v12 = vmax.f32 %v226_v11, %v12841_v6  ;;  %v277_v4 = vrot.slane %v235_v56, 4  ;;  %v8420_v50 = vmax.f32 %v228_v22, %v231_v27  ;;  %v278_v16 = vrot.slane %v236_v46, 3 }
  0x3e   :  { %v251_v24 = vmax.f32 %v227_v2, %v12842_v23  ;;  %v252_v15 = vmax.f32 %v228_v22, %v12843_v20  ;;  %v259_v59 = vsel %vm258_vm1, %v257_v17, %v256_v53  ;;  %v8424_v34 = vmax.f32 %v8395_v57, %v357_v37 }
  0x3f   :  { %v266_v49 = vrot.slane %v250_v12, 7  ;;  %v261_v30 = vsel %vm12744_vm2, %v249_v38, %v259_v59  ;;  %v281_v6 = vrot.slane %v8420_v50, 2  ;;  %v8429_v18 = vmax.f32 %v8398_v31, %v358_v28 }
  0x40   :  { %v267_v10 = vrot.slane %v251_v24, 6  ;;  %v270_v13 = vrot.slane %v252_v15, 5  ;;  %v280_v7 = vsel %vm12742_vm4, %v278_v16, %v277_v4  ;;  %v8434_v27 = vmax.f32 %v8401_v51, %v359_v26 }
  0x41   :  { %v8437_v46 = vmax.f32 %v8404_v36, %v360_v62  ;;  %v8441_v11 = vmax.f32 %v8407_v1, %v361_v45  ;;  %v372_v55 = vrot.slane %v8209_v58, 1  ;;  %v373_v28 = vrot.slane %v8229_v5, 1 }
  0x42   :  { %v269_v12 = vsel %vm268_vm3, %v267_v10, %v266_v49  ;;  %v374_v33 = vrot.slane %v8247_v25, 1  ;;  %v375_v22 = vrot.slane %v8289_v44, 1  ;;  %v376_v26 = vrot.slane %v8278_v35, 1 }
  0x43   :  { %v272_v37 = vsel %vm12743_vm5, %v270_v13, %v269_v12  ;;  %v382_v56 = vmax.f32 %v8209_v58, %v372_v55  ;;  %v383_v38 = vmax.f32 %v8229_v5, %v373_v28  ;;  %v387_v45 = vrot.slane %v8209_v58, 2 }
  0x44   :  { %v285_v2 = vsel %vm12741_vm6, %v261_v30, %v272_v37  ;;  %v384_v23 = vmax.f32 %v8247_v25, %v374_v33  ;;  %v385_v24 = vmax.f32 %v8289_v44, %v375_v22  ;;  %v386_v53 = vmax.f32 %v8278_v35, %v376_v26 }
  0x45   :  { %v287_v62 = vsel %vm12734_vm7, %v285_v2, %v280_v7  ;;  %v388_v17 = vrot.slane %v8229_v5, 2  ;;  %v12844_v20 = vmov 0.0   ;;  %v389_v15 = vrot.slane %v8247_v25, 2 }
  0x46   :  { %7764 = vmatmul.mubr.msk.f32.vlgmr.msra.gmra.mxu0 %vm12732_vm8, %v287_v62  ;;  %v390_v49 = vrot.slane %v8289_v44, 2  ;;  %v391_v4 = vrot.slane %v8278_v35, 2  ;;  %v397_v59 = vmax.f32 %v382_v56, %v387_v45  ;;  %v402_v16 = vrot.slane %v8209_v58, 3 }
  0x47   :  { %7766 = vmatprep.mubr.msk.f32.mxu0 %vm7935_vm0, %v12844_v20  ;;  %v398_v10 = vmax.f32 %v383_v38, %v388_v17  ;;  %v403_v30 = vrot.slane %v8229_v5, 3  ;;  %v404_v13 = vrot.slane %v8247_v25, 3  ;;  %v399_v12 = vmax.f32 %v384_v23, %v389_v15 }
  0x48   :  { %v400_v7 = vmax.f32 %v385_v24, %v390_v49  ;;  %v401_v37 = vmax.f32 %v386_v53, %v391_v4  ;;  %v405_v55 = vrot.slane %v8289_v44, 3  ;;  %v406_v28 = vrot.slane %v8278_v35, 3 }
  0x49   :  { %v412_v2 = vmax.f32 %v397_v59, %v402_v16  ;;  %v413_v33 = vmax.f32 %v398_v10, %v403_v30  ;;  %v422_v22 = vrot.slane %v8224_v0, 4  ;;  %v414_v26 = vmax.f32 %v399_v12, %v404_v13 }
  0x4a   :  { %v415_v62 = vmax.f32 %v400_v7, %v405_v55  ;;  %v423_v56 = vrot.slane %v8241_v41, 4  ;;  %v424_v38 = vrot.slane %v8255_v21, 4  ;;  %v416_v45 = vmax.f32 %v401_v37, %v406_v28 }
  0x4b   :  { %v425_v17 = vrot.slane %v8275_v19, 4  ;;  %v426_v23 = vrot.slane %v8286_v43, 4  ;;  %v432_v24 = vmax.f32 %v412_v2, %v422_v22  ;;  %v437_v49 = vrot.slane %v8224_v0, 5 }
  0x4c   :  { %v433_v53 = vmax.f32 %v413_v33, %v423_v56  ;;  %v434_v15 = vmax.f32 %v414_v26, %v424_v38  ;;  %v438_v4 = vrot.slane %v8241_v41, 5  ;;  %v439_v16 = vrot.slane %v8255_v21, 5 }
  0x4d   :  { %v435_v59 = vmax.f32 %v415_v62, %v425_v17  ;;  %v436_v10 = vmax.f32 %v416_v45, %v426_v23  ;;  %v440_v30 = vrot.slane %v8275_v19, 5  ;;  %v441_v13 = vrot.slane %v8286_v43, 5 }
  0x4e   :  { %v447_v12 = vmax.f32 %v432_v24, %v437_v49  ;;  %v448_v7 = vmax.f32 %v433_v53, %v438_v4  ;;  %v452_v37 = vrot.slane %v8224_v0, 6  ;;  %v449_v55 = vmax.f32 %v434_v15, %v439_v16 }
  0x4f   :  { %v450_v28 = vmax.f32 %v435_v59, %v440_v30  ;;  %v453_v2 = vrot.slane %v8241_v41, 6  ;;  %v454_v33 = vrot.slane %v8255_v21, 6  ;;  %v451_v22 = vmax.f32 %v436_v10, %v441_v13 }
  0x50   :  { %v455_v26 = vrot.slane %v8275_v19, 6  ;;  %v456_v62 = vrot.slane %v8286_v43, 6  ;;  %v462_v56 = vmax.f32 %v447_v12, %v452_v37  ;;  %v467_v17 = vrot.slane %v8224_v0, 7 }
  0x51   :  { %v463_v38 = vmax.f32 %v448_v7, %v453_v2  ;;  %v464_v45 = vmax.f32 %v449_v55, %v454_v33  ;;  %v468_v23 = vrot.slane %v8241_v41, 7  ;;  %v469_v15 = vrot.slane %v8255_v21, 7 }
  0x52   :  { %v465_v24 = vmax.f32 %v450_v28, %v455_v26  ;;  %v466_v53 = vmax.f32 %v451_v22, %v456_v62  ;;  %v470_v49 = vrot.slane %v8275_v19, 7  ;;  %v471_v4 = vrot.slane %v8286_v43, 7 }
  0x53   :  { %v477_v59 = vmax.f32 %v462_v56, %v467_v17  ;;  %v478_v10 = vmax.f32 %v463_v38, %v468_v23  ;;  %v488_v16 = vrot.slane %v8241_v41, 1  ;;  %vm12740_vm9 = vcmask 1043459  }
  0x54   :  { %v479_v30 = vmax.f32 %v464_v45, %v469_v15  ;;  %v480_v13 = vmax.f32 %v465_v24, %v470_v49  ;;  %v489_v12 = vrot.slane %v8255_v21, 1  ;;  %v537_v7 = vrot.slane %v8424_v34, 7 }
  0x55   :  { %vm12739_vm10 = vcmask 1046534   ;;  %v481_v37 = vmax.f32 %v466_v53, %v471_v4  ;;  %v482_v55 = vmax.f32 %v477_v59, %v8224_v0  ;;  %v483_v28 = vmax.f32 %v478_v10, %v8241_v41 }
  0x56   :  { %v538_v2 = vrot.slane %v8429_v18, 7  ;;  %v484_v33 = vmax.f32 %v479_v30, %v8255_v21  ;;  %v539_v22 = vrot.slane %v8434_v27, 7  ;;  %v540_v26 = vrot.slane %v8437_v46, 7 }
  0x57   :  { %v541_v62 = vrot.slane %v8441_v11, 7  ;;  %vm12738_vm11 = vcmask 1044480   ;;  %v486_v56 = vmax.f32 %v481_v37, %v8286_v43  ;;  %v8499_v34 = vmax.f32 %v483_v28, %v488_v16 }
  0x58   :  { %v547_v38 = vmax.f32 %v477_v59, %v537_v7  ;;  %v548_v45 = vmax.f32 %v478_v10, %v538_v2  ;;  %v8501_v17 = vmax.f32 %v484_v33, %v489_v12  ;;  %v549_v23 = vmax.f32 %v479_v30, %v539_v22 }
  0x59   :  { %v550_v24 = vmax.f32 %v480_v13, %v540_v26  ;;  %v551_v18 = vmax.f32 %v481_v37, %v541_v62  ;;  %v557_v53 = vrot.slane %v8395_v57, 7  ;;  %v558_v27 = vrot.slane %v8398_v31, 7 }
  0x5a   :  { %v559_v46 = vrot.slane %v8401_v51, 7  ;;  %v578_v11 = vrot.slane %v8371_v29, 7  ;;  %vm12733_vm12 = vcmask 1040384   ;;  %v579_v15 = vrot.slane %v8377_v40, 7 }
  0x5b   :  { %v602_v49 = vrot.slane %v547_v38, 4  ;;  %v603_v4 = vrot.slane %v548_v45, 3  ;;  %v605_v59 = vrot.slane %v549_v23, 2  ;;  %v567_v10 = vmax.f32 %v482_v55, %v557_v53 }
  0x5c   :  { %v568_v16 = vmax.f32 %v483_v28, %v558_v27  ;;  %v569_v12 = vmax.f32 %v484_v33, %v559_v46  ;;  %v588_v30 = vmax.f32 %v8499_v34, %v578_v11  ;;  %v589_v7 = vmax.f32 %v8501_v17, %v579_v15 }
  0x5d   :  { %v604_v57 = vsel %vm258_vm1, %v603_v4, %v602_v49  ;;  %v607_v31 = vrot.slane %v550_v24, 1  ;;  %v485_v51 = vmax.f32 %v480_v13, %v8275_v19  ;;  %v617_v37 = vrot.slane %v567_v10, 7 }
  0x5e   :  { %v606_v29 = vsel %vm12744_vm2, %v605_v59, %v604_v57  ;;  %v618_v2 = vrot.slane %v568_v16, 6  ;;  %v621_v40 = vrot.slane %v569_v12, 5  ;;  %v487_v26 = vrot.slane %v8224_v0, 1 }
  0x5f   :  { %v609_v22 = vsel %vm12740_vm9, %v607_v31, %v606_v29  ;;  %v490_v28 = vrot.slane %v8275_v19, 1  ;;  %v491_v33 = vrot.slane %v8286_v43, 1  ;;  %v502_v45 = vrot.slane %v8224_v0, 2 }
  0x60   :  { %v610_v62 = vsel %vm268_vm3, %v551_v18, %v609_v22  ;;  %v620_v38 = vsel %vm12739_vm10, %v618_v2, %v617_v37  ;;  %v517_v13 = vrot.slane %v8224_v0, 3  ;;  %v497_v24 = vmax.f32 %v482_v55, %v487_v26 }
  0x61   :  { %v622_v23 = vsel %vm12742_vm4, %v621_v40, %v620_v38  ;;  %v500_v53 = vmax.f32 %v485_v51, %v490_v28  ;;  %v501_v27 = vmax.f32 %v486_v56, %v491_v33  ;;  %vm12737_vm13 = vcmask 1041408  }
  0x62   :  { %v671_v46 = vsel %vm12738_vm11, %v610_v62, %v622_v23  ;;  %v560_v11 = vrot.slane %v8404_v36, 7  ;;  %v561_v15 = vrot.slane %v8407_v1, 7  ;;  %v577_v18 = vrot.slane %v8261_v32, 7 }
  0x63   :  { %vm12736_vm14 = vcmask 1046528   ;;  %v1307_v49 = vrot.slane %v671_v46, 7  ;;  %v512_v4 = vmax.f32 %v497_v24, %v502_v45  ;;  %v580_v59 = vrot.slane %v8383_v3, 7 }
  0x64   :  { %v581_v0 = vrot.slane %v8388_v48, 7  ;;  %v570_v10 = vmax.f32 %v485_v51, %v560_v11  ;;  %v571_v55 = vmax.f32 %v486_v56, %v561_v15  ;;  %v587_v16 = vmax.f32 %v497_v24, %v577_v18 }
  0x65   :  { %v634_v12 = vrot.slane %v588_v30, 1  ;;  %v1336_v57 = vsel %vm12733_vm12, %v281_v6, %v1307_v49  ;;  %v527_v36 = vmax.f32 %v512_v4, %v517_v13  ;;  %v590_v31 = vmax.f32 %v500_v53, %v580_v59 }
  0x66   :  { %v591_v1 = vmax.f32 %v501_v27, %v581_v0  ;;  %7767 = vmatmul.mubr.msk.f32.gmra.mxu0 %vm12732_vm8, %v1336_v57  ;;  %v12845_v32 = vrot.slane %v8209_v58, 7  ;;  %v623_v37 = vrot.slane %v570_v10, 4  ;;  %v624_v3 = vrot.slane %v571_v55, 3 }
  0x67   :  { %v633_v2 = vrot.slane %v587_v16, 2  ;;  %7769 = vmatprep.mubr.msk.f32.mxu0 %vm7935_vm0, %v12844_v20  ;;  %v637_v48 = vrot.slane %v590_v31, 7  ;;  %v503_v50 = vrot.slane %v8241_v41, 2  ;;  %v504_v6 = vrot.slane %v8255_v21, 2 }
  0x68   :  { %v592_v29 = vmax.f32 %v512_v4, %v12845_v32  ;;  %v639_v56 = vrot.slane %v591_v1, 6  ;;  %v625_v30 = vsel %vm258_vm1, %v624_v3, %v623_v37  ;;  %v505_v58 = vrot.slane %v8275_v19, 2 }
  0x69   :  { %v635_v51 = vsel %vm12740_vm9, %v634_v12, %v633_v2  ;;  %vm12735_vm15 = vcmask 1043456   ;;  %v506_v26 = vrot.slane %v8286_v43, 2  ;;  %v513_v28 = vmax.f32 %v8499_v34, %v503_v50 }
  0x6a   :  { %v647_v40 = vrot.slane %v592_v29, 5  ;;  %v636_v22 = vsel %vm268_vm3, %v589_v7, %v635_v51  ;;  %v514_v33 = vmax.f32 %v8501_v17, %v504_v6  ;;  %v515_v38 = vmax.f32 %v500_v53, %v505_v58  ;;  %v12853_v6 = vld [vmem:[#allocation10_spill] sm:$0xff]  ;;  %v12856_v51 = vld [vmem:[#allocation16_spill] sm:$0xff] }
  0x6b   :  { %v638_v62 = vsel %vm12743_vm5, %v637_v48, %v636_v22  ;;  %v518_v45 = vrot.slane %v8241_v41, 3  ;;  %v519_v13 = vrot.slane %v8255_v21, 3  ;;  %v516_v24 = vmax.f32 %v501_v27, %v506_v26 }
  0x6c   :  { %v640_v23 = vsel %vm12739_vm10, %v639_v56, %v638_v62  ;;  %v520_v46 = vrot.slane %v8275_v19, 3  ;;  %v12846_v7 = vrot.slane %v8229_v5, 7  ;;  %v12847_v17 = vrot.slane %v8247_v25, 7  ;;  %v12862_v62 = vld [vmem:[#allocation8_spill] sm:$0xff] }
  0x6d   :  { %v673_v15 = vsel %vm12737_vm13, %v625_v30, %v640_v23  ;;  %v528_v34 = vmax.f32 %v513_v28, %v518_v45  ;;  %v529_v18 = vmax.f32 %v514_v33, %v519_v13  ;;  %v12848_v21 = vrot.slane %v8289_v44, 7 }
  0x6e   :  { %v593_v11 = vmax.f32 %v513_v28, %v12846_v7  ;;  %v594_v4 = vmax.f32 %v514_v33, %v12847_v17  ;;  %v675_v53 = vsel %vm12736_vm14, %v673_v15, %v647_v40  ;;  %v530_v41 = vmax.f32 %v515_v38, %v520_v46  ;;  %v12860_v28 = vld [vmem:[#allocation18_spill] sm:$0xff] }
  0x6f   :  { %v595_v59 = vmax.f32 %v515_v38, %v12848_v21  ;;  %v12849_v27 = vrot.slane %v8278_v35, 7  ;;  %v1308_v19 = vrot.slane %v675_v53, 7  ;;  %v662_v55 = vrot.slane %v528_v34, 7 }
  0x70   :  { %v648_v10 = vrot.slane %v593_v11, 4  ;;  %v649_v5 = vrot.slane %v594_v4, 3  ;;  %v664_v57 = vrot.slane %v529_v18, 6  ;;  %v666_v31 = vrot.slane %v530_v41, 5 }
  0x71   :  { %v596_v0 = vmax.f32 %v516_v24, %v12849_v27  ;;  %v651_v16 = vrot.slane %v595_v59, 2  ;;  %v1309_v25 = vsel %vm12733_vm12, %v1307_v49, %v1308_v19  ;;  %v663_v32 = vsel %vm12743_vm5, %v662_v55, %v527_v36 }
  0x72   :  { %v650_v1 = vsel %vm258_vm1, %v649_v5, %v648_v10  ;;  %v521_v44 = vrot.slane %v8286_v43, 3  ;;  %7770 = vmatmul.mubr.msk.f32.gmra.mxu0 %vm12732_vm8, %v1309_v25  ;;  %v665_v29 = vsel %vm12739_vm10, %v664_v57, %v663_v32  ;;  %v696_v37 = vmax.f32 %v8200_v52, %v8195_v47 }
  0x73   :  { %v653_v12 = vrot.slane %v596_v0, 1  ;;  %v652_v35 = vsel %vm12744_vm2, %v651_v16, %v650_v1  ;;  %v8571_v3 = vmax.f32 %v8216_v60, %v8267_v14  ;;  %7772 = vmatprep.mubr.msk.f32.mxu0 %vm7935_vm0, %v12844_v20  ;;  %v667_v43 = vsel %vm12742_vm4, %v666_v31, %v665_v29 }
  0x74   :  { %v8577_v36 = vmax.f32 %v516_v24, %v521_v44  ;;  %v12850_v2 = vmax.f32 %v8156_v63, %v8032_v8  ;;  %v698_v60 = vmax.f32 %v696_v37, %v8214_v42  ;;  %v8591_v14 = vmax.f32 %v8185_v39, %v8165_v9  ;;  %v12857_v42 = vld [vmem:[#allocation9_spill] sm:$0xff] }
  0x75   :  { %v654_v49 = vsel %vm12740_vm9, %v653_v12, %v652_v35  ;;  %v8595_v56 = vmax.f32 %v8200_v52, %v8153_v61  ;;  %v8599_v8 = vmax.f32 %v696_v37, %v12853_v6 }
  0x76   :  { %v8583_v48 = vmax.f32 %v8143_v54, %v12850_v2  ;;  %v8586_v47 = vsel %vm12735_vm15, %v654_v49, %v667_v43  ;;  %12851 = vst [vmem:[#allocation19_spill] sm:$0xff] %v8591_v14  ;;  %v12855_v54 = vld [vmem:[#allocation13_spill] sm:$0xff]  ;;  %v700_v40 = vmax.f32 %v698_v60, %v12856_v51  ;;  %v8605_v58 = vmax.f32 %v698_v60, %v12857_v42 }
  0x77   :  { %12852 = vst [vmem:[#allocation20_spill] sm:$0xff] %v8595_v56  ;;  %v12710_v50 = vrot.slane %v8586_v47, 7  ;;  %12854 = vst [vmem:[#allocation10_spill] sm:$0xff] %v8599_v8  ;;  %v12709_v63 = vrot.slane %v12855_v54, 7  ;;  %v744_v30 = vrot.slane %v12855_v54, 6  ;;  %v12708_v9 = vrot.slane %v8591_v14, 7 }
  0x78   :  { %12858 = vst [vmem:[#allocation16_spill] sm:$0xff] %v8605_v58  ;;  %v12707_v39 = vrot.slane %v8595_v56, 7  ;;  %v12706_v52 = vrot.slane %v8599_v8, 7  ;;  %v745_v26 = vrot.slane %v8591_v14, 6  ;;  %v8621_v33 = vmax.f32 %v700_v40, %v12860_v28 }
  0x79   :  { %v1311_v61 = vsel %vm12733_vm12, %v1308_v19, %v12710_v50  ;;  %v8616_v22 = vmax.f32 %v12855_v54, %v12709_v63  ;;  %v8624_v38 = vmax.f32 %v700_v40, %v12862_v62  ;;  %v12705_v45 = vrot.slane %v8605_v58, 7  ;;  %v12877_v63 = vld [vmem:[#allocation11_spill] sm:$0xff] }
  0x7a   :  { %7773 = vmatmul.mubr.msk.f32.gmra.mxu0 %vm12732_vm8, %v1311_v61  ;;  %12861 = vst [vmem:[#allocation18_spill] sm:$0xff] %v8621_v33  ;;  %v8630_v13 = vmax.f32 %v8591_v14, %v12708_v9  ;;  %v8637_v23 = vmax.f32 %v8595_v56, %v12707_v39  ;;  %v8642_v24 = vmax.f32 %v8599_v8, %v12706_v52  ;;  %v746_v46 = vrot.slane %v8595_v56, 6 }
  0x7b   :  { %12859 = vst [vmem:[#allocation9_spill] sm:$0xff] %v8616_v22  ;;  %12863 = vst [vmem:[#allocation8_spill] sm:$0xff] %v8624_v38  ;;  %7775 = vmatprep.mubr.msk.f32.mxu0 %vm7935_vm0, %v12844_v20  ;;  %v747_v7 = vrot.slane %v8599_v8, 6  ;;  %v12704_v11 = vrot.slane %v8624_v38, 7  ;;  %v12703_v15 = vrot.slane %v8621_v33, 7  ;;  %v8651_v34 = vmax.f32 %v8605_v58, %v12705_v45 }
  0x7c   :  { %12864 = vst [vmem:[#allocation21_spill] sm:$0xff] %v8630_v13  ;;  %12865 = vst [vmem:[#allocation22_spill] sm:$0xff] %v8637_v23  ;;  %v748_v18 = vrot.slane %v8605_v58, 6  ;;  %v749_v17 = vrot.slane %v8624_v38, 6  ;;  %v750_v4 = vrot.slane %v8621_v33, 6  ;;  %v8657_v53 = vmax.f32 %v8616_v22, %v744_v30 }
  0x7d   :  { %12866 = vst [vmem:[#allocation23_spill] sm:$0xff] %v8642_v24  ;;  %12867 = vst [vmem:[#allocation24_spill] sm:$0xff] %v8651_v34  ;;  %v8660_v41 = vmax.f32 %v8630_v13, %v745_v26  ;;  %v8665_v21 = vmax.f32 %v8624_v38, %v12704_v11  ;;  %v8670_v59 = vmax.f32 %v8621_v33, %v12703_v15  ;;  %v765_v10 = vrot.slane %v12855_v54, 5 }
  0x7e   :  { %12868 = vst [vmem:[#allocation25_spill] sm:$0xff] %v8657_v53  ;;  %v8673_v27 = vmax.f32 %v8637_v23, %v746_v46  ;;  %v8676_v0 = vmax.f32 %v8642_v24, %v747_v7  ;;  %v8679_v19 = vmax.f32 %v8651_v34, %v748_v18  ;;  %v766_v5 = vrot.slane %v8591_v14, 5  ;;  %v12879_v34 = vld [vmem:[#allocation14_spill] sm:$0xff] }
  0x7f   :  { %12869 = vst [vmem:[#allocation26_spill] sm:$0xff] %v8660_v41  ;;  %12870 = vst [vmem:[#allocation27_spill] sm:$0xff] %v8665_v21  ;;  %v767_v55 = vrot.slane %v8595_v56, 5  ;;  %v8685_v16 = vmax.f32 %v8665_v21, %v749_v17  ;;  %v8688_v12 = vmax.f32 %v8670_v59, %v750_v4  ;;  %v768_v57 = vrot.slane %v8599_v8, 5 }
  0x80   :  { %12871 = vst [vmem:[#allocation28_spill] sm:$0xff] %v8670_v59  ;;  %12872 = vst [vmem:[#allocation29_spill] sm:$0xff] %v8673_v27  ;;  %v769_v31 = vrot.slane %v8605_v58, 5  ;;  %v770_v25 = vrot.slane %v8624_v38, 5  ;;  %v771_v1 = vrot.slane %v8621_v33, 5  ;;  %v8695_v32 = vmax.f32 %v8657_v53, %v765_v10  ;;  %v12878_v59 = vld [vmem:[#allocation12_spill] sm:$0xff] }
  0x81   :  { %12873 = vst [vmem:[#allocation30_spill] sm:$0xff] %v8676_v0  ;;  %12874 = vst [vmem:[#allocation31_spill] sm:$0xff] %v8679_v19  ;;  %v8698_v44 = vmax.f32 %v8660_v41, %v766_v5  ;;  %v8701_v35 = vmax.f32 %v8673_v27, %v767_v55  ;;  %v8704_v29 = vmax.f32 %v8676_v0, %v768_v57  ;;  %v786_v49 = vrot.slane %v12855_v54, 4 }
  0x82   :  { %12875 = vst [vmem:[#allocation32_spill] sm:$0xff] %v8685_v16  ;;  %12876 = vst [vmem:[#allocation33_spill] sm:$0xff] %v8688_v12  ;;  %v8707_v37 = vmax.f32 %v8679_v19, %v769_v31  ;;  %v8711_v43 = vmax.f32 %v8685_v16, %v770_v25  ;;  %v8714_v2 = vmax.f32 %v8688_v12, %v771_v1  ;;  %v787_v60 = vrot.slane %v8591_v14, 4 }
  0x83   :  { %v788_v6 = vrot.slane %v8595_v56, 4  ;;  %v789_v30 = vrot.slane %v8599_v8, 4  ;;  %v790_v51 = vrot.slane %v8605_v58, 4  ;;  %v791_v40 = vrot.slane %v8624_v38, 4 }
  0x84   :  { %v792_v42 = vrot.slane %v8621_v33, 4  ;;  %v8723_v61 = vmax.f32 %v8695_v32, %v786_v49  ;;  %v8726_v26 = vmax.f32 %v8698_v44, %v787_v60  ;;  %v807_v62 = vrot.slane %v12855_v54, 3 }
  0x85   :  { %v8729_v28 = vmax.f32 %v8701_v35, %v788_v6  ;;  %v8733_v46 = vmax.f32 %v8704_v29, %v789_v30  ;;  %v8736_v7 = vmax.f32 %v8707_v37, %v790_v51  ;;  %v8739_v18 = vmax.f32 %v8711_v43, %v791_v40 }
  0x86   :  { %v8742_v17 = vmax.f32 %v8714_v2, %v792_v42  ;;  %v808_v4 = vrot.slane %v8591_v14, 3  ;;  %v809_v10 = vrot.slane %v8595_v56, 3  ;;  %v810_v5 = vrot.slane %v8599_v8, 3 }
  0x87   :  { %v811_v55 = vrot.slane %v8605_v58, 3  ;;  %v812_v57 = vrot.slane %v8624_v38, 3  ;;  %v813_v31 = vrot.slane %v8621_v33, 3  ;;  %v821_v25 = vmax.f32 %v8723_v61, %v807_v62 }
  0x88   :  { %v828_v1 = vrot.slane %v12855_v54, 1  ;;  %v822_v49 = vmax.f32 %v8726_v26, %v808_v4  ;;  %v823_v60 = vmax.f32 %v8729_v28, %v809_v10  ;;  %v824_v6 = vmax.f32 %v8733_v46, %v810_v5 }
  0x89   :  { %v825_v30 = vmax.f32 %v8736_v7, %v811_v55  ;;  %v826_v51 = vmax.f32 %v8739_v18, %v812_v57  ;;  %v827_v40 = vmax.f32 %v8742_v17, %v813_v31  ;;  %v829_v42 = vrot.slane %v8591_v14, 1 }
  0x8a   :  { %v830_v15 = vrot.slane %v8595_v56, 1  ;;  %v831_v62 = vrot.slane %v8599_v8, 1  ;;  %v832_v11 = vrot.slane %v8605_v58, 1  ;;  %v833_v4 = vrot.slane %v8624_v38, 1 }
  0x8b   :  { %v834_v10 = vrot.slane %v8621_v33, 1  ;;  %v842_v5 = vmax.f32 %v12855_v54, %v828_v1  ;;  %v843_v55 = vmax.f32 %v8591_v14, %v829_v42  ;;  %v856_v31 = vrot.slane %v8583_v48, 2  ;;  %v12880_v54 = vld [vmem:[#allocation15_spill] sm:$0xff]  ;;  %v12881_v14 = vld [vmem:[#allocation17_spill] sm:$0xff] }
  0x8c   :  { %v844_v57 = vmax.f32 %v8595_v56, %v830_v15  ;;  %v845_v45 = vmax.f32 %v8599_v8, %v831_v62  ;;  %v846_v52 = vmax.f32 %v8605_v58, %v832_v11  ;;  %v847_v39 = vmax.f32 %v8624_v38, %v833_v4 }
  0x8d   :  { %v848_v9 = vmax.f32 %v8621_v33, %v834_v10  ;;  %v857_v50 = vrot.slane %v12877_v63, 2  ;;  %v858_v21 = vrot.slane %v12878_v59, 2  ;;  %v859_v1 = vrot.slane %v12879_v34, 2 }
  0x8e   :  { %v860_v42 = vrot.slane %v12880_v54, 2  ;;  %v861_v15 = vrot.slane %v12881_v14, 2  ;;  %v862_v56 = vrot.slane %v8571_v3, 2  ;;  %v870_v24 = vmax.f32 %v842_v5, %v856_v31 }
  0x8f   :  { %v877_v62 = vrot.slane %v8583_v48, 3  ;;  %v871_v11 = vmax.f32 %v843_v55, %v857_v50  ;;  %v872_v58 = vmax.f32 %v844_v57, %v858_v21  ;;  %v873_v4 = vmax.f32 %v845_v45, %v859_v1 }
  0x90   :  { %v874_v38 = vmax.f32 %v846_v52, %v860_v42  ;;  %v875_v10 = vmax.f32 %v847_v39, %v861_v15  ;;  %v876_v33 = vmax.f32 %v848_v9, %v862_v56  ;;  %v878_v8 = vrot.slane %v12877_v63, 3 }
  0x91   :  { %v879_v23 = vrot.slane %v12878_v59, 3  ;;  %v880_v13 = vrot.slane %v12879_v34, 3  ;;  %v881_v22 = vrot.slane %v12880_v54, 3  ;;  %v882_v12 = vrot.slane %v12881_v14, 3 }
  0x92   :  { %v883_v5 = vrot.slane %v8571_v3, 3  ;;  %v891_v31 = vmax.f32 %v870_v24, %v877_v62  ;;  %v892_v16 = vmax.f32 %v871_v11, %v878_v8  ;;  %v898_v45 = vrot.slane %v8583_v48, 4 }
  0x93   :  { %v893_v50 = vmax.f32 %v872_v58, %v879_v23  ;;  %v894_v52 = vmax.f32 %v873_v4, %v880_v13  ;;  %v895_v39 = vmax.f32 %v874_v38, %v881_v22  ;;  %v896_v56 = vmax.f32 %v875_v10, %v882_v12 }
  0x94   :  { %v897_v9 = vmax.f32 %v876_v33, %v883_v5  ;;  %v912_v21 = vmax.f32 %v891_v31, %v898_v45  ;;  %v1017_v55 = vrot.slane %v821_v25, 7  ;;  %v1018_v57 = vrot.slane %v822_v49, 7 }
  0x95   :  { %v1019_v1 = vrot.slane %v823_v60, 7  ;;  %v1020_v42 = vrot.slane %v824_v6, 7  ;;  %v1021_v15 = vrot.slane %v825_v30, 7  ;;  %v1022_v19 = vrot.slane %v826_v51, 7 }
  0x96   :  { %v1023_v0 = vrot.slane %v827_v40, 7  ;;  %v1031_v27 = vmax.f32 %v891_v31, %v1017_v55  ;;  %v1032_v41 = vmax.f32 %v892_v16, %v1018_v57  ;;  %v1045_v8 = vrot.slane %v8723_v61, 7 }
  0x97   :  { %v1033_v53 = vmax.f32 %v893_v50, %v1019_v1  ;;  %v1034_v58 = vmax.f32 %v894_v52, %v1020_v42  ;;  %v1035_v23 = vmax.f32 %v895_v39, %v1021_v15  ;;  %v1036_v24 = vmax.f32 %v896_v56, %v1022_v19 }
  0x98   :  { %v1037_v13 = vmax.f32 %v897_v9, %v1023_v0  ;;  %v1059_v22 = vmax.f32 %v912_v21, %v1045_v8  ;;  %v1164_v38 = vrot.slane %v1031_v27, 6  ;;  %v1165_v33 = vrot.slane %v1032_v41, 5 }
  0x99   :  { %v1167_v12 = vrot.slane %v1033_v53, 4  ;;  %v1169_v25 = vrot.slane %v1034_v58, 3  ;;  %v1171_v49 = vrot.slane %v1035_v23, 2  ;;  %v1173_v60 = vrot.slane %v1036_v24, 1 }
  0x9a   :  { %v7327_v6 = vrot.slane %v8577_v36, 11  ;;  %v1166_v30 = vsel %vm258_vm1, %v1165_v33, %v1164_v38  ;;  %v1184_v51 = vrot.slane %v1059_v22, 7  ;;  %v899_v40 = vrot.slane %v12877_v63, 4 }
  0x9b   :  { %v900_v61 = vrot.slane %v12878_v59, 4  ;;  %v1168_v62 = vsel %vm12744_vm2, %v1167_v12, %v1166_v30  ;;  %v12882_v0 = vrot.slane %v8586_v47, 7  ;;  %v901_v53 = vrot.slane %v12879_v34, 4 }
  0x9c   :  { %v902_v41 = vrot.slane %v12880_v54, 4  ;;  %v1170_v19 = vsel %vm12740_vm9, %v1169_v25, %v1168_v62  ;;  %v903_v36 = vrot.slane %v12881_v14, 4  ;;  %v904_v11 = vrot.slane %v8571_v3, 4 }
  0x9d   :  { %v1313_v27 = vsel %vm12733_vm12, %v12882_v0, %v7327_v6  ;;  %v913_v4 = vmax.f32 %v892_v16, %v899_v40  ;;  %v1172_v10 = vsel %vm268_vm3, %v1171_v49, %v1170_v19  ;;  %v914_v5 = vmax.f32 %v893_v50, %v900_v61 }
  0x9e   :  { %v915_v31 = vmax.f32 %v894_v52, %v901_v53  ;;  %v916_v45 = vmax.f32 %v895_v39, %v902_v41  ;;  %v1174_v47 = vsel %vm12743_vm5, %v1173_v60, %v1172_v10  ;;  %v917_v55 = vmax.f32 %v896_v56, %v903_v36 }
  0x9f   :  { %v918_v57 = vmax.f32 %v897_v9, %v904_v11  ;;  %v919_v1 = vrot.slane %v8583_v48, 5  ;;  %v1175_v42 = vsel %vm12739_vm10, %v1037_v13, %v1174_v47  ;;  %v920_v15 = vrot.slane %v12877_v63, 5 }
  0xa0   :  { %v940_v8 = vrot.slane %v8583_v48, 6  ;;  %v961_v58 = vrot.slane %v8583_v48, 7  ;;  %v8808_v16 = vsel %vm12736_vm14, %v1175_v42, %v1184_v51  ;;  %v1046_v52 = vrot.slane %v8726_v26, 7 }
  0xa1   :  { %v933_v50 = vmax.f32 %v912_v21, %v919_v1  ;;  %v1047_v39 = vrot.slane %v8729_v28, 7  ;;  %v1322_v56 = vrot.slane %v8808_v16, 6  ;;  %v934_v9 = vmax.f32 %v913_v4, %v920_v15 }
  0xa2   :  { %v1048_v23 = vrot.slane %v8733_v46, 7  ;;  %v1049_v24 = vrot.slane %v8736_v7, 7  ;;  %v1050_v22 = vrot.slane %v8739_v18, 7  ;;  %v1051_v38 = vrot.slane %v8742_v17, 7 }
  0xa3   :  { %v8815_v13 = vmax.f32 %v933_v50, %v940_v8  ;;  %v1060_v33 = vmax.f32 %v913_v4, %v1046_v52  ;;  %v1337_v21 = vsel %vm12737_vm13, %v1313_v27, %v1322_v56  ;;  %v1061_v12 = vmax.f32 %v914_v5, %v1047_v39 }
  0xa4   :  { %v1062_v26 = vmax.f32 %v915_v31, %v1048_v23  ;;  %v1063_v25 = vmax.f32 %v916_v45, %v1049_v24  ;;  %7776 = vmatmul.mubr.msk.f32.gmra.mxu0 %vm12732_vm8, %v1337_v21  ;;  %v1064_v46 = vmax.f32 %v917_v55, %v1050_v22  ;;  %v1065_v49 = vmax.f32 %v918_v57, %v1051_v38 }
  0xa5   :  { %v8822_v28 = vmax.f32 %v8815_v13, %v961_v58  ;;  %v1073_v7 = vrot.slane %v8695_v32, 7  ;;  %7778 = vmatprep.mubr.msk.f32.mxu0 %vm7935_vm0, %v12844_v20  ;;  %v1074_v18 = vrot.slane %v8698_v44, 7  ;;  %v1185_v17 = vrot.slane %v1060_v33, 6 }
  0xa6   :  { %v1186_v60 = vrot.slane %v1061_v12, 5  ;;  %v1188_v6 = vrot.slane %v1062_v26, 4  ;;  %v1190_v40 = vrot.slane %v1063_v25, 3  ;;  %v1192_v61 = vrot.slane %v1064_v46, 2 }
  0xa7   :  { %v8830_v30 = vmax.f32 %v8822_v28, %v8583_v48  ;;  %v1087_v51 = vmax.f32 %v933_v50, %v1073_v7  ;;  %v1088_v62 = vmax.f32 %v934_v9, %v1074_v18  ;;  %v1194_v27 = vrot.slane %v1065_v49, 1 }
  0xa8   :  { %v1187_v0 = vsel %vm258_vm1, %v1186_v60, %v1185_v17  ;;  %v921_v32 = vrot.slane %v12878_v59, 5  ;;  %v922_v44 = vrot.slane %v12879_v34, 5  ;;  %v923_v41 = vrot.slane %v12880_v54, 5 }
  0xa9   :  { %v1189_v53 = vsel %vm12744_vm2, %v1188_v6, %v1187_v0  ;;  %v924_v19 = vrot.slane %v12881_v14, 5  ;;  %v1205_v11 = vrot.slane %v1088_v62, 7  ;;  %v925_v4 = vrot.slane %v8571_v3, 5 }
  0xaa   :  { %v1191_v36 = vsel %vm12740_vm9, %v1190_v40, %v1189_v53  ;;  %v935_v10 = vmax.f32 %v914_v5, %v921_v32  ;;  %v936_v1 = vmax.f32 %v915_v31, %v922_v44  ;;  %v937_v42 = vmax.f32 %v916_v45, %v923_v41 }
  0xab   :  { %v1193_v47 = vsel %vm268_vm3, %v1192_v61, %v1191_v36  ;;  %v938_v15 = vmax.f32 %v917_v55, %v924_v19  ;;  %v1206_v58 = vsel %vm12742_vm4, %v1205_v11, %v1087_v51  ;;  %v939_v16 = vmax.f32 %v918_v57, %v925_v4 }
  0xac   :  { %v1195_v8 = vsel %vm12743_vm5, %v1194_v27, %v1193_v47  ;;  %v941_v50 = vrot.slane %v12877_v63, 6  ;;  %v942_v39 = vrot.slane %v12878_v59, 6  ;;  %v962_v23 = vrot.slane %v12877_v63, 7 }
  0xad   :  { %v8845_v52 = vsel %vm12734_vm7, %v1195_v8, %v1206_v58  ;;  %v1075_v5 = vrot.slane %v8701_v35, 7  ;;  %v1076_v55 = vrot.slane %v8704_v29, 7  ;;  %v1077_v24 = vrot.slane %v8707_v37, 7  ;;  %v12884_v29 = vld [vmem:[#allocation26_spill] sm:$0xff] }
  0xae   :  { %v1323_v31 = vrot.slane %v8845_v52, 6  ;;  %v955_v45 = vmax.f32 %v934_v9, %v941_v50  ;;  %v956_v22 = vmax.f32 %v935_v10, %v942_v39  ;;  %v1078_v57 = vrot.slane %v8711_v43, 7  ;;  %v12883_v9 = vld [vmem:[#allocation25_spill] sm:$0xff] }
  0xaf   :  { %v1079_v38 = vrot.slane %v8714_v2, 7  ;;  %v1089_v33 = vmax.f32 %v935_v10, %v1075_v5  ;;  %v1090_v26 = vmax.f32 %v936_v1, %v1076_v55  ;;  %v1091_v25 = vmax.f32 %v937_v42, %v1077_v24  ;;  %v12885_v43 = vld [vmem:[#allocation29_spill] sm:$0xff]  ;;  %v12888_v55 = vld [vmem:[#allocation32_spill] sm:$0xff] }
  0xb0   :  { %v1324_v21 = vsel %vm12737_vm13, %v1322_v56, %v1323_v31  ;;  %v976_v12 = vmax.f32 %v955_v45, %v962_v23  ;;  %v1092_v35 = vmax.f32 %v938_v15, %v1078_v57  ;;  %v1101_v49 = vrot.slane %v12883_v9, 7  ;;  %v12886_v23 = vld [vmem:[#allocation30_spill] sm:$0xff] }
  0xb1   :  { %7779 = vmatmul.mubr.msk.f32.gmra.mxu0 %vm12732_vm8, %v1324_v21  ;;  %v1093_v46 = vmax.f32 %v939_v16, %v1079_v38  ;;  %v1102_v7 = vrot.slane %v12884_v29, 7  ;;  %v1103_v2 = vrot.slane %v12885_v43, 7  ;;  %v1207_v56 = vrot.slane %v1089_v33, 6  ;;  %v12889_v38 = vld [vmem:[#allocation33_spill] sm:$0xff]  ;;  %v12892_v43 = vld [vmem:[#allocation22_spill] sm:$0xff] }
  0xb2   :  { %7781 = vmatprep.mubr.msk.f32.mxu0 %vm7935_vm0, %v12844_v20  ;;  %v8862_v37 = vmax.f32 %v976_v12, %v12877_v63  ;;  %v1208_v18 = vrot.slane %v1090_v26, 5  ;;  %v1115_v17 = vmax.f32 %v8815_v13, %v1101_v49  ;;  %v1210_v6 = vrot.slane %v1091_v25, 4  ;;  %v12890_v25 = vld [vmem:[#allocation9_spill] sm:$0xff] }
  0xb3   :  { %v1116_v60 = vmax.f32 %v955_v45, %v1102_v7  ;;  %v1212_v51 = vrot.slane %v1092_v35, 3  ;;  %v1117_v40 = vmax.f32 %v956_v22, %v1103_v2  ;;  %v1214_v62 = vrot.slane %v1093_v46, 2  ;;  %v12887_v45 = vld [vmem:[#allocation31_spill] sm:$0xff]  ;;  %v12891_v29 = vld [vmem:[#allocation21_spill] sm:$0xff] }
  0xb4   :  { %v1209_v61 = vsel %vm258_vm1, %v1208_v18, %v1207_v56  ;;  %v943_v0 = vrot.slane %v12879_v34, 6  ;;  %v1225_v32 = vrot.slane %v1115_v17, 1  ;;  %v944_v53 = vrot.slane %v12880_v54, 6  ;;  %v12893_v2 = vld [vmem:[#allocation23_spill] sm:$0xff] }
  0xb5   :  { %v1211_v27 = vsel %vm12744_vm2, %v1210_v6, %v1209_v61  ;;  %v945_v44 = vrot.slane %v12881_v14, 6  ;;  %v1227_v19 = vrot.slane %v1117_v40, 7  ;;  %v946_v13 = vrot.slane %v8571_v3, 6 }
  0xb6   :  { %v1213_v41 = vsel %vm12740_vm9, %v1212_v51, %v1211_v27  ;;  %v957_v36 = vmax.f32 %v936_v1, %v943_v0  ;;  %v1226_v4 = vsel %vm12739_vm10, %v1116_v60, %v1225_v32  ;;  %v958_v10 = vmax.f32 %v937_v42, %v944_v53 }
  0xb7   :  { %v1215_v11 = vsel %vm268_vm3, %v1214_v62, %v1213_v41  ;;  %v959_v47 = vmax.f32 %v938_v15, %v945_v44  ;;  %v1228_v8 = vsel %vm12742_vm4, %v1227_v19, %v1226_v4  ;;  %v960_v58 = vmax.f32 %v939_v16, %v946_v13 }
  0xb8   :  { %v963_v50 = vrot.slane %v12878_v59, 7  ;;  %v964_v52 = vrot.slane %v12879_v34, 7  ;;  %v8879_v39 = vsel %vm12738_vm11, %v1215_v11, %v1228_v8  ;;  %v1104_v5 = vrot.slane %v12886_v23, 7  ;;  %v12895_v23 = vld [vmem:[#allocation27_spill] sm:$0xff] }
  0xb9   :  { %v1105_v1 = vrot.slane %v12887_v45, 7  ;;  %v1106_v24 = vrot.slane %v12888_v55, 7  ;;  %v1325_v57 = vrot.slane %v8879_v39, 6  ;;  %v1107_v33 = vrot.slane %v12889_v38, 7  ;;  %v12897_v55 = vld [vmem:[#allocation13_spill] sm:$0xff] }
  0xba   :  { %v977_v42 = vmax.f32 %v956_v22, %v963_v50  ;;  %v978_v15 = vmax.f32 %v957_v36, %v964_v52  ;;  %v1118_v16 = vmax.f32 %v957_v36, %v1104_v5  ;;  %v1129_v35 = vrot.slane %v12890_v25, 7  ;;  %v12894_v52 = vld [vmem:[#allocation24_spill] sm:$0xff] }
  0xbb   :  { %v1119_v21 = vmax.f32 %v958_v10, %v1105_v1  ;;  %v1120_v26 = vmax.f32 %v959_v47, %v1106_v24  ;;  %v1326_v46 = vsel %vm12737_vm13, %v1323_v31, %v1325_v57  ;;  %v1121_v49 = vmax.f32 %v960_v58, %v1107_v33  ;;  %v12896_v1 = vld [vmem:[#allocation28_spill] sm:$0xff] }
  0xbc   :  { %v8889_v9 = vmax.f32 %v977_v42, %v12878_v59  ;;  %v1130_v7 = vrot.slane %v12891_v29, 7  ;;  %7782 = vmatmul.mubr.msk.f32.gmra.mxu0 %vm12732_vm8, %v1326_v46  ;;  %v1131_v22 = vrot.slane %v12892_v43, 7  ;;  %v1132_v56 = vrot.slane %v12893_v2, 7  ;;  %v12905_v43 = vld [vmem:[#allocation16_spill] sm:$0xff] }
  0xbd   :  { %v1143_v18 = vmax.f32 %v8822_v28, %v1129_v35  ;;  %v1229_v17 = vrot.slane %v1118_v16, 6  ;;  %7784 = vmatprep.mubr.msk.f32.mxu0 %vm7935_vm0, %v12844_v20  ;;  %v1230_v31 = vrot.slane %v1119_v21, 5  ;;  %v1232_v6 = vrot.slane %v1120_v26, 4  ;;  %v12901_v21 = vld [vmem:[#allocation20_spill] sm:$0xff] }
  0xbe   :  { %v1144_v60 = vmax.f32 %v976_v12, %v1130_v7  ;;  %v1234_v51 = vrot.slane %v1121_v49, 3  ;;  %v1145_v40 = vmax.f32 %v977_v42, %v1131_v22  ;;  %v1146_v61 = vmax.f32 %v978_v15, %v1132_v56  ;;  %v12903_v49 = vld [vmem:[#allocation10_spill] sm:$0xff] }
  0xbf   :  { %v1245_v62 = vrot.slane %v1143_v18, 2  ;;  %v965_v0 = vrot.slane %v12880_v54, 7  ;;  %v1231_v27 = vsel %vm258_vm1, %v1230_v31, %v1229_v17  ;;  %v966_v53 = vrot.slane %v12881_v14, 7 }
  0xc0   :  { %v1246_v32 = vrot.slane %v1144_v60, 1  ;;  %v967_v28 = vrot.slane %v8571_v3, 7  ;;  %v1233_v44 = vsel %vm12744_vm2, %v1232_v6, %v1231_v27  ;;  %v1249_v41 = vrot.slane %v1146_v61, 7 }
  0xc1   :  { %v979_v19 = vmax.f32 %v958_v10, %v965_v0  ;;  %v985_v12 = vmax.f32 %v978_v15, %v12879_v34  ;;  %v1235_v13 = vsel %vm12740_vm9, %v1234_v51, %v1233_v44  ;;  %v980_v11 = vmax.f32 %v959_v47, %v966_v53  ;;  %v12899_v15 = vld [vmem:[#allocation19_spill] sm:$0xff] }
  0xc2   :  { %v1247_v36 = vsel %vm12743_vm5, %v1246_v32, %v1245_v62  ;;  %v981_v4 = vmax.f32 %v960_v58, %v967_v28  ;;  %v1133_v39 = vrot.slane %v12894_v52, 7  ;;  %v1134_v5 = vrot.slane %v12895_v23, 7 }
  0xc3   :  { %v1248_v8 = vsel %vm12739_vm10, %v1145_v40, %v1247_v36  ;;  %v986_v50 = vmax.f32 %v979_v19, %v12880_v54  ;;  %v1135_v10 = vrot.slane %v12896_v1, 7  ;;  %v12898_v24 = vrot.slane %v12897_v55, 7 }
  0xc4   :  { %v1250_v45 = vsel %vm12742_vm4, %v1249_v41, %v1248_v8  ;;  %v12900_v38 = vrot.slane %v12899_v15, 7  ;;  %v1147_v33 = vmax.f32 %v979_v19, %v1133_v39  ;;  %v1148_v16 = vmax.f32 %v980_v11, %v1134_v5  ;;  %v12907_v5 = vld [vmem:[#allocation8_spill] sm:$0xff] }
  0xc5   :  { %v1150_v42 = vmax.f32 %v8830_v30, %v12898_v24  ;;  %v1300_v58 = vsel %vm12735_vm15, %v1235_v13, %v1250_v45  ;;  %v12902_v26 = vrot.slane %v12901_v21, 7  ;;  %v1149_v46 = vmax.f32 %v981_v4, %v1135_v10 }
  0xc6   :  { %v1151_v47 = vmax.f32 %v8862_v37, %v12900_v38  ;;  %v1327_v35 = vrot.slane %v1300_v58, 6  ;;  %v12904_v29 = vrot.slane %v12903_v49, 7  ;;  %v12906_v22 = vrot.slane %v12905_v43, 7 }
  0xc7   :  { %v1152_v25 = vmax.f32 %v8889_v9, %v12902_v26  ;;  %v1251_v56 = vrot.slane %v1147_v33, 6  ;;  %v1252_v18 = vrot.slane %v1148_v16, 5  ;;  %v1265_v17 = vrot.slane %v1150_v42, 3 }
  0xc8   :  { %v1153_v7 = vmax.f32 %v985_v12, %v12904_v29  ;;  %v1154_v2 = vmax.f32 %v986_v50, %v12906_v22  ;;  %v1266_v60 = vrot.slane %v1151_v47, 2  ;;  %v1328_v31 = vsel %vm12737_vm13, %v1325_v57, %v1327_v35 }
  0xc9   :  { %v1254_v6 = vrot.slane %v1149_v46, 4  ;;  %v1268_v51 = vrot.slane %v1152_v25, 1  ;;  %7785 = vmatmul.mubr.msk.f32.gmra.mxu0 %vm12732_vm8, %v1328_v31  ;;  %v1253_v61 = vsel %vm258_vm1, %v1252_v18, %v1251_v56  ;;  %v987_v0 = vmax.f32 %v980_v11, %v12881_v14 }
  0xca   :  { %v1271_v40 = vrot.slane %v1154_v2, 7  ;;  %v1267_v62 = vsel %vm268_vm3, %v1266_v60, %v1265_v17  ;;  %v988_v27 = vmax.f32 %v981_v4, %v8571_v3  ;;  %7787 = vmatprep.mubr.msk.f32.mxu0 %vm7935_vm0, %v12844_v20  ;;  %v989_v53 = vrot.slane %v8583_v48, 1  ;;  %v8976_v2 = vld [vmem:[%s12675_s2] ss:$0 sm:$0xff] }
  0xcb   :  { %v1255_v32 = vsel %vm12744_vm2, %v1254_v6, %v1253_v61  ;;  %v1269_v57 = vsel %vm12743_vm5, %v1268_v51, %v1267_v62  ;;  %v990_v28 = vrot.slane %v12877_v63, 1  ;;  %v991_v41 = vrot.slane %v12878_v59, 1 }
  0xcc   :  { %v1270_v44 = vsel %vm12739_vm10, %v1153_v7, %v1269_v57  ;;  %v992_v19 = vrot.slane %v12879_v34, 1  ;;  %v993_v13 = vrot.slane %v12880_v54, 1  ;;  %v994_v11 = vrot.slane %v12881_v14, 1  ;;  %v12909_v54 = vld [vmem:[#allocation18_spill] sm:$0xff] }
  0xcd   :  { %v1272_v36 = vsel %vm12742_vm4, %v1271_v40, %v1270_v44  ;;  %v1003_v4 = vmax.f32 %v8830_v30, %v989_v53  ;;  %v1004_v8 = vmax.f32 %v8862_v37, %v990_v28  ;;  %v1005_v63 = vmax.f32 %v8889_v9, %v991_v41 }
  0xce   :  { %v1301_v48 = vsel %vm12741_vm6, %v1255_v32, %v1272_v36  ;;  %v1006_v52 = vmax.f32 %v985_v12, %v992_v19  ;;  %v1007_v39 = vmax.f32 %v986_v50, %v993_v13  ;;  %v1008_v59 = vmax.f32 %v987_v0, %v994_v11  ;;  %v1631_v13 = vld [vmem:[%s12676_s3 + $0x78] sm:$0xff]  ;;  %v1630_v36 = vld [vmem:[%s12676_s3 + $0x70] sm:$0xff]  ;;  %v1629_v11 = vld [vmem:[%s12676_s3 + $0x68] sm:$0xff] }
  0xcf   :  { %v1329_v23 = vrot.slane %v1301_v48, 6  ;;  %v12908_v34 = vrot.slane %v12907_v5, 7  ;;  %v12910_v1 = vrot.slane %v12909_v54, 7  ;;  %v1285_v55 = vrot.slane %v1003_v4, 4  ;;  %1649 = vmatpush1.msra.mxu1 %v1631_v13  ;;  %v1625_v54 = vld [vmem:[%s12676_s3 + $0x48] sm:$0xff]  ;;  %v2019_v13 = vld [vmem:[%s12677_s4 + $0xf8] sm:$0xff] }
  0xd0   :  { %v1286_v14 = vrot.slane %v1004_v8, 3  ;;  %v1288_v24 = vrot.slane %v1005_v63, 2  ;;  %v1290_v30 = vrot.slane %v1006_v52, 1  ;;  %v1293_v12 = vrot.slane %v1008_v59, 7  ;;  %1650 = vmatprep.subr.mxu1 %v12844_v20  ;;  %v1628_v52 = vld [vmem:[%s12676_s3 + $0x60] sm:$0xff]  ;;  %7424 = vmatprep.subr.mxu0 %v2019_v13 }
  0xd1   :  { %v1155_v45 = vmax.f32 %v987_v0, %v12908_v34  ;;  %v1156_v10 = vmax.f32 %v988_v27, %v12910_v1  ;;  %v1330_v37 = vsel %vm12737_vm13, %v1327_v35, %v1329_v23  ;;  %v995_v50 = vrot.slane %v8571_v3, 1  ;;  %1651 = vmatpush1.msra.mxu1 %v1630_v36  ;;  %v2003_v36 = vld [vmem:[%s12677_s4 + $0x78] sm:$0xff]  ;;  %v1988_v13 = vld [vmem:[%s12677_s4] sm:$0xff] }
  0xd2   :  { %7788 = vmatmul.mubr.msk.f32.gmra.mxu0 %vm12732_vm8, %v1330_v37  ;;  %v1287_v9 = vsel %vm12740_vm9, %v1286_v14, %v1285_v55  ;;  %v1510_v49 = vlaneseq  ;;  %v7936_v29 = vmov 1966171168   ;;  %v12913_v31 = vmov 0  ;;  %1652 = vmatprep.subr.mxu1 %v12844_v20  ;;  %v1624_v14 = vld [vmem:[%s12676_s3 + $0x40] sm:$0xff] }
  0xd3   :  { %v1273_v42 = vrot.slane %v1155_v45, 6  ;;  %v1274_v15 = vrot.slane %v1156_v10, 5  ;;  %7790 = vmatprep.mubr.msk.f32.mxu0 %vm7935_vm0, %v12844_v20  ;;  %v1289_v47 = vsel %vm268_vm3, %v1288_v24, %v1287_v9  ;;  %v1009_v33 = vmax.f32 %v988_v27, %v995_v50  ;;  %1653 = vmatpush1.msra.mxu1 %v1629_v11  ;;  %v1626_v45 = vld [vmem:[%s12676_s3 + $0x50] sm:$0xff]  ;;  %v1623_v9 = vld [vmem:[%s12676_s3 + $0x38] sm:$0xff] }
  0xd4   :  { %v1291_v58 = vsel %vm12743_vm5, %v1290_v30, %v1289_v47  ;;  %v1517_v7 = vunpack.c.l.s4 %v7936_v29  ;;  %v8971_v22 = vshrl.u32 %v1510_v49, 7  ;;  %1654 = vmatprep.subr.mxu1 %v12844_v20  ;;  %v1622_v50 = vld [vmem:[%s12676_s3 + $0x30] sm:$0xff]  ;;  %7425 = vmatpush3.msra.mxu0 %v2003_v36  ;;  %vm1541_vm12 = vcmp.ge.s32.totalorder %v1510_v49, 16 }
  0xd5   :  { %v1275_v38 = vsel %vm258_vm1, %v1274_v15, %v1273_v42  ;;  %v1292_v16 = vsel %vm12739_vm10, %v1007_v39, %v1291_v58  ;;  %v7328_v26 = vrot.slane %v1009_v33, 12  ;;  %v1627_v39 = vld [vmem:[%s12676_s3 + $0x58] sm:$0xff]  ;;  %1655 = vmatpush1.msra.mxu1 %v1628_v52  ;;  %v2018_v11 = vld [vmem:[%s12677_s4 + $0xf0] sm:$0xff]  ;;  %v2001_v52 = vld [vmem:[%s12677_s4 + $0x68] sm:$0xff]  ;;  %vm1542_vm7 = vcmp.lt.s32.totalorder %v1510_v49, 32 }
  0xd6   :  { %v1294_v21 = vsel %vm12742_vm4, %v1293_v12, %v1292_v16  ;;  %v1518_v43 = vunpack.c.0.s8 %v1517_v7  ;;  %12911 = vst [vmem:[#allocation11_spill] sm:$0xff] %v8971_v22  ;;  %1656 = vmatprep.subr.mxu1 %v12844_v20  ;;  %v1621_v16 = vld [vmem:[%s12676_s3 + $0x28] sm:$0xff]  ;;  %v1619_v7 = vld [vmem:[%s12676_s3 + $0x18] sm:$0xff]  ;;  %7426 = vmatprep.subr.mxu0 %v2018_v11  ;;  %vm9256_vm15 = vmand %vm1541_vm12, %vm1542_vm7  ;;  %vm9261_vm14 = vcmp.ge.s32.totalorder %v1510_v49, 32  ;;  %vm1557_vm11 = vcmp.ge.s32.totalorder %v1510_v49, 48 }
  0xd7   :  { %v1302_v25 = vsel %vm12737_vm13, %v1275_v38, %v1294_v21  ;;  %1657 = vmatpush1.msra.mxu1 %v1627_v39  ;;  %v2016_v39 = vld [vmem:[%s12677_s4 + $0xe0] sm:$0xff]  ;;  %vm1558_vm7 = vcmp.lt.s32.totalorder %v1510_v49, 64  ;;  %vm9274_vm12 = vcmp.ge.s32.totalorder %v1510_v49, 64  ;;  %vm1580_vm10 = vcmp.lt.s32.totalorder %v1510_v49, 80 }
  0xd8   :  { %v1331_v35 = vrot.slane %v1302_v25, 6  ;;  %v8980_v17 = vsub.s32 %v1518_v43, %v8971_v22  ;;  %1658 = vmatprep.subr.mxu1 %v12844_v20  ;;  %vm9287_vm6 = vmand %vm1557_vm11, %vm1558_vm7  ;;  %vm9292_vm4 = vcmp.ge.s32.totalorder %v1510_v49, 80  ;;  %vm9297_vm5 = vcmp.lt.s32.totalorder %v1510_v49, 96 }
  0xd9   :  { %1659 = vmatpush1.msra.mxu1 %v1626_v45  ;;  %v2015_v45 = vld [vmem:[%s12677_s4 + $0xd8] sm:$0xff]  ;;  %vm9305_vm11 = vmand %vm9274_vm12, %vm1580_vm10  ;;  %vm1610_vm12 = vcmp.ge.s32.totalorder %v1510_v49, 112  ;;  %vm1611_vm2 = vcmp.lt.s32.totalorder %v1510_v49, 128 }
  0xda   :  { %v1332_v3 = vsel %vm12737_vm13, %v1329_v23, %v1331_v35  ;;  %v1334_v46 = vsel %vm12737_vm13, %v1331_v35, %v7328_v26  ;;  %12912 = vst [vmem:[#allocation12_spill] sm:$0xff] %v8980_v17  ;;  %1660 = vmatprep.subr.mxu1 %v12844_v20  ;;  %vm1550_vm13 = vcmp.lt.s32.totalorder %v1510_v49, 48  ;;  %vm9322_vm10 = vmand %vm9292_vm4, %vm9297_vm5  ;;  %vm12969_vm5 = vcmask 1042434  }
  0xdb   :  { %7791 = vmatmul.mubr.msk.f32.gmra.mxu0 %vm12732_vm8, %v1332_v3  ;;  %1661 = vmatpush1.msra.mxu1 %v1625_v54  ;;  %vm9283_vm9 = vmand %vm9261_vm14, %vm1550_vm13  ;;  %vm1602_vm13 = vcmp.ge.s32.totalorder %v1510_v49, 96  ;;  %vm1603_vm14 = vcmp.lt.s32.totalorder %v1510_v49, 112 }
  0xdc   :  { %7793 = vmatprep.mubr.msk.f32.mxu0 %vm7935_vm0, %v12844_v20  ;;  %1662 = vmatprep.subr.mxu1 %v12844_v20  ;;  %vm9328_vm7 = vmand %vm1602_vm13, %vm1603_vm14  ;;  %vm12970_vm13 = vcmask 1045509   ;;  %vm12974_vm14 = vcmask 1047559  }
  0xdd   :  { %1663 = vmatpush1.msra.mxu1 %v1624_v14  ;;  %vm9342_vm4 = vmand %vm1610_vm12, %vm1611_vm2  ;;  %vm12801_vm2 = vcmask 130048   ;;  %vm12975_vm12 = vcmask 1042432  }
  0xde   :  { %1664 = vmatprep.subr.mxu1 %v12844_v20 }
  0xdf   :  { %7794 = vmatmul.mubr.msk.f32.gmra.mxu0 %vm12732_vm8, %v1334_v46  ;;  %vm8983_vm8 = vcmp.lt.s32.totalorder %v1510_v49, 16  ;;  %1665 = vmatpush1.msra.mxu1 %v1623_v9  ;;  %v1620_v46 = vld [vmem:[%s12676_s3 + $0x20] sm:$0xff]  ;;  %v2011_v9 = vld [vmem:[%s12677_s4 + $0xb8] sm:$0xff]  ;;  %v12942_v49 = vmov 0 }
  0xe0   :  { %v12914_v31 = vsel %vm8983_vm8, 4294967295, %v12913_v31  ;;  %1666 = vmatprep.subr.mxu1 %v12844_v20  ;;  %v12943_v49 = vsel %vm9342_vm4, 4294967295, %v12942_v49 }
  0xe1   :  { %12915 = vst [vmem:[#allocation14_spill] sm:$0xff] %v12914_v31  ;;  %1667 = vmatpush1.msra.mxu1 %v1622_v50  ;;  %v2010_v50 = vld [vmem:[%s12677_s4 + $0xb0] sm:$0xff]  ;;  %12944 = vst [vmem:[#allocation31_spill] sm:$0xff] %v12943_v49 }
  0xe2   :  { %1668 = vmatprep.subr.mxu1 %v12844_v20 }
  0xe3   :  { %1669 = vmatpush1.msra.mxu1 %v1621_v16 }
  0xe4   :  { %1670 = vmatprep.subr.mxu1 %v12844_v20 }
  0xe5   :  { %1671 = vmatpush1.msra.mxu1 %v1620_v46  ;;  %v1992_v46 = vld [vmem:[%s12677_s4 + $0x20] sm:$0xff] }
  0xe6   :  { %1672 = vmatprep.subr.mxu1 %v12844_v20 }
  0xe7   :  { %1673 = vmatpush1.msra.mxu1 %v1619_v7 }
  0xe8   :  { %1674 = vmatprep.subr.mxu1 %v12844_v20 }
 0x106   :  { %v1445_v56 = vpop.f32.mrf.mxu0 }
 0x107   :  { %v1446_v18 = vadd.f32 %v8976_v2, %v1445_v56 }
 0x108   :  { %v7765_v60 = vpop.f32.mrf.mxu0 }
 0x109   :  { %v1499_v6 = vmax.f32 %v1446_v18, 0.0  ;;  %v1618_v18 = vld [vmem:[%s12676_s3 + $0x10] sm:$0xff] }
 0x10a   :  { %1675 = vmatpush1.msra.mxu1 %v1618_v18 }
 0x10b   :  { %1514 = vst.msk [vmem:[#allocation2] sm:$0x1] %vm8983_vm8, %v1499_v6  ;;  %v1561_v51 = vcombine.high %v1499_v6, %v1499_v6  ;;  %v1522_v40 = vrot.slane %v1499_v6, %v8980_v17  ;;  %v1617_v6 = vld [vmem:[%s12676_s3 + $0x8] sm:$0xff]  ;;  %1676 = vmatprep.subr.mxu1 %v12844_v20 }
 0x10c   :  { %1677 = vmatpush1.msra.mxu1 %v1617_v6  ;;  %v2006_v6 = vld [vmem:[%s12677_s4 + $0x90] sm:$0xff] }
 0x10d   :  { %v1568_v61 = vrot.slane %v1561_v51, %v8980_v17  ;;  %v1523_v62 = vcombine.high %v1522_v40, %v1522_v40  ;;  %v1530_v32 = vrot.slane %v1522_v40, %v8980_v17  ;;  %1678 = vmatprep.subr.mxu1 %v12844_v20 }
 0x10f   :  { %v1575_v0 = vrot.slane %v1568_v61, %v8980_v17  ;;  %v1537_v27 = vrot.slane %v1523_v62, %v8980_v17  ;;  %v1583_v57 = vcombine.high %v1568_v61, %v1568_v61  ;;  %v1545_v28 = vcombine.high %v1530_v32, %v1530_v32  ;;  %v1633_v32 = vld [vmem:[%s12676_s3 + $0x88] sm:$0xff] }
 0x111   :  { %1576 = vrot.lane.b32.xlu1 %v1575_v0, %s7937_s28  ;;  %1538 = vrot.lane.b32.xlu0 %v1537_v27, %s7938_s29  ;;  %v1553_v53 = vcombine.high %v1537_v27, %v1537_v27  ;;  %v1598_v44 = vcombine.high %v1575_v0, %v1575_v0  ;;  %v1590_v41 = vrot.slane %v1583_v57, %v8980_v17  ;;  %v1616_v0 = vld [vmem:[%s12676_s3] sm:$0xff] }
 0x112   :  { %1679 = vmatpush1.msra.mxu1 %v1616_v0 }
 0x113   :  { %v1606_v19 = vcombine.high %v1590_v41, %v1590_v41  ;;  %1708 = vmatprep.subr.mxu1 %v12844_v20 }
 0x114   :  { %1709 = vmatpush2.msra.mxu1 %v1633_v32 }
 0x115   :  { %1546 = vrot.lane.b32.xlu0 %v1545_v28, %s7939_s30  ;;  %1554 = vrot.lane.b32.xlu1 %v1553_v53, %s7940_s10 }
 0x116   :  { %1710 = vmatprep.subr.mxu1 %v12844_v20 }
 0x119   :  { %1591 = vrot.lane.b32.xlu0 %v1590_v41, %s7941_s11  ;;  %1599 = vrot.lane.b32.xlu1 %v1598_v44, %s7942_s12  ;;  %v1632_v44 = vld [vmem:[%s12676_s3 + $0x80] sm:$0xff] }
 0x11a   :  { %1711 = vmatpush2.msra.mxu1 %v1632_v44 }
 0x11b   :  { %2139 = vmatprep.subr.mxu1 %v12844_v20 }
 0x11d   :  { %1607 = vrot.lane.b32.xlu1 %v1606_v19, %s7943_s13 }
 0x126   :  { %v1450_v4 = vpop.f32.mrf.mxu0 }
 0x127   :  { %v1451_v8 = vadd.f32 %v8976_v2, %v1450_v4 }
 0x128   :  { %v7768_v48 = vpop.f32.mrf.mxu0 }
 0x129   :  { %v1500_v63 = vmax.f32 %v1451_v8, 0.0  ;;  %v2002_v8 = vld [vmem:[%s12677_s4 + $0x70] sm:$0xff]  ;;  %v2017_v48 = vld [vmem:[%s12677_s4 + $0xe8] sm:$0xff] }
 0x12a   :  { %7427 = vmatpush3.msra.mxu0 %v2002_v8 }
 0x12b   :  { %1614 = vst.msk [vmem:[#allocation2 + $0x1] sm:$0x1] %vm8983_vm8, %v1500_v63  ;;  %v9024_v23 = vrot.slane %v1500_v63, %v8980_v17  ;;  %v1755_v59 = vcombine.high %v1500_v63, %v1500_v63  ;;  %7428 = vmatprep.subr.mxu0 %v2017_v48 }
 0x12c   :  { %7429 = vmatpush3.msra.mxu0 %v2001_v52 }
 0x12d   :  { %v1728_v5 = vcombine.high %v9024_v23, %v9024_v23  ;;  %v1762_v34 = vrot.slane %v1755_v59, %v8980_v17  ;;  %v2000_v59 = vld [vmem:[%s12677_s4 + $0x60] sm:$0xff]  ;;  %7430 = vmatprep.subr.mxu0 %v2016_v39 }
 0x12e   :  { %7431 = vmatpush3.msra.mxu0 %v2000_v59 }
 0x12f   :  { %v1742_v1 = vrot.slane %v1728_v5, %v8980_v17  ;;  %v1769_v10 = vrot.slane %v1762_v34, %v8980_v17  ;;  %v1774_v15 = vcombine.high %v1762_v34, %v1762_v34  ;;  %7432 = vmatprep.subr.mxu0 %v2015_v45 }
 0x131   :  { %1743 = vrot.lane.b32.xlu0 %v1742_v1, %s7943_s13  ;;  %1770 = vrot.lane.b32.xlu1 %v1769_v10, %s7939_s30  ;;  %v1750_v37 = vcombine.high %v1742_v1, %v1742_v1  ;;  %v1786_v42 = vcombine.high %v1769_v10, %v1769_v10  ;;  %v1781_v58 = vrot.slane %v1774_v15, %v8980_v17  ;;  %v1999_v1 = vld [vmem:[%s12677_s4 + $0x58] sm:$0xff]  ;;  %v2014_v10 = vld [vmem:[%s12677_s4 + $0xd0] sm:$0xff] }
 0x132   :  { %v1455_v55 = vpop.f32.mrf.mxu0  ;;  %7433 = vmatpush3.msra.mxu0 %v1999_v1 }
 0x133   :  { %v1456_v24 = vadd.f32 %v8976_v2, %v1455_v55  ;;  %v1791_v60 = vcombine.high %v1781_v58, %v1781_v58  ;;  %v1998_v55 = vld [vmem:[%s12677_s4 + $0x50] sm:$0xff]  ;;  %7434 = vmatprep.subr.mxu0 %v2014_v10 }
 0x134   :  { %v7771_v30 = vpop.f32.mrf.mxu0  ;;  %7435 = vmatpush3.msra.mxu0 %v1998_v55 }
 0x135   :  { %v1501_v12 = vmax.f32 %v1456_v24, 0.0  ;;  %1751 = vrot.lane.b32.xlu0 %v1750_v37, %s7938_s29  ;;  %1787 = vrot.lane.b32.xlu1 %v1786_v42, %s7937_s28  ;;  %v2013_v24 = vld [vmem:[%s12677_s4 + $0xc8] sm:$0xff]  ;;  %v2012_v37 = vld [vmem:[%s12677_s4 + $0xc0] sm:$0xff] }
 0x136   :  { %v1997_v30 = vld [vmem:[%s12677_s4 + $0x48] sm:$0xff]  ;;  %7436 = vmatprep.subr.mxu0 %v2013_v24  ;;  %v1996_v42 = vld [vmem:[%s12677_s4 + $0x40] sm:$0xff] }
 0x137   :  { %v1803_v38 = vrot.slane %v1501_v12, %v8980_v17  ;;  %v1835_v47 = vcombine.high %v1501_v12, %v1501_v12  ;;  %7437 = vmatpush3.msra.mxu0 %v1997_v30  ;;  %v1995_v12 = vld [vmem:[%s12677_s4 + $0x38] sm:$0xff] }
 0x138   :  { %7438 = vmatprep.subr.mxu0 %v2012_v37 }
 0x139   :  { %v1815_v21 = vcombine.high %v1803_v38, %v1803_v38  ;;  %v1842_v26 = vrot.slane %v1835_v47, %v8980_v17  ;;  %v9064_v25 = vrot.slane %v1803_v38, %v8980_v17  ;;  %1782 = vrot.lane.b32.xlu0 %v1781_v58, %s7940_s10  ;;  %7439 = vmatpush3.msra.mxu0 %v1996_v42  ;;  %v1994_v38 = vld [vmem:[%s12677_s4 + $0x30] sm:$0xff]  ;;  %v2009_v47 = vld [vmem:[%s12677_s4 + $0xa8] sm:$0xff]  ;;  %v12916_v42 = vmov 0 }
 0x13a   :  { %v1460_v33 = vpop.f32.mrf.mxu0  ;;  %7440 = vmatprep.subr.mxu0 %v2011_v9  ;;  %v12917_v42 = vsel %vm9256_vm15, 4294967295, %v12916_v42 }
 0x13b   :  { %v1461_v35 = vadd.f32 %v8976_v2, %v1460_v33  ;;  %v1849_v29 = vrot.slane %v1842_v26, %v8980_v17  ;;  %1811 = vrot.lane.b32.xlu1 %v9064_v25, %s7942_s12  ;;  %v1822_v56 = vrot.slane %v1815_v21, %v8980_v17  ;;  %v1854_v61 = vcombine.high %v1842_v26, %v1842_v26 }
 0x13c   :  { %v7774_v3 = vpop.f32.mrf.mxu0  ;;  %7441 = vmatpush3.msra.mxu0 %v1995_v12  ;;  %12918 = vst [vmem:[#allocation15_spill] sm:$0xff] %v12917_v42 }
 0x13d   :  { %v1502_v43 = vmax.f32 %v1461_v35, 0.0  ;;  %1850 = vrot.lane.b32.xlu0 %v1849_v29, %s7939_s30  ;;  %v1830_v40 = vcombine.high %v1822_v56, %v1822_v56  ;;  %v1866_v27 = vcombine.high %v1849_v29, %v1849_v29  ;;  %v1861_v53 = vrot.slane %v1854_v61, %v8980_v17  ;;  %7442 = vmatprep.subr.mxu0 %v2010_v50  ;;  %v1993_v35 = vld [vmem:[%s12677_s4 + $0x28] sm:$0xff]  ;;  %v2008_v3 = vld [vmem:[%s12677_s4 + $0xa0] sm:$0xff]  ;;  %v1990_v61 = vld [vmem:[%s12677_s4 + $0x10] sm:$0xff] }
 0x13e   :  { %7443 = vmatpush3.msra.mxu0 %v1994_v38 }
 0x13f   :  { %1823 = vrot.lane.b32.xlu1 %v1822_v56, %s7943_s13  ;;  %v1915_v51 = vcombine.high %v1502_v43, %v1502_v43  ;;  %v1883_v62 = vrot.slane %v1502_v43, %v8980_v17  ;;  %v1871_v63 = vcombine.high %v1861_v53, %v1861_v53  ;;  %7444 = vmatprep.subr.mxu0 %v2009_v47  ;;  %v2007_v56 = vld [vmem:[%s12677_s4 + $0x98] sm:$0xff] }
 0x140   :  { %7445 = vmatpush3.msra.mxu0 %v1993_v35 }
 0x141   :  { %1792 = vrot.lane.b32.xlu0 %v1791_v60, %s7941_s11  ;;  %v1922_v57 = vrot.slane %v1915_v51, %v8980_v17  ;;  %v9105_v28 = vrot.slane %v1883_v62, %v8980_v17  ;;  %v1895_v41 = vcombine.high %v1883_v62, %v1883_v62  ;;  %7446 = vmatprep.subr.mxu0 %v2008_v3  ;;  %v1991_v60 = vld [vmem:[%s12677_s4 + $0x18] sm:$0xff]  ;;  %v2005_v62 = vld [vmem:[%s12677_s4 + $0x88] sm:$0xff] }
 0x142   :  { %7447 = vmatpush3.msra.mxu0 %v1992_v46  ;;  %v2033_v3 = vld [vmem:[%s12677_s4 + $0x168] sm:$0xff] }
 0x143   :  { %1831 = vrot.lane.b32.xlu1 %v1830_v40, %s7938_s29  ;;  %v1929_v19 = vrot.slane %v1922_v57, %v8980_v17  ;;  %v1902_v4 = vrot.slane %v1895_v41, %v8980_v17  ;;  %v1934_v34 = vcombine.high %v1922_v57, %v1922_v57  ;;  %7448 = vmatprep.subr.mxu0 %v2007_v56  ;;  %v1989_v41 = vld [vmem:[%s12677_s4 + $0x8] sm:$0xff] }
 0x144   :  { %7449 = vmatpush3.msra.mxu0 %v1991_v60 }
 0x145   :  { %1867 = vrot.lane.b32.xlu0 %v1866_v27, %s7937_s28  ;;  %v1910_v5 = vcombine.high %v1902_v4, %v1902_v4  ;;  %v1946_v54 = vcombine.high %v1929_v19, %v1929_v19  ;;  %v1941_v14 = vrot.slane %v1934_v34, %v8980_v17  ;;  %7450 = vmatprep.subr.mxu0 %v2006_v6 }
 0x146   :  { %7451 = vmatpush3.msra.mxu0 %v1990_v61  ;;  %v12939_v61 = vmov 0 }
 0x147   :  { %1862 = vrot.lane.b32.xlu1 %v1861_v53, %s7940_s10  ;;  %v1951_v15 = vcombine.high %v1941_v14, %v1941_v14  ;;  %7452 = vmatprep.subr.mxu0 %v2005_v62  ;;  %v12940_v61 = vsel %vm9328_vm7, 4294967295, %v12939_v61 }
 0x148   :  { %7453 = vmatpush3.msra.mxu0 %v1989_v41  ;;  %12941 = vst [vmem:[#allocation30_spill] sm:$0xff] %v12940_v61 }
 0x149   :  { %1891 = vrot.lane.b32.xlu0 %v9105_v28, %s7942_s12 }
 0x14b   :  { %1930 = vrot.lane.b32.xlu1 %v1929_v19, %s7939_s30  ;;  %v2004_v19 = vld [vmem:[%s12677_s4 + $0x80] sm:$0xff] }
 0x14c   :  { %7454 = vmatprep.subr.mxu0 %v2004_v19 }
 0x14d   :  { %1903 = vrot.lane.b32.xlu0 %v1902_v4, %s7943_s13  ;;  %7455 = vmatpush3.msra.mxu0 %v1988_v13 }
 0x14f   :  { %1872 = vrot.lane.b32.xlu1 %v1871_v63, %s7941_s11 }
 0x151   :  { %1911 = vrot.lane.b32.xlu0 %v1910_v5, %s7938_s29 }
 0x153   :  { %1947 = vrot.lane.b32.xlu1 %v1946_v54, %s7937_s28 }
 0x155   :  { %1942 = vrot.lane.b32.xlu0 %v1941_v14, %s7940_s10 }
 0x159   :  { %1952 = vrot.lane.b32.xlu0 %v1951_v15, %s7941_s11 }
 0x164   :  { %v1465_v58 = vpop.f32.mrf.mxu0 }
 0x165   :  { %v1466_v33 = vadd.f32 %v8976_v2, %v1465_v58 }
 0x166   :  { %v7777_v16 = vpop.f32.mrf.mxu0 }
 0x167   :  { %v1503_v21 = vmax.f32 %v1466_v33, 0.0  ;;  %v12923_v16 = vmov 0 }
 0x168   :  { %v12924_v16 = vsel %vm9283_vm9, 4294967295, %v12923_v16 }
 0x169   :  { %v1963_v26 = vrot.slane %v1503_v21, %v8980_v17  ;;  %v2221_v7 = vcombine.high %v1503_v21, %v1503_v21  ;;  %12925 = vst [vmem:[#allocation17_spill] sm:$0xff] %v12924_v16 }
 0x16b   :  { %v1975_v29 = vcombine.high %v1963_v26, %v1963_v26  ;;  %v1970_v43 = vrot.slane %v1963_v26, %v8980_v17  ;;  %v2228_v51 = vrot.slane %v2221_v7, %v8980_v17  ;;  %v12926_v26 = vmov 0 }
 0x16c   :  { %v12927_v26 = vsel %vm9287_vm6, 4294967295, %v12926_v26 }
 0x16d   :  { %1971 = vrot.lane.b32.xlu1 %v1970_v43, %s7942_s12  ;;  %v1982_v18 = vrot.slane %v1975_v29, %v8980_v17  ;;  %v2211_v40 = vcombine.high %v1970_v43, %v1970_v43  ;;  %v2238_v44 = vcombine.high %v2228_v51, %v2228_v51  ;;  %v9236_v63 = vrot.slane %v2228_v51, %v8980_v17 }
 0x16e   :  { %12928 = vst [vmem:[#allocation25_spill] sm:$0xff] %v12927_v26  ;;  %v12933_v43 = vmov 0 }
 0x16f   :  { %1983 = vrot.lane.b32.xlu0 %v1982_v18, %s7943_s13  ;;  %v2216_v53 = vcombine.high %v1982_v18, %v1982_v18  ;;  %v2245_v48 = vrot.slane %v2238_v44, %v8980_v17  ;;  %v2250_v5 = vcombine.high %v9236_v63, %v9236_v63  ;;  %v12934_v43 = vsel %vm9305_vm11, 4294967295, %v12933_v43 }
 0x170   :  { %12935 = vst [vmem:[#allocation26_spill] sm:$0xff] %v12934_v43 }
 0x171   :  { %v1470_v0 = vpop.f32.mrf.mxu0  ;;  %2212 = vrot.lane.b32.xlu1 %v2211_v40, %s7942_s12  ;;  %v2255_v37 = vcombine.high %v2245_v48, %v2245_v48  ;;  %v12936_v40 = vmov 0 }
 0x172   :  { %v1471_v27 = vadd.f32 %v8976_v2, %v1470_v0  ;;  %v12937_v40 = vsel %vm9322_vm10, 4294967295, %v12936_v40 }
 0x173   :  { %v7780_v32 = vpop.f32.mrf.mxu0  ;;  %12938 = vst [vmem:[#allocation29_spill] sm:$0xff] %v12937_v40 }
 0x174   :  { %v1504_v57 = vmax.f32 %v1471_v27, 0.0 }
 0x175   :  { %2217 = vrot.lane.b32.xlu1 %v2216_v53, %s7943_s13 }
 0x176   :  { %v2267_v36 = vrot.slane %v1504_v57, %v8980_v17  ;;  %v2301_v11 = vcombine.high %v1504_v57, %v1504_v57 }
 0x178   :  { %v2274_v4 = vrot.slane %v2267_v36, %v8980_v17  ;;  %v2279_v8 = vcombine.high %v2267_v36, %v2267_v36  ;;  %v2308_v52 = vrot.slane %v2301_v11, %v8980_v17 }
 0x179   :  { %2246 = vrot.lane.b32.xlu1 %v2245_v48, %s7938_s29 }
 0x17a   :  { %v2291_v39 = vcombine.high %v2274_v4, %v2274_v4  ;;  %v2286_v59 = vrot.slane %v2279_v8, %v8980_v17  ;;  %v2318_v1 = vcombine.high %v2308_v52, %v2308_v52  ;;  %v9252_v24 = vrot.slane %v2308_v52, %v8980_v17 }
 0x17c   :  { %2292 = vrot.lane.b32.xlu0 %v2291_v39, %s7942_s12  ;;  %v1475_v34 = vpop.f32.mrf.mxu0  ;;  %v2296_v45 = vcombine.high %v2286_v59, %v2286_v59  ;;  %v2325_v14 = vrot.slane %v2318_v1, %v8980_v17  ;;  %v2330_v9 = vcombine.high %v9252_v24, %v9252_v24 }
 0x17d   :  { %v1476_v54 = vadd.f32 %v8976_v2, %v1475_v34  ;;  %2251 = vrot.lane.b32.xlu1 %v2250_v5, %s7939_s30  ;;  %v9361_v5 = vsub.s32 0, %v8971_v22 }
 0x17e   :  { %v7783_v10 = vpop.f32.mrf.mxu0  ;;  %v2335_v0 = vcombine.high %v2325_v14, %v2325_v14 }
 0x17f   :  { %v1505_v55 = vmax.f32 %v1476_v54, 0.0  ;;  %12946 = vst [vmem:[#allocation33_spill] sm:$0xff] %v9361_v5 }
 0x180   :  { %2297 = vrot.lane.b32.xlu0 %v2296_v45, %s7943_s13 }
 0x181   :  { %2275 = vrot.lane.b32.xlu1 %v2274_v4, %s7937_s28  ;;  %v2347_v30 = vrot.slane %v1505_v55, %v8980_v17  ;;  %v2381_v58 = vcombine.high %v1505_v55, %v1505_v55 }
 0x183   :  { %v1577_v12 = vpop.permute.xlu1 %1576  ;;  %v1539_v50 = vpop.permute.xlu0 %1538  ;;  %v2359_v47 = vcombine.high %v2347_v30, %v2347_v30  ;;  %v2354_v33 = vrot.slane %v2347_v30, %v8980_v17  ;;  %v2388_v18 = vrot.slane %v2381_v58, %v8980_v17 }
 0x184   :  { %2326 = vrot.lane.b32.xlu0 %v2325_v14, %s7938_s29  ;;  %1544 = vst.msk [vmem:[#allocation2] sm:$0x1] %vm9256_vm15, %v1539_v50 }
 0x185   :  { %2256 = vrot.lane.b32.xlu1 %v2255_v37, %s7940_s10  ;;  %v2366_v6 = vrot.slane %v2359_v47, %v8980_v17  ;;  %v2371_v51 = vcombine.high %v2354_v33, %v2354_v33  ;;  %v2398_v44 = vcombine.high %v2388_v18, %v2388_v18  ;;  %v9352_v48 = vrot.slane %v2388_v18, %v8980_v17  ;;  %v2034_v47 = vld [vmem:[%s12677_s4 + $0x170] sm:$0xff] }
 0x187   :  { %v1547_v29 = vpop.permute.xlu0 %1546  ;;  %v1555_v7 = vpop.permute.xlu1 %1554  ;;  %v2376_v53 = vcombine.high %v2366_v6, %v2366_v6  ;;  %v2405_v8 = vrot.slane %v2398_v44, %v8980_v17  ;;  %v2410_v45 = vcombine.high %v9352_v48, %v9352_v48 }
 0x188   :  { %2331 = vrot.lane.b32.xlu0 %v2330_v9, %s7939_s30  ;;  %1552 = vst.msk [vmem:[#allocation2] sm:$0x1] %vm9283_vm9, %v1547_v29  ;;  %v2035_v9 = vld [vmem:[%s12677_s4 + $0x178] sm:$0xff] }
 0x189   :  { %v1480_v21 = vpop.f32.mrf.mxu0  ;;  %2287 = vrot.lane.b32.xlu1 %v2286_v59, %s7941_s11  ;;  %1560 = vst.msk [vmem:[#allocation2] sm:$0x1] %vm9287_vm6, %v1555_v7  ;;  %v9358_v59 = vsub.s32 1, %v8971_v22  ;;  %v2032_v7 = vld [vmem:[%s12677_s4 + $0x160] sm:$0xff] }
 0x18a   :  { %v1481_v46 = vadd.f32 %v8976_v2, %v1480_v21  ;;  %1582 = vst.msk [vmem:[#allocation2] sm:$0x1] %vm9305_vm11, %v1577_v12  ;;  %v2415_v21 = vcombine.high %v2405_v8, %v2405_v8 }
 0x18b   :  { %v7786_v56 = vpop.f32.mrf.mxu0  ;;  %v1592_v27 = vpop.permute.xlu0 %1591  ;;  %12945 = vst [vmem:[#allocation32_spill] sm:$0xff] %v9358_v59 }
 0x18c   :  { %v1506_v60 = vmax.f32 %v1481_v46, 0.0  ;;  %2355 = vrot.lane.b32.xlu0 %v2354_v33, %s7937_s28  ;;  %v1600_v32 = vpop.permute.xlu1 %1599  ;;  %1597 = vst.msk [vmem:[#allocation2] sm:$0x1] %vm9322_vm10, %v1592_v27  ;;  %v1735_v46 = vrot.slane %v9024_v23, %v8980_v17  ;;  %v2031_v23 = vld [vmem:[%s12677_s4 + $0x158] sm:$0xff]  ;;  %v2030_v27 = vld [vmem:[%s12677_s4 + $0x150] sm:$0xff] }
 0x18d   :  { %2372 = vrot.lane.b32.xlu1 %v2371_v51, %s7942_s12  ;;  %1605 = vst.msk [vmem:[#allocation2] sm:$0x1] %vm9328_vm7, %v1600_v32 }
 0x18e   :  { %v2427_v62 = vrot.slane %v1506_v60, %v8980_v17  ;;  %v2461_v13 = vcombine.high %v1506_v60, %v1506_v60  ;;  %v1747_v51 = vcombine.high %v1735_v46, %v1735_v46  ;;  %v2023_v46 = vld [vmem:[%s12677_s4 + $0x118] sm:$0xff] }
 0x190   :  { %v2434_v57 = vrot.slane %v2427_v62, %v8980_v17  ;;  %2336 = vrot.lane.b32.xlu0 %v2335_v0, %s7940_s10  ;;  %v2439_v19 = vcombine.high %v2427_v62, %v2427_v62  ;;  %v1608_v36 = vpop.permute.xlu1 %1607  ;;  %v2468_v52 = vrot.slane %v2461_v13, %v8980_v17 }
 0x191   :  { %2377 = vrot.lane.b32.xlu1 %v2376_v53, %s7943_s13  ;;  %1613 = vst.msk [vmem:[#allocation2] sm:$0x1] %vm9342_vm4, %v1608_v36 }
 0x192   :  { %v1485_v41 = vpop.f32.mrf.mxu0  ;;  %v2451_v4 = vcombine.high %v2434_v57, %v2434_v57  ;;  %v2446_v39 = vrot.slane %v2439_v19, %v8980_v17  ;;  %v2478_v1 = vcombine.high %v2468_v52, %v2468_v52  ;;  %v9378_v50 = vrot.slane %v2468_v52, %v8980_v17  ;;  %v2029_v19 = vld [vmem:[%s12677_s4 + $0x148] sm:$0xff] }
 0x193   :  { %v1486_v34 = vadd.f32 %v8976_v2, %v1485_v41 }
 0x194   :  { %v7789_v11 = vpop.f32.mrf.mxu0  ;;  %2367 = vrot.lane.b32.xlu0 %v2366_v6, %s7941_s11  ;;  %v2456_v54 = vcombine.high %v2446_v39, %v2446_v39  ;;  %v2485_v12 = vrot.slane %v2478_v1, %v8980_v17  ;;  %v2490_v29 = vcombine.high %v9378_v50, %v9378_v50 }
 0x195   :  { %2406 = vrot.lane.b32.xlu1 %v2405_v8, %s7938_s29  ;;  %v1507_v37 = vmax.f32 %v1486_v34, 0.0  ;;  %v2027_v34 = vld [vmem:[%s12677_s4 + $0x138] sm:$0xff] }
 0x196   :  { %v2495_v13 = vcombine.high %v2485_v12, %v2485_v12 }
 0x197   :  { %v2507_v58 = vrot.slane %v1507_v37, %v8980_v17  ;;  %v2541_v56 = vcombine.high %v1507_v37, %v1507_v37 }
 0x198   :  { %2452 = vrot.lane.b32.xlu0 %v2451_v4, %s7942_s12  ;;  %v1615_v55 = vld [vmem:[#allocation2] sm:$0x3] }
 0x199   :  { %2411 = vrot.lane.b32.xlu1 %v2410_v45, %s7939_s30  ;;  %v1643_v14 = vrot.slane %v1615_v55, %v9358_v59  ;;  %v1639_v30 = vrot.slane %v1615_v55, %v9361_v5  ;;  %v2519_v18 = vcombine.high %v2507_v58, %v2507_v58  ;;  %v2514_v6 = vrot.slane %v2507_v58, %v8980_v17  ;;  %v2028_v4 = vld [vmem:[%s12677_s4 + $0x140] sm:$0xff] }
 0x19a   :  { %v2548_v32 = vrot.slane %v2541_v56, %v8980_v17  ;;  %v2024_v58 = vld [vmem:[%s12677_s4 + $0x120] sm:$0xff] }
 0x19b   :  { %v1490_v10 = vpop.f32.mrf.mxu0  ;;  %7341 = vmatprep.mubr.msk.f32.mxu1 %vm12801_vm2, %v1643_v14  ;;  %v2526_v44 = vrot.slane %v2519_v18, %v8980_v17  ;;  %v2531_v41 = vcombine.high %v2514_v6, %v2514_v6  ;;  %v2021_v18 = vld [vmem:[%s12677_s4 + $0x108] sm:$0xff] }
 0x19c   :  { %2457 = vrot.lane.b32.xlu0 %v2456_v54, %s7943_s13  ;;  %1713 = vmatmul.mubr.f32.vlgmr.msra.gmra.mxu1 %v1639_v30  ;;  %v1491_v33 = vadd.f32 %v8976_v2, %v1490_v10  ;;  %v2026_v10 = vld [vmem:[%s12677_s4 + $0x130] sm:$0xff]  ;;  %v9452_v37 = vrot.slane %v2548_v32, %v8980_v17 }
 0x19d   :  { %v7792_v15 = vpop.f32.mrf.mxu0  ;;  %2435 = vrot.lane.b32.xlu1 %v2434_v57, %s7937_s28  ;;  %2140 = vmatpush1.msra.mxu1 %v2035_v9  ;;  %v2728_v57 = vld [vmem:[%s12678_s5 + $0xf8] sm:$0xff]  ;;  %v2536_v52 = vcombine.high %v2526_v44, %v2526_v44 }
 0x19e   :  { %2141 = vmatprep.subr.mxu1 %v12844_v20  ;;  %v1508_v60 = vmax.f32 %v1491_v33, 0.0  ;;  %7459 = vmatprep.subr.mxu0 %v2728_v57  ;;  %v2025_v15 = vld [vmem:[%s12677_s4 + $0x128] sm:$0xff]  ;;  %v1827_v33 = vcombine.high %v9064_v25, %v9064_v25 }
 0x19f   :  { %v9380_v38 = vpop.f32.mrf.mxu0  ;;  %2142 = vmatpush1.msra.mxu1 %v2034_v47 }
 0x1a0   :  { %2486 = vrot.lane.b32.xlu0 %v2485_v12, %s7938_s29  ;;  %2143 = vmatprep.subr.mxu1 %v12844_v20  ;;  %v2587_v53 = vrot.slane %v1508_v60, %v8980_v17  ;;  %v2621_v54 = vcombine.high %v1508_v60, %v1508_v60 }
 0x1a1   :  { %v7795_v35 = vpop.f32.mrf.mxu0  ;;  %2416 = vrot.lane.b32.xlu1 %v2415_v21, %s7940_s10  ;;  %2144 = vmatpush1.msra.mxu1 %v2033_v3  ;;  %v2570_v3 = vcombine.high %v9452_v37, %v9452_v37 }
 0x1a2   :  { %2145 = vmatprep.subr.mxu1 %v12844_v20  ;;  %v2594_v8 = vrot.slane %v2587_v53, %v8980_v17  ;;  %v2599_v45 = vcombine.high %v2587_v53, %v2587_v53  ;;  %v2628_v9 = vrot.slane %v2621_v54, %v8980_v17  ;;  %v1496_v35 = vadd.f32 %v8976_v2, %v9380_v38 }
 0x1a3   :  { %2146 = vmatpush1.msra.mxu1 %v2032_v7  ;;  %v1744_v62 = vpop.permute.xlu0 %1743  ;;  %v1771_v0 = vpop.permute.xlu1 %1770 }
 0x1a4   :  { %2491 = vrot.lane.b32.xlu0 %v2490_v29, %s7939_s30  ;;  %2147 = vmatprep.subr.mxu1 %v12844_v20  ;;  %1746 = vst.msk [vmem:[#allocation3] sm:$0x1] %vm8983_vm8, %v1744_v62  ;;  %v2611_v14 = vcombine.high %v2594_v8, %v2594_v8  ;;  %v2606_v12 = vrot.slane %v2599_v45, %v8980_v17  ;;  %v2022_v29 = vld [vmem:[%s12677_s4 + $0x110] sm:$0xff]  ;;  %v1509_v56 = vmax.f32 %v1496_v35, 0.0 }
 0x1a5   :  { %2447 = vrot.lane.b32.xlu1 %v2446_v39, %s7941_s11  ;;  %2148 = vmatpush1.msra.mxu1 %v2031_v23  ;;  %1749 = vst.msk [vmem:[#allocation3] sm:$0x1] %vm9256_vm15, %v1747_v51  ;;  %v2558_v39 = vcombine.high %v2548_v32, %v2548_v32  ;;  %v2638_v2 = vcombine.high %v2628_v9, %v2628_v9  ;;  %v2020_v51 = vld [vmem:[%s12677_s4 + $0x100] sm:$0xff]  ;;  %v2037_v32 = vld [vmem:[%s12677_s4 + $0x188] sm:$0xff] }
 0x1a6   :  { %2149 = vmatprep.subr.mxu1 %v12844_v20  ;;  %v2616_v25 = vcombine.high %v2606_v12, %v2606_v12 }
 0x1a7   :  { %2150 = vmatpush1.msra.mxu1 %v2030_v27  ;;  %v1752_v36 = vpop.permute.xlu0 %1751  ;;  %v1788_v11 = vpop.permute.xlu1 %1787  ;;  %v2565_v30 = vrot.slane %v2558_v39, %v8980_v17  ;;  %v2645_v60 = vrot.slane %v2638_v2, %v8980_v17  ;;  %v2759_v2 = vld [vmem:[%s12678_s5 + $0x1f0] sm:$0xff] }
 0x1a8   :  { %2515 = vrot.lane.b32.xlu0 %v2514_v6, %s7937_s28  ;;  %2151 = vmatprep.subr.mxu1 %v12844_v20  ;;  %1754 = vst.msk [vmem:[#allocation3] sm:$0x1] %vm9283_vm9, %v1752_v36  ;;  %v9503_v6 = vrot.slane %v2628_v9, %v8980_v17  ;;  %v1907_v36 = vcombine.high %v9105_v28, %v9105_v28  ;;  %v9572_v9 = vsub.s32 2, %v8971_v22 }
 0x1a9   :  { %2532 = vrot.lane.b32.xlu1 %v2531_v41, %s7942_s12  ;;  %2152 = vmatpush1.msra.mxu1 %v2029_v19  ;;  %1773 = vst.msk [vmem:[#allocation3] sm:$0x1] %vm9287_vm6, %v1771_v0  ;;  %v2667_v0 = vrot.slane %v1509_v56, %v8980_v17  ;;  %v2575_v27 = vcombine.high %v2565_v30, %v2565_v30  ;;  %v2760_v19 = vld [vmem:[%s12678_s5 + $0x1f8] sm:$0xff]  ;;  %v2726_v56 = vld [vmem:[%s12678_s5 + $0xe8] sm:$0xff] }
 0x1aa   :  { %2153 = vmatprep.subr.mxu1 %v12844_v20  ;;  %v2650_v57 = vcombine.high %v9503_v6, %v9503_v6  ;;  %12948 = vst [vmem:[#allocation21_spill] sm:$0xff] %v9572_v9 }
 0x1ab   :  { %2154 = vmatpush1.msra.mxu1 %v2028_v4  ;;  %v1783_v1 = vpop.permute.xlu0 %1782  ;;  %v2679_v28 = vcombine.high %v2667_v0, %v2667_v0 }
 0x1ac   :  { %2496 = vrot.lane.b32.xlu0 %v2495_v13, %s7940_s10  ;;  %2155 = vmatprep.subr.mxu1 %v12844_v20  ;;  %1785 = vst.msk [vmem:[#allocation3] sm:$0x1] %vm9305_vm11, %v1783_v1  ;;  %v2674_v13 = vrot.slane %v2667_v0, %v8980_v17  ;;  %v7342_v1 = vld [vmem:[%s12679_s6] ss:$0 sm:$0xff] }
 0x1ad   :  { %2537 = vrot.lane.b32.xlu1 %v2536_v52, %s7943_s13  ;;  %v1812_v55 = vpop.permute.xlu1 %1811  ;;  %2156 = vmatpush1.msra.mxu1 %v2027_v34  ;;  %1790 = vst.msk [vmem:[#allocation3] sm:$0x1] %vm9322_vm10, %v1788_v11  ;;  %v2655_v52 = vcombine.high %v2645_v60, %v2645_v60  ;;  %v2686_v45 = vrot.slane %v2679_v28, %v8980_v17  ;;  %v2757_v0 = vld [vmem:[%s12678_s5 + $0x1e0] sm:$0xff]  ;;  %v2722_v28 = vld [vmem:[%s12678_s5 + $0xc8] sm:$0xff] }
 0x1ae   :  { %2157 = vmatprep.subr.mxu1 %v12844_v20 }
 0x1af   :  { %2158 = vmatpush1.msra.mxu1 %v2026_v10  ;;  %v1851_v47 = vpop.permute.xlu0 %1850 }
 0x1b0   :  { %2527 = vrot.lane.b32.xlu0 %v2526_v44, %s7941_s11  ;;  %2159 = vmatprep.subr.mxu1 %v12844_v20  ;;  %v2036_v44 = vld [vmem:[%s12677_s4 + $0x180] sm:$0xff] }
 0x1b1   :  { %2566 = vrot.lane.b32.xlu1 %v2565_v30, %s7938_s29  ;;  %v1824_v21 = vpop.permute.xlu1 %1823  ;;  %2160 = vmatpush1.msra.mxu1 %v2025_v15  ;;  %v9569_v15 = vsub.s32 3, %v8971_v22 }
 0x1b2   :  { %1826 = vst.msk [vmem:[#allocation3 + $0x1] sm:$0x1] %vm8983_vm8, %v1824_v21  ;;  %2161 = vmatprep.subr.mxu1 %v12844_v20 }
 0x1b3   :  { %1829 = vst.msk [vmem:[#allocation3 + $0x1] sm:$0x1] %vm9256_vm15, %v1827_v33  ;;  %2162 = vmatpush1.msra.mxu1 %v2024_v58  ;;  %v1793_v38 = vpop.permute.xlu0 %1792  ;;  %12947 = vst [vmem:[#allocation9_spill] sm:$0xff] %v9569_v15 }
 0x1b4   :  { %2612 = vrot.lane.b32.xlu0 %v2611_v14, %s7942_s12  ;;  %2163 = vmatprep.subr.mxu1 %v12844_v20  ;;  %1795 = vst.msk [vmem:[#allocation3] sm:$0x1] %vm9328_vm7, %v1793_v38 }
 0x1b5   :  { %2571 = vrot.lane.b32.xlu1 %v2570_v3, %s7939_s30  ;;  %v1832_v7 = vpop.permute.xlu1 %1831  ;;  %2164 = vmatpush1.msra.mxu1 %v2023_v46  ;;  %1814 = vst.msk [vmem:[#allocation3] sm:$0x1] %vm9342_vm4, %v1812_v55  ;;  %v2712_v46 = vld [vmem:[%s12678_s5 + $0x78] sm:$0xff] }
 0x1b6   :  { %1834 = vst.msk [vmem:[#allocation3 + $0x1] sm:$0x1] %vm9283_vm9, %v1832_v7  ;;  %2165 = vmatprep.subr.mxu1 %v12844_v20  ;;  %v2743_v7 = vld [vmem:[%s12678_s5 + $0x170] sm:$0xff] }
 0x1b7   :  { %1853 = vst.msk [vmem:[#allocation3 + $0x1] sm:$0x1] %vm9287_vm6, %v1851_v47  ;;  %2166 = vmatpush1.msra.mxu1 %v2022_v29  ;;  %v1868_v23 = vpop.permute.xlu0 %1867  ;;  %v2711_v29 = vld [vmem:[%s12678_s5 + $0x70] sm:$0xff] }
 0x1b8   :  { %2617 = vrot.lane.b32.xlu0 %v2616_v25, %s7943_s13  ;;  %2167 = vmatprep.subr.mxu1 %v12844_v20  ;;  %v2744_v25 = vld [vmem:[%s12678_s5 + $0x178] sm:$0xff] }
 0x1b9   :  { %2595 = vrot.lane.b32.xlu1 %v2594_v8, %s7937_s28  ;;  %v1863_v62 = vpop.permute.xlu1 %1862  ;;  %2168 = vmatpush1.msra.mxu1 %v2021_v18  ;;  %v2691_v8 = vcombine.high %v2674_v13, %v2674_v13  ;;  %v2758_v18 = vld [vmem:[%s12678_s5 + $0x1e8] sm:$0xff] }
 0x1ba   :  { %1865 = vst.msk [vmem:[#allocation3 + $0x1] sm:$0x1] %vm9305_vm11, %v1863_v62  ;;  %2169 = vmatprep.subr.mxu1 %v12844_v20  ;;  %v2725_v62 = vld [vmem:[%s12678_s5 + $0xe0] sm:$0xff] }
 0x1bb   :  { %1870 = vst.msk [vmem:[#allocation3 + $0x1] sm:$0x1] %vm9322_vm10, %v1868_v23  ;;  %2170 = vmatpush1.msra.mxu1 %v2020_v51  ;;  %v1892_v53 = vpop.permute.xlu0 %1891  ;;  %v2710_v23 = vld [vmem:[%s12678_s5 + $0x68] sm:$0xff] }
 0x1bc   :  { %2646 = vrot.lane.b32.xlu0 %v2645_v60, %s7938_s29  ;;  %2199 = vmatprep.subr.mxu1 %v12844_v20  ;;  %v2742_v51 = vld [vmem:[%s12678_s5 + $0x168] sm:$0xff] }
 0x1bd   :  { %2576 = vrot.lane.b32.xlu1 %v2575_v27, %s7940_s10  ;;  %v1931_v41 = vpop.permute.xlu1 %1930  ;;  %2200 = vmatpush2.msra.mxu1 %v2037_v32  ;;  %v2709_v32 = vld [vmem:[%s12678_s5 + $0x60] sm:$0xff] }
 0x1be   :  { %2201 = vmatprep.subr.mxu1 %v12844_v20 }
 0x1bf   :  { %2202 = vmatpush2.msra.mxu1 %v2036_v44  ;;  %v1904_v11 = vpop.permute.xlu0 %1903  ;;  %v2756_v44 = vld [vmem:[%s12678_s5 + $0x1d8] sm:$0xff] }
 0x1c0   :  { %2651 = vrot.lane.b32.xlu0 %v2650_v57, %s7939_s30  ;;  %7494 = vmatprep.subr.mxu1 %v2760_v19  ;;  %1906 = vst.msk [vmem:[#allocation3 + $0x2] sm:$0x1] %vm8983_vm8, %v1904_v11  ;;  %v2741_v57 = vld [vmem:[%s12678_s5 + $0x160] sm:$0xff]  ;;  %v2708_v19 = vld [vmem:[%s12678_s5 + $0x58] sm:$0xff] }
 0x1c1   :  { %2607 = vrot.lane.b32.xlu1 %v2606_v12, %s7941_s11  ;;  %v1873_v4 = vpop.permute.xlu1 %1872  ;;  %1909 = vst.msk [vmem:[#allocation3 + $0x2] sm:$0x1] %vm9256_vm15, %v1907_v36  ;;  %v2723_v36 = vld [vmem:[%s12678_s5 + $0xd0] sm:$0xff] }
 0x1c2   :  { %1875 = vst.msk [vmem:[#allocation3 + $0x1] sm:$0x1] %vm9328_vm7, %v1873_v4  ;;  %v2707_v4 = vld [vmem:[%s12678_s5 + $0x50] sm:$0xff] }
 0x1c3   :  { %1894 = vst.msk [vmem:[#allocation3 + $0x1] sm:$0x1] %vm9342_vm4, %v1892_v53  ;;  %v1912_v39 = vpop.permute.xlu0 %1911  ;;  %v2724_v53 = vld [vmem:[%s12678_s5 + $0xd8] sm:$0xff] }
 0x1c4   :  { %2675 = vrot.lane.b32.xlu0 %v2674_v13, %s7937_s28  ;;  %1914 = vst.msk [vmem:[#allocation3 + $0x2] sm:$0x1] %vm9283_vm9, %v1912_v39  ;;  %v2740_v13 = vld [vmem:[%s12678_s5 + $0x158] sm:$0xff] }
 0x1c5   :  { %2692 = vrot.lane.b32.xlu1 %v2691_v8, %s7942_s12  ;;  %1933 = vst.msk [vmem:[#allocation3 + $0x2] sm:$0x1] %vm9287_vm6, %v1931_v41  ;;  %v1948_v34 = vpop.permute.xlu1 %1947  ;;  %v2739_v8 = vld [vmem:[%s12678_s5 + $0x150] sm:$0xff] }
 0x1c7   :  { %v1943_v54 = vpop.permute.xlu0 %1942 }
 0x1c8   :  { %2656 = vrot.lane.b32.xlu0 %v2655_v52, %s7940_s10  ;;  %1945 = vst.msk [vmem:[#allocation3 + $0x2] sm:$0x1] %vm9305_vm11, %v1943_v54  ;;  %v2754_v52 = vld [vmem:[%s12678_s5 + $0x1c8] sm:$0xff]  ;;  %v2721_v54 = vld [vmem:[%s12678_s5 + $0xc0] sm:$0xff] }
 0x1c9   :  { %1950 = vst.msk [vmem:[#allocation3 + $0x2] sm:$0x1] %vm9322_vm10, %v1948_v34  ;;  %v2706_v34 = vld [vmem:[%s12678_s5 + $0x48] sm:$0xff] }
 0x1cb   :  { %v1953_v10 = vpop.permute.xlu0 %1952 }
 0x1cc   :  { %2687 = vrot.lane.b32.xlu0 %v2686_v45, %s7941_s11  ;;  %1955 = vst.msk [vmem:[#allocation3 + $0x2] sm:$0x1] %vm9328_vm7, %v1953_v10  ;;  %v2738_v45 = vld [vmem:[%s12678_s5 + $0x148] sm:$0xff] }
 0x1d0   :  { %2064 = vrot.lane.b32.xlu0 %v7342_v1, %s7937_s28  ;;  %v2753_v1 = vld [vmem:[%s12678_s5 + $0x1c0] sm:$0xff] }
 0x1df   :  { %v1972_v55 = vpop.permute.xlu1 %1971 }
 0x1e0   :  { %1974 = vst.msk [vmem:[#allocation3 + $0x2] sm:$0x1] %vm9342_vm4, %v1972_v55  ;;  %v2705_v55 = vld [vmem:[%s12678_s5 + $0x40] sm:$0xff] }
 0x1e1   :  { %v1984_v14 = vpop.permute.xlu0 %1983 }
 0x1e2   :  { %1986 = vst.msk [vmem:[#allocation3 + $0x3] sm:$0x1] %vm8983_vm8, %v1984_v14  ;;  %v2737_v14 = vld [vmem:[%s12678_s5 + $0x140] sm:$0xff] }
 0x1e3   :  { %v2213_v30 = vpop.permute.xlu1 %2212 }
 0x1e4   :  { %2215 = vst.msk [vmem:[#allocation4] sm:$0x1] %vm8983_vm8, %v2213_v30  ;;  %v2720_v30 = vld [vmem:[%s12678_s5 + $0xb8] sm:$0xff] }
 0x1e7   :  { %v2218_v12 = vpop.permute.xlu1 %2217 }
 0x1e8   :  { %2220 = vst.msk [vmem:[#allocation4] sm:$0x1] %vm9256_vm15, %v2218_v12  ;;  %v2752_v12 = vld [vmem:[%s12678_s5 + $0x1b8] sm:$0xff] }
 0x1e9   :  { %v1987_v47 = vld [vmem:[#allocation3] sm:$0xf]  ;;  %2237 = vst.msk [vmem:[#allocation4] sm:$0x1] %vm9283_vm9, %v9236_v63  ;;  %v2727_v63 = vld [vmem:[%s12678_s5 + $0xf0] sm:$0xff] }
 0x1ea   :  { %v2047_v58 = vrot.slane %v1987_v47, %v9358_v59  ;;  %v2055_v33 = vrot.slane %v1987_v47, %v9569_v15  ;;  %v2043_v21 = vrot.slane %v1987_v47, %v9361_v5  ;;  %v2051_v35 = vrot.slane %v1987_v47, %v9572_v9 }
 0x1eb   :  { %v2247_v3 = vpop.permute.xlu1 %2246 }
 0x1ec   :  { %2249 = vst.msk [vmem:[#allocation4] sm:$0x1] %vm9287_vm6, %v2247_v3  ;;  %2133 = vmatprep.mubr.f32.mxu0 %v2047_v58  ;;  %7343 = vmatprep.mubr.msk.f32.mxu1 %vm12801_vm2, %v2055_v33  ;;  %v2704_v58 = vld [vmem:[%s12678_s5 + $0x38] sm:$0xff] }
 0x1ed   :  { %2134 = vmatmul.mubr.f32.vlgmr.msra.gmra.mxu0 %v2043_v21  ;;  %2204 = vmatmul.mubr.f32.vlgmr.msra.gmra.mxu1 %v2051_v35  ;;  %v2736_v33 = vld [vmem:[%s12678_s5 + $0x138] sm:$0xff]  ;;  %v2719_v21 = vld [vmem:[%s12678_s5 + $0xb0] sm:$0xff] }
 0x1ee   :  { %v2293_v38 = vpop.permute.xlu0 %2292  ;;  %7460 = vmatpush3.msra.mxu0 %v2712_v46  ;;  %7495 = vmatpush3.msra.mxu1 %v2744_v25  ;;  %v2751_v35 = vld [vmem:[%s12678_s5 + $0x1b0] sm:$0xff] }
 0x1ef   :  { %2295 = vst.msk [vmem:[#allocation4 + $0x1] sm:$0x1] %vm8983_vm8, %v2293_v38  ;;  %v2252_v60 = vpop.permute.xlu1 %2251  ;;  %7461 = vmatprep.subr.mxu0 %v2727_v63  ;;  %7496 = vmatprep.subr.mxu1 %v2759_v2  ;;  %v2703_v46 = vld [vmem:[%s12678_s5 + $0x30] sm:$0xff]  ;;  %v2718_v63 = vld [vmem:[%s12678_s5 + $0xa8] sm:$0xff] }
 0x1f0   :  { %2254 = vst.msk [vmem:[#allocation4] sm:$0x1] %vm9305_vm11, %v2252_v60  ;;  %7462 = vmatpush3.msra.mxu0 %v2711_v29  ;;  %7497 = vmatpush3.msra.mxu1 %v2743_v7  ;;  %v2735_v25 = vld [vmem:[%s12678_s5 + $0x130] sm:$0xff]  ;;  %v2750_v2 = vld [vmem:[%s12678_s5 + $0x1a8] sm:$0xff] }
 0x1f1   :  { %7463 = vmatprep.subr.mxu0 %v2726_v56  ;;  %7498 = vmatprep.subr.mxu1 %v2758_v18  ;;  %v2702_v29 = vld [vmem:[%s12678_s5 + $0x28] sm:$0xff]  ;;  %v2717_v56 = vld [vmem:[%s12678_s5 + $0xa0] sm:$0xff] }
 0x1f2   :  { %v2298_v27 = vpop.permute.xlu0 %2297  ;;  %7464 = vmatpush3.msra.mxu0 %v2710_v23  ;;  %7499 = vmatpush3.msra.mxu1 %v2742_v51  ;;  %v2734_v7 = vld [vmem:[%s12678_s5 + $0x128] sm:$0xff]  ;;  %v2749_v18 = vld [vmem:[%s12678_s5 + $0x1a0] sm:$0xff] }
 0x1f3   :  { %2300 = vst.msk [vmem:[#allocation4 + $0x1] sm:$0x1] %vm9256_vm15, %v2298_v27  ;;  %v2276_v41 = vpop.permute.xlu1 %2275  ;;  %7465 = vmatprep.subr.mxu0 %v2725_v62  ;;  %7500 = vmatprep.subr.mxu1 %v2757_v0  ;;  %v2701_v23 = vld [vmem:[%s12678_s5 + $0x20] sm:$0xff]  ;;  %v2716_v62 = vld [vmem:[%s12678_s5 + $0x98] sm:$0xff] }
 0x1f4   :  { %2317 = vst.msk [vmem:[#allocation4 + $0x1] sm:$0x1] %vm9283_vm9, %v9252_v24  ;;  %7466 = vmatpush3.msra.mxu0 %v2709_v32  ;;  %7501 = vmatpush3.msra.mxu1 %v2741_v57  ;;  %v2755_v24 = vld [vmem:[%s12678_s5 + $0x1d0] sm:$0xff]  ;;  %v2733_v51 = vld [vmem:[%s12678_s5 + $0x120] sm:$0xff]  ;;  %v2748_v0 = vld [vmem:[%s12678_s5 + $0x198] sm:$0xff] }
 0x1f5   :  { %7467 = vmatprep.subr.mxu0 %v2724_v53  ;;  %7502 = vmatprep.subr.mxu1 %v2756_v44  ;;  %v2700_v32 = vld [vmem:[%s12678_s5 + $0x18] sm:$0xff]  ;;  %v2715_v53 = vld [vmem:[%s12678_s5 + $0x90] sm:$0xff] }
 0x1f6   :  { %v2327_v11 = vpop.permute.xlu0 %2326  ;;  %7468 = vmatpush3.msra.mxu0 %v2708_v19  ;;  %7503 = vmatpush3.msra.mxu1 %v2740_v13  ;;  %v2732_v57 = vld [vmem:[%s12678_s5 + $0x118] sm:$0xff]  ;;  %v2747_v44 = vld [vmem:[%s12678_s5 + $0x190] sm:$0xff] }
 0x1f7   :  { %2329 = vst.msk [vmem:[#allocation4 + $0x1] sm:$0x1] %vm9287_vm6, %v2327_v11  ;;  %v2257_v39 = vpop.permute.xlu1 %2256  ;;  %7469 = vmatprep.subr.mxu0 %v2723_v36  ;;  %7504 = vmatprep.subr.mxu1 %v2755_v24  ;;  %v2699_v19 = vld [vmem:[%s12678_s5 + $0x10] sm:$0xff]  ;;  %v2714_v36 = vld [vmem:[%s12678_s5 + $0x88] sm:$0xff] }
 0x1f8   :  { %2259 = vst.msk [vmem:[#allocation4] sm:$0x1] %vm9322_vm10, %v2257_v39  ;;  %7470 = vmatpush3.msra.mxu0 %v2707_v4  ;;  %7505 = vmatpush3.msra.mxu1 %v2739_v8  ;;  %v2731_v13 = vld [vmem:[%s12678_s5 + $0x110] sm:$0xff]  ;;  %v2698_v11 = vld [vmem:[%s12678_s5 + $0x8] sm:$0xff]  ;;  %v2713_v8 = vld [vmem:[%s12678_s5 + $0x80] sm:$0xff] }
 0x1f9   :  { %2278 = vst.msk [vmem:[#allocation4] sm:$0x1] %vm9328_vm7, %v2276_v41  ;;  %7471 = vmatprep.subr.mxu0 %v2722_v28  ;;  %7506 = vmatprep.subr.mxu1 %v2754_v52  ;;  %v2730_v4 = vld [vmem:[%s12678_s5 + $0x108] sm:$0xff]  ;;  %v2745_v28 = vld [vmem:[%s12678_s5 + $0x180] sm:$0xff] }
 0x1fa   :  { %v2332_v10 = vpop.permute.xlu0 %2331  ;;  %7472 = vmatpush3.msra.mxu0 %v2706_v34  ;;  %7507 = vmatpush3.msra.mxu1 %v2738_v45  ;;  %v2697_v39 = vld [vmem:[%s12678_s5] sm:$0xff]  ;;  %v2792_v45 = vld [vmem:[%s12678_s5 + $0x2f8] sm:$0xff] }
 0x1fb   :  { %2334 = vst.msk [vmem:[#allocation4 + $0x1] sm:$0x1] %vm9305_vm11, %v2332_v10  ;;  %v2288_v47 = vpop.permute.xlu1 %2287  ;;  %7473 = vmatprep.subr.mxu0 %v2721_v54  ;;  %7508 = vmatprep.subr.mxu1 %v2753_v1  ;;  %v2729_v34 = vld [vmem:[%s12678_s5 + $0x100] sm:$0xff] }
 0x1fc   :  { %2290 = vst.msk [vmem:[#allocation4] sm:$0x1] %vm9342_vm4, %v2288_v47  ;;  %7474 = vmatpush3.msra.mxu0 %v2705_v55  ;;  %7509 = vmatpush3.msra.mxu1 %v2737_v14 }
 0x1fd   :  { %7475 = vmatprep.subr.mxu0 %v2720_v30  ;;  %7510 = vmatprep.subr.mxu1 %v2752_v12 }
 0x1fe   :  { %v2356_v3 = vpop.permute.xlu0 %2355  ;;  %7476 = vmatpush3.msra.mxu0 %v2704_v58  ;;  %7511 = vmatpush3.msra.mxu1 %v2736_v33 }
 0x1ff   :  { %v2373_v38 = vpop.permute.xlu1 %2372  ;;  %7477 = vmatprep.subr.mxu0 %v2719_v21  ;;  %7512 = vmatprep.subr.mxu1 %v2751_v35 }
 0x200   :  { %2375 = vst.msk [vmem:[#allocation4 + $0x2] sm:$0x1] %vm8983_vm8, %v2373_v38  ;;  %7478 = vmatpush3.msra.mxu0 %v2703_v46  ;;  %7513 = vmatpush3.msra.mxu1 %v2735_v25 }
 0x201   :  { %7479 = vmatprep.subr.mxu0 %v2718_v63  ;;  %7514 = vmatprep.subr.mxu1 %v2750_v2 }
 0x202   :  { %v2337_v60 = vpop.permute.xlu0 %2336  ;;  %7480 = vmatpush3.msra.mxu0 %v2702_v29  ;;  %7515 = vmatpush3.msra.mxu1 %v2734_v7 }
 0x203   :  { %2339 = vst.msk [vmem:[#allocation4 + $0x1] sm:$0x1] %vm9322_vm10, %v2337_v60  ;;  %v2378_v27 = vpop.permute.xlu1 %2377  ;;  %7481 = vmatprep.subr.mxu0 %v2717_v56  ;;  %7516 = vmatprep.subr.mxu1 %v2749_v18  ;;  %v12747_v60 = vsub.s32 5, %v8971_v22 }
 0x204   :  { %2358 = vst.msk [vmem:[#allocation4 + $0x1] sm:$0x1] %vm9328_vm7, %v2356_v3  ;;  %7482 = vmatpush3.msra.mxu0 %v2701_v23  ;;  %7517 = vmatpush3.msra.mxu1 %v2733_v51 }
 0x205   :  { %2380 = vst.msk [vmem:[#allocation4 + $0x2] sm:$0x1] %vm9256_vm15, %v2378_v27  ;;  %7483 = vmatprep.subr.mxu0 %v2716_v62  ;;  %7518 = vmatprep.subr.mxu1 %v2748_v0 }
 0x206   :  { %v2368_v41 = vpop.permute.xlu0 %2367  ;;  %2397 = vst.msk [vmem:[#allocation4 + $0x2] sm:$0x1] %vm9283_vm9, %v9352_v48  ;;  %7484 = vmatpush3.msra.mxu0 %v2700_v32  ;;  %7519 = vmatpush3.msra.mxu1 %v2732_v57  ;;  %v2746_v48 = vld [vmem:[%s12678_s5 + $0x188] sm:$0xff]  ;;  %v2776_v32 = vld [vmem:[%s12678_s5 + $0x278] sm:$0xff]  ;;  %v2791_v57 = vld [vmem:[%s12678_s5 + $0x2f0] sm:$0xff] }
 0x207   :  { %2370 = vst.msk [vmem:[#allocation4 + $0x1] sm:$0x1] %vm9342_vm4, %v2368_v41  ;;  %v2407_v24 = vpop.permute.xlu1 %2406  ;;  %7485 = vmatprep.subr.mxu0 %v2715_v53  ;;  %7520 = vmatprep.subr.mxu1 %v2747_v44  ;;  %v2794_v44 = vld [vmem:[%s12678_s5 + $0x308] sm:$0xff]  ;;  %v2775_v41 = vld [vmem:[%s12678_s5 + $0x270] sm:$0xff] }
 0x208   :  { %2409 = vst.msk [vmem:[#allocation4 + $0x2] sm:$0x1] %vm9287_vm6, %v2407_v24  ;;  %7486 = vmatpush3.msra.mxu0 %v2699_v19  ;;  %7521 = vmatpush3.msra.mxu1 %v2731_v13  ;;  %v12746_v19 = vsub.s32 6, %v8971_v22  ;;  %v2790_v13 = vld [vmem:[%s12678_s5 + $0x2e8] sm:$0xff]  ;;  %v2789_v24 = vld [vmem:[%s12678_s5 + $0x2e0] sm:$0xff] }
 0x209   :  { %7487 = vmatprep.subr.mxu0 %v2714_v36  ;;  %7522 = vmatprep.subr.mxu1 %v2746_v48  ;;  %v2793_v36 = vld [vmem:[%s12678_s5 + $0x300] sm:$0xff]  ;;  %v2774_v48 = vld [vmem:[%s12678_s5 + $0x268] sm:$0xff] }
 0x20a   :  { %v2453_v52 = vpop.permute.xlu0 %2452  ;;  %7488 = vmatpush3.msra.mxu0 %v2698_v11  ;;  %7523 = vmatpush3.msra.mxu1 %v2730_v4  ;;  %v2773_v4 = vld [vmem:[%s12678_s5 + $0x260] sm:$0xff] }
 0x20b   :  { %2455 = vst.msk [vmem:[#allocation4 + $0x3] sm:$0x1] %vm8983_vm8, %v2453_v52  ;;  %v2412_v54 = vpop.permute.xlu1 %2411  ;;  %7489 = vmatprep.subr.mxu0 %v2713_v8  ;;  %7524 = vmatprep.subr.mxu1 %v2745_v28  ;;  %v2788_v8 = vld [vmem:[%s12678_s5 + $0x2d8] sm:$0xff]  ;;  %v2787_v52 = vld [vmem:[%s12678_s5 + $0x2d0] sm:$0xff] }
 0x20c   :  { %2414 = vst.msk [vmem:[#allocation4 + $0x2] sm:$0x1] %vm9305_vm11, %v2412_v54  ;;  %7490 = vmatpush3.msra.mxu0 %v2697_v39  ;;  %7525 = vmatpush3.msra.mxu1 %v2729_v34  ;;  %v2772_v28 = vld [vmem:[%s12678_s5 + $0x258] sm:$0xff]  ;;  %v2771_v39 = vld [vmem:[%s12678_s5 + $0x250] sm:$0xff]  ;;  %v2786_v34 = vld [vmem:[%s12678_s5 + $0x2c8] sm:$0xff] }
 0x20d   :  { %7529 = vmatprep.subr.mxu0 %v2792_v45  ;;  %7796 = vmatprep.subr.mxu1 %v12844_v20  ;;  %v2770_v45 = vld [vmem:[%s12678_s5 + $0x248] sm:$0xff]  ;;  %v2785_v54 = vld [vmem:[%s12678_s5 + $0x2c0] sm:$0xff] }
 0x20e   :  { %v2458_v1 = vpop.permute.xlu0 %2457 }
 0x20f   :  { %2460 = vst.msk [vmem:[#allocation4 + $0x3] sm:$0x1] %vm9256_vm15, %v2458_v1  ;;  %v2436_v10 = vpop.permute.xlu1 %2435  ;;  %v2769_v1 = vld [vmem:[%s12678_s5 + $0x240] sm:$0xff] }
 0x210   :  { %2477 = vst.msk [vmem:[#allocation4 + $0x3] sm:$0x1] %vm9283_vm9, %v9378_v50 }
 0x212   :  { %v2487_v55 = vpop.permute.xlu0 %2486 }
 0x213   :  { %2489 = vst.msk [vmem:[#allocation4 + $0x3] sm:$0x1] %vm9287_vm6, %v2487_v55  ;;  %v2417_v14 = vpop.permute.xlu1 %2416  ;;  %v2768_v55 = vld [vmem:[%s12678_s5 + $0x238] sm:$0xff] }
 0x214   :  { %2419 = vst.msk [vmem:[#allocation4 + $0x2] sm:$0x1] %vm9322_vm10, %v2417_v14  ;;  %v2783_v14 = vld [vmem:[%s12678_s5 + $0x2b0] sm:$0xff] }
 0x215   :  { %2438 = vst.msk [vmem:[#allocation4 + $0x2] sm:$0x1] %vm9328_vm7, %v2436_v10  ;;  %v2784_v10 = vld [vmem:[%s12678_s5 + $0x2b8] sm:$0xff] }
 0x216   :  { %v2492_v30 = vpop.permute.xlu0 %2491 }
 0x217   :  { %2494 = vst.msk [vmem:[#allocation4 + $0x3] sm:$0x1] %vm9305_vm11, %v2492_v30  ;;  %v2448_v12 = vpop.permute.xlu1 %2447  ;;  %v2767_v30 = vld [vmem:[%s12678_s5 + $0x230] sm:$0xff] }
 0x218   :  { %2450 = vst.msk [vmem:[#allocation4 + $0x2] sm:$0x1] %vm9342_vm4, %v2448_v12  ;;  %v2782_v12 = vld [vmem:[%s12678_s5 + $0x2a8] sm:$0xff] }
 0x21a   :  { %v2516_v50 = vpop.permute.xlu0 %2515 }
 0x21b   :  { %v2533_v47 = vpop.permute.xlu1 %2532 }
 0x21c   :  { %2535 = vst.msk [vmem:[#allocation4 + $0x4] sm:$0x1] %vm8983_vm8, %v2533_v47  ;;  %v2781_v47 = vld [vmem:[%s12678_s5 + $0x2a0] sm:$0xff] }
 0x21e   :  { %v2497_v58 = vpop.permute.xlu0 %2496 }
 0x21f   :  { %2499 = vst.msk [vmem:[#allocation4 + $0x3] sm:$0x1] %vm9322_vm10, %v2497_v58  ;;  %v2538_v33 = vpop.permute.xlu1 %2537  ;;  %v2765_v58 = vld [vmem:[%s12678_s5 + $0x220] sm:$0xff] }
 0x220   :  { %2518 = vst.msk [vmem:[#allocation4 + $0x3] sm:$0x1] %vm9328_vm7, %v2516_v50  ;;  %v2766_v50 = vld [vmem:[%s12678_s5 + $0x228] sm:$0xff] }
 0x221   :  { %2540 = vst.msk [vmem:[#allocation4 + $0x4] sm:$0x1] %vm9256_vm15, %v2538_v33 }
 0x222   :  { %v2528_v21 = vpop.permute.xlu0 %2527  ;;  %2557 = vst.msk [vmem:[#allocation4 + $0x4] sm:$0x1] %vm9283_vm9, %v9452_v37 }
 0x223   :  { %2530 = vst.msk [vmem:[#allocation4 + $0x3] sm:$0x1] %vm9342_vm4, %v2528_v21  ;;  %v2567_v35 = vpop.permute.xlu1 %2566  ;;  %v2780_v21 = vld [vmem:[%s12678_s5 + $0x298] sm:$0xff] }
 0x224   :  { %2569 = vst.msk [vmem:[#allocation4 + $0x4] sm:$0x1] %vm9287_vm6, %v2567_v35  ;;  %v2764_v35 = vld [vmem:[%s12678_s5 + $0x218] sm:$0xff] }
 0x226   :  { %v2613_v3 = vpop.permute.xlu0 %2612 }
 0x227   :  { %2615 = vst.msk [vmem:[#allocation4 + $0x5] sm:$0x1] %vm8983_vm8, %v2613_v3  ;;  %v2572_v46 = vpop.permute.xlu1 %2571 }
 0x228   :  { %2574 = vst.msk [vmem:[#allocation4 + $0x4] sm:$0x1] %vm9305_vm11, %v2572_v46  ;;  %v2779_v46 = vld [vmem:[%s12678_s5 + $0x290] sm:$0xff] }
 0x22a   :  { %v2618_v25 = vpop.permute.xlu0 %2617 }
 0x22b   :  { %2620 = vst.msk [vmem:[#allocation4 + $0x5] sm:$0x1] %vm9256_vm15, %v2618_v25  ;;  %v2596_v37 = vpop.permute.xlu1 %2595  ;;  %v2763_v25 = vld [vmem:[%s12678_s5 + $0x210] sm:$0xff] }
 0x22c   :  { %2637 = vst.msk [vmem:[#allocation4 + $0x5] sm:$0x1] %vm9283_vm9, %v9503_v6 }
 0x22e   :  { %v2647_v63 = vpop.permute.xlu0 %2646 }
 0x22f   :  { %2649 = vst.msk [vmem:[#allocation4 + $0x5] sm:$0x1] %vm9287_vm6, %v2647_v63  ;;  %v2577_v2 = vpop.permute.xlu1 %2576  ;;  %v2762_v63 = vld [vmem:[%s12678_s5 + $0x208] sm:$0xff] }
 0x230   :  { %2579 = vst.msk [vmem:[#allocation4 + $0x4] sm:$0x1] %vm9322_vm10, %v2577_v2  ;;  %v12745_v2 = vsub.s32 4, %v8971_v22 }
 0x231   :  { %2598 = vst.msk [vmem:[#allocation4 + $0x4] sm:$0x1] %vm9328_vm7, %v2596_v37  ;;  %v2778_v37 = vld [vmem:[%s12678_s5 + $0x288] sm:$0xff] }
 0x232   :  { %v2652_v38 = vpop.permute.xlu0 %2651 }
 0x233   :  { %2654 = vst.msk [vmem:[#allocation4 + $0x5] sm:$0x1] %vm9305_vm11, %v2652_v38  ;;  %v2608_v29 = vpop.permute.xlu1 %2607  ;;  %v2777_v38 = vld [vmem:[%s12678_s5 + $0x280] sm:$0xff] }
 0x234   :  { %2610 = vst.msk [vmem:[#allocation4 + $0x4] sm:$0x1] %vm9342_vm4, %v2608_v29  ;;  %v2761_v29 = vld [vmem:[%s12678_s5 + $0x200] sm:$0xff] }
 0x236   :  { %v2676_v6 = vpop.permute.xlu0 %2675 }
 0x237   :  { %v2693_v7 = vpop.permute.xlu1 %2692 }
 0x238   :  { %2695 = vst.msk [vmem:[#allocation4 + $0x6] sm:$0x1] %vm8983_vm8, %v2693_v7  ;;  %v3179_v7 = vld [vmem:[%s12680_s7 + $0x200] sm:$0xff] }
 0x23a   :  { %v2657_v56 = vpop.permute.xlu0 %2656 }
 0x23b   :  { %2659 = vst.msk [vmem:[#allocation4 + $0x5] sm:$0x1] %vm9322_vm10, %v2657_v56  ;;  %v3181_v56 = vld [vmem:[%s12680_s7 + $0x210] sm:$0xff] }
 0x23c   :  { %2678 = vst.msk [vmem:[#allocation4 + $0x5] sm:$0x1] %vm9328_vm7, %v2676_v6 }
 0x23e   :  { %v2688_v18 = vpop.permute.xlu0 %2687 }
 0x23f   :  { %2690 = vst.msk [vmem:[#allocation4 + $0x5] sm:$0x1] %vm9342_vm4, %v2688_v18  ;;  %v3178_v18 = vld [vmem:[%s12680_s7 + $0x1f8] sm:$0xff]  ;;  %vm13118_vm4 = vcmask 1041408  }
 0x246   :  { %v9872_v23 = vld [vmem:[#allocation4] sm:$0x7f] }
 0x247   :  { %v2804_v51 = vrot.slane %v9872_v23, %v9358_v59  ;;  %v2812_v62 = vrot.slane %v9872_v23, %v9569_v15  ;;  %v2800_v0 = vrot.slane %v9872_v23, %v9361_v5  ;;  %v2808_v27 = vrot.slane %v9872_v23, %v9572_v9  ;;  %v10328_v9 = vld [vmem:[%s12673_s0 + $0x1e8] sm:$0xff] }
 0x248   :  { %v2820_v53 = vrot.slane %v9872_v23, %v12747_v60  ;;  %v2824_v11 = vrot.slane %v9872_v23, %v12746_v19  ;;  %v2816_v6 = vrot.slane %v9872_v23, %v12745_v2  ;;  %v3180_v23 = vld [vmem:[%s12680_s7 + $0x208] sm:$0xff]  ;;  %12967 = vst [vmem:[#allocation40_spill] sm:$0xff] %v10328_v9 }
 0x249   :  { %2897 = vmatprep.mubr.f32.mxu0 %v2804_v51  ;;  %2967 = vmatprep.mubr.f32.mxu1 %v2812_v62  ;;  %v3170_v51 = vld [vmem:[%s12680_s7 + $0x1b8] sm:$0xff]  ;;  %v3172_v62 = vld [vmem:[%s12680_s7 + $0x1c8] sm:$0xff] }
 0x24a   :  { %2898 = vmatmul.mubr.f32.vlgmr.msra.gmra.mxu0 %v2800_v0  ;;  %2968 = vmatmul.mubr.f32.vlgmr.msra.gmra.mxu1 %v2808_v27  ;;  %v3169_v0 = vld [vmem:[%s12680_s7 + $0x1b0] sm:$0xff]  ;;  %v3171_v27 = vld [vmem:[%s12680_s7 + $0x1c0] sm:$0xff] }
 0x24b   :  { %7530 = vmatpush3.msra.mxu0 %v2776_v32  ;;  %3037 = vmatprep.mubr.f32.mxu0 %v2820_v53  ;;  %v10027_v32 = vld [vmem:[%s12673_s0 + $0x120] sm:$0xff] }
 0x24c   :  { %7531 = vmatprep.subr.mxu0 %v2791_v57  ;;  %7797 = vmatpush3.msra.mxu1 %v2794_v44  ;;  %v10032_v57 = vld [vmem:[%s12673_s0 + $0x130] sm:$0xff]  ;;  %v10041_v44 = vld [vmem:[%s12673_s0 + $0x140] sm:$0xff] }
 0x24d   :  { %7532 = vmatpush3.msra.mxu0 %v2775_v41  ;;  %7798 = vmatprep.subr.mxu1 %v12844_v20  ;;  %v10036_v53 = vmax.f32 %v10027_v32, %v10032_v57 }
 0x24e   :  { %7533 = vmatprep.subr.mxu0 %v2790_v13  ;;  %7799 = vmatpush3.msra.mxu1 %v2793_v36  ;;  %v10048_v13 = vld [vmem:[%s12673_s0 + $0x150] sm:$0xff] }
 0x24f   :  { %7800 = vmatprep.mubr.msk.f32.mxu1 %vm7935_vm0, %v12844_v20  ;;  %7534 = vmatpush3.msra.mxu0 %v2774_v48  ;;  %v3703_v41 = vmax.f32 %v10036_v53, %v10041_v44  ;;  %v10054_v48 = vld [vmem:[%s12673_s0 + $0x160] sm:$0xff] }
 0x250   :  { %7801 = vmatmul.mubr.msk.f32.vlgmr.msra.gmra.mxu1 %vm12801_vm2, %v2824_v11  ;;  %7535 = vmatprep.subr.mxu0 %v2789_v24  ;;  %v10060_v11 = vld [vmem:[%s12673_s0 + $0x170] sm:$0xff]  ;;  %vm12996_vm2 = vcmask 1047559  }
 0x251   :  { %7536 = vmatpush3.msra.mxu0 %v2773_v4  ;;  %3254 = vmatprep.mubr.f32.mxu1 %v12844_v20  ;;  %v3708_v36 = vmax.f32 %v3703_v41, %v10048_v13 }
 0x252   :  { %7537 = vmatprep.subr.mxu0 %v2788_v8  ;;  %3206 = vmatprep.subr.mxu1 %v3179_v7  ;;  %v10066_v8 = vld [vmem:[%s12673_s0 + $0x128] sm:$0xff]  ;;  %v3145_v7 = vld [vmem:[%s12680_s7 + $0xf0] sm:$0xff] }
 0x253   :  { %7538 = vmatpush3.msra.mxu0 %v2772_v28  ;;  %3207 = vmatpush1.msra.mxu1 %v3178_v18  ;;  %v3713_v24 = vmax.f32 %v3708_v36, %v10054_v48  ;;  %v10071_v28 = vld [vmem:[%s12673_s0 + $0x138] sm:$0xff]  ;;  %v10150_v18 = vld [vmem:[%s12673_s0 + $0x1b0] sm:$0xff] }
 0x254   :  { %7539 = vmatprep.subr.mxu0 %v2787_v52  ;;  %3208 = vmatprep.subr.mxu1 %v3170_v51  ;;  %v10076_v52 = vld [vmem:[%s12673_s0 + $0x180] sm:$0xff]  ;;  %12951 = vst [vmem:[#allocation24_spill] sm:$0xff] %v10150_v18  ;;  %v3142_v51 = vld [vmem:[%s12680_s7 + $0xd8] sm:$0xff] }
 0x255   :  { %7540 = vmatpush3.msra.mxu0 %v2771_v39  ;;  %3209 = vmatpush1.msra.mxu1 %v3169_v0  ;;  %v3718_v4 = vmax.f32 %v3713_v24, %v10060_v11  ;;  %v10080_v39 = vmax.f32 %v10066_v8, %v10071_v28  ;;  %v10161_v0 = vld [vmem:[%s12673_s0 + $0x178] sm:$0xff] }
 0x256   :  { %7541 = vmatprep.subr.mxu0 %v2786_v34  ;;  %v3134_v24 = vld [vmem:[%s12680_s7 + $0x98] sm:$0xff] }
 0x257   :  { %7542 = vmatpush3.msra.mxu0 %v2770_v45  ;;  %v3723_v34 = vmax.f32 %v3718_v4, %v10076_v52  ;;  %v10086_v45 = vld [vmem:[%s12673_s0 + $0x148] sm:$0xff] }
 0x258   :  { %7543 = vmatprep.subr.mxu0 %v2785_v54  ;;  %v10091_v54 = vld [vmem:[%s12673_s0 + $0x190] sm:$0xff]  ;;  %v3136_v4 = vld [vmem:[%s12680_s7 + $0xa8] sm:$0xff] }
 0x259   :  { %7544 = vmatpush3.msra.mxu0 %v2769_v1  ;;  %12949 = vst [vmem:[#allocation22_spill] sm:$0xff] %v10091_v54  ;;  %v3161_v1 = vld [vmem:[%s12680_s7 + $0x170] sm:$0xff] }
 0x25a   :  { %7545 = vmatprep.subr.mxu0 %v2784_v10  ;;  %v3163_v10 = vld [vmem:[%s12680_s7 + $0x180] sm:$0xff]  ;;  %3210 = vmatprep.subr.mxu1 %v3161_v1 }
 0x25b   :  { %7546 = vmatpush3.msra.mxu0 %v2768_v55  ;;  %v3160_v55 = vld [vmem:[%s12680_s7 + $0x168] sm:$0xff]  ;;  %v10174_v1 = vld [vmem:[%s12673_s0 + $0x1c0] sm:$0xff] }
 0x25c   :  { %7547 = vmatprep.subr.mxu0 %v2783_v14  ;;  %v9969_v33 = vpop.f32.mrf.mxu1  ;;  %v3704_v14 = vmax.f32 %v10080_v39, %v10086_v45  ;;  %3211 = vmatpush1.msra.mxu1 %v3160_v55  ;;  %12952 = vst [vmem:[#allocation27_spill] sm:$0xff] %v10174_v1  ;;  %v3133_v55 = vld [vmem:[%s12680_s7 + $0x90] sm:$0xff] }
 0x25d   :  { %7548 = vmatpush3.msra.mxu0 %v2767_v30  ;;  %v3728_v30 = vmax.f32 %v3723_v34, %v10091_v54 }
 0x25e   :  { %7549 = vmatprep.subr.mxu0 %v2782_v12  ;;  %v1716_v3 = vpop.f32.mrf.mxu1  ;;  %v3162_v12 = vld [vmem:[%s12680_s7 + $0x178] sm:$0xff] }
 0x25f   :  { %7550 = vmatpush3.msra.mxu0 %v2766_v50  ;;  %v10111_v50 = vld [vmem:[%s12673_s0 + $0x158] sm:$0xff] }
 0x260   :  { %7551 = vmatprep.subr.mxu0 %v2781_v47  ;;  %v10116_v47 = vld [vmem:[%s12673_s0 + $0x1a0] sm:$0xff] }
 0x261   :  { %7552 = vmatpush3.msra.mxu0 %v2765_v58  ;;  %12950 = vst [vmem:[#allocation23_spill] sm:$0xff] %v10116_v47  ;;  %v3152_v58 = vld [vmem:[%s12680_s7 + $0x128] sm:$0xff]  ;;  %v3733_v3 = vmax.f32 %v3728_v30, %v10116_v47 }
 0x262   :  { %7553 = vmatprep.subr.mxu0 %v2780_v21  ;;  %v3154_v21 = vld [vmem:[%s12680_s7 + $0x138] sm:$0xff]  ;;  %3212 = vmatprep.subr.mxu1 %v3152_v58  ;;  %v10185_v30 = vld [vmem:[%s12673_s0 + $0x188] sm:$0xff]  ;;  %v3125_v58 = vld [vmem:[%s12680_s7 + $0x50] sm:$0xff] }
 0x263   :  { %7554 = vmatpush3.msra.mxu0 %v2764_v35  ;;  %v3709_v35 = vmax.f32 %v3704_v14, %v10111_v50  ;;  %v3135_v14 = vld [vmem:[%s12680_s7 + $0xa0] sm:$0xff]  ;;  %12953 = vst [vmem:[#allocation28_spill] sm:$0xff] %v10185_v30 }
 0x264   :  { %7555 = vmatprep.subr.mxu0 %v2779_v46  ;;  %v3151_v46 = vld [vmem:[%s12680_s7 + $0x120] sm:$0xff] }
 0x265   :  { %7556 = vmatpush3.msra.mxu0 %v2763_v25  ;;  %v3153_v25 = vld [vmem:[%s12680_s7 + $0x130] sm:$0xff]  ;;  %3213 = vmatpush1.msra.mxu1 %v3151_v46 }
 0x266   :  { %7557 = vmatprep.subr.mxu0 %v2778_v37  ;;  %v10135_v37 = vld [vmem:[%s12673_s0 + $0x168] sm:$0xff] }
 0x267   :  { %7558 = vmatpush3.msra.mxu0 %v2762_v63  ;;  %v1634_v63 = vld [vmem:[%s12679_s6] sm:$0x1] }
 0x268   :  { %7559 = vmatprep.subr.mxu0 %v2777_v38 }
 0x269   :  { %7560 = vmatpush3.msra.mxu0 %v2761_v29 }
 0x26a   :  { %3038 = vmatmul.mubr.f32.vlgmr.msra.gmra.mxu0 %v2816_v6  ;;  %3277 = vmatprep.subr.mxu0 %v3181_v56  ;;  %v3143_v6 = vld [vmem:[%s12680_s7 + $0xe0] sm:$0xff]  ;;  %v3714_v56 = vmax.f32 %v3709_v35, %v10135_v37  ;;  %v10197_v35 = vld [vmem:[%s12673_s0 + $0x1d0] sm:$0xff] }
 0x26b   :  { %3325 = vmatprep.mubr.f32.mxu0 %v12844_v20  ;;  %3278 = vmatpush1.msra.mxu0 %v3180_v23  ;;  %v2065_v23 = vpop.permute.xlu0 %2064  ;;  %12954 = vst [vmem:[#allocation13_spill] sm:$0xff] %v10197_v35 }
 0x26c   :  { %3279 = vmatprep.subr.mxu0 %v3172_v62  ;;  %3214 = vmatprep.subr.mxu1 %v3143_v6  ;;  %v3144_v62 = vld [vmem:[%s12680_s7 + $0xe8] sm:$0xff]  ;;  %v3719_v34 = vmax.f32 %v3714_v56, %v10161_v0  ;;  %v10209_v6 = vld [vmem:[%s12673_s0 + $0x110] sm:$0xff]  ;;  %v10221_v56 = vld [vmem:[%s12673_s0 + $0x100] sm:$0xff] }
 0x26d   :  { %3280 = vmatpush1.msra.mxu0 %v3171_v27  ;;  %v3738_v27 = vmax.f32 %v3733_v3, %v10150_v18  ;;  %3215 = vmatpush1.msra.mxu1 %v3142_v51  ;;  %v1715_v3 = vadd.f32 %v9969_v33, %v1634_v63  ;;  %12955 = vst [vmem:[#allocation19_spill] sm:$0xff] %v10209_v6  ;;  %v3116_v33 = vld [vmem:[%s12680_s7 + $0x8] sm:$0xff]  ;;  %v3118_v63 = vld [vmem:[%s12680_s7 + $0x18] sm:$0xff]  ;;  %12956 = vst [vmem:[#allocation20_spill] sm:$0xff] %v10221_v56 }
 0x26e   :  { %3281 = vmatprep.subr.mxu0 %v3163_v10  ;;  %3216 = vmatprep.subr.mxu1 %v3134_v24  ;;  %v10250_v24 = vld [vmem:[%s12673_s0 + $0x1a8] sm:$0xff] }
 0x26f   :  { %3282 = vmatpush1.msra.mxu0 %v3162_v12  ;;  %v3743_v12 = vmax.f32 %v3738_v27, %v10174_v1  ;;  %3217 = vmatpush1.msra.mxu1 %v3133_v55  ;;  %v3117_v27 = vld [vmem:[%s12680_s7 + $0x10] sm:$0xff]  ;;  %12958 = vst [vmem:[#allocation16_spill] sm:$0xff] %v10250_v24 }
 0x270   :  { %3283 = vmatprep.subr.mxu0 %v3154_v21  ;;  %v3127_v21 = vld [vmem:[%s12680_s7 + $0x60] sm:$0xff]  ;;  %3218 = vmatprep.subr.mxu1 %v3125_v58 }
 0x271   :  { %3284 = vmatpush1.msra.mxu0 %v3153_v25  ;;  %v3124_v25 = vld [vmem:[%s12680_s7 + $0x48] sm:$0xff]  ;;  %v10265_v58 = vld [vmem:[%s12673_s0 + $0x1e0] sm:$0xff] }
 0x272   :  { %3285 = vmatprep.subr.mxu0 %v3145_v7  ;;  %v3724_v7 = vmax.f32 %v3719_v34, %v10185_v30  ;;  %3219 = vmatpush1.msra.mxu1 %v3124_v25  ;;  %v1718_v34 = vmax.f32 %v1715_v3, 0.0  ;;  %12960 = vst [vmem:[#allocation18_spill] sm:$0xff] %v10265_v58 }
 0x273   :  { %3286 = vmatpush1.msra.mxu0 %v3144_v62  ;;  %3220 = vmatprep.subr.mxu1 %v3116_v33  ;;  %v3115_v62 = vld [vmem:[%s12680_s7] sm:$0xff]  ;;  %v10281_v33 = vld [vmem:[%s12673_s0 + $0x1f0] sm:$0xff] }
 0x274   :  { %3287 = vmatprep.subr.mxu0 %v3136_v4  ;;  %3221 = vmatpush1.msra.mxu1 %v3115_v62  ;;  %12963 = vst [vmem:[#allocation36_spill] sm:$0xff] %v10281_v33 }
 0x275   :  { %3288 = vmatpush1.msra.mxu0 %v3135_v14 }
 0x276   :  { %3289 = vmatprep.subr.mxu0 %v3127_v21 }
 0x2ad   :  { %v7456_v38 = vpop.f32.mrf.mxu0  ;;  %v2205_v29 = vpop.f32.mrf.mxu1 }
 0x2af   :  { %v7457_v41 = vpop.f32.mrf.mxu0  ;;  %v2207_v36 = vpop.f32.mrf.mxu1 }
 0x2b0   :  { %v7458_v10 = vadd.f32 %v7457_v41, %v7456_v38  ;;  %v3126_v38 = vld [vmem:[%s12680_s7 + $0x58] sm:$0xff]  ;;  %v3183_v41 = vld [vmem:[%s12680_s7 + $0x220] sm:$0xff]  ;;  %v3690_v36 = vmax.f32 %v10209_v6, %v10221_v56 }
 0x2b1   :  { %3290 = vmatpush1.msra.mxu0 %v3126_v38  ;;  %3348 = vmatprep.subr.mxu1 %v3183_v41 }
 0x2b2   :  { %v2136_v46 = vadd.f32 %v7458_v10, %v2065_v23  ;;  %v10225_v23 = vmax.f32 %v10041_v44, %v10048_v13  ;;  %3291 = vmatprep.subr.mxu0 %v3118_v63  ;;  %v3748_v44 = vmax.f32 %v3743_v12, %v10197_v35  ;;  %v3185_v13 = vld [vmem:[%s12680_s7 + $0x230] sm:$0xff]  ;;  %v10260_v12 = vld [vmem:[%s12673_s0 + $0x1b8] sm:$0xff] }
 0x2b3   :  { %3292 = vmatpush1.msra.mxu0 %v3117_v27  ;;  %12959 = vst [vmem:[#allocation8_spill] sm:$0xff] %v10260_v12 }
 0x2b4   :  { %v2206_v51 = vadd.f32 %v2205_v29, %v2136_v46  ;;  %v10245_v29 = vld [vmem:[%s12673_s0 + $0x198] sm:$0xff]  ;;  %v3939_v4 = vmax.f32 %v10225_v23, %v10054_v48  ;;  %3419 = vmatprep.subr.mxu0 %v3185_v13  ;;  %v10255_v14 = vmax.f32 %v3748_v44, %v3690_v36  ;;  %v3753_v25 = vmax.f32 %v3748_v44, %v10265_v58 }
 0x2b5   :  { %12957 = vst [vmem:[#allocation10_spill] sm:$0xff] %v10245_v29  ;;  %v3729_v55 = vmax.f32 %v3724_v7, %v10245_v29  ;;  %v10276_v7 = vld [vmem:[%s12673_s0 + $0x1c8] sm:$0xff]  ;;  %v10299_v44 = vld [vmem:[%s12673_s0 + $0x1d8] sm:$0xff] }
 0x2b6   :  { %v2209_v10 = vmax.f32 %v2206_v51, 0.0  ;;  %v3941_v21 = vmax.f32 %v3939_v4, %v10060_v11  ;;  %v3776_v38 = vrot.slane %v10255_v14, 1  ;;  %12962 = vst [vmem:[#allocation35_spill] sm:$0xff] %v10276_v7  ;;  %v3785_v63 = vrot.slane %v10255_v14, 2  ;;  %12964 = vst [vmem:[#allocation37_spill] sm:$0xff] %v10299_v44  ;;  %v10308_v4 = vld [vmem:[%s12673_s0 + $0x118] sm:$0xff] }
 0x2b7   :  { %v3734_v46 = vmax.f32 %v3729_v55, %v10250_v24  ;;  %v10286_v51 = vmax.f32 %v10086_v45, %v10111_v50  ;;  %v10290_v27 = vmax.f32 %v3753_v25, %v10281_v33  ;;  %v10293_v41 = vmax.f32 %v3753_v25, %v10209_v6  ;;  %12965 = vst [vmem:[#allocation38_spill] sm:$0xff] %v10308_v4  ;;  %v10317_v25 = vld [vmem:[%s12673_s0 + $0x108] sm:$0xff] }
 0x2b8   :  { %v10268_v3 = vadd.f32 %v2209_v10, %v1718_v34  ;;  %v3782_v36 = vmax.f32 %v10255_v14, %v3776_v38  ;;  %v3794_v13 = vrot.slane %v10255_v14, 3  ;;  %v3943_v50 = vmax.f32 %v3941_v21, %v10076_v52  ;;  %12966 = vst [vmem:[#allocation39_spill] sm:$0xff] %v10317_v25 }
 0x2b9   :  { %v3739_v62 = vmax.f32 %v3734_v46, %v10260_v12  ;;  %v3940_v45 = vmax.f32 %v10286_v51, %v10135_v37  ;;  %v3777_v10 = vrot.slane %v10293_v41, 1  ;;  %v3778_v55 = vrot.slane %v10290_v27, 1 }
 0x2ba   :  { %12961 = vst [vmem:[#allocation34_spill] sm:$0xff] %v10268_v3  ;;  %v3786_v46 = vrot.slane %v10293_v41, 2  ;;  %v3787_v21 = vrot.slane %v10290_v27, 2  ;;  %v3791_v38 = vmax.f32 %v3782_v36, %v3785_v63  ;;  %v3795_v2 = vrot.slane %v10293_v41, 3  ;;  %v10335_v63 = vld [vmem:[%s12673_s0 + $0x1f8] sm:$0xff] }
 0x2bb   :  { %v3744_v34 = vmax.f32 %v3739_v62, %v10276_v7  ;;  %v3796_v19 = vrot.slane %v10290_v27, 3  ;;  %v3691_v62 = vmax.f32 %v10308_v4, %v10317_v25  ;;  %v3783_v15 = vmax.f32 %v10293_v41, %v3777_v10  ;;  %12968 = vst [vmem:[#allocation41_spill] sm:$0xff] %v10335_v63 }
 0x2bc   :  { %v3784_v59 = vmax.f32 %v10290_v27, %v3778_v55  ;;  %v3800_v36 = vmax.f32 %v3791_v38, %v3794_v13  ;;  %v3803_v49 = vrot.slane %v10255_v14, 4  ;;  %v3804_v61 = vrot.slane %v10293_v41, 4 }
 0x2bd   :  { %v3749_v60 = vmax.f32 %v3744_v34, %v10299_v44  ;;  %v3805_v34 = vrot.slane %v10290_v27, 4  ;;  %v3792_v26 = vmax.f32 %v3783_v15, %v3786_v46  ;;  %v3812_v55 = vrot.slane %v10255_v14, 5 }
 0x2be   :  { %v3793_v10 = vmax.f32 %v3784_v59, %v3787_v21  ;;  %v3809_v16 = vmax.f32 %v3800_v36, %v3803_v49  ;;  %v3813_v42 = vrot.slane %v10293_v41, 5  ;;  %v3814_v31 = vrot.slane %v10290_v27, 5 }
 0x2bf   :  { %v3754_v40 = vmax.f32 %v3749_v60, %v10328_v9  ;;  %v10341_v43 = vmax.f32 %v3749_v60, %v3691_v62  ;;  %v3801_v17 = vmax.f32 %v3792_v26, %v3795_v2  ;;  %v3945_v49 = vmax.f32 %v3943_v50, %v10091_v54 }
 0x2c0   :  { %v3802_v22 = vmax.f32 %v3793_v10, %v3796_v19  ;;  %v3818_v5 = vmax.f32 %v3809_v16, %v3812_v55  ;;  %v3942_v16 = vmax.f32 %v3940_v45, %v10161_v0 }
 0x2c1   :  { %v10347_v13 = vmax.f32 %v3754_v40, %v10335_v63  ;;  %v10350_v38 = vmax.f32 %v3754_v40, %v10308_v4  ;;  %v3824_v60 = vrot.slane %v10341_v43, 6  ;;  %v3833_v59 = vrot.slane %v10341_v43, 7 }
 0x2c2   :  { %v3810_v15 = vmax.f32 %v3801_v17, %v3804_v61  ;;  %v3811_v46 = vmax.f32 %v3802_v22, %v3805_v34  ;;  %v3845_v2 = vrot.slane %v10341_v43, 1  ;;  %v10363_v17 = vmax.f32 %v10036_v53, %v10209_v6 }
 0x2c3   :  { %v3825_v21 = vrot.slane %v10350_v38, 6  ;;  %v3826_v62 = vrot.slane %v10347_v13, 6  ;;  %v3830_v36 = vmax.f32 %v3818_v5, %v3824_v60  ;;  %v3834_v20 = vrot.slane %v10350_v38, 7 }
 0x2c4   :  { %v3819_v40 = vmax.f32 %v3810_v15, %v3813_v42  ;;  %v3820_v3 = vmax.f32 %v3811_v46, %v3814_v31  ;;  %v3835_v26 = vrot.slane %v10347_v13, 7  ;;  %v3947_v22 = vmax.f32 %v3945_v49, %v10116_v47 }
 0x2c5   :  { %v3839_v19 = vmax.f32 %v3830_v36, %v3833_v59  ;;  %v3846_v5 = vrot.slane %v10350_v38, 1  ;;  %v3944_v42 = vmax.f32 %v3942_v16, %v10185_v30  ;;  %v3847_v34 = vrot.slane %v10347_v13, 1 }
 0x2c6   :  { %v3831_v61 = vmax.f32 %v3819_v40, %v3825_v21  ;;  %v3832_v50 = vmax.f32 %v3820_v3, %v3826_v62  ;;  %v3854_v45 = vrot.slane %v10341_v43, 2  ;;  %v3855_v10 = vrot.slane %v10350_v38, 2 }
 0x2c7   :  { %v3842_v31 = vmax.f32 %v3839_v19, %v10341_v43  ;;  %v3856_v59 = vrot.slane %v10347_v13, 2  ;;  %v3946_v49 = vmax.f32 %v3944_v42, %v10245_v29  ;;  %v3767_v3 = vrot.slane %v10255_v14, 7 }
 0x2c8   :  { %v3840_v55 = vmax.f32 %v3831_v61, %v3834_v20  ;;  %v3841_v60 = vmax.f32 %v3832_v50, %v3835_v26  ;;  %v3768_v15 = vrot.slane %v10293_v41, 7  ;;  %v3863_v21 = vrot.slane %v10341_v43, 3 }
 0x2c9   :  { %v3851_v46 = vmax.f32 %v3842_v31, %v3845_v2  ;;  %v3864_v40 = vrot.slane %v10350_v38, 3  ;;  %v3865_v20 = vrot.slane %v10347_v13, 3  ;;  %v3773_v26 = vmax.f32 %v10255_v14, %v3767_v3 }
 0x2ca   :  { %v3843_v62 = vmax.f32 %v3840_v55, %v10350_v38  ;;  %v3844_v36 = vmax.f32 %v3841_v60, %v10347_v13  ;;  %v3774_v16 = vmax.f32 %v10293_v41, %v3768_v15  ;;  %v3872_v61 = vrot.slane %v10341_v43, 4 }
 0x2cb   :  { %v3860_v19 = vmax.f32 %v3851_v46, %v3854_v45  ;;  %v3769_v50 = vrot.slane %v10290_v27, 7  ;;  %v3873_v31 = vrot.slane %v10350_v38, 4  ;;  %v3874_v60 = vrot.slane %v10347_v13, 4 }
 0x2cc   :  { %v3852_v2 = vmax.f32 %v3843_v62, %v3846_v5  ;;  %v3853_v42 = vmax.f32 %v3844_v36, %v3847_v34  ;;  %v3893_v47 = vrot.slane %v3773_v26, 7  ;;  %v3894_v29 = vrot.slane %v3774_v16, 7 }
 0x2cd   :  { %v3869_v55 = vmax.f32 %v3860_v19, %v3863_v21  ;;  %v3775_v54 = vmax.f32 %v10290_v27, %v3769_v50  ;;  %v3948_v41 = vmax.f32 %v3946_v49, %v10250_v24  ;;  %v3881_v46 = vrot.slane %v10341_v43, 5 }
 0x2ce   :  { %v3861_v30 = vmax.f32 %v3852_v2, %v3855_v10  ;;  %v3862_v14 = vmax.f32 %v3853_v42, %v3856_v59  ;;  %v3934_v5 = vmax.f32 %v10080_v39, %v10308_v4  ;;  %v3935_v21 = vmax.f32 %v10363_v17, %v10221_v56 }
 0x2cf   :  { %v3878_v45 = vmax.f32 %v3869_v55, %v3872_v61  ;;  %v3899_v6 = vmax.f32 %v3869_v55, %v3893_v47  ;;  %v3949_v36 = vmax.f32 %v3947_v22, %v10150_v18  ;;  %v3882_v27 = vrot.slane %v10350_v38, 5 }
 0x2d0   :  { %v3870_v34 = vmax.f32 %v3861_v30, %v3864_v40  ;;  %v3871_v62 = vmax.f32 %v3862_v14, %v3865_v20  ;;  %v3895_v10 = vrot.slane %v3775_v54, 7  ;;  %v3950_v49 = vmax.f32 %v3948_v41, %v10260_v12 }
 0x2d1   :  { %v3902_v59 = vmax.f32 %v3878_v45, %v3767_v3  ;;  %v3908_v47 = vrot.slane %v3899_v6, 2  ;;  %v10399_v19 = vmax.f32 %v3878_v45, %v3881_v46  ;;  %v3936_v30 = vmax.f32 %v3934_v5, %v10317_v25 }
 0x2d2   :  { %v3879_v26 = vmax.f32 %v3870_v34, %v3873_v31  ;;  %v10397_v16 = vmax.f32 %v3871_v62, %v3874_v60  ;;  %v3900_v43 = vmax.f32 %v3870_v34, %v3894_v29  ;;  %v3951_v40 = vmax.f32 %v3949_v36, %v10174_v1 }
 0x2d3   :  { %v3952_v20 = vmax.f32 %v3950_v49, %v10276_v7  ;;  %v3916_v3 = vrot.slane %v3902_v59, 7  ;;  %v3901_v2 = vmax.f32 %v3871_v62, %v3895_v10  ;;  %v10415_v41 = vmax.f32 %v3950_v49, %v3936_v30 }
 0x2d4   :  { %v3903_v22 = vmax.f32 %v3879_v26, %v3768_v15  ;;  %v3904_v38 = vmax.f32 %v10397_v16, %v3769_v50  ;;  %v3909_v54 = vrot.slane %v3900_v43, 1  ;;  %v10405_v61 = vmax.f32 %v3879_v26, %v3882_v27 }
 0x2d5   :  { %v3953_v42 = vmax.f32 %v3951_v40, %v10197_v35  ;;  %v3954_v6 = vmax.f32 %v3952_v20, %v10299_v44  ;;  %v10413_v50 = vmax.f32 %v3949_v36, %v3935_v21  ;;  %v10423_v62 = vmax.f32 %v3951_v40, %v10363_v17 }
 0x2d6   :  { %v3910_v29 = vsel %vm258_vm1, %v3909_v54, %v3908_v47  ;;  %v3917_v31 = vrot.slane %v3903_v22, 6  ;;  %v3919_v55 = vrot.slane %v3904_v38, 5  ;;  %v10438_v49 = vmax.f32 %v3952_v20, %v3934_v5 }
 0x2d7   :  { %v3955_v60 = vmax.f32 %v3953_v42, %v10265_v58  ;;  %v10418_v45 = vsel %vm12969_vm5, %v3901_v2, %v3910_v29  ;;  %v3956_v34 = vmax.f32 %v3954_v6, %v10328_v9  ;;  %v10430_v21 = vmax.f32 %v3953_v42, %v10036_v53 }
 0x2d8   :  { %v3918_v14 = vsel %vm268_vm3, %v3917_v31, %v3916_v3  ;;  %v12786_v26 = vrot.slane %v10413_v50, 7  ;;  %v12785_v17 = vrot.slane %v10423_v62, 7  ;;  %v3987_v20 = vrot.slane %v10413_v50, 6 }
 0x2d9   :  { %v10427_v10 = vmax.f32 %v3955_v60, %v10281_v33  ;;  %v10433_v36 = vmax.f32 %v3955_v60, %v10032_v57  ;;  %v10436_v59 = vsel %vm12970_vm13, %v3919_v55, %v3918_v14  ;;  %v10443_v43 = vmax.f32 %v3956_v34, %v10335_v63 }
 0x2da   :  { %v12784_v47 = vrot.slane %v10430_v21, 7  ;;  %v10451_v40 = vmax.f32 %v10413_v50, %v12786_v26  ;;  %v10456_v5 = vmax.f32 %v10423_v62, %v12785_v17  ;;  %v3988_v22 = vrot.slane %v10423_v62, 6 }
 0x2db   :  { %v12783_v53 = vrot.slane %v10433_v36, 7  ;;  %v12782_v30 = vrot.slane %v10427_v10, 7  ;;  %v3989_v2 = vrot.slane %v10430_v21, 6  ;;  %v3990_v42 = vrot.slane %v10433_v36, 6 }
 0x2dc   :  { %v10463_v38 = vmax.f32 %v10430_v21, %v12784_v47  ;;  %v3991_v29 = vrot.slane %v10427_v10, 6  ;;  %v10479_v31 = vmax.f32 %v10451_v40, %v3987_v20  ;;  %v10482_v55 = vmax.f32 %v10456_v5, %v3988_v22 }
 0x2dd   :  { %v10468_v54 = vmax.f32 %v10433_v36, %v12783_v53  ;;  %v10473_v3 = vmax.f32 %v10427_v10, %v12782_v30  ;;  %v4002_v14 = vrot.slane %v10413_v50, 5  ;;  %v4003_v30 = vrot.slane %v10423_v62, 5 }
 0x2de   :  { %v10485_v60 = vmax.f32 %v10463_v38, %v3989_v2  ;;  %v4004_v53 = vrot.slane %v10430_v21, 5  ;;  %v10491_v47 = vmax.f32 %v3954_v6, %v10080_v39  ;;  %v10494_v17 = vmax.f32 %v3956_v34, %v10071_v28 }
 0x2df   :  { %v10497_v20 = vmax.f32 %v10468_v54, %v3990_v42  ;;  %v10500_v22 = vmax.f32 %v10473_v3, %v3991_v29  ;;  %v10505_v27 = vmax.f32 %v10479_v31, %v4002_v14  ;;  %v4017_v46 = vrot.slane %v10413_v50, 1 }
 0x2e0   :  { %v10509_v39 = vmax.f32 %v10482_v55, %v4003_v30  ;;  %v10512_v6 = vmax.f32 %v10485_v60, %v4004_v53  ;;  %v4018_v34 = vrot.slane %v10423_v62, 1  ;;  %v4019_v42 = vrot.slane %v10430_v21, 1 }
 0x2e1   :  { %v4020_v29 = vrot.slane %v10433_v36, 1  ;;  %v4021_v15 = vrot.slane %v10427_v10, 1  ;;  %v4027_v26 = vmax.f32 %v10413_v50, %v4017_v46  ;;  %v4032_v14 = vrot.slane %v10413_v50, 2 }
 0x2e2   :  { %v4028_v2 = vmax.f32 %v10423_v62, %v4018_v34  ;;  %v4029_v30 = vmax.f32 %v10430_v21, %v4019_v42  ;;  %v4033_v63 = vrot.slane %v10423_v62, 2  ;;  %v4034_v53 = vrot.slane %v10430_v21, 2 }
 0x2e3   :  { %v4030_v33 = vmax.f32 %v10433_v36, %v4020_v29  ;;  %v4031_v9 = vmax.f32 %v10427_v10, %v4021_v15  ;;  %v4035_v58 = vrot.slane %v10433_v36, 2  ;;  %v4036_v44 = vrot.slane %v10427_v10, 2 }
 0x2e4   :  { %v4042_v35 = vmax.f32 %v4027_v26, %v4032_v14  ;;  %v4043_v46 = vmax.f32 %v4028_v2, %v4033_v63  ;;  %v4044_v7 = vmax.f32 %v4029_v30, %v4034_v53  ;;  %v4047_v1 = vrot.slane %v10413_v50, 3 }
 0x2e5   :  { %v4045_v34 = vmax.f32 %v4030_v33, %v4035_v58  ;;  %v4046_v12 = vmax.f32 %v4031_v9, %v4036_v44  ;;  %v4048_v42 = vrot.slane %v10423_v62, 3  ;;  %v4049_v18 = vrot.slane %v10430_v21, 3 }
 0x2e6   :  { %v4050_v24 = vrot.slane %v10433_v36, 3  ;;  %v4051_v29 = vrot.slane %v10427_v10, 3  ;;  %v4057_v15 = vmax.f32 %v4042_v35, %v4047_v1  ;;  %v4067_v25 = vrot.slane %v10415_v41, 4 }
 0x2e7   :  { %v4058_v56 = vmax.f32 %v4043_v46, %v4048_v42  ;;  %v4059_v4 = vmax.f32 %v4044_v7, %v4049_v18  ;;  %v4068_v63 = vrot.slane %v10438_v49, 4  ;;  %v4069_v26 = vrot.slane %v10491_v47, 4 }
 0x2e8   :  { %v4060_v2 = vmax.f32 %v4045_v34, %v4050_v24  ;;  %v4061_v58 = vmax.f32 %v4046_v12, %v4051_v29  ;;  %v4070_v9 = vrot.slane %v10494_v17, 4  ;;  %v4071_v33 = vrot.slane %v10443_v43, 4 }
 0x2e9   :  { %v4077_v44 = vmax.f32 %v4057_v15, %v4067_v25  ;;  %v4078_v14 = vmax.f32 %v4058_v56, %v4068_v63  ;;  %v4079_v30 = vmax.f32 %v4059_v4, %v4069_v26  ;;  %v4082_v53 = vrot.slane %v10415_v41, 5 }
 0x2ea   :  { %v4080_v1 = vmax.f32 %v4060_v2, %v4070_v9  ;;  %v4081_v35 = vmax.f32 %v4061_v58, %v4071_v33  ;;  %v4083_v46 = vrot.slane %v10438_v49, 5  ;;  %v4084_v18 = vrot.slane %v10491_v47, 5 }
 0x2eb   :  { %v4085_v7 = vrot.slane %v10494_v17, 5  ;;  %v4086_v24 = vrot.slane %v10443_v43, 5  ;;  %v4092_v12 = vmax.f32 %v4077_v44, %v4082_v53  ;;  %v4097_v34 = vrot.slane %v10415_v41, 6 }
 0x2ec   :  { %v4093_v42 = vmax.f32 %v4078_v14, %v4083_v46  ;;  %v4094_v29 = vmax.f32 %v4079_v30, %v4084_v18  ;;  %v4098_v56 = vrot.slane %v10438_v49, 6  ;;  %v4099_v4 = vrot.slane %v10491_v47, 6 }
 0x2ed   :  { %v4095_v25 = vmax.f32 %v4080_v1, %v4085_v7  ;;  %v4096_v15 = vmax.f32 %v4081_v35, %v4086_v24  ;;  %v4100_v63 = vrot.slane %v10494_v17, 6  ;;  %v4101_v26 = vrot.slane %v10443_v43, 6 }
 0x2ee   :  { %v4107_v2 = vmax.f32 %v4092_v12, %v4097_v34  ;;  %v4108_v58 = vmax.f32 %v4093_v42, %v4098_v56  ;;  %v4109_v9 = vmax.f32 %v4094_v29, %v4099_v4  ;;  %v4112_v33 = vrot.slane %v10415_v41, 7 }
 0x2ef   :  { %v12971_v44 = vrot.slane %v10433_v36, 5  ;;  %v4110_v30 = vmax.f32 %v4095_v25, %v4100_v63  ;;  %v4113_v53 = vrot.slane %v10438_v49, 7  ;;  %v4114_v46 = vrot.slane %v10491_v47, 7 }
 0x2f0   :  { %v12972_v1 = vrot.slane %v10399_v19, 4  ;;  %v12973_v35 = vrot.slane %v10405_v61, 3  ;;  %v4111_v7 = vmax.f32 %v4096_v15, %v4101_v26  ;;  %v4115_v24 = vrot.slane %v10494_v17, 7 }
 0x2f1   :  { %v4015_v14 = vmax.f32 %v10497_v20, %v12971_v44  ;;  %v4122_v12 = vmax.f32 %v4107_v2, %v4112_v33  ;;  %v4116_v34 = vrot.slane %v10443_v43, 7  ;;  %v4123_v42 = vmax.f32 %v4108_v58, %v4113_v53 }
 0x2f2   :  { %v10559_v18 = vsel %vm12974_vm14, %v12973_v35, %v12972_v1  ;;  %v4124_v29 = vmax.f32 %v4109_v9, %v4114_v46  ;;  %v4182_v56 = vrot.slane %v10505_v27, 7  ;;  %v10567_v4 = vsel %vm12975_vm12, %v10418_v45, %v10436_v59 }
 0x2f3   :  { %v12976_v19 = vrot.slane %v10347_v13, 5  ;;  %v4125_v25 = vmax.f32 %v4110_v30, %v4115_v24  ;;  %v4183_v15 = vrot.slane %v10509_v39, 7  ;;  %v12977_v63 = vrot.slane %v10427_v10, 5 }
 0x2f4   :  { %v4133_v2 = vrot.slane %v10438_v49, 1  ;;  %v4184_v27 = vrot.slane %v10512_v6, 7  ;;  %v4185_v58 = vrot.slane %v4015_v14, 7  ;;  %v4127_v45 = vmax.f32 %v4122_v12, %v10415_v41 }
 0x2f5   :  { %v10572_v61 = vmax.f32 %v10397_v16, %v12976_v19  ;;  %v4016_v26 = vmax.f32 %v10500_v22, %v12977_v63  ;;  %v4128_v59 = vmax.f32 %v4123_v42, %v10438_v49  ;;  %v4192_v13 = vmax.f32 %v4122_v12, %v4182_v56 }
 0x2f6   :  { %v4193_v9 = vmax.f32 %v4123_v42, %v4183_v15  ;;  %v4126_v16 = vmax.f32 %v4111_v7, %v4116_v34  ;;  %v4129_v33 = vmax.f32 %v4124_v29, %v10491_v47  ;;  %v4134_v39 = vrot.slane %v10491_v47, 1 }
 0x2f7   :  { %v4194_v44 = vmax.f32 %v4124_v29, %v4184_v27  ;;  %v4195_v30 = vmax.f32 %v4125_v25, %v4185_v58  ;;  %v4202_v53 = vrot.slane %v10479_v31, 7  ;;  %v4203_v46 = vrot.slane %v10482_v55, 7 }
 0x2f8   :  { %v4204_v6 = vrot.slane %v10485_v60, 7  ;;  %v4131_v14 = vmax.f32 %v4126_v16, %v10443_v43  ;;  %v4186_v1 = vrot.slane %v4016_v26, 7  ;;  %v4247_v35 = vrot.slane %v4192_v13, 4 }
 0x2f9   :  { %v4248_v24 = vrot.slane %v4193_v9, 3  ;;  %v4143_v12 = vmax.f32 %v4128_v59, %v4133_v2  ;;  %v4212_v42 = vmax.f32 %v4127_v45, %v4202_v53  ;;  %v4213_v7 = vmax.f32 %v4128_v59, %v4203_v46 }
 0x2fa   :  { %v4250_v34 = vrot.slane %v4194_v44, 2  ;;  %v4144_v56 = vmax.f32 %v4129_v33, %v4134_v39  ;;  %v4214_v19 = vmax.f32 %v4129_v33, %v4204_v6  ;;  %v4223_v29 = vrot.slane %v10456_v5, 7 }
 0x2fb   :  { %v4249_v15 = vsel %vm258_vm1, %v4248_v24, %v4247_v35  ;;  %v4224_v31 = vrot.slane %v10463_v38, 7  ;;  %v4252_v60 = vrot.slane %v4195_v30, 1  ;;  %v4261_v63 = vrot.slane %v4212_v42, 7 }
 0x2fc   :  { %v4251_v55 = vsel %vm12969_vm5, %v4250_v34, %v4249_v15  ;;  %v4262_v27 = vrot.slane %v4213_v7, 6  ;;  %v4130_v26 = vmax.f32 %v4125_v25, %v10494_v17  ;;  %v4132_v2 = vrot.slane %v10415_v41, 1 }
 0x2fd   :  { %v4135_v58 = vrot.slane %v10494_v17, 1  ;;  %v3928_v59 = vrot.slane %v10572_v61, 2  ;;  %v4196_v13 = vmax.f32 %v4126_v16, %v4186_v1  ;;  %v4136_v5 = vrot.slane %v10443_v43, 1 }
 0x2fe   :  { %v4147_v9 = vrot.slane %v10415_v41, 2  ;;  %v4233_v33 = vmax.f32 %v4143_v12, %v4223_v29  ;;  %v4264_v38 = vrot.slane %v4214_v19, 5  ;;  %v4142_v39 = vmax.f32 %v4127_v45, %v4132_v2 }
 0x2ff   :  { %v4145_v44 = vmax.f32 %v4130_v26, %v4135_v58  ;;  %vm12978_vm13 = vcmask 1043459   ;;  %v4146_v53 = vmax.f32 %v4131_v14, %v4136_v5  ;;  %v4205_v25 = vrot.slane %v10497_v20, 7 }
 0x300   :  { %v4253_v30 = vsel %vm12978_vm13, %v4252_v60, %v4251_v55  ;;  %v4206_v46 = vrot.slane %v10500_v22, 7  ;;  %v4234_v6 = vmax.f32 %v4144_v56, %v4224_v31  ;;  %vm12979_vm14 = vcmask 1046534   ;;  %vm12982_vm5 = vmmov %vm12978_vm13 }
 0x301   :  { %v4263_v35 = vsel %vm12979_vm14, %v4262_v27, %v4261_v63  ;;  %v4222_v16 = vrot.slane %v10451_v40, 7  ;;  %v4225_v1 = vrot.slane %v10468_v54, 7  ;;  %v4157_v24 = vmax.f32 %v4142_v39, %v4147_v9 }
 0x302   :  { %v4215_v42 = vmax.f32 %v4130_v26, %v4205_v25  ;;  %v4216_v7 = vmax.f32 %v4131_v14, %v4206_v46  ;;  %v4226_v45 = vrot.slane %v10473_v3, 7  ;;  %v4254_v34 = vsel %vm268_vm3, %v4196_v13, %v4253_v30 }
 0x303   :  { %v4232_v19 = vmax.f32 %v4142_v39, %v4222_v16  ;;  %v4235_v29 = vmax.f32 %v4145_v44, %v4225_v1  ;;  %v4277_v15 = vrot.slane %v4233_v33, 1  ;;  %vm12980_vm12 = vcmask 1047559  }
 0x304   :  { %v4265_v20 = vsel %vm12980_vm12, %v4264_v38, %v4263_v35  ;;  %v4236_v22 = vmax.f32 %v4146_v53, %v4226_v45  ;;  %v4266_v31 = vrot.slane %v4215_v42, 4  ;;  %v4267_v55 = vrot.slane %v4216_v7, 3 }
 0x305   :  { %v4276_v60 = vrot.slane %v4232_v19, 2  ;;  %v4280_v63 = vrot.slane %v4235_v29, 7  ;;  %v4148_v40 = vrot.slane %v10438_v49, 2  ;;  %v4149_v54 = vrot.slane %v10491_v47, 2 }
 0x306   :  { %v4162_v3 = vrot.slane %v10415_v41, 3  ;;  %v12981_v26 = vrot.slane %v10413_v50, 7  ;;  %v4282_v58 = vrot.slane %v4236_v22, 6  ;;  %v4150_v13 = vrot.slane %v10494_v17, 2 }
 0x307   :  { %v4278_v5 = vsel %vm12982_vm5, %v4277_v15, %v4276_v60  ;;  %v4151_v9 = vrot.slane %v10443_v43, 2  ;;  %v4158_v33 = vmax.f32 %v4143_v12, %v4148_v40  ;;  %v4159_v38 = vmax.f32 %v4144_v56, %v4149_v54 }
 0x308   :  { %v4237_v2 = vmax.f32 %v4157_v24, %v12981_v26  ;;  %v4279_v30 = vsel %vm268_vm3, %v4234_v6, %v4278_v5  ;;  %v4160_v25 = vmax.f32 %v4145_v44, %v4150_v13  ;;  %v4163_v46 = vrot.slane %v10438_v49, 3 }
 0x309   :  { %v4164_v41 = vrot.slane %v10491_v47, 3  ;;  %vm12983_vm13 = vcmask 1044480   ;;  %v4268_v35 = vsel %vm258_vm1, %v4267_v55, %v4266_v31  ;;  %vm12984_vm14 = vcmask 1045509  }
 0x30a   :  { %v7491_v27 = vpop.f32.mrf.mxu0  ;;  %v10609_v14 = vpop.f32.mrf.mxu1  ;;  %v10621_v50 = vsel %vm12983_vm13, %v4254_v34, %v4265_v20  ;;  %v4281_v16 = vsel %vm12984_vm14, %v4280_v63, %v4279_v30  ;;  %v4161_v1 = vmax.f32 %v4146_v53, %v4151_v9  ;;  %vm12985_vm12 = vcmask 1046534  }
 0x30b   :  { %v4283_v12 = vsel %vm12985_vm12, %v4282_v58, %v4281_v16  ;;  %v4165_v56 = vrot.slane %v10494_v17, 3  ;;  %v4173_v7 = vmax.f32 %v4158_v33, %v4163_v46  ;;  %v4174_v6 = vmax.f32 %v4159_v38, %v4164_v41 }
 0x30c   :  { %v7527_v39 = vpop.f32.mrf.mxu1  ;;  %v7492_v42 = vpop.f32.mrf.mxu0  ;;  %v4172_v44 = vmax.f32 %v4157_v24, %v4162_v3  ;;  %v4290_v45 = vrot.slane %v4237_v2, 5  ;;  %v12986_v49 = vrot.slane %v10423_v62, 7  ;;  %v12987_v34 = vrot.slane %v10430_v21, 7 }
 0x30d   :  { %vm12988_vm5 = vcmask 1041408   ;;  %v4175_v53 = vmax.f32 %v4160_v25, %v4165_v56  ;;  %v12989_v20 = vrot.slane %v10433_v36, 7  ;;  %v12990_v17 = vrot.slane %v10427_v10, 7  ;;  %v2795_v10 = vld [vmem:[%s12679_s6 + $0x1] sm:$0x1] }
 0x30e   :  { %v4238_v47 = vmax.f32 %v4158_v33, %v12986_v49  ;;  %v4239_v19 = vmax.f32 %v4159_v38, %v12987_v34  ;;  %v4314_v15 = vsel %vm12988_vm5, %v4268_v35, %v4283_v12  ;;  %v7493_v55 = vadd.f32 %v7492_v42, %v7491_v27  ;;  %v12999_v56 = vld [vmem:[#allocation38_spill] sm:$0xff] }
 0x30f   :  { %v4240_v22 = vmax.f32 %v4160_v25, %v12989_v20  ;;  %v4241_v31 = vmax.f32 %v4161_v1, %v12990_v17  ;;  %v4945_v24 = vrot.slane %v10621_v50, 7  ;;  %v4305_v54 = vrot.slane %v4173_v7, 7 }
 0x310   :  { %v10631_v29 = vpop.f32.mrf.mxu1  ;;  %v4291_v60 = vrot.slane %v4238_v47, 4  ;;  %v4292_v62 = vrot.slane %v4239_v19, 3  ;;  %v4307_v3 = vrot.slane %v4174_v6, 6  ;;  %vm12991_vm13 = vcmask 1046528   ;;  %v13001_v6 = vld [vmem:[#allocation22_spill] sm:$0xff] }
 0x311   :  { %v4294_v40 = vrot.slane %v4240_v22, 2  ;;  %v4296_v21 = vrot.slane %v4241_v31, 1  ;;  %v4315_v26 = vsel %vm12991_vm13, %v4314_v15, %v4290_v45  ;;  %v4309_v58 = vrot.slane %v4175_v53, 5  ;;  %v13002_v45 = vld [vmem:[#allocation20_spill] sm:$0xff]  ;;  %v13004_v47 = vld [vmem:[#allocation10_spill] sm:$0xff] }
 0x312   :  { %v7802_v63 = vpop.f32.mrf.mxu1  ;;  %v4293_v2 = vsel %vm258_vm1, %v4292_v62, %v4291_v60  ;;  %v4166_v36 = vrot.slane %v10443_v43, 3  ;;  %vm12992_vm14 = vcmask 1042434   ;;  %vm12993_vm12 = vcmask 1045509   ;;  %v13011_v22 = vld [vmem:[#allocation16_spill] sm:$0xff] }
 0x313   :  { %v4295_v27 = vsel %vm12992_vm14, %v4294_v40, %v4293_v2  ;;  %v4306_v13 = vsel %vm12993_vm12, %v4305_v54, %v4172_v44  ;;  %v4317_v5 = vmax.f32 %v10225_v23, %v10032_v57  ;;  %v4318_v9 = vmax.f32 %v10286_v51, %v10071_v28  ;;  %v13016_v60 = vld [vmem:[#allocation8_spill] sm:$0xff] }
 0x314   :  { %vm12994_vm5 = vcmask 1043459   ;;  %vm12995_vm13 = vcmask 1046534   ;;  %v4176_v30 = vmax.f32 %v4161_v1, %v4166_v36  ;;  %v4325_v43 = vmax.f32 %v10054_v48, %v10060_v11  ;;  %v12998_v1 = vld [vmem:[#allocation19_spill] sm:$0xff]  ;;  %v13000_v11 = vld [vmem:[#allocation28_spill] sm:$0xff] }
 0x315   :  { %v4297_v33 = vsel %vm12994_vm5, %v4296_v21, %v4295_v27  ;;  %v4308_v38 = vsel %vm12995_vm13, %v4307_v3, %v4306_v13  ;;  %v4319_v46 = vmax.f32 %v4317_v5, %v10027_v32  ;;  %v4320_v41 = vmax.f32 %v4318_v9, %v10066_v8  ;;  %v13017_v21 = vld [vmem:[#allocation27_spill] sm:$0xff] }
 0x316   :  { %v4310_v25 = vsel %vm12996_vm2, %v4309_v58, %v4308_v38  ;;  %v4326_v57 = vmax.f32 %v10135_v37, %v10161_v0  ;;  %v2900_v50 = vadd.f32 %v7493_v55, %v2795_v10  ;;  %v4946_v35 = vrot.slane %v4315_v26, 7  ;;  %v13003_v0 = vld [vmem:[#allocation39_spill] sm:$0xff]  ;;  %v13013_v55 = vld [vmem:[#allocation24_spill] sm:$0xff] }
 0x317   :  { %vm12997_vm14 = vcmask 1043456   ;;  %v4327_v16 = vmax.f32 %v4325_v43, %v10076_v52  ;;  %v4321_v12 = vmax.f32 %v4319_v46, %v12998_v1  ;;  %v4322_v48 = vmax.f32 %v4320_v41, %v12999_v56  ;;  %v13019_v58 = vld [vmem:[#allocation35_spill] sm:$0xff] }
 0x318   :  { %v4316_v28 = vsel %vm12997_vm14, %v4297_v33, %v4310_v25  ;;  %v4328_v7 = vmax.f32 %v4326_v57, %v13000_v11  ;;  %v7528_v32 = vadd.f32 %v7527_v39, %v10609_v14  ;;  %v7382_v44 = vrot.slane %v4176_v30, 11  ;;  %v13007_v39 = vld [vmem:[#allocation23_spill] sm:$0xff]  ;;  %v13021_v33 = vld [vmem:[#allocation13_spill] sm:$0xff] }
 0x319   :  { %v4948_v42 = vrot.slane %v4316_v28, 7  ;;  %v4329_v8 = vmax.f32 %v4327_v16, %v13001_v6  ;;  %v4323_v37 = vmax.f32 %v4321_v12, %v13002_v45  ;;  %v4324_v49 = vmax.f32 %v4322_v48, %v13003_v0  ;;  %v13025_v28 = vld [vmem:[#allocation18_spill] sm:$0xff] }
 0x31a   :  { %v4330_v34 = vmax.f32 %v4328_v7, %v13004_v47  ;;  %v10670_v19 = vadd.f32 %v7528_v32, %v2900_v50  ;;  %vm13005_vm2 = vcmask 1045504   ;;  %vm13006_vm12 = vcmask 1040384   ;;  %v13029_v7 = vld [vmem:[#allocation36_spill] sm:$0xff] }
 0x31b   :  { %v10675_v52 = vsel %vm13005_vm2, %v10567_v4, %v10559_v18  ;;  %v10680_v14 = vsel %vm13006_vm12, %v3928_v59, %v4945_v24  ;;  %v4331_v15 = vmax.f32 %v4329_v8, %v13007_v39  ;;  %vm13008_vm5 = vmmov %vm13006_vm12  ;;  %v10690_v31 = vmax.f32 %v4329_v8, %v4323_v37  ;;  %v7910_v32 = vld [vmem:[%s12673_s0 + $0x150] sm:$0xff]  ;;  %v7911_v37 = vld [vmem:[%s12673_s0 + $0x158] sm:$0xff] }
 0x31c   :  { %v10684_v53 = vsel %vm13008_vm5, %v4945_v24, %v4946_v35  ;;  %vm13009_vm13 = vmmov %vm13008_vm5  ;;  %v4332_v17 = vmax.f32 %v4330_v34, %v13011_v22  ;;  %v10693_v4 = vmax.f32 %v4330_v34, %v4324_v49  ;;  %vm13042_vm2 = vcmask 523264  }
 0x31d   :  { %v10687_v20 = vsel %vm13009_vm13, %v4946_v35, %v4948_v42  ;;  %13012 = vst [vmem:[#allocation38_spill] sm:$0xff] %v10690_v31  ;;  %v4333_v18 = vmax.f32 %v4331_v15, %v13013_v55  ;;  %v10695_v61 = vmax.f32 %v4331_v15, %v4321_v12  ;;  %vm13015_vm14 = vmmov %vm13008_vm5  ;;  %v12808_v63 = vrot.slane %v10690_v31, 7  ;;  %v13028_v12 = vld [vmem:[#allocation40_spill] sm:$0xff] }
 0x31e   :  { %13010 = vst [vmem:[#allocation19_spill] sm:$0xff] %v10687_v20  ;;  %v10698_v59 = vsel %vm13015_vm14, %v4948_v42, %v7382_v44  ;;  %v4334_v62 = vmax.f32 %v4332_v17, %v13016_v60  ;;  %v10701_v24 = vmax.f32 %v4332_v17, %v4322_v48  ;;  %v4383_v40 = vrot.slane %v10690_v31, 6  ;;  %v13033_v44 = vld [vmem:[#allocation41_spill] sm:$0xff]  ;;  %vm13043_vm12 = vmmov %vm13042_vm2 }
 0x31f   :  { %13014 = vst [vmem:[#allocation28_spill] sm:$0xff] %v10695_v61  ;;  %v4335_v54 = vmax.f32 %v4333_v18, %v13017_v21  ;;  %v10706_v3 = vmax.f32 %v4333_v18, %v4319_v46  ;;  %v12807_v26 = vrot.slane %v10695_v61, 7  ;;  %v4384_v2 = vrot.slane %v10695_v61, 6  ;;  %v13024_v46 = vld [vmem:[#allocation37_spill] sm:$0xff]  ;;  %vm13046_vm13 = vmmov %vm13042_vm2 }
 0x320   :  { %v4336_v36 = vmax.f32 %v4334_v62, %v13019_v58  ;;  %v10711_v10 = vmax.f32 %v4334_v62, %v4320_v41  ;;  %v10716_v27 = vmax.f32 %v10690_v31, %v12808_v63  ;;  %v4404_v13 = vrot.slane %v10690_v31, 5  ;;  %vm13047_vm14 = vmmov %vm13042_vm2 }
 0x321   :  { %13018 = vst [vmem:[#allocation22_spill] sm:$0xff] %v10706_v3  ;;  %v4337_v38 = vmax.f32 %v4335_v54, %v13021_v33  ;;  %v10720_v30 = vmax.f32 %v4335_v54, %v4317_v5  ;;  %v12806_v43 = vrot.slane %v10706_v3, 7  ;;  %v10726_v25 = vmax.f32 %v10695_v61, %v12807_v26 }
 0x322   :  { %13020 = vst [vmem:[#allocation20_spill] sm:$0xff] %v10716_v27  ;;  %v4338_v41 = vmax.f32 %v4336_v36, %v13024_v46  ;;  %v10729_v57 = vmax.f32 %v4336_v36, %v4318_v9  ;;  %v4385_v50 = vrot.slane %v10706_v3, 6  ;;  %v10733_v35 = vmax.f32 %v10716_v27, %v4383_v40 }
 0x323   :  { %13022 = vst [vmem:[#allocation39_spill] sm:$0xff] %v10720_v30  ;;  %13023 = vst [vmem:[#allocation10_spill] sm:$0xff] %v10726_v25  ;;  %v4339_v16 = vmax.f32 %v4337_v38, %v13025_v28  ;;  %v10737_v5 = vmax.f32 %v4337_v38, %v10225_v23  ;;  %v12805_v42 = vrot.slane %v10720_v30, 7  ;;  %v10743_v1 = vmax.f32 %v10706_v3, %v12806_v43 }
 0x324   :  { %v4340_v9 = vmax.f32 %v4338_v41, %v13028_v12  ;;  %v10747_v56 = vmax.f32 %v4338_v41, %v10286_v51  ;;  %v4386_v48 = vrot.slane %v10720_v30, 6  ;;  %v10751_v11 = vmax.f32 %v10726_v25, %v4384_v2 }
 0x325   :  { %13026 = vst [vmem:[#allocation23_spill] sm:$0xff] %v10737_v5  ;;  %13027 = vst [vmem:[#allocation16_spill] sm:$0xff] %v10743_v1  ;;  %v10754_v23 = vmax.f32 %v4339_v16, %v13029_v7  ;;  %v10759_v6 = vmax.f32 %v4339_v16, %v7910_v32  ;;  %v12804_v8 = vrot.slane %v10737_v5, 7  ;;  %v10765_v51 = vmax.f32 %v10720_v30, %v12805_v42 }
 0x326   :  { %v10768_v45 = vmax.f32 %v4340_v9, %v13033_v44  ;;  %v10773_v0 = vmax.f32 %v4340_v9, %v7911_v37  ;;  %v4387_v49 = vrot.slane %v10737_v5, 6  ;;  %v10777_v47 = vmax.f32 %v10743_v1, %v4385_v50 }
 0x327   :  { %13030 = vst [vmem:[#allocation24_spill] sm:$0xff] %v10754_v23  ;;  %13031 = vst [vmem:[#allocation8_spill] sm:$0xff] %v10759_v6  ;;  %v12803_v34 = vrot.slane %v10759_v6, 7  ;;  %v12802_v39 = vrot.slane %v10754_v23, 7  ;;  %v10784_v15 = vmax.f32 %v10737_v5, %v12804_v8  ;;  %v4388_v22 = vrot.slane %v10759_v6, 6 }
 0x328   :  { %13032 = vst [vmem:[#allocation27_spill] sm:$0xff] %v10765_v51  ;;  %v4389_v17 = vrot.slane %v10754_v23, 6  ;;  %v10789_v55 = vmax.f32 %v10765_v51, %v4386_v48  ;;  %v4405_v18 = vrot.slane %v10695_v61, 5  ;;  %v4406_v60 = vrot.slane %v10706_v3, 5  ;;  %v3175_v51 = vld [vmem:[%s12680_s7 + $0x1e0] sm:$0xff] }
 0x329   :  { %13034 = vst [vmem:[#allocation35_spill] sm:$0xff] %v10784_v15  ;;  %v10796_v62 = vmax.f32 %v10759_v6, %v12803_v34  ;;  %v10801_v40 = vmax.f32 %v10754_v23, %v12802_v39  ;;  %v10804_v21 = vmax.f32 %v10784_v15, %v4387_v49  ;;  %v4407_v54 = vrot.slane %v10720_v30, 5  ;;  %v3173_v15 = vld [vmem:[%s12680_s7 + $0x1d0] sm:$0xff] }
 0x32a   :  { %13035 = vst [vmem:[#allocation13_spill] sm:$0xff] %v10789_v55  ;;  %v7561_v2 = vpop.f32.mrf.mxu0  ;;  %v4408_v58 = vrot.slane %v10737_v5, 5  ;;  %v4409_v36 = vrot.slane %v10759_v6, 5  ;;  %v4410_v33 = vrot.slane %v10754_v23, 5  ;;  %v10811_v38 = vmax.f32 %v10733_v35, %v4404_v13 }
 0x32b   :  { %13036 = vst [vmem:[#allocation37_spill] sm:$0xff] %v10796_v62  ;;  %13037 = vst [vmem:[#allocation18_spill] sm:$0xff] %v10801_v40  ;;  %v10814_v46 = vmax.f32 %v10796_v62, %v4388_v22  ;;  %v10817_v41 = vmax.f32 %v10801_v40, %v4389_v17  ;;  %v10820_v50 = vmax.f32 %v10751_v11, %v4405_v18  ;;  %v4425_v13 = vrot.slane %v10690_v31, 4 }
 0x32c   :  { %13038 = vst [vmem:[#allocation40_spill] sm:$0xff] %v10804_v21  ;;  %v10823_v28 = vmax.f32 %v10777_v47, %v4406_v60  ;;  %v7562_v16 = vpop.f32.mrf.mxu0  ;;  %v10826_v12 = vmax.f32 %v10789_v55, %v4407_v54  ;;  %v10829_v9 = vmax.f32 %v10804_v21, %v4408_v58  ;;  %v4426_v48 = vrot.slane %v10695_v61, 4 }
 0x32d   :  { %13039 = vst [vmem:[#allocation36_spill] sm:$0xff] %v10814_v46  ;;  %13040 = vst [vmem:[#allocation41_spill] sm:$0xff] %v10817_v41  ;;  %v7563_v7 = vadd.f32 %v7562_v16, %v7561_v2  ;;  %v10834_v32 = vmax.f32 %v10814_v46, %v4409_v36  ;;  %v10837_v44 = vmax.f32 %v10817_v41, %v4410_v33  ;;  %v4427_v37 = vrot.slane %v10706_v3, 4  ;;  %v3165_v41 = vld [vmem:[%s12680_s7 + $0x190] sm:$0xff]  ;;  %v3167_v46 = vld [vmem:[%s12680_s7 + $0x1a0] sm:$0xff] }
 0x32e   :  { %v4428_v49 = vrot.slane %v10720_v30, 4  ;;  %v4429_v22 = vrot.slane %v10737_v5, 4  ;;  %v4430_v17 = vrot.slane %v10759_v6, 4  ;;  %v4431_v18 = vrot.slane %v10754_v23, 4 }
 0x32f   :  { %v3040_v60 = vadd.f32 %v7563_v7, %v10670_v19  ;;  %v10846_v54 = vmax.f32 %v10811_v38, %v4425_v13  ;;  %v10849_v2 = vmax.f32 %v10820_v50, %v4426_v48  ;;  %v10852_v58 = vmax.f32 %v10823_v28, %v4427_v37 }
 0x330   :  { %v10855_v36 = vmax.f32 %v10826_v12, %v4428_v49  ;;  %v10858_v33 = vmax.f32 %v10829_v9, %v4429_v22  ;;  %v10861_v16 = vmax.f32 %v10834_v32, %v4430_v17  ;;  %v10864_v19 = vmax.f32 %v10837_v44, %v4431_v18 }
 0x331   :  { %v3110_v13 = vadd.f32 %v10631_v29, %v3040_v60  ;;  %v4446_v48 = vrot.slane %v10690_v31, 3  ;;  %v4447_v7 = vrot.slane %v10695_v61, 3  ;;  %v4448_v37 = vrot.slane %v10706_v3, 3 }
 0x332   :  { %v4449_v49 = vrot.slane %v10720_v30, 3  ;;  %v4450_v39 = vrot.slane %v10737_v5, 3  ;;  %v4451_v22 = vrot.slane %v10759_v6, 3  ;;  %v4452_v17 = vrot.slane %v10754_v23, 3 }
 0x333   :  { %v3113_v34 = vmax.f32 %v3110_v13, 0.0  ;;  %v10875_v18 = vmax.f32 %v10846_v54, %v4446_v48  ;;  %v10878_v29 = vmax.f32 %v10849_v2, %v4447_v7  ;;  %v10881_v60 = vmax.f32 %v10852_v58, %v4448_v37  ;;  %v13041_v48 = vld [vmem:[#allocation34_spill] sm:$0xff]  ;;  %v3184_v37 = vld [vmem:[%s12680_s7 + $0x228] sm:$0xff] }
 0x334   :  { %v10884_v8 = vmax.f32 %v10855_v36, %v4449_v49  ;;  %v10887_v42 = vmax.f32 %v10858_v33, %v4450_v39  ;;  %v10890_v43 = vmax.f32 %v10861_v16, %v4451_v22  ;;  %v10893_v13 = vmax.f32 %v10864_v19, %v4452_v17  ;;  %v3182_v7 = vld [vmem:[%s12680_s7 + $0x218] sm:$0xff] }
 0x335   :  { %v10896_v26 = vadd.f32 %v3113_v34, %v13041_v48  ;;  %v4467_v39 = vrot.slane %v10690_v31, 1  ;;  %v4468_v49 = vrot.slane %v10695_v61, 1  ;;  %v4469_v22 = vrot.slane %v10706_v3, 1  ;;  %v3174_v17 = vld [vmem:[%s12680_s7 + $0x1d8] sm:$0xff]  ;;  %v3176_v34 = vld [vmem:[%s12680_s7 + $0x1e8] sm:$0xff] }
 0x336   :  { %v4470_v48 = vrot.slane %v10720_v30, 1  ;;  %v4471_v63 = vrot.slane %v10737_v5, 1  ;;  %v4472_v40 = vrot.slane %v10759_v6, 1  ;;  %v4473_v62 = vrot.slane %v10754_v23, 1 }
 0x337   :  { %7345 = vmatmul.mubr.msk.f32.vlgmr.msra.gmra.mxu1 %vm13042_vm2, %v10896_v26  ;;  %7346 = vmatmul.mubr.msk.f32.vlgmr.msra.gmra.mxu0 %vm13043_vm12, %v10896_v26  ;;  %v4481_v1 = vmax.f32 %v10690_v31, %v4467_v39  ;;  %v4482_v25 = vmax.f32 %v10695_v61, %v4468_v49  ;;  %v4483_v20 = vmax.f32 %v10706_v3, %v4469_v22  ;;  %v4495_v27 = vrot.slane %v10693_v4, 2 }
 0x338   :  { %3349 = vmatpush1.msra.mxu1 %v3182_v7  ;;  %3420 = vmatpush1.msra.mxu0 %v3184_v37  ;;  %v4484_v21 = vmax.f32 %v10720_v30, %v4470_v48  ;;  %v4485_v39 = vmax.f32 %v10737_v5, %v4471_v63  ;;  %v4486_v49 = vmax.f32 %v10759_v6, %v4472_v40  ;;  %v4496_v22 = vrot.slane %v10701_v24, 2  ;;  %v3164_v7 = vld [vmem:[%s12680_s7 + $0x188] sm:$0xff]  ;;  %v3166_v37 = vld [vmem:[%s12680_s7 + $0x198] sm:$0xff] }
 0x339   :  { %3350 = vmatprep.subr.mxu1 %v3174_v17  ;;  %3421 = vmatprep.subr.mxu0 %v3176_v34  ;;  %v4487_v3 = vmax.f32 %v10754_v23, %v4473_v62  ;;  %v4497_v48 = vrot.slane %v10711_v10, 2  ;;  %v4498_v63 = vrot.slane %v10729_v57, 2  ;;  %v4499_v40 = vrot.slane %v10747_v56, 2  ;;  %v3156_v17 = vld [vmem:[%s12680_s7 + $0x148] sm:$0xff]  ;;  %v3158_v34 = vld [vmem:[%s12680_s7 + $0x158] sm:$0xff] }
 0x33a   :  { %3351 = vmatpush1.msra.mxu1 %v3173_v15  ;;  %3422 = vmatpush1.msra.mxu0 %v3175_v51  ;;  %v4500_v6 = vrot.slane %v10773_v0, 2  ;;  %v4501_v62 = vrot.slane %v10768_v45, 2  ;;  %v4509_v23 = vmax.f32 %v4481_v1, %v4495_v27  ;;  %v4510_v5 = vmax.f32 %v4482_v25, %v4496_v22  ;;  %v3155_v51 = vld [vmem:[%s12680_s7 + $0x140] sm:$0xff]  ;;  %v3157_v15 = vld [vmem:[%s12680_s7 + $0x150] sm:$0xff] }
 0x33b   :  { %3352 = vmatprep.subr.mxu1 %v3165_v41  ;;  %3423 = vmatprep.subr.mxu0 %v3167_v46  ;;  %v4511_v30 = vmax.f32 %v4483_v20, %v4497_v48  ;;  %v4512_v61 = vmax.f32 %v4484_v21, %v4498_v63  ;;  %v4513_v31 = vmax.f32 %v4485_v39, %v4499_v40  ;;  %v4516_v55 = vrot.slane %v10693_v4, 3  ;;  %v3147_v27 = vld [vmem:[%s12680_s7 + $0x100] sm:$0xff]  ;;  %v3149_v25 = vld [vmem:[%s12680_s7 + $0x110] sm:$0xff]  ;;  %v3146_v21 = vld [vmem:[%s12680_s7 + $0xf8] sm:$0xff] }
 0x33c   :  { %3353 = vmatpush1.msra.mxu1 %v3164_v7  ;;  %3424 = vmatpush1.msra.mxu0 %v3166_v37  ;;  %v4514_v1 = vmax.f32 %v4486_v49, %v4500_v6  ;;  %v4515_v46 = vmax.f32 %v4487_v3, %v4501_v62  ;;  %v4517_v41 = vrot.slane %v10701_v24, 3  ;;  %v4518_v20 = vrot.slane %v10711_v10, 3  ;;  %v3148_v39 = vld [vmem:[%s12680_s7 + $0x108] sm:$0xff]  ;;  %v3138_v49 = vld [vmem:[%s12680_s7 + $0xb8] sm:$0xff]  ;;  %v3139_v62 = vld [vmem:[%s12680_s7 + $0xc0] sm:$0xff] }
 0x33d   :  { %3354 = vmatprep.subr.mxu1 %v3156_v17  ;;  %3425 = vmatprep.subr.mxu0 %v3158_v34  ;;  %v4519_v22 = vrot.slane %v10729_v57, 3  ;;  %v4520_v7 = vrot.slane %v10747_v56, 3  ;;  %v4521_v3 = vrot.slane %v10773_v0, 3  ;;  %v4522_v6 = vrot.slane %v10768_v45, 3  ;;  %v3140_v37 = vld [vmem:[%s12680_s7 + $0xc8] sm:$0xff]  ;;  %v3137_v34 = vld [vmem:[%s12680_s7 + $0xb0] sm:$0xff] }
 0x33e   :  { %3355 = vmatpush1.msra.mxu1 %v3155_v51  ;;  %3426 = vmatpush1.msra.mxu0 %v3157_v15  ;;  %v4530_v48 = vmax.f32 %v4509_v23, %v4516_v55  ;;  %v10990_v63 = vmax.f32 %v4510_v5, %v4517_v41  ;;  %v10992_v40 = vmax.f32 %v4511_v30, %v4518_v20  ;;  %v4537_v17 = vrot.slane %v10693_v4, 4  ;;  %v3129_v23 = vld [vmem:[%s12680_s7 + $0x70] sm:$0xff]  ;;  %v3131_v55 = vld [vmem:[%s12680_s7 + $0x80] sm:$0xff] }
 0x33f   :  { %3356 = vmatprep.subr.mxu1 %v3147_v27  ;;  %3427 = vmatprep.subr.mxu0 %v3149_v25  ;;  %v11001_v51 = vmax.f32 %v4512_v61, %v4519_v22  ;;  %v11003_v15 = vmax.f32 %v4513_v31, %v4520_v7  ;;  %v11005_v5 = vmax.f32 %v4514_v1, %v4521_v3  ;;  %v4656_v30 = vrot.slane %v10875_v18, 7  ;;  %v3128_v18 = vld [vmem:[%s12680_s7 + $0x68] sm:$0xff]  ;;  %v3130_v1 = vld [vmem:[%s12680_s7 + $0x78] sm:$0xff] }
 0x340   :  { %3357 = vmatpush1.msra.mxu1 %v3146_v21  ;;  %3428 = vmatpush1.msra.mxu0 %v3148_v39  ;;  %v11014_v27 = vmax.f32 %v4515_v46, %v4522_v6  ;;  %v11016_v61 = vmax.f32 %v4530_v48, %v4537_v17  ;;  %v4657_v31 = vrot.slane %v10878_v29, 7  ;;  %v4658_v25 = vrot.slane %v10881_v60, 7  ;;  %v3120_v60 = vld [vmem:[%s12680_s7 + $0x28] sm:$0xff]  ;;  %v3122_v21 = vld [vmem:[%s12680_s7 + $0x38] sm:$0xff] }
 0x341   :  { %3358 = vmatprep.subr.mxu1 %v3138_v49  ;;  %3429 = vmatprep.subr.mxu0 %v3140_v37  ;;  %v4659_v41 = vrot.slane %v10884_v8, 7  ;;  %v4660_v46 = vrot.slane %v10887_v42, 7  ;;  %v4661_v20 = vrot.slane %v10890_v43, 7  ;;  %v4662_v29 = vrot.slane %v10893_v13, 7  ;;  %v3119_v43 = vld [vmem:[%s12680_s7 + $0x20] sm:$0xff] }
 0x342   :  { %3359 = vmatpush1.msra.mxu1 %v3137_v34  ;;  %3430 = vmatpush1.msra.mxu0 %v3139_v62  ;;  %v4670_v39 = vmax.f32 %v4530_v48, %v4656_v30  ;;  %v4671_v22 = vmax.f32 %v10990_v63, %v4657_v31  ;;  %v4672_v8 = vmax.f32 %v10992_v40, %v4658_v25  ;;  %v4684_v42 = vrot.slane %v10846_v54, 7  ;;  %v3121_v54 = vld [vmem:[%s12680_s7 + $0x30] sm:$0xff] }
 0x343   :  { %3360 = vmatprep.subr.mxu1 %v3129_v23  ;;  %3431 = vmatprep.subr.mxu0 %v3131_v55  ;;  %v4673_v13 = vmax.f32 %v11001_v51, %v4659_v41  ;;  %v4674_v7 = vmax.f32 %v11003_v15, %v4660_v46  ;;  %v4675_v3 = vmax.f32 %v11005_v5, %v4661_v20  ;;  %v4538_v6 = vrot.slane %v10701_v24, 4  ;;  %v3186_v41 = vld [vmem:[%s12680_s7 + $0x238] sm:$0xff] }
 0x344   :  { %3361 = vmatpush1.msra.mxu1 %v3128_v18  ;;  %3432 = vmatpush1.msra.mxu0 %v3130_v1  ;;  %v4676_v49 = vmax.f32 %v11014_v27, %v4662_v29  ;;  %v4698_v37 = vmax.f32 %v11016_v61, %v4684_v42  ;;  %v4803_v48 = vrot.slane %v4670_v39, 6  ;;  %v4804_v17 = vrot.slane %v4671_v22, 5  ;;  %v4983_v46 = vld [vmem:[%s12674_s1 + $0x38] sm:$0xff] }
 0x345   :  { %3362 = vmatprep.subr.mxu1 %v3120_v60  ;;  %3433 = vmatprep.subr.mxu0 %v3122_v21  ;;  %v4806_v34 = vrot.slane %v4672_v8, 4  ;;  %v4808_v62 = vrot.slane %v4673_v13, 3  ;;  %v4810_v30 = vrot.slane %v4674_v7, 2  ;;  %v4812_v23 = vrot.slane %v4675_v3, 1  ;;  %v4982_v13 = vld [vmem:[%s12674_s1 + $0x30] sm:$0xff] }
 0x346   :  { %3363 = vmatpush1.msra.mxu1 %v3119_v43  ;;  %v13044_v55 = vmov 0.0   ;;  %v4805_v31 = vsel %vm258_vm1, %v4804_v17, %v4803_v48  ;;  %v4823_v25 = vrot.slane %v4698_v37, 7  ;;  %v4539_v18 = vrot.slane %v10711_v10, 4  ;;  %3434 = vmatpush1.msra.mxu0 %v3121_v54  ;;  %v3177_v43 = vld [vmem:[%s12680_s7 + $0x1f0] sm:$0xff] }
 0x347   :  { %3396 = vmatprep.mubr.f32.mxu1 %v13044_v55  ;;  %v4540_v1 = vrot.slane %v10729_v57, 4  ;;  %3467 = vmatprep.mubr.f32.mxu0 %v13044_v55  ;;  %vm13045_vm5 = vcmask 1042434   ;;  %v4541_v29 = vrot.slane %v10747_v56, 4  ;;  %v4542_v60 = vrot.slane %v10773_v0, 4 }
 0x348   :  { %v4807_v20 = vsel %vm13045_vm5, %v4806_v34, %v4805_v31  ;;  %v4543_v21 = vrot.slane %v10768_v45, 4  ;;  %7347 = vmatmul.mubr.msk.f32.vlgmr.msra.gmra.mxu1 %vm13046_vm13, %v10896_v26  ;;  %7348 = vmatmul.mubr.msk.f32.vlgmr.msra.gmra.mxu0 %vm13047_vm14, %v10896_v26  ;;  %vm13048_vm2 = vcmask 1043459   ;;  %v4552_v22 = vmax.f32 %v10990_v63, %v4538_v6 }
 0x349   :  { %v4809_v39 = vsel %vm13048_vm2, %v4808_v62, %v4807_v20  ;;  %v11073_v8 = vmax.f32 %v10992_v40, %v4539_v18  ;;  %v4558_v42 = vrot.slane %v10693_v4, 5  ;;  %7803 = vmatprep.subr.mxu1 %v13044_v55  ;;  %7822 = vmatprep.subr.mxu0 %v13044_v55  ;;  %v11086_v63 = vmax.f32 %v11001_v51, %v4540_v1  ;;  %v3168_v51 = vld [vmem:[%s12680_s7 + $0x1a8] sm:$0xff]  ;;  %v3150_v20 = vld [vmem:[%s12680_s7 + $0x118] sm:$0xff] }
 0x34a   :  { %v4811_v7 = vsel %vm268_vm3, %v4810_v30, %v4809_v39  ;;  %v11089_v40 = vmax.f32 %v11003_v15, %v4541_v29  ;;  %v4559_v3 = vrot.slane %v10701_v24, 5  ;;  %7804 = vmatpush3.msra.mxu1 %v3186_v41  ;;  %7823 = vmatpush3.msra.mxu0 %v4983_v46  ;;  %vm13049_vm12 = vcmask 1045509   ;;  %v4981_v15 = vld [vmem:[%s12674_s1 + $0x28] sm:$0xff] }
 0x34b   :  { %v4813_v6 = vsel %vm13049_vm12, %v4812_v23, %v4811_v7  ;;  %v11094_v54 = vmax.f32 %v11005_v5, %v4542_v60  ;;  %v11097_v37 = vmax.f32 %v11014_v27, %v4543_v21  ;;  %v4579_v48 = vrot.slane %v10693_v4, 6  ;;  %7805 = vmatprep.subr.mxu1 %v13044_v55  ;;  %7824 = vmatprep.subr.mxu0 %v13044_v55 }
 0x34c   :  { %vm13050_vm5 = vcmask 1046534   ;;  %v4572_v17 = vmax.f32 %v11016_v61, %v4558_v42  ;;  %v11110_v27 = vmax.f32 %v4552_v22, %v4559_v3  ;;  %v4600_v34 = vrot.slane %v10693_v4, 7  ;;  %7806 = vmatpush3.msra.mxu1 %v3177_v43  ;;  %7825 = vmatpush3.msra.mxu0 %v4982_v13  ;;  %v3159_v61 = vld [vmem:[%s12680_s7 + $0x160] sm:$0xff] }
 0x34d   :  { %v4814_v5 = vsel %vm13050_vm5, %v4676_v49, %v4813_v6  ;;  %vm13051_vm13 = vcmask 1046528   ;;  %v4685_v30 = vrot.slane %v10849_v2, 7  ;;  %v4686_v23 = vrot.slane %v10852_v58, 7  ;;  %7807 = vmatprep.subr.mxu1 %v13044_v55  ;;  %7826 = vmatprep.subr.mxu0 %v13044_v55  ;;  %v4980_v49 = vld [vmem:[%s12674_s1 + $0x20] sm:$0xff] }
 0x34e   :  { %v11114_v62 = vsel %vm13051_vm13, %v4814_v5, %v4823_v25  ;;  %v4687_v31 = vrot.slane %v10855_v36, 7  ;;  %v11128_v18 = vmax.f32 %v4572_v17, %v4579_v48  ;;  %v4688_v2 = vrot.slane %v10858_v33, 7  ;;  %7808 = vmatpush3.msra.mxu1 %v3168_v51  ;;  %7827 = vmatpush3.msra.mxu0 %v4981_v15  ;;  %v4979_v33 = vld [vmem:[%s12674_s1 + $0x18] sm:$0xff]  ;;  %v3132_v15 = vld [vmem:[%s12680_s7 + $0x88] sm:$0xff] }
 0x34f   :  { %v4960_v25 = vrot.slane %v11114_v62, 6  ;;  %v4689_v58 = vrot.slane %v10861_v16, 7  ;;  %v4690_v36 = vrot.slane %v10864_v19, 7  ;;  %v4699_v1 = vmax.f32 %v4552_v22, %v4685_v30  ;;  %7809 = vmatprep.subr.mxu1 %v13044_v55  ;;  %7828 = vmatprep.subr.mxu0 %v13044_v55  ;;  %v4977_v5 = vld [vmem:[%s12674_s1 + $0x8] sm:$0xff] }
 0x350   :  { %v4700_v41 = vmax.f32 %v11073_v8, %v4686_v23  ;;  %v4701_v46 = vmax.f32 %v11086_v63, %v4687_v31  ;;  %vm13052_vm14 = vcmask 1041408   ;;  %v11150_v19 = vmax.f32 %v11128_v18, %v4600_v34  ;;  %7810 = vmatpush3.msra.mxu1 %v3159_v61  ;;  %7829 = vmatpush3.msra.mxu0 %v4980_v49 }
 0x351   :  { %v11147_v16 = vsel %vm13052_vm14, %v10698_v59, %v4960_v25  ;;  %v4702_v29 = vmax.f32 %v11089_v40, %v4688_v2  ;;  %v4712_v60 = vrot.slane %v10811_v38, 7  ;;  %v4703_v21 = vmax.f32 %v11094_v54, %v4689_v58  ;;  %7811 = vmatprep.subr.mxu1 %v13044_v55  ;;  %7830 = vmatprep.subr.mxu0 %v13044_v55  ;;  %v3141_v59 = vld [vmem:[%s12680_s7 + $0xd0] sm:$0xff]  ;;  %v3123_v58 = vld [vmem:[%s12680_s7 + $0x40] sm:$0xff] }
 0x352   :  { %v4704_v39 = vmax.f32 %v11097_v37, %v4690_v36  ;;  %v4713_v22 = vrot.slane %v10820_v50, 7  ;;  %v4824_v42 = vrot.slane %v4699_v1, 6  ;;  %v4978_v38 = vld [vmem:[%s12674_s1 + $0x10] sm:$0xff]  ;;  %v11167_v43 = vmax.f32 %v11150_v19, %v10693_v4  ;;  %7812 = vmatpush3.msra.mxu1 %v3150_v20  ;;  %7831 = vmatpush3.msra.mxu0 %v4979_v33  ;;  %v4976_v20 = vld [vmem:[%s12674_s1] sm:$0xff] }
 0x353   :  { %v4726_v13 = vmax.f32 %v4572_v17, %v4712_v60  ;;  %v4825_v7 = vrot.slane %v4700_v41, 5  ;;  %v4827_v50 = vrot.slane %v4701_v46, 4  ;;  %v4829_v6 = vrot.slane %v4702_v29, 3  ;;  %7813 = vmatprep.subr.mxu1 %v13044_v55  ;;  %7832 = vmatprep.subr.mxu0 %v13044_v55 }
 0x354   :  { %v4727_v3 = vmax.f32 %v11110_v27, %v4713_v22  ;;  %v4831_v48 = vrot.slane %v4703_v21, 2  ;;  %v4833_v51 = vrot.slane %v4704_v39, 1  ;;  %v4560_v34 = vrot.slane %v10711_v10, 5  ;;  %7814 = vmatpush3.msra.mxu1 %v3141_v59  ;;  %7833 = vmatpush3.msra.mxu0 %v4978_v38 }
 0x355   :  { %v4826_v17 = vsel %vm258_vm1, %v4825_v7, %v4824_v42  ;;  %v4561_v30 = vrot.slane %v10729_v57, 5  ;;  %v4562_v23 = vrot.slane %v10747_v56, 5  ;;  %vm13053_vm2 = vcmask 1042434   ;;  %7815 = vmatprep.subr.mxu1 %v13044_v55  ;;  %7834 = vmatprep.subr.mxu0 %v13044_v55 }
 0x356   :  { %v4828_v31 = vsel %vm13053_vm2, %v4827_v50, %v4826_v17  ;;  %v4844_v61 = vrot.slane %v4727_v3, 7  ;;  %v4563_v49 = vrot.slane %v10773_v0, 5  ;;  %v4564_v2 = vrot.slane %v10768_v45, 5  ;;  %7816 = vmatpush3.msra.mxu1 %v3132_v15  ;;  %7835 = vmatpush3.msra.mxu0 %v4977_v5 }
 0x357   :  { %vm13054_vm12 = vcmask 1043459   ;;  %v4574_v1 = vmax.f32 %v11073_v8, %v4560_v34  ;;  %v11193_v41 = vmax.f32 %v11086_v63, %v4561_v30  ;;  %v4580_v46 = vrot.slane %v10701_v24, 6  ;;  %7817 = vmatprep.subr.mxu1 %v13044_v55  ;;  %7836 = vmatprep.subr.mxu0 %v13044_v55 }
 0x358   :  { %v4830_v36 = vsel %vm13054_vm12, %v4829_v6, %v4828_v31  ;;  %vm13055_vm5 = vcmask 1047559   ;;  %v4576_v60 = vmax.f32 %v11089_v40, %v4562_v23  ;;  %v4581_v21 = vrot.slane %v10711_v10, 6  ;;  %7818 = vmatpush3.msra.mxu1 %v3123_v58  ;;  %7819 = vmatprep.mubr.msk.f32.mxu1 %vm7935_vm0, %v13044_v55 }
 0x359   :  { %v4832_v33 = vsel %vm268_vm3, %v4831_v48, %v4830_v36  ;;  %v4845_v29 = vsel %vm13055_vm5, %v4844_v61, %v4726_v13  ;;  %vm13056_vm13 = vcmask 1045509   ;;  %v4577_v63 = vmax.f32 %v11094_v54, %v4563_v49  ;;  %7837 = vmatpush3.msra.mxu0 %v4976_v20  ;;  %7838 = vmatprep.mubr.msk.f32.mxu0 %vm7935_vm0, %v13044_v55 }
 0x35a   :  { %v4834_v8 = vsel %vm13056_vm13, %v4833_v51, %v4832_v33  ;;  %v4578_v39 = vmax.f32 %v11097_v37, %v4564_v2  ;;  %v4601_v22 = vrot.slane %v10701_v24, 7  ;;  %vm13057_vm14 = vcmask 1045504   ;;  %5259 = vmatprep.subr.mxu1 %v13044_v55 }
 0x35b   :  { %v11212_v40 = vsel %vm13057_vm14, %v4834_v8, %v4845_v29  ;;  %v4594_v42 = vmax.f32 %v11110_v27, %v4580_v46  ;;  %v4595_v59 = vmax.f32 %v4574_v1, %v4581_v21  ;;  %v4714_v38 = vrot.slane %v10823_v28, 7 }
 0x35c   :  { %v4961_v54 = vrot.slane %v11212_v40, 6  ;;  %v4715_v37 = vrot.slane %v10826_v12, 7  ;;  %v4716_v13 = vrot.slane %v10829_v9, 7  ;;  %v4717_v7 = vrot.slane %v10834_v32, 7 }
 0x35d   :  { %vm13058_vm2 = vcmask 523264   ;;  %v11226_v27 = vmax.f32 %v4594_v42, %v4601_v22  ;;  %v4718_v28 = vrot.slane %v10837_v44, 7  ;;  %v4728_v50 = vmax.f32 %v4574_v1, %v4714_v38  ;;  %v13069_v22 = vld [vmem:[#allocation40_spill] sm:$0xff] }
 0x35e   :  { %7820 = vmatmul.mubr.msk.f32.vlgmr.msra.gmra.mxu1 %vm13058_vm2, %v10896_v26  ;;  %vm13059_vm12 = vmmov %vm13058_vm2  ;;  %v4740_v3 = vrot.slane %v10733_v35, 7  ;;  %vm13060_vm5 = vcmask 1041408   ;;  %v4729_v26 = vmax.f32 %v11193_v41, %v4715_v37  ;;  %v4730_v9 = vmax.f32 %v4576_v60, %v4716_v13 }
 0x35f   :  { %7839 = vmatmul.mubr.msk.f32.vlgmr.msra.gmra.mxu0 %vm13059_vm12, %v10675_v52  ;;  %v11235_v12 = vsel %vm13060_vm5, %v4960_v25, %v4961_v54  ;;  %v4731_v32 = vmax.f32 %v4577_v63, %v4717_v7  ;;  %v11240_v52 = vmax.f32 %v11226_v27, %v10701_v24  ;;  %v4732_v44 = vmax.f32 %v4578_v39, %v4718_v28  ;;  %vm13061_vm13 = vmmov %vm13058_vm2  ;;  %v13072_v28 = vld [vmem:[#allocation20_spill] sm:$0xff] }
 0x360   :  { %7841 = vmatprep.mubr.msk.f32.mxu0 %vm7935_vm0, %v13044_v55  ;;  %v4741_v6 = vrot.slane %v10751_v11, 7  ;;  %v4742_v35 = vrot.slane %v10777_v47, 7  ;;  %v4754_v62 = vmax.f32 %v11128_v18, %v4740_v3  ;;  %v4846_v48 = vrot.slane %v4728_v50, 6  ;;  %vm13065_vm5 = vmmov %vm13061_vm13  ;;  %v13073_v3 = vld [vmem:[#allocation19_spill] sm:$0xff] }
 0x361   :  { %v4847_v25 = vrot.slane %v4729_v26, 5  ;;  %v4849_v51 = vrot.slane %v4730_v9, 4  ;;  %v4851_v17 = vrot.slane %v4731_v32, 3  ;;  %v4853_v34 = vrot.slane %v4732_v44, 2 }
 0x362   :  { %v4755_v15 = vmax.f32 %v4594_v42, %v4741_v6  ;;  %v4756_v5 = vmax.f32 %v4595_v59, %v4742_v35  ;;  %v4864_v47 = vrot.slane %v4754_v62, 1  ;;  %v4582_v30 = vrot.slane %v10729_v57, 6  ;;  %v13070_v42 = vld [vmem:[#allocation36_spill] sm:$0xff] }
 0x363   :  { %7842 = vmatmul.mubr.msk.f32.gmra.mxu0 %vm13061_vm13, %v10680_v14  ;;  %v4848_v11 = vsel %vm258_vm1, %v4847_v25, %v4846_v48  ;;  %v4583_v18 = vrot.slane %v10747_v56, 6  ;;  %vm13062_vm14 = vcmask 1042434   ;;  %v4584_v61 = vrot.slane %v10773_v0, 6  ;;  %v13077_v62 = vld [vmem:[#allocation16_spill] sm:$0xff]  ;;  %v13078_v25 = vld [vmem:[#allocation27_spill] sm:$0xff] }
 0x364   :  { %7844 = vmatprep.mubr.msk.f32.mxu0 %vm7935_vm0, %v13044_v55  ;;  %v4850_v23 = vsel %vm13062_vm14, %v4849_v51, %v4848_v11  ;;  %v4866_v31 = vrot.slane %v4756_v5, 7  ;;  %v4585_v14 = vrot.slane %v10768_v45, 6  ;;  %vm13063_vm2 = vcmask 1043459  }
 0x365   :  { %v4852_v49 = vsel %vm13063_vm2, %v4851_v17, %v4850_v23  ;;  %vm13064_vm12 = vcmask 1046534   ;;  %v4596_v58 = vmax.f32 %v11193_v41, %v4582_v30  ;;  %v4597_v36 = vmax.f32 %v4576_v60, %v4583_v18  ;;  %v13068_v60 = vld [vmem:[#allocation13_spill] sm:$0xff]  ;;  %vm13074_vm2 = vmmov %vm13065_vm5 }
 0x366   :  { %v4865_v2 = vsel %vm13064_vm12, %v4755_v15, %v4864_v47  ;;  %v4854_v1 = vsel %vm268_vm3, %v4853_v34, %v4852_v49  ;;  %vm13066_vm13 = vcmask 1047559   ;;  %v4598_v20 = vmax.f32 %v4577_v63, %v4584_v61  ;;  %v13071_v63 = vld [vmem:[#allocation41_spill] sm:$0xff] }
 0x367   :  { %7845 = vmatmul.mubr.msk.f32.gmra.mxu0 %vm13065_vm5, %v10684_v53  ;;  %v4867_v46 = vsel %vm13066_vm13, %v4866_v31, %v4865_v2  ;;  %v4599_v33 = vmax.f32 %v4578_v39, %v4585_v14  ;;  %vm13067_vm14 = vcmask 1044480   ;;  %v4602_v21 = vrot.slane %v10711_v10, 7  ;;  %vm13079_vm5 = vmmov %vm13074_vm2 }
 0x368   :  { %7847 = vmatprep.mubr.msk.f32.mxu0 %vm7935_vm0, %v13044_v55  ;;  %v11266_v29 = vsel %vm13067_vm14, %v4854_v1, %v4867_v46  ;;  %v4603_v41 = vrot.slane %v10729_v57, 7  ;;  %v4743_v8 = vrot.slane %v13068_v60, 7  ;;  %v4744_v40 = vrot.slane %v13069_v22, 7 }
 0x369   :  { %v4963_v53 = vrot.slane %v11266_v29, 6  ;;  %v4745_v38 = vrot.slane %v13070_v42, 7  ;;  %v4746_v39 = vrot.slane %v13071_v63, 7  ;;  %v4616_v37 = vmax.f32 %v4595_v59, %v4602_v21  ;;  %v13076_v59 = vld [vmem:[#allocation10_spill] sm:$0xff] }
 0x36a   :  { %v4617_v13 = vmax.f32 %v4596_v58, %v4603_v41  ;;  %v4757_v7 = vmax.f32 %v4596_v58, %v4743_v8  ;;  %v4768_v50 = vrot.slane %v13072_v28, 7  ;;  %vm13075_vm12 = vcmask 1041408   ;;  %v13083_v41 = vld [vmem:[#allocation35_spill] sm:$0xff]  ;;  %v13084_v8 = vld [vmem:[#allocation37_spill] sm:$0xff] }
 0x36b   :  { %7848 = vmatmul.mubr.msk.f32.gmra.mxu0 %vm13074_vm2, %v13073_v3  ;;  %v4964_v26 = vsel %vm13075_vm12, %v4961_v54, %v4963_v53  ;;  %v4758_v9 = vmax.f32 %v4597_v36, %v4744_v40  ;;  %v4759_v32 = vmax.f32 %v4598_v20, %v4745_v38  ;;  %v4760_v44 = vmax.f32 %v4599_v33, %v4746_v39  ;;  %vm13085_vm12 = vmmov %vm13079_vm5  ;;  %v13087_v38 = vld [vmem:[#allocation18_spill] sm:$0xff] }
 0x36c   :  { %7850 = vmatprep.mubr.msk.f32.mxu0 %vm7935_vm0, %v13044_v55  ;;  %v11284_v6 = vmax.f32 %v4616_v37, %v10711_v10  ;;  %v4769_v35 = vrot.slane %v13076_v59, 7  ;;  %v4770_v48 = vrot.slane %v13077_v62, 7  ;;  %v4771_v51 = vrot.slane %v13078_v25, 7  ;;  %v13096_v59 = vld [vmem:[#allocation39_spill] sm:$0xff] }
 0x36d   :  { %v4782_v15 = vmax.f32 %v11150_v19, %v4768_v50  ;;  %v4868_v5 = vrot.slane %v4757_v7, 6  ;;  %v4869_v17 = vrot.slane %v4758_v9, 5  ;;  %v4871_v54 = vrot.slane %v4759_v32, 4  ;;  %v13091_v7 = vld [vmem:[#allocation28_spill] sm:$0xff]  ;;  %v13094_v9 = vld [vmem:[#allocation22_spill] sm:$0xff]  ;;  %v13098_v25 = vld [vmem:[#allocation23_spill] sm:$0xff] }
 0x36e   :  { %v4783_v34 = vmax.f32 %v11226_v27, %v4769_v35  ;;  %v4784_v11 = vmax.f32 %v4616_v37, %v4770_v48  ;;  %v4785_v47 = vmax.f32 %v4617_v13, %v4771_v51  ;;  %v4873_v30 = vrot.slane %v4760_v44, 3 }
 0x36f   :  { %7851 = vmatmul.mubr.msk.f32.gmra.mxu0 %vm13079_vm5, %v11147_v16  ;;  %v4870_v18 = vsel %vm258_vm1, %v4869_v17, %v4868_v5  ;;  %v4884_v23 = vrot.slane %v4782_v15, 2  ;;  %v4604_v31 = vrot.slane %v10747_v56, 7  ;;  %v4605_v61 = vrot.slane %v10773_v0, 7 }
 0x370   :  { %7853 = vmatprep.mubr.msk.f32.mxu0 %vm7935_vm0, %v13044_v55  ;;  %vm13080_vm13 = vcmask 1042434   ;;  %v4885_v14 = vrot.slane %v4783_v34, 1  ;;  %v4888_v27 = vrot.slane %v4785_v47, 7  ;;  %v4606_v49 = vrot.slane %v10768_v45, 7 }
 0x371   :  { %v4872_v19 = vsel %vm13080_vm13, %v4871_v54, %v4870_v18  ;;  %vm13081_vm14 = vcmask 1043459   ;;  %v4618_v58 = vmax.f32 %v4597_v36, %v4604_v31  ;;  %v4619_v16 = vmax.f32 %v4598_v20, %v4605_v61  ;;  %v13088_v36 = vld [vmem:[#allocation38_spill] sm:$0xff] }
 0x372   :  { %v4874_v2 = vsel %vm13081_vm14, %v4873_v30, %v4872_v19  ;;  %v4624_v1 = vmax.f32 %v4617_v13, %v10729_v57  ;;  %vm13082_vm2 = vcmask 1045509   ;;  %v4620_v21 = vmax.f32 %v4599_v33, %v4606_v49 }
 0x373   :  { %v4886_v46 = vsel %vm13082_vm2, %v4885_v14, %v4884_v23  ;;  %v4772_v60 = vrot.slane %v13083_v41, 7  ;;  %v4773_v22 = vrot.slane %v13084_v8, 7  ;;  %7854 = vmatmul.mubr.msk.f32.gmra.mxu0 %vm13085_vm12, %v11235_v12  ;;  %vm13086_vm5 = vcmask 1046534   ;;  %vm13100_vm2 = vmmov %vm13085_vm12  ;;  %v13108_v8 = vld [vmem:[#allocation8_spill] sm:$0xff] }
 0x374   :  { %v4887_v40 = vsel %vm13086_vm5, %v4784_v11, %v4886_v46  ;;  %v4625_v42 = vmax.f32 %v4618_v58, %v10747_v56  ;;  %v4774_v63 = vrot.slane %v13087_v38, 7  ;;  %v13089_v20 = vrot.slane %v13088_v36, 7  ;;  %7856 = vmatprep.mubr.msk.f32.mxu0 %vm7935_vm0, %v13044_v55 }
 0x375   :  { %vm13090_vm13 = vcmask 1047559   ;;  %v4786_v37 = vmax.f32 %v4618_v58, %v4772_v60  ;;  %v4787_v13 = vmax.f32 %v4619_v16, %v4773_v22  ;;  %v13092_v28 = vrot.slane %v13091_v7, 7 }
 0x376   :  { %v4789_v39 = vmax.f32 %v11167_v43, %v13089_v20  ;;  %v4889_v33 = vsel %vm13090_vm13, %v4888_v27, %v4887_v40  ;;  %vm13093_vm14 = vcmask 1043456   ;;  %v4788_v3 = vmax.f32 %v4620_v21, %v4774_v63  ;;  %v13110_v40 = vld [vmem:[#allocation24_spill] sm:$0xff] }
 0x377   :  { %v4790_v12 = vmax.f32 %v11240_v52, %v13092_v28  ;;  %v4939_v50 = vsel %vm13093_vm14, %v4874_v2, %v4889_v33  ;;  %v13095_v32 = vrot.slane %v13094_v9, 7  ;;  %v13097_v35 = vrot.slane %v13096_v59, 7  ;;  %7857 = vmatmul.mubr.msk.f32.gmra.mxu0 %vm13100_vm2, %v4964_v26  ;;  %vm13104_vm14 = vmmov %vm13100_vm2 }
 0x378   :  { %v4965_v48 = vrot.slane %v4939_v50, 6  ;;  %v13099_v51 = vrot.slane %v13098_v25, 7  ;;  %v4890_v5 = vrot.slane %v4786_v37, 6  ;;  %v4891_v17 = vrot.slane %v4787_v13, 5  ;;  %7859 = vmatprep.mubr.msk.f32.mxu0 %vm7935_vm0, %v13044_v55 }
 0x379   :  { %v4791_v44 = vmax.f32 %v11284_v6, %v13095_v32  ;;  %v4792_v62 = vmax.f32 %v4624_v1, %v13097_v35  ;;  %v4893_v54 = vrot.slane %v4788_v3, 4  ;;  %v4904_v34 = vrot.slane %v4789_v39, 3 }
 0x37a   :  { %v4793_v15 = vmax.f32 %v4625_v42, %v13099_v51  ;;  %v4905_v11 = vrot.slane %v4790_v12, 2  ;;  %vm13101_vm12 = vcmask 1041408   ;;  %v4892_v18 = vsel %vm258_vm1, %v4891_v17, %v4890_v5 }
 0x37b   :  { %v4907_v47 = vrot.slane %v4791_v44, 1  ;;  %v4966_v30 = vsel %vm13101_vm12, %v4963_v53, %v4965_v48  ;;  %v4626_v31 = vmax.f32 %v4619_v16, %v10773_v0  ;;  %vm13102_vm5 = vcmask 1042434  }
 0x37c   :  { %v4910_v23 = vrot.slane %v4793_v15, 7  ;;  %v4894_v61 = vsel %vm13102_vm5, %v4893_v54, %v4892_v18  ;;  %v4906_v26 = vsel %vm268_vm3, %v4905_v11, %v4904_v34  ;;  %v4627_v19 = vmax.f32 %v4620_v21, %v10768_v45  ;;  %7860 = vmatmul.mubr.msk.f32.gmra.mxu0 %vm13104_vm14, %v4966_v30  ;;  %v5243_v34 = vld [vmem:[%s12676_s3 + $0x78] sm:$0xff] }
 0x37d   :  { %v4628_v14 = vrot.slane %v10693_v4, 1  ;;  %vm13103_vm13 = vcmask 1045509   ;;  %v4629_v49 = vrot.slane %v10701_v24, 1  ;;  %v4630_v29 = vrot.slane %v10711_v10, 1  ;;  %7862 = vmatprep.mubr.msk.f32.mxu0 %vm7935_vm0, %v13044_v55  ;;  %5260 = vmatpush1.msra.mxu1 %v5243_v34 }
 0x37e   :  { %v4908_v27 = vsel %vm13103_vm13, %v4907_v47, %v4906_v26  ;;  %v4631_v53 = vrot.slane %v10729_v57, 1  ;;  %vm13105_vm2 = vcmask 1046534   ;;  %v4632_v58 = vrot.slane %v10747_v56, 1  ;;  %5261 = vmatprep.subr.mxu1 %v13044_v55 }
 0x37f   :  { %v4909_v2 = vsel %vm13105_vm2, %v4792_v62, %v4908_v27  ;;  %v4633_v16 = vrot.slane %v10773_v0, 1  ;;  %v4642_v46 = vmax.f32 %v11167_v43, %v4628_v14  ;;  %vm13106_vm12 = vcmask 1047559   ;;  %v5239_v14 = vld [vmem:[%s12676_s3 + $0x58] sm:$0xff] }
 0x380   :  { %v4911_v4 = vsel %vm13106_vm12, %v4910_v23, %v4909_v2  ;;  %v4643_v24 = vmax.f32 %v11240_v52, %v4629_v49  ;;  %v4644_v10 = vmax.f32 %v11284_v6, %v4630_v29  ;;  %v4645_v57 = vmax.f32 %v4624_v1, %v4631_v53  ;;  %v5242_v23 = vld [vmem:[%s12676_s3 + $0x70] sm:$0xff] }
 0x381   :  { %vm13107_vm5 = vcmask 1042432   ;;  %v4646_v41 = vmax.f32 %v4625_v42, %v4632_v58  ;;  %v4647_v60 = vmax.f32 %v4626_v31, %v4633_v16  ;;  %v13109_v56 = vrot.slane %v13108_v8, 7  ;;  %5262 = vmatpush1.msra.mxu1 %v5242_v23  ;;  %v13122_v29 = vld [vmem:[#allocation33_spill] sm:$0xff]  ;;  %v13123_v58 = vld [vmem:[#allocation11_spill] sm:$0xff] }
 0x382   :  { %v4940_v21 = vsel %vm13107_vm5, %v4894_v61, %v4911_v4  ;;  %v13111_v43 = vrot.slane %v13110_v40, 7  ;;  %v4924_v63 = vrot.slane %v4642_v46, 4  ;;  %v4925_v36 = vrot.slane %v4643_v24, 3  ;;  %5263 = vmatprep.subr.mxu1 %v13044_v55  ;;  %v11408_v46 = vld [vmem:[%s12675_s2] ss:$0 sm:$0xff]  ;;  %v5237_v40 = vld [vmem:[%s12676_s3 + $0x48] sm:$0xff] }
 0x383   :  { %v4794_v22 = vmax.f32 %v4626_v31, %v13109_v56  ;;  %v4967_v0 = vrot.slane %v4940_v21, 6  ;;  %v4927_v39 = vrot.slane %v4644_v10, 2  ;;  %v4929_v33 = vrot.slane %v4645_v57, 1  ;;  %v5241_v31 = vld [vmem:[%s12676_s3 + $0x68] sm:$0xff]  ;;  %v5238_v10 = vld [vmem:[%s12676_s3 + $0x50] sm:$0xff] }
 0x384   :  { %v4795_v38 = vmax.f32 %v4627_v19, %v13111_v43  ;;  %v4932_v52 = vrot.slane %v4647_v60, 7  ;;  %vm13112_vm13 = vcmask 1041408   ;;  %vm13113_vm14 = vcmask 1043459   ;;  %5264 = vmatpush1.msra.mxu1 %v5241_v31  ;;  %v3552_v60 = vld [vmem:[%s12681_s8] sm:$0x1] }
 0x385   :  { %v4912_v20 = vrot.slane %v4794_v22, 6  ;;  %v4968_v6 = vsel %vm13112_vm13, %v4965_v48, %v4967_v0  ;;  %v4926_v37 = vsel %vm13113_vm14, %v4925_v36, %v4924_v63  ;;  %v4634_v42 = vrot.slane %v10768_v45, 1  ;;  %vm13119_vm14 = vmmov %vm13118_vm4  ;;  %5265 = vmatprep.subr.mxu1 %v13044_v55 }
 0x386   :  { %v4913_v1 = vrot.slane %v4795_v38, 5  ;;  %vm13114_vm2 = vcmask 523264   ;;  %v4928_v13 = vsel %vm268_vm3, %v4927_v39, %v4926_v37  ;;  %vm13115_vm12 = vcmask 1045509   ;;  %vm13120_vm3 = vmmov %vm13118_vm4 }
 0x387   :  { %7863 = vmatmul.mubr.msk.f32.gmra.mxu0 %vm13114_vm2, %v4968_v6  ;;  %v4930_v28 = vsel %vm13115_vm12, %v4929_v33, %v4928_v13  ;;  %v4648_v12 = vmax.f32 %v4627_v19, %v4634_v42  ;;  %vm13116_vm5 = vcmask 1046534   ;;  %vm13117_vm13 = vcmask 1047559   ;;  %v5240_v19 = vld [vmem:[%s12676_s3 + $0x60] sm:$0xff] }
 0x388   :  { %7865 = vmatprep.mubr.msk.f32.mxu0 %vm7935_vm0, %v13044_v55  ;;  %v4914_v7 = vsel %vm258_vm1, %v4913_v1, %v4912_v20  ;;  %v4931_v50 = vsel %vm13116_vm5, %v4646_v41, %v4930_v28  ;;  %vm13121_vm1 = vmmov %vm13114_vm2  ;;  %5266 = vmatpush1.msra.mxu1 %v5240_v19  ;;  %v11403_v16 = vadd.s32 8, %v13123_v58  ;;  %v5236_v6 = vld [vmem:[%s12676_s3 + $0x40] sm:$0xff] }
 0x389   :  { %v4933_v3 = vsel %vm13117_vm13, %v4932_v52, %v4931_v50  ;;  %v7383_v45 = vrot.slane %v4648_v12, 12  ;;  %5267 = vmatprep.subr.mxu1 %v13044_v55  ;;  %vm13135_vm13 = vcmask 130048  }
 0x38a   :  { %v4941_v9 = vsel %vm13118_vm4, %v4914_v7, %v4933_v3  ;;  %5268 = vmatpush1.msra.mxu1 %v5239_v14  ;;  %vm3563_vm4 = vcmp.eq.s32.totalorder %v13123_v58, 0  ;;  %vm3566_vm12 = vcmp.eq.s32.totalorder %v11403_v16, 15 }
 0x38b   :  { %v4969_v32 = vrot.slane %v4941_v9, 6  ;;  %5269 = vmatprep.subr.mxu1 %v13044_v55  ;;  %v5235_v9 = vld [vmem:[%s12676_s3 + $0x38] sm:$0xff] }
 0x38c   :  { %5270 = vmatpush1.msra.mxu1 %v5238_v10 }
 0x38d   :  { %v4970_v44 = vsel %vm13119_vm14, %v4967_v0, %v4969_v32  ;;  %v4972_v59 = vsel %vm13120_vm3, %v4969_v32, %v7383_v45  ;;  %5271 = vmatprep.subr.mxu1 %v13044_v55  ;;  %vm13138_vm14 = vmmov %vm13135_vm13 }
 0x38e   :  { %7866 = vmatmul.mubr.msk.f32.gmra.mxu0 %vm13114_vm2, %v4970_v44  ;;  %5272 = vmatpush1.msra.mxu1 %v5237_v40  ;;  %v13124_v44 = vld [vmem:[#allocation12_spill] sm:$0xff] }
 0x38f   :  { %7868 = vmatprep.mubr.msk.f32.mxu0 %vm7935_vm0, %v13044_v55  ;;  %5273 = vmatprep.subr.mxu1 %v13044_v55 }
 0x390   :  { %5274 = vmatpush1.msra.mxu1 %v5236_v6 }
 0x391   :  { %5275 = vmatprep.subr.mxu1 %v13044_v55 }
 0x392   :  { %7869 = vmatmul.mubr.msk.f32.gmra.mxu0 %vm13121_vm1, %v4972_v59  ;;  %5276 = vmatpush1.msra.mxu1 %v5235_v9  ;;  %v5245_v9 = vld [vmem:[%s12676_s3 + $0x88] sm:$0xff] }
 0x393   :  { %5277 = vmatprep.subr.mxu1 %v13044_v55 }
 0x3f7   :  { %v3256_v35 = vpop.f32.mrf.mxu1  ;;  %v11376_v25 = vpop.f32.mrf.mxu0 }
 0x3f9   :  { %v3258_v62 = vpop.f32.mrf.mxu1  ;;  %v3329_v15 = vpop.f32.mrf.mxu0 }
 0x3fa   :  { %v3544_v48 = vadd.f32 %v3258_v62, %v3256_v35  ;;  %v3556_v30 = vadd.f32 %v3329_v15, %v3256_v35  ;;  %v6387_v62 = vld [vmem:[%s12678_s5 + $0x278] sm:$0xff] }
 0x3fc   :  { %v11379_v51 = vadd.f32 %v3544_v48, %v11376_v25 }
 0x3fe   :  { %v3546_v17 = vadd.f32 %v11379_v51, %v3329_v15 }
 0x408   :  { %v3398_v5 = vpop.f32.mrf.mxu1  ;;  %v3469_v47 = vpop.f32.mrf.mxu0 }
 0x409   :  { %v3547_v54 = vadd.f32 %v3546_v17, %v3398_v5  ;;  %v3557_v61 = vadd.f32 %v3556_v30, %v3469_v47  ;;  %v5234_v17 = vld [vmem:[%s12676_s3 + $0x30] sm:$0xff] }
 0x40a   :  { %v3400_v11 = vpop.f32.mrf.mxu1  ;;  %v3471_v2 = vpop.f32.mrf.mxu0  ;;  %5278 = vmatpush1.msra.mxu1 %v5234_v17 }
 0x40b   :  { %v3548_v18 = vadd.f32 %v3547_v54, %v3400_v11  ;;  %v3598_v27 = vsub.f32 %v3557_v61, %v3256_v35  ;;  %v3623_v49 = vsub.f32 %v3557_v61, %v3469_v47  ;;  %v3574_v53 = vrot.slane %v3557_v61, %v13122_v29  ;;  %5279 = vmatprep.subr.mxu1 %v13044_v55 }
 0x40c   :  { %v3558_v4 = vadd.f32 %v3400_v11, %v11376_v25  ;;  %v3554_v38 = vadd.f32 %v3471_v2, %v3469_v47 }
 0x40d   :  { %v3549_v26 = vadd.f32 %v3548_v18, %v3469_v47  ;;  %v3603_v57 = vrot.slane %v3598_v27, %v13122_v29  ;;  %v3628_v21 = vrot.slane %v3623_v49, %v13122_v29  ;;  %v3575_v43 = vsel %vm3563_vm4, %v3574_v53, 0.0 }
 0x40f   :  { %v3550_v24 = vadd.f32 %v3549_v26, %v3471_v2  ;;  %v3604_v1 = vsel %vm3563_vm4, %v3603_v57, 0.0  ;;  %v11439_v37 = vsel %vm3563_vm4, %v3628_v21, 0.0  ;;  %v5233_v26 = vld [vmem:[%s12676_s3 + $0x28] sm:$0xff]  ;;  %v5232_v57 = vld [vmem:[%s12676_s3 + $0x20] sm:$0xff] }
 0x410   :  { %5280 = vmatpush1.msra.mxu1 %v5233_v26 }
 0x411   :  { %5281 = vmatprep.subr.mxu1 %v13044_v55 }
 0x412   :  { %5282 = vmatpush1.msra.mxu1 %v5232_v57  ;;  %v5612_v57 = vld [vmem:[%s12677_s4 + $0x68] sm:$0xff] }
 0x413   :  { %5283 = vmatprep.subr.mxu1 %v13044_v55 }
 0x41e   :  { %v3540_v41 = vpop.f32.mrf.mxu1 }
 0x41f   :  { %v5082_v8 = vpop.f32.mrf.mxu0  ;;  %v3551_v56 = vadd.f32 %v3550_v24, %v3540_v41  ;;  %v3559_v22 = vadd.f32 %v3558_v4, %v3540_v41  ;;  %v3555_v42 = vadd.f32 %v3554_v38, %v3540_v41  ;;  %v5230_v38 = vld [vmem:[%s12676_s3 + $0x10] sm:$0xff] }
 0x420   :  { %v5083_v0 = vadd.f32 %v11408_v46, %v5082_v8  ;;  %v7821_v63 = vpop.f32.mrf.mxu1 }
 0x421   :  { %v7840_v36 = vpop.f32.mrf.mxu0  ;;  %v3553_v20 = vadd.f32 %v3552_v60, %v3551_v56  ;;  %v3590_v39 = vrot.slane %v3559_v22, %v13122_v29  ;;  %v3599_v33 = vsub.f32 %v3559_v22, %v11376_v25  ;;  %v3624_v52 = vsub.f32 %v3559_v22, %v3540_v41  ;;  %v5231_v56 = vld [vmem:[%s12676_s3 + $0x18] sm:$0xff] }
 0x422   :  { %v11441_v13 = vmax.f32 %v5083_v0, 0.0  ;;  %5284 = vmatpush1.msra.mxu1 %v5231_v56  ;;  %v5627_v56 = vld [vmem:[%s12677_s4 + $0xe0] sm:$0xff] }
 0x423   :  { %v5087_v7 = vpop.f32.mrf.mxu0  ;;  %v3580_v28 = vrot.slane %v3553_v20, %v13122_v29  ;;  %v3592_v12 = vsel %vm3566_vm12, %v3590_v39, 0.0  ;;  %v3597_v50 = vsub.f32 %v3553_v20, %v11379_v51  ;;  %v3615_v3 = vrot.slane %v3599_v33, %v13122_v29  ;;  %5285 = vmatprep.subr.mxu1 %v13044_v55 }
 0x424   :  { %v3622_v32 = vsub.f32 %v3553_v20, %v3555_v42  ;;  %v3640_v45 = vrot.slane %v3624_v52, %v13122_v29  ;;  %v11455_v59 = vrot.slane %v11441_v13, %v13124_v44  ;;  %v5185_v35 = vcombine.high %v11441_v13, %v11441_v13  ;;  %5147 = vst.msk [vmem:[#allocation2] sm:$0x1] %vm8983_vm8, %v11441_v13  ;;  %v5229_v20 = vld [vmem:[%s12676_s3 + $0x8] sm:$0xff]  ;;  %v5228_v42 = vld [vmem:[%s12676_s3] sm:$0xff] }
 0x425   :  { %v7843_v48 = vpop.f32.mrf.mxu0  ;;  %v3581_v25 = vsub.f32 %v3580_v28, %v3575_v43  ;;  %v3594_v51 = vsub.f32 %v3580_v28, %v3592_v12  ;;  %v3609_v15 = vrot.slane %v3597_v50, %v13122_v29  ;;  %v3617_v5 = vsel %vm3566_vm12, %v3615_v3, 0.0  ;;  %5286 = vmatpush1.msra.mxu1 %v5230_v38  ;;  %v5626_v38 = vld [vmem:[%s12677_s4 + $0xd8] sm:$0xff] }
 0x426   :  { %v3634_v54 = vrot.slane %v3622_v32, %v13122_v29  ;;  %v3642_v34 = vsel %vm3566_vm12, %v3640_v45, 0.0  ;;  %v5088_v11 = vadd.f32 %v11408_v46, %v5087_v7  ;;  %v5163_v47 = vrot.slane %v11455_v59, %v13124_v44  ;;  %5287 = vmatprep.subr.mxu1 %v13044_v55  ;;  %v5244_v45 = vld [vmem:[%s12676_s3 + $0x80] sm:$0xff] }
 0x427   :  { %v11475_v30 = vpop.f32.mrf.mxu0  ;;  %v3595_v18 = vmax.f32 %v3581_v25, 0.0  ;;  %v3596_v23 = vmax.f32 %v3594_v51, 0.0  ;;  %v3610_v31 = vsub.f32 %v3609_v15, %v3604_v1  ;;  %v3619_v61 = vsub.f32 %v3609_v15, %v3617_v5  ;;  %5288 = vmatpush1.msra.mxu1 %v5229_v20 }
 0x428   :  { %v3635_v19 = vsub.f32 %v3634_v54, %v11439_v37  ;;  %v3644_v14 = vsub.f32 %v3634_v54, %v3642_v34  ;;  %v11482_v27 = vmax.f32 %v5088_v11, 0.0  ;;  %v5175_v49 = vcombine.high %v5163_v47, %v5163_v47  ;;  %5289 = vmatprep.subr.mxu1 %v13044_v55 }
 0x429   :  { %v7846_v53 = vpop.f32.mrf.mxu0  ;;  %v3620_v2 = vmax.f32 %v3610_v31, 0.0  ;;  %v3621_v4 = vmax.f32 %v3619_v61, 0.0  ;;  %3649 = vst [vmem:[#allocation5 + $0x10] sm:$0xff] %v3595_v18  ;;  %3650 = vst [vmem:[#allocation5 + $0x18] sm:$0xff] %v3596_v23  ;;  %v5156_v24 = vcombine.high %v11455_v59, %v11455_v59  ;;  %v5192_v10 = vrot.slane %v5185_v35, %v13124_v44  ;;  %5290 = vmatpush1.msra.mxu1 %v5228_v42 }
 0x42a   :  { %3651 = vst [vmem:[#allocation5 + $0x20] sm:$0xff] %v3595_v18  ;;  %3652 = vst [vmem:[#allocation5 + $0x28] sm:$0xff] %v3596_v23  ;;  %v3645_v21 = vmax.f32 %v3635_v19, 0.0  ;;  %v3646_v41 = vmax.f32 %v3644_v14, 0.0  ;;  %5176 = vrot.lane.b32.xlu0 %v5175_v49, %s7939_s30  ;;  %v11505_v43 = vrot.slane %v11482_v27, %v13124_v44  ;;  %v5366_v39 = vcombine.high %v11482_v27, %v11482_v27  ;;  %v5614_v14 = vld [vmem:[%s12677_s4 + $0x78] sm:$0xff] }
 0x42b   :  { %3653 = vst [vmem:[#allocation5 + $0x30] sm:$0xff] %v3595_v18  ;;  %3654 = vst [vmem:[#allocation5 + $0x38] sm:$0xff] %v3596_v23  ;;  %v11495_v60 = vpop.f32.mrf.mxu0  ;;  %v5170_v8 = vrot.slane %v5156_v24, %v13124_v44  ;;  %v5199_v22 = vrot.slane %v5192_v10, %v13124_v44  ;;  %v5204_v0 = vcombine.high %v5192_v10, %v5192_v10  ;;  %5319 = vmatprep.subr.mxu1 %v13044_v55  ;;  %v5628_v24 = vld [vmem:[%s12677_s4 + $0xe8] sm:$0xff] }
 0x42c   :  { %3655 = vst [vmem:[#allocation5 + $0x40] sm:$0xff] %v3595_v18  ;;  %3656 = vst [vmem:[#allocation5 + $0x48] sm:$0xff] %v3596_v23  ;;  %v5093_v1 = vadd.f32 %v11408_v46, %v11475_v30  ;;  %v5339_v37 = vcombine.high %v11505_v43, %v11505_v43  ;;  %v5373_v28 = vrot.slane %v5366_v39, %v13124_v44  ;;  %5320 = vmatpush2.msra.mxu1 %v5245_v9  ;;  %v5630_v30 = vld [vmem:[%s12677_s4 + $0xf8] sm:$0xff]  ;;  %v5608_v9 = vld [vmem:[%s12677_s4 + $0x48] sm:$0xff] }
 0x42d   :  { %3657 = vst [vmem:[#allocation5 + $0x50] sm:$0xff] %v3595_v18  ;;  %3658 = vst [vmem:[#allocation5 + $0x58] sm:$0xff] %v3596_v23  ;;  %v7849_v40 = vpop.f32.mrf.mxu0  ;;  %5171 = vrot.lane.b32.xlu1 %v5170_v8, %s7938_s29  ;;  %v5180_v36 = vcombine.high %v5170_v8, %v5170_v8  ;;  %v5216_v33 = vcombine.high %v5199_v22, %v5199_v22  ;;  %v5211_v52 = vrot.slane %v5204_v0, %v13124_v44  ;;  %v5610_v39 = vld [vmem:[%s12677_s4 + $0x58] sm:$0xff] }
 0x42e   :  { %3659 = vst [vmem:[#allocation5 + $0x60] sm:$0xff] %v3595_v18  ;;  %3660 = vst [vmem:[#allocation5 + $0x68] sm:$0xff] %v3596_v23  ;;  %5200 = vrot.lane.b32.xlu0 %v5199_v22, %s7937_s28  ;;  %v5138_v50 = vmax.f32 %v5093_v1, 0.0  ;;  %v5353_v3 = vrot.slane %v5339_v37, %v13124_v44  ;;  %v5380_v59 = vrot.slane %v5373_v28, %v13124_v44  ;;  %5321 = vmatprep.subr.mxu1 %v13044_v55  ;;  %v5611_v40 = vld [vmem:[%s12677_s4 + $0x60] sm:$0xff]  ;;  %v5625_v1 = vld [vmem:[%s12677_s4 + $0xd0] sm:$0xff] }
 0x42f   :  { %3661 = vst [vmem:[#allocation5 + $0x70] sm:$0xff] %v3595_v18  ;;  %3662 = vst [vmem:[#allocation5 + $0x78] sm:$0xff] %v3596_v23  ;;  %v11513_v63 = vpop.f32.mrf.mxu0  ;;  %v5221_v7 = vcombine.high %v5211_v52, %v5211_v52  ;;  %5322 = vmatpush2.msra.mxu1 %v5244_v45  ;;  %v5385_v15 = vcombine.high %v5373_v28, %v5373_v28  ;;  %v5098_v31 = vadd.f32 %v11408_v46, %v11495_v60  ;;  %v5624_v28 = vld [vmem:[%s12677_s4 + $0xc8] sm:$0xff] }
 0x430   :  { %3663 = vst [vmem:[#allocation5 + $0x80] sm:$0xff] %v3595_v18  ;;  %3664 = vst [vmem:[#allocation5 + $0x88] sm:$0xff] %v3596_v23  ;;  %v5446_v48 = vcombine.high %v5138_v50, %v5138_v50  ;;  %v5361_v51 = vcombine.high %v5353_v3, %v5353_v3  ;;  %5750 = vmatprep.subr.mxu1 %v13044_v55  ;;  %v5414_v5 = vrot.slane %v5138_v50, %v13124_v44 }
 0x431   :  { %3665 = vst [vmem:[#allocation5 + $0x90] sm:$0xff] %v3595_v18  ;;  %3666 = vst [vmem:[#allocation5 + $0x98] sm:$0xff] %v3596_v23  ;;  %v7852_v6 = vpop.f32.mrf.mxu0  ;;  %5181 = vrot.lane.b32.xlu1 %v5180_v36, %s7940_s10  ;;  %v5397_v17 = vcombine.high %v5380_v59, %v5380_v59  ;;  %v5392_v47 = vrot.slane %v5385_v15, %v13124_v44  ;;  %7595 = vmatprep.subr.mxu0 %v5630_v30  ;;  %v5139_v49 = vmax.f32 %v5098_v31, 0.0 }
 0x432   :  { %3667 = vst [vmem:[#allocation5 + $0xa0] sm:$0xff] %v3595_v18  ;;  %3668 = vst [vmem:[#allocation5 + $0xa8] sm:$0xff] %v3596_v23  ;;  %5217 = vrot.lane.b32.xlu0 %v5216_v33, %s7942_s12  ;;  %v5453_v11 = vrot.slane %v5446_v48, %v13124_v44  ;;  %7596 = vmatpush3.msra.mxu0 %v5614_v14  ;;  %v5622_v48 = vld [vmem:[%s12677_s4 + $0xb8] sm:$0xff] }
 0x433   :  { %3669 = vst [vmem:[#allocation5 + $0xb0] sm:$0xff] %v3595_v18  ;;  %3670 = vst [vmem:[#allocation5 + $0xb8] sm:$0xff] %v3596_v23  ;;  %v11531_v13 = vpop.f32.mrf.mxu0  ;;  %v5402_v10 = vcombine.high %v5392_v47, %v5392_v47  ;;  %v5494_v22 = vrot.slane %v5139_v49, %v13124_v44 }
 0x434   :  { %3671 = vst [vmem:[#allocation5 + $0xc0] sm:$0xff] %v3595_v18  ;;  %3672 = vst [vmem:[#allocation5 + $0xc8] sm:$0xff] %v3596_v23  ;;  %v5460_v26 = vrot.slane %v5453_v11, %v13124_v44  ;;  %v5465_v60 = vcombine.high %v5453_v11, %v5453_v11 }
 0x435   :  { %3673 = vst [vmem:[#allocation5 + $0xd0] sm:$0xff] %v3595_v18  ;;  %3674 = vst [vmem:[#allocation5 + $0xd8] sm:$0xff] %v3596_v23  ;;  %v7855_v12 = vpop.f32.mrf.mxu0  ;;  %5212 = vrot.lane.b32.xlu1 %v5211_v52, %s7941_s11  ;;  %v11618_v37 = vrot.slane %v5494_v22, %v13124_v44 }
 0x436   :  { %3675 = vst [vmem:[#allocation5 + $0xe0] sm:$0xff] %v3595_v18  ;;  %3676 = vst [vmem:[#allocation5 + $0xe8] sm:$0xff] %v3596_v23  ;;  %5222 = vrot.lane.b32.xlu0 %v5221_v7, %s7943_s13  ;;  %v5426_v18 = vcombine.high %v5414_v5, %v5414_v5  ;;  %v11564_v23 = vrot.slane %v5414_v5, %v13124_v44  ;;  %v5477_v20 = vcombine.high %v5460_v26, %v5460_v26  ;;  %v5609_v7 = vld [vmem:[%s12677_s4 + $0x50] sm:$0xff] }
 0x437   :  { %5226 = vst.msk [vmem:[#allocation2 + $0x1] sm:$0x1] %vm8983_vm8, %v11482_v27  ;;  %3679 = vst [vmem:[#allocation5] sm:$0xff] %v3620_v2  ;;  %v11541_v32 = vpop.f32.mrf.mxu0  ;;  %v5629_v27 = vld [vmem:[%s12677_s4 + $0xf0] sm:$0xff]  ;;  %v5472_v52 = vrot.slane %v5465_v60, %v13124_v44  ;;  %v5103_v12 = vadd.f32 %v11408_v46, %v11513_v63  ;;  %v5607_v63 = vld [vmem:[%s12677_s4 + $0x40] sm:$0xff] }
 0x438   :  { %3680 = vst [vmem:[#allocation5 + $0x8] sm:$0xff] %v3621_v4  ;;  %3682 = vst [vmem:[#allocation5 + $0xf0] sm:$0xff] %v3645_v21  ;;  %v5433_v53 = vrot.slane %v5426_v18, %v13124_v44  ;;  %v5613_v4 = vld [vmem:[%s12677_s4 + $0x70] sm:$0xff]  ;;  %7597 = vmatprep.subr.mxu0 %v5629_v27  ;;  %v5526_v21 = vcombine.high %v5139_v49, %v5139_v49  ;;  %v5618_v27 = vld [vmem:[%s12677_s4 + $0x98] sm:$0xff] }
 0x439   :  { %3683 = vst [vmem:[#allocation5 + $0xf8] sm:$0xff] %v3646_v41  ;;  %v7858_v35 = vpop.f32.mrf.mxu0  ;;  %5354 = vrot.lane.b32.xlu1 %v5353_v3, %s7943_s13  ;;  %7598 = vmatpush3.msra.mxu0 %v5613_v4  ;;  %v5506_v3 = vcombine.high %v5494_v22, %v5494_v22  ;;  %v5482_v15 = vcombine.high %v5472_v52, %v5472_v52  ;;  %v5621_v5 = vld [vmem:[%s12677_s4 + $0xb0] sm:$0xff] }
 0x43a   :  { %5381 = vrot.lane.b32.xlu0 %v5380_v59, %s7939_s30  ;;  %v5441_v41 = vcombine.high %v5433_v53, %v5433_v53  ;;  %7599 = vmatprep.subr.mxu0 %v5628_v24  ;;  %v5533_v33 = vrot.slane %v5526_v21, %v13124_v44  ;;  %v5623_v59 = vld [vmem:[%s12677_s4 + $0xc0] sm:$0xff]  ;;  %v5140_v35 = vmax.f32 %v5103_v12, 0.0  ;;  %v5601_v21 = vld [vmem:[%s12677_s4 + $0x10] sm:$0xff] }
 0x43b   :  { %7600 = vmatpush3.msra.mxu0 %v5612_v57 }
 0x43c   :  { %v5117_v25 = vpop.f32.mrf.mxu0  ;;  %7601 = vmatprep.subr.mxu0 %v5627_v56  ;;  %v5540_v45 = vrot.slane %v5533_v33, %v13124_v44  ;;  %v5574_v11 = vrot.slane %v5140_v35, %v13124_v44  ;;  %v5545_v18 = vcombine.high %v5533_v33, %v5533_v33  ;;  %v5832_v24 = vcombine.high %v5140_v35, %v5140_v35 }
 0x43d   :  { %v11554_v54 = vadd.f32 %v11408_v46, %v5117_v25  ;;  %5362 = vrot.lane.b32.xlu1 %v5361_v51, %s7938_s29  ;;  %7602 = vmatpush3.msra.mxu0 %v5611_v40  ;;  %v5513_v25 = vrot.slane %v5506_v3, %v13124_v44  ;;  %v5606_v51 = vld [vmem:[%s12677_s4 + $0x38] sm:$0xff]  ;;  %v5113_v3 = vadd.f32 %v11408_v46, %v11541_v32 }
 0x43e   :  { %v7861_v34 = vpop.f32.mrf.mxu0  ;;  %5398 = vrot.lane.b32.xlu0 %v5397_v17, %s7937_s28  ;;  %7603 = vmatprep.subr.mxu0 %v5626_v38  ;;  %v5108_v17 = vadd.f32 %v11408_v46, %v11531_v13  ;;  %v5604_v13 = vld [vmem:[%s12677_s4 + $0x28] sm:$0xff]  ;;  %v5557_v31 = vcombine.high %v5540_v45, %v5540_v45  ;;  %v5581_v14 = vrot.slane %v5574_v11, %v13124_v44  ;;  %v5615_v38 = vld [vmem:[%s12677_s4 + $0x80] sm:$0xff] }
 0x43f   :  { %7604 = vmatpush3.msra.mxu0 %v5610_v39  ;;  %v5605_v34 = vld [vmem:[%s12677_s4 + $0x30] sm:$0xff]  ;;  %v5521_v30 = vcombine.high %v5513_v25, %v5513_v25  ;;  %v5552_v49 = vrot.slane %v5545_v18, %v13124_v44  ;;  %v5586_v4 = vcombine.high %v5574_v11, %v5574_v11  ;;  %v5839_v40 = vrot.slane %v5832_v24, %v13124_v44 }
 0x440   :  { %7605 = vmatprep.subr.mxu0 %v5625_v1  ;;  %v5822_v22 = vcombine.high %v5581_v14, %v5581_v14 }
 0x441   :  { %5393 = vrot.lane.b32.xlu1 %v5392_v47, %s7940_s10  ;;  %7606 = vmatpush3.msra.mxu0 %v5609_v7  ;;  %v5620_v47 = vld [vmem:[%s12677_s4 + $0xa8] sm:$0xff]  ;;  %v5562_v60 = vcombine.high %v5552_v49, %v5552_v49  ;;  %v5593_v56 = vrot.slane %v5586_v4, %v13124_v44  ;;  %v11716_v12 = vrot.slane %v5839_v40, %v13124_v44 }
 0x442   :  { %5422 = vrot.lane.b32.xlu0 %v11564_v23, %s7942_s12  ;;  %7607 = vmatprep.subr.mxu0 %v5624_v28 }
 0x443   :  { %7608 = vmatpush3.msra.mxu0 %v5608_v9 }
 0x444   :  { %7609 = vmatprep.subr.mxu0 %v5623_v59  ;;  %v5861_v59 = vcombine.high %v11716_v12, %v11716_v12 }
 0x445   :  { %5461 = vrot.lane.b32.xlu1 %v5460_v26, %s7939_s30  ;;  %7610 = vmatpush3.msra.mxu0 %v5607_v63  ;;  %v5141_v26 = vmax.f32 %v5108_v17, 0.0  ;;  %v5142_v63 = vmax.f32 %v5113_v3, 0.0 }
 0x446   :  { %5434 = vrot.lane.b32.xlu0 %v5433_v53, %s7943_s13  ;;  %7611 = vmatprep.subr.mxu0 %v5622_v48  ;;  %v5602_v53 = vld [vmem:[%s12677_s4 + $0x18] sm:$0xff] }
 0x447   :  { %v5122_v61 = vpop.f32.mrf.mxu0  ;;  %7612 = vmatpush3.msra.mxu0 %v5606_v51  ;;  %v5878_v57 = vrot.slane %v5141_v26, %v13124_v44  ;;  %v5912_v33 = vcombine.high %v5141_v26, %v5141_v26  ;;  %v5992_v17 = vcombine.high %v5142_v63, %v5142_v63 }
 0x448   :  { %v11580_v2 = vadd.f32 %v11408_v46, %v5122_v61  ;;  %7613 = vmatprep.subr.mxu0 %v5621_v5  ;;  %v5619_v61 = vld [vmem:[%s12677_s4 + $0xa0] sm:$0xff] }
 0x449   :  { %v7864_v19 = vpop.f32.mrf.mxu0  ;;  %5403 = vrot.lane.b32.xlu1 %v5402_v10, %s7941_s11  ;;  %7614 = vmatpush3.msra.mxu0 %v5605_v34  ;;  %v5617_v10 = vld [vmem:[%s12677_s4 + $0x90] sm:$0xff]  ;;  %v5890_v39 = vcombine.high %v5878_v57, %v5878_v57  ;;  %v5919_v28 = vrot.slane %v5912_v33, %v13124_v44  ;;  %v5999_v18 = vrot.slane %v5992_v17, %v13124_v44 }
 0x44a   :  { %5442 = vrot.lane.b32.xlu0 %v5441_v41, %s7938_s29  ;;  %7615 = vmatprep.subr.mxu0 %v5620_v47  ;;  %v5603_v19 = vld [vmem:[%s12677_s4 + $0x20] sm:$0xff]  ;;  %v5616_v41 = vld [vmem:[%s12677_s4 + $0x88] sm:$0xff] }
 0x44b   :  { %7616 = vmatpush3.msra.mxu0 %v5604_v13  ;;  %v5897_v7 = vrot.slane %v5890_v39, %v13124_v44  ;;  %v5929_v9 = vcombine.high %v5919_v28, %v5919_v28  ;;  %v11728_v35 = vrot.slane %v5919_v28, %v13124_v44 }
 0x44c   :  { %7617 = vmatprep.subr.mxu0 %v5619_v61  ;;  %v6009_v61 = vcombine.high %v5999_v18, %v5999_v18 }
 0x44d   :  { %5478 = vrot.lane.b32.xlu1 %v5477_v20, %s7937_s28  ;;  %7618 = vmatpush3.msra.mxu0 %v5603_v19  ;;  %v5599_v20 = vld [vmem:[%s12677_s4] sm:$0xff]  ;;  %v5936_v48 = vrot.slane %v5929_v9, %v13124_v44 }
 0x44e   :  { %v5127_v8 = vpop.f32.mrf.mxu0  ;;  %5473 = vrot.lane.b32.xlu0 %v5472_v52, %s7940_s10  ;;  %7619 = vmatprep.subr.mxu0 %v5618_v27  ;;  %v5849_v52 = vcombine.high %v5839_v40, %v5839_v40 }
 0x44f   :  { %v11599_v0 = vadd.f32 %v11408_v46, %v5127_v8  ;;  %7620 = vmatpush3.msra.mxu0 %v5602_v53  ;;  %v5600_v8 = vld [vmem:[%s12677_s4 + $0x8] sm:$0xff]  ;;  %v5946_v11 = vcombine.high %v5936_v48, %v5936_v48  ;;  %v6016_v53 = vrot.slane %v6009_v61, %v13124_v44 }
 0x450   :  { %v7867_v36 = vpop.f32.mrf.mxu0  ;;  %7621 = vmatprep.subr.mxu0 %v5617_v10 }
 0x451   :  { %5502 = vrot.lane.b32.xlu1 %v11618_v37, %s7942_s12  ;;  %7622 = vmatpush3.msra.mxu0 %v5601_v21  ;;  %v5885_v36 = vrot.slane %v5878_v57, %v13124_v44  ;;  %v5144_v57 = vmax.f32 %v11580_v2, 0.0  ;;  %v5145_v2 = vmax.f32 %v11599_v0, 0.0 }
 0x452   :  { %v5132_v6 = vpop.f32.mrf.mxu0  ;;  %5541 = vrot.lane.b32.xlu0 %v5540_v45, %s7939_s30  ;;  %7623 = vmatprep.subr.mxu0 %v5616_v41  ;;  %v5907_v45 = vcombine.high %v5897_v7, %v5897_v7 }
 0x453   :  { %v11621_v42 = vadd.f32 %v11408_v46, %v5132_v6  ;;  %7624 = vmatpush3.msra.mxu0 %v5600_v8  ;;  %v5827_v6 = vcombine.high %v5593_v56, %v5593_v56  ;;  %v5902_v1 = vcombine.high %v5885_v36, %v5885_v36  ;;  %v5941_v46 = vcombine.high %v11728_v35, %v11728_v35 }
 0x454   :  { %v7870_v50 = vpop.f32.mrf.mxu0  ;;  %7625 = vmatprep.subr.mxu0 %v5615_v38  ;;  %v6152_v38 = vcombine.high %v5144_v57, %v5144_v57 }
 0x455   :  { %5514 = vrot.lane.b32.xlu1 %v5513_v25, %s7943_s13  ;;  %7626 = vmatpush3.msra.mxu0 %v5599_v20  ;;  %v5856_v50 = vrot.slane %v5849_v52, %v13124_v44  ;;  %v5958_v25 = vrot.slane %v5142_v63, %v13124_v44  ;;  %v6198_v20 = vrot.slane %v5145_v2, %v13124_v44 }
 0x456   :  { %5483 = vrot.lane.b32.xlu0 %v5482_v15, %s7941_s11  ;;  %v5143_v15 = vmax.f32 %v11554_v54, 0.0  ;;  %v6159_v0 = vrot.slane %v6152_v38, %v13124_v44 }
 0x457   :  { %v5866_v32 = vcombine.high %v5856_v50, %v5856_v50  ;;  %v5965_v51 = vrot.slane %v5958_v25, %v13124_v44  ;;  %v5970_v5 = vcombine.high %v5958_v25, %v5958_v25 }
 0x458   :  { %v6038_v34 = vrot.slane %v5143_v15, %v13124_v44  ;;  %v6169_v28 = vcombine.high %v6159_v0, %v6159_v0 }
 0x459   :  { %5522 = vrot.lane.b32.xlu1 %v5521_v30, %s7938_s29  ;;  %v5977_v47 = vrot.slane %v5970_v5, %v13124_v44  ;;  %v5982_v30 = vcombine.high %v5965_v51, %v5965_v51 }
 0x45a   :  { %5558 = vrot.lane.b32.xlu0 %v5557_v31, %s7937_s28  ;;  %v6045_v13 = vrot.slane %v6038_v34, %v13124_v44  ;;  %v6050_v54 = vcombine.high %v6038_v34, %v6038_v34  ;;  %v6072_v31 = vcombine.high %v5143_v15, %v5143_v15 }
 0x45b   :  { %v5987_v26 = vcombine.high %v5977_v47, %v5977_v47 }
 0x45c   :  { %v6062_v19 = vcombine.high %v6045_v13, %v6045_v13  ;;  %v6079_v27 = vrot.slane %v6072_v31, %v13124_v44 }
 0x45d   :  { %5553 = vrot.lane.b32.xlu1 %v5552_v49, %s7940_s10  ;;  %v11753_v49 = vrot.slane %v5999_v18, %v13124_v44  ;;  %v5146_v18 = vmax.f32 %v11621_v42, 0.0  ;;  %v13132_v42 = vld [vmem:[#allocation31_spill] sm:$0xff] }
 0x45e   :  { %5582 = vrot.lane.b32.xlu0 %v5581_v14, %s7942_s12  ;;  %v6057_v14 = vrot.slane %v6050_v54, %v13124_v44  ;;  %v6089_v4 = vcombine.high %v6079_v27, %v6079_v27  ;;  %v11764_v21 = vrot.slane %v6079_v27, %v13124_v44  ;;  %vm13133_vm5 = vnez %v13132_v42  ;;  %v6402_v42 = vld [vmem:[%s12678_s5 + $0x2f0] sm:$0xff] }
 0x45f   :  { %v6021_v10 = vcombine.high %v11753_v49, %v11753_v49 }
 0x460   :  { %v6067_v24 = vcombine.high %v6057_v14, %v6057_v14  ;;  %v6096_v41 = vrot.slane %v6089_v4, %v13124_v44  ;;  %v6101_v8 = vcombine.high %v11764_v21, %v11764_v21 }
 0x461   :  { %5563 = vrot.lane.b32.xlu1 %v5562_v60, %s7941_s11  ;;  %v6118_v60 = vrot.slane %v5144_v57, %v13124_v44 }
 0x462   :  { %5823 = vrot.lane.b32.xlu0 %v5822_v22, %s7942_s12  ;;  %v6106_v39 = vcombine.high %v6096_v41, %v6096_v41 }
 0x463   :  { %v6125_v22 = vrot.slane %v6118_v60, %v13124_v44  ;;  %v6130_v40 = vcombine.high %v6118_v60, %v6118_v60 }
 0x465   :  { %5594 = vrot.lane.b32.xlu1 %v5593_v56, %s7943_s13  ;;  %v6026_v56 = vcombine.high %v6016_v53, %v6016_v53  ;;  %v6137_v33 = vrot.slane %v6130_v40, %v13124_v44  ;;  %v6142_v52 = vcombine.high %v6125_v22, %v6125_v22 }
 0x466   :  { %5828 = vrot.lane.b32.xlu0 %v5827_v6, %s7943_s13  ;;  %v6205_v6 = vrot.slane %v6198_v20, %v13124_v44 }
 0x467   :  { %v6147_v3 = vcombine.high %v6137_v33, %v6137_v33 }
 0x468   :  { %v6222_v9 = vcombine.high %v6205_v6, %v6205_v6 }
 0x469   :  { %5903 = vrot.lane.b32.xlu1 %v5902_v1, %s7942_s12  ;;  %v6210_v1 = vcombine.high %v6198_v20, %v6198_v20  ;;  %v5646_v20 = vld [vmem:[%s12677_s4 + $0x178] sm:$0xff] }
 0x46a   :  { %5857 = vrot.lane.b32.xlu0 %v5856_v50, %s7938_s29 }
 0x46d   :  { %5908 = vrot.lane.b32.xlu1 %v5907_v45, %s7943_s13  ;;  %v6217_v45 = vrot.slane %v6210_v1, %v13124_v44  ;;  %v5644_v1 = vld [vmem:[%s12677_s4 + $0x168] sm:$0xff] }
 0x46e   :  { %5862 = vrot.lane.b32.xlu0 %v5861_v59, %s7939_s30 }
 0x46f   :  { %v6227_v17 = vcombine.high %v6217_v45, %v6217_v45 }
 0x471   :  { %5937 = vrot.lane.b32.xlu1 %v5936_v48, %s7938_s29  ;;  %v11792_v48 = vrot.slane %v6159_v0, %v13124_v44 }
 0x472   :  { %5886 = vrot.lane.b32.xlu0 %v5885_v36, %s7937_s28  ;;  %v6339_v36 = vld [vmem:[%s12678_s5 + $0xf8] sm:$0xff] }
 0x473   :  { %7630 = vmatprep.subr.mxu0 %v6339_v36 }
 0x475   :  { %5942 = vrot.lane.b32.xlu1 %v5941_v46, %s7939_s30 }
 0x476   :  { %5867 = vrot.lane.b32.xlu0 %v5866_v32, %s7940_s10  ;;  %v6176_v32 = vrot.slane %v6169_v28, %v13124_v44 }
 0x479   :  { %5966 = vrot.lane.b32.xlu1 %v5965_v51, %s7937_s28 }
 0x47a   :  { %5898 = vrot.lane.b32.xlu0 %v5897_v7, %s7941_s11  ;;  %v6232_v7 = vcombine.high %v5145_v2, %v5145_v2 }
 0x47c   :  { %v6239_v59 = vrot.slane %v6232_v7, %v13124_v44  ;;  %v5438_v7 = vcombine.high %v11564_v23, %v11564_v23  ;;  %v7397_v23 = vld [vmem:[%s12679_s6] ss:$0 sm:$0xff] }
 0x47d   :  { %5947 = vrot.lane.b32.xlu1 %v5946_v11, %s7940_s10 }
 0x47e   :  { %5983 = vrot.lane.b32.xlu0 %v5982_v30, %s7942_s12  ;;  %v6249_v15 = vcombine.high %v6239_v59, %v6239_v59  ;;  %v11813_v54 = vrot.slane %v6239_v59, %v13124_v44 }
 0x480   :  { %v6256_v61 = vrot.slane %v6249_v15, %v13124_v44  ;;  %v6261_v4 = vcombine.high %v11813_v54, %v11813_v54 }
 0x481   :  { %5978 = vrot.lane.b32.xlu1 %v5977_v47, %s7941_s11  ;;  %v6181_v47 = vcombine.high %v11792_v48, %v11792_v48 }
 0x482   :  { %5988 = vrot.lane.b32.xlu0 %v5987_v26, %s7943_s13  ;;  %v6266_v36 = vcombine.high %v6256_v61, %v6256_v61 }
 0x485   :  { %6063 = vrot.lane.b32.xlu1 %v6062_v19, %s7942_s12 }
 0x486   :  { %6017 = vrot.lane.b32.xlu0 %v6016_v53, %s7938_s29 }
 0x489   :  { %6068 = vrot.lane.b32.xlu1 %v6067_v24, %s7943_s13 }
 0x48a   :  { %6022 = vrot.lane.b32.xlu0 %v6021_v10, %s7939_s30  ;;  %v6186_v10 = vcombine.high %v6176_v32, %v6176_v32 }
 0x48d   :  { %6097 = vrot.lane.b32.xlu1 %v6096_v41, %s7938_s29 }
 0x48e   :  { %6046 = vrot.lane.b32.xlu0 %v6045_v13, %s7937_s28  ;;  %v5346_v13 = vrot.slane %v11505_v43, %v13124_v44 }
 0x490   :  { %v5358_v43 = vcombine.high %v5346_v13, %v5346_v13  ;;  %v5636_v13 = vld [vmem:[%s12677_s4 + $0x128] sm:$0xff] }
 0x491   :  { %6102 = vrot.lane.b32.xlu1 %v6101_v8, %s7939_s30 }
 0x492   :  { %6027 = vrot.lane.b32.xlu0 %v6026_v56, %s7940_s10  ;;  %v13134_v56 = vld [vmem:[#allocation32_spill] sm:$0xff] }
 0x495   :  { %6126 = vrot.lane.b32.xlu1 %v6125_v22, %s7937_s28 }
 0x496   :  { %6058 = vrot.lane.b32.xlu0 %v6057_v14, %s7941_s11  ;;  %v6278_v14 = vrot.slane %v5146_v18, %v13124_v44 }
 0x498   :  { %v6285_v57 = vrot.slane %v6278_v14, %v13124_v44  ;;  %v6290_v40 = vcombine.high %v6278_v14, %v6278_v14 }
 0x499   :  { %6107 = vrot.lane.b32.xlu1 %v6106_v39, %s7940_s10 }
 0x49a   :  { %6143 = vrot.lane.b32.xlu0 %v6142_v52, %s7942_s12  ;;  %v6302_v39 = vcombine.high %v6285_v57, %v6285_v57  ;;  %v5645_v52 = vld [vmem:[%s12677_s4 + $0x170] sm:$0xff]  ;;  %v6297_v0 = vrot.slane %v6290_v40, %v13124_v44  ;;  %v5643_v44 = vld [vmem:[%s12677_s4 + $0x160] sm:$0xff] }
 0x49c   :  { %v5177_v50 = vpop.permute.xlu0 %5176 }
 0x49d   :  { %6138 = vrot.lane.b32.xlu1 %v6137_v33, %s7941_s11 }
 0x49e   :  { %6148 = vrot.lane.b32.xlu0 %v6147_v3, %s7943_s13  ;;  %v5642_v3 = vld [vmem:[%s12677_s4 + $0x158] sm:$0xff] }
 0x49f   :  { %v5172_v63 = vpop.permute.xlu1 %5171 }
 0x4a0   :  { %5174 = vst.msk [vmem:[#allocation2] sm:$0x1] %vm9256_vm15, %v5172_v63  ;;  %v5201_v46 = vpop.permute.xlu0 %5200  ;;  %v5640_v63 = vld [vmem:[%s12677_s4 + $0x148] sm:$0xff] }
 0x4a1   :  { %5179 = vst.msk [vmem:[#allocation2] sm:$0x1] %vm9283_vm9, %v5177_v50  ;;  %6223 = vrot.lane.b32.xlu1 %v6222_v9, %s7942_s12 }
 0x4a2   :  { %6177 = vrot.lane.b32.xlu0 %v6176_v32, %s7938_s29  ;;  %v5639_v32 = vld [vmem:[%s12677_s4 + $0x140] sm:$0xff] }
 0x4a3   :  { %v5182_v5 = vpop.permute.xlu1 %5181 }
 0x4a4   :  { %5184 = vst.msk [vmem:[#allocation2] sm:$0x1] %vm9287_vm6, %v5182_v5  ;;  %v5218_v11 = vpop.permute.xlu0 %5217  ;;  %v5638_v5 = vld [vmem:[%s12677_s4 + $0x138] sm:$0xff] }
 0x4a5   :  { %5203 = vst.msk [vmem:[#allocation2] sm:$0x1] %vm9305_vm11, %v5201_v46  ;;  %6228 = vrot.lane.b32.xlu1 %v6227_v17, %s7943_s13 }
 0x4a6   :  { %6182 = vrot.lane.b32.xlu0 %v6181_v47, %s7939_s30  ;;  %v5518_v47 = vcombine.high %v11618_v37, %v11618_v37  ;;  %v5635_v37 = vld [vmem:[%s12677_s4 + $0x120] sm:$0xff] }
 0x4a7   :  { %v5213_v31 = vpop.permute.xlu1 %5212 }
 0x4a8   :  { %5215 = vst.msk [vmem:[#allocation2] sm:$0x1] %vm9322_vm10, %v5213_v31  ;;  %v5223_v19 = vpop.permute.xlu0 %5222 }
 0x4a9   :  { %5220 = vst.msk [vmem:[#allocation2] sm:$0x1] %vm9328_vm7, %v5218_v11  ;;  %6257 = vrot.lane.b32.xlu1 %v6256_v61, %s7938_s29  ;;  %v5637_v11 = vld [vmem:[%s12677_s4 + $0x130] sm:$0xff] }
 0x4aa   :  { %5225 = vst.msk [vmem:[#allocation2] sm:$0x1] %vm13133_vm5, %v5223_v19  ;;  %6206 = vrot.lane.b32.xlu0 %v6205_v6, %s7937_s28  ;;  %v5634_v19 = vld [vmem:[%s12677_s4 + $0x118] sm:$0xff] }
 0x4ab   :  { %v5355_v53 = vpop.permute.xlu1 %5354 }
 0x4ac   :  { %5357 = vst.msk [vmem:[#allocation3] sm:$0x1] %vm8983_vm8, %v5355_v53  ;;  %v5382_v24 = vpop.permute.xlu0 %5381 }
 0x4ad   :  { %5360 = vst.msk [vmem:[#allocation3] sm:$0x1] %vm9256_vm15, %v5358_v43  ;;  %6262 = vrot.lane.b32.xlu1 %v6261_v4, %s7939_s30  ;;  %v5633_v43 = vld [vmem:[%s12677_s4 + $0x110] sm:$0xff]  ;;  %v5632_v4 = vld [vmem:[%s12677_s4 + $0x108] sm:$0xff] }
 0x4ae   :  { %6187 = vrot.lane.b32.xlu0 %v6186_v10, %s7940_s10  ;;  %v5631_v10 = vld [vmem:[%s12677_s4 + $0x100] sm:$0xff] }
 0x4af   :  { %v5363_v41 = vpop.permute.xlu1 %5362 }
 0x4b0   :  { %5365 = vst.msk [vmem:[#allocation3] sm:$0x1] %vm9283_vm9, %v5363_v41  ;;  %v5399_v60 = vpop.permute.xlu0 %5398  ;;  %v5648_v41 = vld [vmem:[%s12677_s4 + $0x188] sm:$0xff] }
 0x4b1   :  { %5384 = vst.msk [vmem:[#allocation3] sm:$0x1] %vm9287_vm6, %v5382_v24  ;;  %6286 = vrot.lane.b32.xlu1 %v6285_v57, %s7937_s28  ;;  %v5227_v8 = vld [vmem:[#allocation2] sm:$0x3] }
 0x4b2   :  { %6218 = vrot.lane.b32.xlu0 %v6217_v45, %s7941_s11  ;;  %v5255_v22 = vrot.slane %v5227_v8, %v13134_v56  ;;  %v5251_v2 = vrot.slane %v5227_v8, %v13122_v29  ;;  %v5641_v45 = vld [vmem:[%s12677_s4 + $0x150] sm:$0xff]  ;;  %v5647_v8 = vld [vmem:[%s12677_s4 + $0x180] sm:$0xff] }
 0x4b3   :  { %v5394_v38 = vpop.permute.xlu1 %5393 }
 0x4b4   :  { %5396 = vst.msk [vmem:[#allocation3] sm:$0x1] %vm9305_vm11, %v5394_v38  ;;  %7396 = vmatprep.mubr.msk.f32.mxu1 %vm13135_vm13, %v5255_v22  ;;  %v5423_v33 = vpop.permute.xlu0 %5422  ;;  %v6371_v22 = vld [vmem:[%s12678_s5 + $0x1f8] sm:$0xff] }
 0x4b5   :  { %5401 = vst.msk [vmem:[#allocation3] sm:$0x1] %vm9322_vm10, %v5399_v60  ;;  %6267 = vrot.lane.b32.xlu1 %v6266_v36, %s7940_s10  ;;  %5324 = vmatmul.mubr.f32.vlgmr.msra.gmra.mxu1 %v5251_v2 }
 0x4b6   :  { %6303 = vrot.lane.b32.xlu0 %v6302_v39, %s7942_s12  ;;  %5751 = vmatpush1.msra.mxu1 %v5646_v20 }
 0x4b7   :  { %v5462_v6 = vpop.permute.xlu1 %5461  ;;  %5752 = vmatprep.subr.mxu1 %v13044_v55 }
 0x4b8   :  { %v5435_v28 = vpop.permute.xlu0 %5434  ;;  %5753 = vmatpush1.msra.mxu1 %v5645_v52  ;;  %v13136_v52 = vld [vmem:[#allocation9_spill] sm:$0xff] }
 0x4b9   :  { %6298 = vrot.lane.b32.xlu1 %v6297_v0, %s7941_s11  ;;  %5437 = vst.msk [vmem:[#allocation3 + $0x1] sm:$0x1] %vm8983_vm8, %v5435_v28  ;;  %5754 = vmatprep.subr.mxu1 %v13044_v55  ;;  %v6323_v28 = vld [vmem:[%s12678_s5 + $0x78] sm:$0xff] }
 0x4ba   :  { %5440 = vst.msk [vmem:[#allocation3 + $0x1] sm:$0x1] %vm9256_vm15, %v5438_v7  ;;  %5755 = vmatpush1.msra.mxu1 %v5644_v1  ;;  %v13137_v1 = vld [vmem:[#allocation21_spill] sm:$0xff] }
 0x4bb   :  { %v5404_v50 = vpop.permute.xlu1 %5403  ;;  %5756 = vmatprep.subr.mxu1 %v13044_v55 }
 0x4bc   :  { %5406 = vst.msk [vmem:[#allocation3] sm:$0x1] %vm9328_vm7, %v5404_v50  ;;  %v5443_v9 = vpop.permute.xlu0 %5442  ;;  %5757 = vmatpush1.msra.mxu1 %v5643_v44  ;;  %v6355_v44 = vld [vmem:[%s12678_s5 + $0x178] sm:$0xff] }
 0x4bd   :  { %5425 = vst.msk [vmem:[#allocation3] sm:$0x1] %vm13133_vm5, %v5423_v33  ;;  %5758 = vmatprep.subr.mxu1 %v13044_v55  ;;  %5675 = vrot.lane.b32.xlu1 %v7397_v23, %s7937_s28  ;;  %v6338_v23 = vld [vmem:[%s12678_s5 + $0xf0] sm:$0xff] }
 0x4be   :  { %5445 = vst.msk [vmem:[#allocation3 + $0x1] sm:$0x1] %vm9283_vm9, %v5443_v9  ;;  %5759 = vmatpush1.msra.mxu1 %v5642_v3  ;;  %v6322_v3 = vld [vmem:[%s12678_s5 + $0x70] sm:$0xff] }
 0x4bf   :  { %5464 = vst.msk [vmem:[#allocation3 + $0x1] sm:$0x1] %vm9287_vm6, %v5462_v6  ;;  %v5479_v59 = vpop.permute.xlu1 %5478  ;;  %5760 = vmatprep.subr.mxu1 %v13044_v55  ;;  %v6354_v9 = vld [vmem:[%s12678_s5 + $0x170] sm:$0xff] }
 0x4c0   :  { %v5474_v46 = vpop.permute.xlu0 %5473  ;;  %5761 = vmatpush1.msra.mxu1 %v5641_v45 }
 0x4c1   :  { %5476 = vst.msk [vmem:[#allocation3 + $0x1] sm:$0x1] %vm9305_vm11, %v5474_v46  ;;  %5762 = vmatprep.subr.mxu1 %v13044_v55  ;;  %v6321_v46 = vld [vmem:[%s12678_s5 + $0x68] sm:$0xff] }
 0x4c2   :  { %5481 = vst.msk [vmem:[#allocation3 + $0x1] sm:$0x1] %vm9322_vm10, %v5479_v59  ;;  %5763 = vmatpush1.msra.mxu1 %v5640_v63  ;;  %v6337_v59 = vld [vmem:[%s12678_s5 + $0xe8] sm:$0xff] }
 0x4c3   :  { %v5503_v15 = vpop.permute.xlu1 %5502  ;;  %5764 = vmatprep.subr.mxu1 %v13044_v55  ;;  %v6369_v63 = vld [vmem:[%s12678_s5 + $0x1e8] sm:$0xff] }
 0x4c4   :  { %v5542_v17 = vpop.permute.xlu0 %5541  ;;  %5765 = vmatpush1.msra.mxu1 %v5639_v32  ;;  %v6353_v32 = vld [vmem:[%s12678_s5 + $0x168] sm:$0xff] }
 0x4c5   :  { %5766 = vmatprep.subr.mxu1 %v13044_v55 }
 0x4c6   :  { %5767 = vmatpush1.msra.mxu1 %v5638_v5  ;;  %v6368_v5 = vld [vmem:[%s12678_s5 + $0x1e0] sm:$0xff] }
 0x4c7   :  { %v5515_v18 = vpop.permute.xlu1 %5514  ;;  %5768 = vmatprep.subr.mxu1 %v13044_v55 }
 0x4c8   :  { %5517 = vst.msk [vmem:[#allocation3 + $0x2] sm:$0x1] %vm8983_vm8, %v5515_v18  ;;  %v5484_v31 = vpop.permute.xlu0 %5483  ;;  %5769 = vmatpush1.msra.mxu1 %v5637_v11  ;;  %v6320_v11 = vld [vmem:[%s12678_s5 + $0x60] sm:$0xff] }
 0x4c9   :  { %5520 = vst.msk [vmem:[#allocation3 + $0x2] sm:$0x1] %vm9256_vm15, %v5518_v47  ;;  %5770 = vmatprep.subr.mxu1 %v13044_v55  ;;  %v6352_v47 = vld [vmem:[%s12678_s5 + $0x160] sm:$0xff] }
 0x4ca   :  { %5486 = vst.msk [vmem:[#allocation3 + $0x1] sm:$0x1] %vm9328_vm7, %v5484_v31  ;;  %5771 = vmatpush1.msra.mxu1 %v5636_v13  ;;  %v6335_v13 = vld [vmem:[%s12678_s5 + $0xd8] sm:$0xff] }
 0x4cb   :  { %5505 = vst.msk [vmem:[#allocation3 + $0x1] sm:$0x1] %vm13133_vm5, %v5503_v15  ;;  %v5523_v61 = vpop.permute.xlu1 %5522  ;;  %5772 = vmatprep.subr.mxu1 %v13044_v55  ;;  %v6336_v15 = vld [vmem:[%s12678_s5 + $0xe0] sm:$0xff]  ;;  %v6367_v31 = vld [vmem:[%s12678_s5 + $0x1d8] sm:$0xff] }
 0x4cc   :  { %5525 = vst.msk [vmem:[#allocation3 + $0x2] sm:$0x1] %vm9283_vm9, %v5523_v61  ;;  %v5559_v14 = vpop.permute.xlu0 %5558  ;;  %5773 = vmatpush1.msra.mxu1 %v5635_v37  ;;  %v6319_v37 = vld [vmem:[%s12678_s5 + $0x58] sm:$0xff] }
 0x4cd   :  { %5544 = vst.msk [vmem:[#allocation3 + $0x2] sm:$0x1] %vm9287_vm6, %v5542_v17  ;;  %5774 = vmatprep.subr.mxu1 %v13044_v55  ;;  %v6351_v61 = vld [vmem:[%s12678_s5 + $0x158] sm:$0xff] }
 0x4ce   :  { %5775 = vmatpush1.msra.mxu1 %v5634_v19  ;;  %v6334_v19 = vld [vmem:[%s12678_s5 + $0xd0] sm:$0xff] }
 0x4cf   :  { %v5554_v53 = vpop.permute.xlu1 %5553  ;;  %5776 = vmatprep.subr.mxu1 %v13044_v55 }
 0x4d0   :  { %5556 = vst.msk [vmem:[#allocation3 + $0x2] sm:$0x1] %vm9305_vm11, %v5554_v53  ;;  %v5583_v24 = vpop.permute.xlu0 %5582  ;;  %5777 = vmatpush1.msra.mxu1 %v5633_v43  ;;  %v6318_v53 = vld [vmem:[%s12678_s5 + $0x50] sm:$0xff] }
 0x4d1   :  { %5561 = vst.msk [vmem:[#allocation3 + $0x2] sm:$0x1] %vm9322_vm10, %v5559_v14  ;;  %5778 = vmatprep.subr.mxu1 %v13044_v55  ;;  %v6366_v14 = vld [vmem:[%s12678_s5 + $0x1d0] sm:$0xff] }
 0x4d2   :  { %5779 = vmatpush1.msra.mxu1 %v5632_v4  ;;  %v6350_v4 = vld [vmem:[%s12678_s5 + $0x150] sm:$0xff] }
 0x4d3   :  { %v5564_v57 = vpop.permute.xlu1 %5563  ;;  %5780 = vmatprep.subr.mxu1 %v13044_v55 }
 0x4d4   :  { %5566 = vst.msk [vmem:[#allocation3 + $0x2] sm:$0x1] %vm9328_vm7, %v5564_v57  ;;  %v5824_v60 = vpop.permute.xlu0 %5823  ;;  %5781 = vmatpush1.msra.mxu1 %v5631_v10  ;;  %v6333_v10 = vld [vmem:[%s12678_s5 + $0xc8] sm:$0xff] }
 0x4d5   :  { %5585 = vst.msk [vmem:[#allocation3 + $0x2] sm:$0x1] %vm13133_vm5, %v5583_v24  ;;  %5810 = vmatprep.subr.mxu1 %v13044_v55  ;;  %v6365_v57 = vld [vmem:[%s12678_s5 + $0x1c8] sm:$0xff] }
 0x4d6   :  { %5826 = vst.msk [vmem:[#allocation4] sm:$0x1] %vm8983_vm8, %v5824_v60  ;;  %5811 = vmatpush2.msra.mxu1 %v5648_v41  ;;  %v6317_v41 = vld [vmem:[%s12678_s5 + $0x48] sm:$0xff] }
 0x4d7   :  { %v5595_v2 = vpop.permute.xlu1 %5594  ;;  %5812 = vmatprep.subr.mxu1 %v13044_v55  ;;  %v6349_v60 = vld [vmem:[%s12678_s5 + $0x148] sm:$0xff] }
 0x4d8   :  { %5597 = vst.msk [vmem:[#allocation3 + $0x3] sm:$0x1] %vm8983_vm8, %v5595_v2  ;;  %v5829_v40 = vpop.permute.xlu0 %5828  ;;  %5813 = vmatpush2.msra.mxu1 %v5647_v8  ;;  %v6332_v8 = vld [vmem:[%s12678_s5 + $0xc0] sm:$0xff] }
 0x4d9   :  { %5831 = vst.msk [vmem:[#allocation4] sm:$0x1] %vm9256_vm15, %v5829_v40  ;;  %7665 = vmatprep.subr.mxu1 %v6371_v22  ;;  %v6364_v22 = vld [vmem:[%s12678_s5 + $0x1c0] sm:$0xff] }
 0x4da   :  { %5848 = vst.msk [vmem:[#allocation4] sm:$0x1] %vm9283_vm9, %v11716_v12  ;;  %v6316_v40 = vld [vmem:[%s12678_s5 + $0x40] sm:$0xff] }
 0x4db   :  { %v5904_v38 = vpop.permute.xlu1 %5903 }
 0x4dc   :  { %5906 = vst.msk [vmem:[#allocation4 + $0x1] sm:$0x1] %vm8983_vm8, %v5904_v38  ;;  %v5858_v36 = vpop.permute.xlu0 %5857  ;;  %v6348_v38 = vld [vmem:[%s12678_s5 + $0x140] sm:$0xff] }
 0x4dd   :  { %5860 = vst.msk [vmem:[#allocation4] sm:$0x1] %vm9287_vm6, %v5858_v36 }
 0x4df   :  { %v5909_v20 = vpop.permute.xlu1 %5908  ;;  %v5598_v39 = vld [vmem:[#allocation3] sm:$0xf] }
 0x4e0   :  { %5911 = vst.msk [vmem:[#allocation4 + $0x1] sm:$0x1] %vm9256_vm15, %v5909_v20  ;;  %v5658_v33 = vrot.slane %v5598_v39, %v13134_v56  ;;  %v5666_v0 = vrot.slane %v5598_v39, %v13136_v52  ;;  %v5654_v6 = vrot.slane %v5598_v39, %v13122_v29  ;;  %v5863_v12 = vpop.permute.xlu0 %5862  ;;  %v5662_v7 = vrot.slane %v5598_v39, %v13137_v1  ;;  %v6331_v20 = vld [vmem:[%s12678_s5 + $0xb8] sm:$0xff] }
 0x4e1   :  { %5928 = vst.msk [vmem:[#allocation4 + $0x1] sm:$0x1] %vm9283_vm9, %v11728_v35  ;;  %v6370_v35 = vld [vmem:[%s12678_s5 + $0x1f0] sm:$0xff]  ;;  %v6363_v39 = vld [vmem:[%s12678_s5 + $0x1b8] sm:$0xff] }
 0x4e2   :  { %5865 = vst.msk [vmem:[#allocation4] sm:$0x1] %vm9305_vm11, %v5863_v12  ;;  %5744 = vmatprep.mubr.f32.mxu0 %v5658_v33  ;;  %7398 = vmatprep.mubr.msk.f32.mxu1 %vm13138_vm14, %v5666_v0  ;;  %v6315_v33 = vld [vmem:[%s12678_s5 + $0x38] sm:$0xff]  ;;  %v6362_v12 = vld [vmem:[%s12678_s5 + $0x1b0] sm:$0xff] }
 0x4e3   :  { %5745 = vmatmul.mubr.f32.vlgmr.msra.gmra.mxu0 %v5654_v6  ;;  %v5938_v50 = vpop.permute.xlu1 %5937  ;;  %5815 = vmatmul.mubr.f32.vlgmr.msra.gmra.mxu1 %v5662_v7  ;;  %v6347_v0 = vld [vmem:[%s12678_s5 + $0x138] sm:$0xff]  ;;  %v6330_v6 = vld [vmem:[%s12678_s5 + $0xb0] sm:$0xff] }
 0x4e4   :  { %5940 = vst.msk [vmem:[#allocation4 + $0x1] sm:$0x1] %vm9287_vm6, %v5938_v50  ;;  %v5887_v45 = vpop.permute.xlu0 %5886  ;;  %7631 = vmatpush3.msra.mxu0 %v6323_v28  ;;  %7666 = vmatpush3.msra.mxu1 %v6355_v44  ;;  %v6314_v28 = vld [vmem:[%s12678_s5 + $0x30] sm:$0xff]  ;;  %v6361_v50 = vld [vmem:[%s12678_s5 + $0x1a8] sm:$0xff] }
 0x4e5   :  { %7632 = vmatprep.subr.mxu0 %v6338_v23  ;;  %7667 = vmatprep.subr.mxu1 %v6370_v35  ;;  %v6346_v44 = vld [vmem:[%s12678_s5 + $0x130] sm:$0xff]  ;;  %v6329_v35 = vld [vmem:[%s12678_s5 + $0xa8] sm:$0xff] }
 0x4e6   :  { %7633 = vmatpush3.msra.mxu0 %v6322_v3  ;;  %7668 = vmatpush3.msra.mxu1 %v6354_v9  ;;  %v6313_v3 = vld [vmem:[%s12678_s5 + $0x28] sm:$0xff] }
 0x4e7   :  { %v5943_v17 = vpop.permute.xlu1 %5942  ;;  %7634 = vmatprep.subr.mxu0 %v6337_v59  ;;  %7669 = vmatprep.subr.mxu1 %v6369_v63  ;;  %v6345_v9 = vld [vmem:[%s12678_s5 + $0x128] sm:$0xff]  ;;  %v6360_v59 = vld [vmem:[%s12678_s5 + $0x1a0] sm:$0xff] }
 0x4e8   :  { %5945 = vst.msk [vmem:[#allocation4 + $0x1] sm:$0x1] %vm9305_vm11, %v5943_v17  ;;  %v5868_v18 = vpop.permute.xlu0 %5867  ;;  %7635 = vmatpush3.msra.mxu0 %v6321_v46  ;;  %7670 = vmatpush3.msra.mxu1 %v6353_v32  ;;  %v6312_v46 = vld [vmem:[%s12678_s5 + $0x20] sm:$0xff]  ;;  %v6311_v17 = vld [vmem:[%s12678_s5 + $0x18] sm:$0xff] }
 0x4e9   :  { %5870 = vst.msk [vmem:[#allocation4] sm:$0x1] %vm9322_vm10, %v5868_v18  ;;  %7636 = vmatprep.subr.mxu0 %v6336_v15  ;;  %7671 = vmatprep.subr.mxu1 %v6368_v5  ;;  %v6327_v15 = vld [vmem:[%s12678_s5 + $0x98] sm:$0xff]  ;;  %v6358_v18 = vld [vmem:[%s12678_s5 + $0x190] sm:$0xff] }
 0x4ea   :  { %5889 = vst.msk [vmem:[#allocation4] sm:$0x1] %vm9328_vm7, %v5887_v45  ;;  %7637 = vmatpush3.msra.mxu0 %v6320_v11  ;;  %7672 = vmatpush3.msra.mxu1 %v6352_v47  ;;  %v6328_v45 = vld [vmem:[%s12678_s5 + $0xa0] sm:$0xff]  ;;  %v6359_v5 = vld [vmem:[%s12678_s5 + $0x198] sm:$0xff]  ;;  %v6326_v47 = vld [vmem:[%s12678_s5 + $0x90] sm:$0xff] }
 0x4eb   :  { %v5967_v43 = vpop.permute.xlu1 %5966  ;;  %7638 = vmatprep.subr.mxu0 %v6335_v13  ;;  %7673 = vmatprep.subr.mxu1 %v6367_v31  ;;  %v6343_v11 = vld [vmem:[%s12678_s5 + $0x118] sm:$0xff]  ;;  %v6310_v31 = vld [vmem:[%s12678_s5 + $0x10] sm:$0xff] }
 0x4ec   :  { %v5899_v24 = vpop.permute.xlu0 %5898  ;;  %7639 = vmatpush3.msra.mxu0 %v6319_v37  ;;  %7674 = vmatpush3.msra.mxu1 %v6351_v61  ;;  %v6342_v37 = vld [vmem:[%s12678_s5 + $0x110] sm:$0xff] }
 0x4ed   :  { %5901 = vst.msk [vmem:[#allocation4] sm:$0x1] %vm13133_vm5, %v5899_v24  ;;  %7640 = vmatprep.subr.mxu0 %v6334_v19  ;;  %7675 = vmatprep.subr.mxu1 %v6366_v14  ;;  %v6325_v19 = vld [vmem:[%s12678_s5 + $0x88] sm:$0xff] }
 0x4ee   :  { %7641 = vmatpush3.msra.mxu0 %v6318_v53  ;;  %7676 = vmatpush3.msra.mxu1 %v6350_v4  ;;  %v6357_v14 = vld [vmem:[%s12678_s5 + $0x188] sm:$0xff]  ;;  %v6324_v4 = vld [vmem:[%s12678_s5 + $0x80] sm:$0xff] }
 0x4ef   :  { %v5948_v2 = vpop.permute.xlu1 %5947  ;;  %7642 = vmatprep.subr.mxu0 %v6333_v10  ;;  %7677 = vmatprep.subr.mxu1 %v6365_v57  ;;  %v6341_v53 = vld [vmem:[%s12678_s5 + $0x108] sm:$0xff]  ;;  %v6308_v10 = vld [vmem:[%s12678_s5] sm:$0xff] }
 0x4f0   :  { %5950 = vst.msk [vmem:[#allocation4 + $0x1] sm:$0x1] %vm9322_vm10, %v5948_v2  ;;  %v5984_v36 = vpop.permute.xlu0 %5983  ;;  %7643 = vmatpush3.msra.mxu0 %v6317_v41  ;;  %7678 = vmatpush3.msra.mxu1 %v6349_v60  ;;  %v6340_v57 = vld [vmem:[%s12678_s5 + $0x100] sm:$0xff]  ;;  %v6403_v60 = vld [vmem:[%s12678_s5 + $0x2f8] sm:$0xff] }
 0x4f1   :  { %5969 = vst.msk [vmem:[#allocation4 + $0x1] sm:$0x1] %vm9328_vm7, %v5967_v43  ;;  %7644 = vmatprep.subr.mxu0 %v6332_v8  ;;  %7679 = vmatprep.subr.mxu1 %v6364_v22  ;;  %v6309_v43 = vld [vmem:[%s12678_s5 + $0x8] sm:$0xff] }
 0x4f2   :  { %5986 = vst.msk [vmem:[#allocation4 + $0x2] sm:$0x1] %vm8983_vm8, %v5984_v36  ;;  %7645 = vmatpush3.msra.mxu0 %v6316_v40  ;;  %7680 = vmatpush3.msra.mxu1 %v6348_v38 }
 0x4f3   :  { %v5979_v7 = vpop.permute.xlu1 %5978  ;;  %7646 = vmatprep.subr.mxu0 %v6331_v20  ;;  %7681 = vmatprep.subr.mxu1 %v6363_v39 }
 0x4f4   :  { %5981 = vst.msk [vmem:[#allocation4 + $0x1] sm:$0x1] %vm13133_vm5, %v5979_v7  ;;  %v5989_v23 = vpop.permute.xlu0 %5988  ;;  %7647 = vmatpush3.msra.mxu0 %v6315_v33  ;;  %7682 = vmatpush3.msra.mxu1 %v6347_v0 }
 0x4f5   :  { %5991 = vst.msk [vmem:[#allocation4 + $0x2] sm:$0x1] %vm9256_vm15, %v5989_v23  ;;  %7648 = vmatprep.subr.mxu0 %v6330_v6  ;;  %7683 = vmatprep.subr.mxu1 %v6362_v12 }
 0x4f6   :  { %6008 = vst.msk [vmem:[#allocation4 + $0x2] sm:$0x1] %vm9283_vm9, %v11753_v49  ;;  %7649 = vmatpush3.msra.mxu0 %v6314_v28  ;;  %7684 = vmatpush3.msra.mxu1 %v6346_v44  ;;  %v6344_v49 = vld [vmem:[%s12678_s5 + $0x120] sm:$0xff] }
 0x4f7   :  { %v6064_v63 = vpop.permute.xlu1 %6063  ;;  %7650 = vmatprep.subr.mxu0 %v6329_v35  ;;  %7685 = vmatprep.subr.mxu1 %v6361_v50 }
 0x4f8   :  { %6066 = vst.msk [vmem:[#allocation4 + $0x3] sm:$0x1] %vm8983_vm8, %v6064_v63  ;;  %v6018_v32 = vpop.permute.xlu0 %6017  ;;  %7651 = vmatpush3.msra.mxu0 %v6313_v3  ;;  %7686 = vmatpush3.msra.mxu1 %v6345_v9  ;;  %v6405_v3 = vld [vmem:[%s12678_s5 + $0x308] sm:$0xff]  ;;  %v6400_v63 = vld [vmem:[%s12678_s5 + $0x2e0] sm:$0xff] }
 0x4f9   :  { %6020 = vst.msk [vmem:[#allocation4 + $0x2] sm:$0x1] %vm9287_vm6, %v6018_v32  ;;  %7652 = vmatprep.subr.mxu0 %v6328_v45  ;;  %7687 = vmatprep.subr.mxu1 %v6360_v59  ;;  %v6401_v9 = vld [vmem:[%s12678_s5 + $0x2e8] sm:$0xff]  ;;  %v6404_v45 = vld [vmem:[%s12678_s5 + $0x300] sm:$0xff] }
 0x4fa   :  { %7653 = vmatpush3.msra.mxu0 %v6312_v46  ;;  %7688 = vmatpush3.msra.mxu1 %v6344_v49  ;;  %v6385_v59 = vld [vmem:[%s12678_s5 + $0x268] sm:$0xff]  ;;  %v13140_v46 = vsub.s32 6, %v13123_v58  ;;  %v6384_v32 = vld [vmem:[%s12678_s5 + $0x260] sm:$0xff] }
 0x4fb   :  { %v6069_v13 = vpop.permute.xlu1 %6068  ;;  %7654 = vmatprep.subr.mxu0 %v6327_v15  ;;  %7689 = vmatprep.subr.mxu1 %v6359_v5  ;;  %v6399_v15 = vld [vmem:[%s12678_s5 + $0x2d8] sm:$0xff] }
 0x4fc   :  { %6071 = vst.msk [vmem:[#allocation4 + $0x3] sm:$0x1] %vm9256_vm15, %v6069_v13  ;;  %v6023_v61 = vpop.permute.xlu0 %6022  ;;  %7655 = vmatpush3.msra.mxu0 %v6311_v17  ;;  %7690 = vmatpush3.msra.mxu1 %v6343_v11  ;;  %v6383_v5 = vld [vmem:[%s12678_s5 + $0x258] sm:$0xff]  ;;  %v6398_v17 = vld [vmem:[%s12678_s5 + $0x2d0] sm:$0xff]  ;;  %v6396_v13 = vld [vmem:[%s12678_s5 + $0x2c0] sm:$0xff] }
 0x4fd   :  { %6088 = vst.msk [vmem:[#allocation4 + $0x3] sm:$0x1] %vm9283_vm9, %v11764_v21  ;;  %7656 = vmatprep.subr.mxu0 %v6326_v47  ;;  %7691 = vmatprep.subr.mxu1 %v6358_v18  ;;  %v6356_v21 = vld [vmem:[%s12678_s5 + $0x180] sm:$0xff]  ;;  %v6382_v11 = vld [vmem:[%s12678_s5 + $0x250] sm:$0xff]  ;;  %v6397_v47 = vld [vmem:[%s12678_s5 + $0x2c8] sm:$0xff] }
 0x4fe   :  { %6025 = vst.msk [vmem:[#allocation4 + $0x2] sm:$0x1] %vm9305_vm11, %v6023_v61  ;;  %7657 = vmatpush3.msra.mxu0 %v6310_v31  ;;  %7692 = vmatpush3.msra.mxu1 %v6342_v37  ;;  %v6381_v18 = vld [vmem:[%s12678_s5 + $0x248] sm:$0xff]  ;;  %v6380_v31 = vld [vmem:[%s12678_s5 + $0x240] sm:$0xff]  ;;  %v6395_v37 = vld [vmem:[%s12678_s5 + $0x2b8] sm:$0xff] }
 0x4ff   :  { %v6098_v24 = vpop.permute.xlu1 %6097  ;;  %7658 = vmatprep.subr.mxu0 %v6325_v19  ;;  %7693 = vmatprep.subr.mxu1 %v6357_v14  ;;  %v6379_v61 = vld [vmem:[%s12678_s5 + $0x238] sm:$0xff]  ;;  %v6394_v19 = vld [vmem:[%s12678_s5 + $0x2b0] sm:$0xff] }
 0x500   :  { %6100 = vst.msk [vmem:[#allocation4 + $0x3] sm:$0x1] %vm9287_vm6, %v6098_v24  ;;  %v6047_v41 = vpop.permute.xlu0 %6046  ;;  %7659 = vmatpush3.msra.mxu0 %v6309_v43  ;;  %7694 = vmatpush3.msra.mxu1 %v6341_v53  ;;  %v6378_v14 = vld [vmem:[%s12678_s5 + $0x230] sm:$0xff]  ;;  %v6393_v43 = vld [vmem:[%s12678_s5 + $0x2a8] sm:$0xff]  ;;  %v6391_v24 = vld [vmem:[%s12678_s5 + $0x298] sm:$0xff] }
 0x501   :  { %7660 = vmatprep.subr.mxu0 %v6324_v4  ;;  %7695 = vmatprep.subr.mxu1 %v6356_v21  ;;  %v6377_v53 = vld [vmem:[%s12678_s5 + $0x228] sm:$0xff]  ;;  %v6392_v4 = vld [vmem:[%s12678_s5 + $0x2a0] sm:$0xff] }
 0x502   :  { %7661 = vmatpush3.msra.mxu0 %v6308_v10  ;;  %7696 = vmatpush3.msra.mxu1 %v6340_v57  ;;  %v6376_v21 = vld [vmem:[%s12678_s5 + $0x220] sm:$0xff]  ;;  %v6375_v10 = vld [vmem:[%s12678_s5 + $0x218] sm:$0xff]  ;;  %v6390_v57 = vld [vmem:[%s12678_s5 + $0x290] sm:$0xff] }
 0x503   :  { %v6103_v8 = vpop.permute.xlu1 %6102  ;;  %7700 = vmatprep.subr.mxu0 %v6403_v60  ;;  %7871 = vmatprep.subr.mxu1 %v13044_v55  ;;  %v6389_v60 = vld [vmem:[%s12678_s5 + $0x288] sm:$0xff] }
 0x504   :  { %6105 = vst.msk [vmem:[#allocation4 + $0x3] sm:$0x1] %vm9305_vm11, %v6103_v8  ;;  %v6028_v22 = vpop.permute.xlu0 %6027  ;;  %v6373_v8 = vld [vmem:[%s12678_s5 + $0x208] sm:$0xff] }
 0x505   :  { %6030 = vst.msk [vmem:[#allocation4 + $0x2] sm:$0x1] %vm9322_vm10, %v6028_v22  ;;  %v6388_v22 = vld [vmem:[%s12678_s5 + $0x280] sm:$0xff] }
 0x506   :  { %6049 = vst.msk [vmem:[#allocation4 + $0x2] sm:$0x1] %vm9328_vm7, %v6047_v41  ;;  %v6374_v41 = vld [vmem:[%s12678_s5 + $0x210] sm:$0xff] }
 0x507   :  { %v6127_v2 = vpop.permute.xlu1 %6126 }
 0x508   :  { %v6059_v40 = vpop.permute.xlu0 %6058 }
 0x509   :  { %6061 = vst.msk [vmem:[#allocation4 + $0x2] sm:$0x1] %vm13133_vm5, %v6059_v40  ;;  %v13142_v40 = vsub.s32 4, %v13123_v58 }
 0x50b   :  { %v6108_v38 = vpop.permute.xlu1 %6107 }
 0x50c   :  { %6110 = vst.msk [vmem:[#allocation4 + $0x3] sm:$0x1] %vm9322_vm10, %v6108_v38  ;;  %v6144_v36 = vpop.permute.xlu0 %6143 }
 0x50d   :  { %6129 = vst.msk [vmem:[#allocation4 + $0x3] sm:$0x1] %vm9328_vm7, %v6127_v2  ;;  %v6372_v2 = vld [vmem:[%s12678_s5 + $0x200] sm:$0xff] }
 0x50e   :  { %6146 = vst.msk [vmem:[#allocation4 + $0x4] sm:$0x1] %vm8983_vm8, %v6144_v36 }
 0x50f   :  { %v6139_v20 = vpop.permute.xlu1 %6138 }
 0x510   :  { %6141 = vst.msk [vmem:[#allocation4 + $0x3] sm:$0x1] %vm13133_vm5, %v6139_v20  ;;  %v6149_v39 = vpop.permute.xlu0 %6148 }
 0x511   :  { %6151 = vst.msk [vmem:[#allocation4 + $0x4] sm:$0x1] %vm9256_vm15, %v6149_v39  ;;  %v6790_v39 = vld [vmem:[%s12680_s7 + $0x200] sm:$0xff] }
 0x512   :  { %6168 = vst.msk [vmem:[#allocation4 + $0x4] sm:$0x1] %vm9283_vm9, %v11792_v48 }
 0x513   :  { %v6224_v33 = vpop.permute.xlu1 %6223 }
 0x514   :  { %6226 = vst.msk [vmem:[#allocation4 + $0x5] sm:$0x1] %vm8983_vm8, %v6224_v33  ;;  %v6178_v0 = vpop.permute.xlu0 %6177  ;;  %v6792_v33 = vld [vmem:[%s12680_s7 + $0x210] sm:$0xff] }
 0x515   :  { %6180 = vst.msk [vmem:[#allocation4 + $0x4] sm:$0x1] %vm9287_vm6, %v6178_v0  ;;  %v6789_v0 = vld [vmem:[%s12680_s7 + $0x1f8] sm:$0xff] }
 0x517   :  { %v6229_v6 = vpop.permute.xlu1 %6228 }
 0x518   :  { %6231 = vst.msk [vmem:[#allocation4 + $0x5] sm:$0x1] %vm9256_vm15, %v6229_v6  ;;  %v6183_v12 = vpop.permute.xlu0 %6182  ;;  %v6791_v6 = vld [vmem:[%s12680_s7 + $0x208] sm:$0xff]  ;;  %vm13145_vm15 = vmmov %vm13121_vm1 }
 0x519   :  { %6248 = vst.msk [vmem:[#allocation4 + $0x5] sm:$0x1] %vm9283_vm9, %v11813_v54  ;;  %vm13144_vm9 = vmmov %vm13121_vm1 }
 0x51a   :  { %6185 = vst.msk [vmem:[#allocation4 + $0x4] sm:$0x1] %vm9305_vm11, %v6183_v12  ;;  %v6781_v12 = vld [vmem:[%s12680_s7 + $0x1b8] sm:$0xff] }
 0x51b   :  { %v6258_v48 = vpop.permute.xlu1 %6257 }
 0x51c   :  { %6260 = vst.msk [vmem:[#allocation4 + $0x5] sm:$0x1] %vm9287_vm6, %v6258_v48  ;;  %v6207_v7 = vpop.permute.xlu0 %6206  ;;  %vm13141_vm6 = vmmov %vm13135_vm13  ;;  %v6783_v48 = vld [vmem:[%s12680_s7 + $0x1c8] sm:$0xff] }
 0x51f   :  { %v6263_v28 = vpop.permute.xlu1 %6262 }
 0x520   :  { %6265 = vst.msk [vmem:[#allocation4 + $0x5] sm:$0x1] %vm9305_vm11, %v6263_v28  ;;  %v6188_v44 = vpop.permute.xlu0 %6187  ;;  %v6782_v28 = vld [vmem:[%s12680_s7 + $0x1c0] sm:$0xff]  ;;  %vm13146_vm11 = vmmov %vm13121_vm1 }
 0x521   :  { %6190 = vst.msk [vmem:[#allocation4 + $0x4] sm:$0x1] %vm9322_vm10, %v6188_v44  ;;  %v6772_v44 = vld [vmem:[%s12680_s7 + $0x170] sm:$0xff] }
 0x522   :  { %6209 = vst.msk [vmem:[#allocation4 + $0x4] sm:$0x1] %vm9328_vm7, %v6207_v7  ;;  %v6780_v7 = vld [vmem:[%s12680_s7 + $0x1b0] sm:$0xff] }
 0x523   :  { %v6287_v25 = vpop.permute.xlu1 %6286 }
 0x524   :  { %v6219_v51 = vpop.permute.xlu0 %6218 }
 0x525   :  { %6221 = vst.msk [vmem:[#allocation4 + $0x4] sm:$0x1] %vm13133_vm5, %v6219_v51  ;;  %v6771_v51 = vld [vmem:[%s12680_s7 + $0x168] sm:$0xff] }
 0x527   :  { %v6268_v54 = vpop.permute.xlu1 %6267 }
 0x528   :  { %6270 = vst.msk [vmem:[#allocation4 + $0x5] sm:$0x1] %vm9322_vm10, %v6268_v54  ;;  %v6304_v34 = vpop.permute.xlu0 %6303  ;;  %v6773_v54 = vld [vmem:[%s12680_s7 + $0x178] sm:$0xff] }
 0x529   :  { %6289 = vst.msk [vmem:[#allocation4 + $0x5] sm:$0x1] %vm9328_vm7, %v6287_v25  ;;  %v6774_v25 = vld [vmem:[%s12680_s7 + $0x180] sm:$0xff] }
 0x52a   :  { %6306 = vst.msk [vmem:[#allocation4 + $0x6] sm:$0x1] %vm8983_vm8, %v6304_v34  ;;  %v6763_v34 = vld [vmem:[%s12680_s7 + $0x128] sm:$0xff]  ;;  %vm13143_vm8 = vmmov %vm13121_vm1 }
 0x52b   :  { %v6299_v30 = vpop.permute.xlu1 %6298 }
 0x52c   :  { %6301 = vst.msk [vmem:[#allocation4 + $0x5] sm:$0x1] %vm13133_vm5, %v6299_v30  ;;  %v6765_v30 = vld [vmem:[%s12680_s7 + $0x138] sm:$0xff] }
 0x533   :  { %v12270_v23 = vld [vmem:[#allocation4] sm:$0x7f] }
 0x534   :  { %v6415_v35 = vrot.slane %v12270_v23, %v13134_v56  ;;  %v6423_v26 = vrot.slane %v12270_v23, %v13136_v52  ;;  %v6411_v50 = vrot.slane %v12270_v23, %v13122_v29  ;;  %v6419_v27 = vrot.slane %v12270_v23, %v13137_v1  ;;  %v6386_v1 = vld [vmem:[%s12678_s5 + $0x270] sm:$0xff] }
 0x535   :  { %v13139_v56 = vsub.s32 5, %v13123_v58  ;;  %v6435_v49 = vrot.slane %v12270_v23, %v13140_v46  ;;  %v6427_v38 = vrot.slane %v12270_v23, %v13142_v40  ;;  %v6729_v46 = vld [vmem:[%s12680_s7 + $0x18] sm:$0xff] }
 0x536   :  { %6508 = vmatprep.mubr.f32.mxu0 %v6415_v35  ;;  %6578 = vmatprep.mubr.f32.mxu1 %v6423_v26  ;;  %v6764_v35 = vld [vmem:[%s12680_s7 + $0x130] sm:$0xff]  ;;  %v6754_v26 = vld [vmem:[%s12680_s7 + $0xe0] sm:$0xff] }
 0x537   :  { %v6431_v52 = vrot.slane %v12270_v23, %v13139_v56  ;;  %6509 = vmatmul.mubr.f32.vlgmr.msra.gmra.mxu0 %v6411_v50  ;;  %6579 = vmatmul.mubr.f32.vlgmr.msra.gmra.mxu1 %v6419_v27  ;;  %v6762_v23 = vld [vmem:[%s12680_s7 + $0x120] sm:$0xff]  ;;  %v6756_v50 = vld [vmem:[%s12680_s7 + $0xf0] sm:$0xff]  ;;  %v6753_v27 = vld [vmem:[%s12680_s7 + $0xd8] sm:$0xff] }
 0x538   :  { %7701 = vmatpush3.msra.mxu0 %v6387_v62  ;;  %7872 = vmatpush3.msra.mxu1 %v6405_v3  ;;  %v6755_v62 = vld [vmem:[%s12680_s7 + $0xe8] sm:$0xff]  ;;  %v6746_v3 = vld [vmem:[%s12680_s7 + $0xa0] sm:$0xff] }
 0x539   :  { %6648 = vmatprep.mubr.f32.mxu0 %v6431_v52  ;;  %7702 = vmatprep.subr.mxu0 %v6402_v42  ;;  %v6745_v42 = vld [vmem:[%s12680_s7 + $0x98] sm:$0xff]  ;;  %v6747_v56 = vld [vmem:[%s12680_s7 + $0xa8] sm:$0xff]  ;;  %v6744_v52 = vld [vmem:[%s12680_s7 + $0x90] sm:$0xff] }
 0x53a   :  { %7703 = vmatpush3.msra.mxu0 %v6386_v1  ;;  %7873 = vmatprep.subr.mxu1 %v13044_v55  ;;  %v6736_v1 = vld [vmem:[%s12680_s7 + $0x50] sm:$0xff] }
 0x53b   :  { %7704 = vmatprep.subr.mxu0 %v6401_v9  ;;  %7874 = vmatpush3.msra.mxu1 %v6404_v45  ;;  %v6738_v9 = vld [vmem:[%s12680_s7 + $0x60] sm:$0xff]  ;;  %v6735_v45 = vld [vmem:[%s12680_s7 + $0x48] sm:$0xff] }
 0x53c   :  { %7875 = vmatprep.mubr.msk.f32.mxu1 %vm7935_vm0, %v13044_v55  ;;  %7705 = vmatpush3.msra.mxu0 %v6385_v59  ;;  %v6737_v59 = vld [vmem:[%s12680_s7 + $0x58] sm:$0xff] }
 0x53d   :  { %7876 = vmatmul.mubr.msk.f32.vlgmr.msra.gmra.mxu1 %vm13141_vm6, %v6435_v49  ;;  %7706 = vmatprep.subr.mxu0 %v6400_v63  ;;  %v6727_v63 = vld [vmem:[%s12680_s7 + $0x8] sm:$0xff]  ;;  %v6726_v49 = vld [vmem:[%s12680_s7] sm:$0xff] }
 0x53e   :  { %7707 = vmatpush3.msra.mxu0 %v6384_v32  ;;  %6865 = vmatprep.mubr.f32.mxu1 %v13044_v55  ;;  %v6728_v32 = vld [vmem:[%s12680_s7 + $0x10] sm:$0xff] }
 0x53f   :  { %7708 = vmatprep.subr.mxu0 %v6399_v15  ;;  %6817 = vmatprep.subr.mxu1 %v6790_v39  ;;  %v6794_v15 = vld [vmem:[%s12680_s7 + $0x220] sm:$0xff] }
 0x540   :  { %7709 = vmatpush3.msra.mxu0 %v6383_v5  ;;  %6818 = vmatpush1.msra.mxu1 %v6789_v0 }
 0x541   :  { %7710 = vmatprep.subr.mxu0 %v6398_v17  ;;  %6819 = vmatprep.subr.mxu1 %v6781_v12 }
 0x542   :  { %7711 = vmatpush3.msra.mxu0 %v6382_v11  ;;  %6820 = vmatpush1.msra.mxu1 %v6780_v7  ;;  %v6796_v11 = vld [vmem:[%s12680_s7 + $0x230] sm:$0xff]  ;;  %v6795_v7 = vld [vmem:[%s12680_s7 + $0x228] sm:$0xff] }
 0x543   :  { %7712 = vmatprep.subr.mxu0 %v6397_v47  ;;  %6821 = vmatprep.subr.mxu1 %v6772_v44  ;;  %v5676_v47 = vpop.permute.xlu1 %5675  ;;  %v6787_v44 = vld [vmem:[%s12680_s7 + $0x1e8] sm:$0xff] }
 0x544   :  { %7713 = vmatpush3.msra.mxu0 %v6381_v18  ;;  %6822 = vmatpush1.msra.mxu1 %v6771_v51  ;;  %v5246_v18 = vld [vmem:[%s12679_s6] sm:$0x1] }
 0x545   :  { %7714 = vmatprep.subr.mxu0 %v6396_v13  ;;  %6823 = vmatprep.subr.mxu1 %v6763_v34  ;;  %v6786_v51 = vld [vmem:[%s12680_s7 + $0x1e0] sm:$0xff] }
 0x546   :  { %7715 = vmatpush3.msra.mxu0 %v6380_v31  ;;  %6824 = vmatpush1.msra.mxu1 %v6762_v23  ;;  %v6778_v34 = vld [vmem:[%s12680_s7 + $0x1a0] sm:$0xff]  ;;  %v6777_v23 = vld [vmem:[%s12680_s7 + $0x198] sm:$0xff] }
 0x547   :  { %7716 = vmatprep.subr.mxu0 %v6395_v37  ;;  %6825 = vmatprep.subr.mxu1 %v6754_v26  ;;  %v6769_v26 = vld [vmem:[%s12680_s7 + $0x158] sm:$0xff] }
 0x548   :  { %7717 = vmatpush3.msra.mxu0 %v6379_v61  ;;  %6826 = vmatpush1.msra.mxu1 %v6753_v27  ;;  %v6768_v27 = vld [vmem:[%s12680_s7 + $0x150] sm:$0xff] }
 0x549   :  { %7718 = vmatprep.subr.mxu0 %v6394_v19  ;;  %6827 = vmatprep.subr.mxu1 %v6745_v42  ;;  %v6760_v42 = vld [vmem:[%s12680_s7 + $0x110] sm:$0xff] }
 0x54a   :  { %7719 = vmatpush3.msra.mxu0 %v6378_v14  ;;  %6828 = vmatpush1.msra.mxu1 %v6744_v52  ;;  %v6759_v52 = vld [vmem:[%s12680_s7 + $0x108] sm:$0xff] }
 0x54b   :  { %7720 = vmatprep.subr.mxu0 %v6393_v43  ;;  %6829 = vmatprep.subr.mxu1 %v6736_v1  ;;  %v6751_v1 = vld [vmem:[%s12680_s7 + $0xc8] sm:$0xff] }
 0x54c   :  { %7721 = vmatpush3.msra.mxu0 %v6377_v53  ;;  %6830 = vmatpush1.msra.mxu1 %v6735_v45  ;;  %v6750_v45 = vld [vmem:[%s12680_s7 + $0xc0] sm:$0xff] }
 0x54d   :  { %7722 = vmatprep.subr.mxu0 %v6392_v4  ;;  %6831 = vmatprep.subr.mxu1 %v6727_v63  ;;  %v6742_v63 = vld [vmem:[%s12680_s7 + $0x80] sm:$0xff] }
 0x54e   :  { %7723 = vmatpush3.msra.mxu0 %v6376_v21  ;;  %6832 = vmatpush1.msra.mxu1 %v6726_v49  ;;  %v6741_v49 = vld [vmem:[%s12680_s7 + $0x78] sm:$0xff] }
 0x54f   :  { %7724 = vmatprep.subr.mxu0 %v6391_v24  ;;  %6959 = vmatprep.subr.mxu1 %v6794_v15  ;;  %v6733_v15 = vld [vmem:[%s12680_s7 + $0x38] sm:$0xff] }
 0x550   :  { %7725 = vmatpush3.msra.mxu0 %v6375_v10 }
 0x551   :  { %7726 = vmatprep.subr.mxu0 %v6390_v57 }
 0x552   :  { %7727 = vmatpush3.msra.mxu0 %v6374_v41 }
 0x553   :  { %7728 = vmatprep.subr.mxu0 %v6389_v60 }
 0x554   :  { %7729 = vmatpush3.msra.mxu0 %v6373_v8 }
 0x555   :  { %7730 = vmatprep.subr.mxu0 %v6388_v22  ;;  %v6406_v22 = vld [vmem:[%s12679_s6 + $0x1] sm:$0x1] }
 0x556   :  { %7731 = vmatpush3.msra.mxu0 %v6372_v2 }
 0x557   :  { %6649 = vmatmul.mubr.f32.vlgmr.msra.gmra.mxu0 %v6427_v38  ;;  %6888 = vmatprep.subr.mxu0 %v6792_v33 }
 0x558   :  { %6936 = vmatprep.mubr.f32.mxu0 %v13044_v55  ;;  %6889 = vmatpush1.msra.mxu0 %v6791_v6 }
 0x559   :  { %6890 = vmatprep.subr.mxu0 %v6783_v48  ;;  %v6793_v48 = vld [vmem:[%s12680_s7 + $0x218] sm:$0xff] }
 0x55a   :  { %6891 = vmatpush1.msra.mxu0 %v6782_v28  ;;  %v6785_v28 = vld [vmem:[%s12680_s7 + $0x1d8] sm:$0xff] }
 0x55b   :  { %6892 = vmatprep.subr.mxu0 %v6774_v25  ;;  %v6784_v25 = vld [vmem:[%s12680_s7 + $0x1d0] sm:$0xff] }
 0x55c   :  { %6893 = vmatpush1.msra.mxu0 %v6773_v54  ;;  %v6776_v54 = vld [vmem:[%s12680_s7 + $0x190] sm:$0xff] }
 0x55d   :  { %6894 = vmatprep.subr.mxu0 %v6765_v30  ;;  %v6775_v30 = vld [vmem:[%s12680_s7 + $0x188] sm:$0xff] }
 0x55e   :  { %6895 = vmatpush1.msra.mxu0 %v6764_v35  ;;  %v6767_v35 = vld [vmem:[%s12680_s7 + $0x148] sm:$0xff] }
 0x55f   :  { %6896 = vmatprep.subr.mxu0 %v6756_v50  ;;  %v6766_v50 = vld [vmem:[%s12680_s7 + $0x140] sm:$0xff] }
 0x560   :  { %6897 = vmatpush1.msra.mxu0 %v6755_v62  ;;  %v6758_v62 = vld [vmem:[%s12680_s7 + $0x100] sm:$0xff] }
 0x561   :  { %6898 = vmatprep.subr.mxu0 %v6747_v56  ;;  %v6757_v56 = vld [vmem:[%s12680_s7 + $0xf8] sm:$0xff] }
 0x562   :  { %6899 = vmatpush1.msra.mxu0 %v6746_v3  ;;  %v6749_v3 = vld [vmem:[%s12680_s7 + $0xb8] sm:$0xff] }
 0x563   :  { %6900 = vmatprep.subr.mxu0 %v6738_v9  ;;  %v6748_v9 = vld [vmem:[%s12680_s7 + $0xb0] sm:$0xff] }
 0x564   :  { %6901 = vmatpush1.msra.mxu0 %v6737_v59  ;;  %v6740_v59 = vld [vmem:[%s12680_s7 + $0x70] sm:$0xff] }
 0x565   :  { %6902 = vmatprep.subr.mxu0 %v6729_v46  ;;  %v6739_v46 = vld [vmem:[%s12680_s7 + $0x68] sm:$0xff] }
 0x566   :  { %6903 = vmatpush1.msra.mxu0 %v6728_v32  ;;  %v6731_v32 = vld [vmem:[%s12680_s7 + $0x28] sm:$0xff] }
 0x567   :  { %7030 = vmatprep.subr.mxu0 %v6796_v11  ;;  %v6797_v11 = vld [vmem:[%s12680_s7 + $0x238] sm:$0xff] }
 0x575   :  { %v12394_v36 = vpop.f32.mrf.mxu1 }
 0x576   :  { %v5326_v61 = vadd.f32 %v12394_v36, %v5246_v18  ;;  %v6779_v18 = vld [vmem:[%s12680_s7 + $0x1a8] sm:$0xff] }
 0x577   :  { %v5327_v20 = vpop.f32.mrf.mxu1 }
 0x578   :  { %v5329_v43 = vmax.f32 %v5326_v61, 0.0  ;;  %v6743_v61 = vld [vmem:[%s12680_s7 + $0x88] sm:$0xff] }
 0x5a3   :  { %v7627_v5 = vpop.f32.mrf.mxu0  ;;  %v5816_v17 = vpop.f32.mrf.mxu1 }
 0x5a5   :  { %v7628_v13 = vpop.f32.mrf.mxu0  ;;  %v5818_v31 = vpop.f32.mrf.mxu1 }
 0x5a6   :  { %v7629_v37 = vadd.f32 %v7628_v13, %v7627_v5  ;;  %v6730_v5 = vld [vmem:[%s12680_s7 + $0x20] sm:$0xff]  ;;  %v6761_v31 = vld [vmem:[%s12680_s7 + $0x118] sm:$0xff] }
 0x5a7   :  { %v6770_v13 = vld [vmem:[%s12680_s7 + $0x160] sm:$0xff] }
 0x5a8   :  { %v5747_v19 = vadd.f32 %v7629_v37, %v5676_v47  ;;  %v6788_v47 = vld [vmem:[%s12680_s7 + $0x1f0] sm:$0xff] }
 0x5a9   :  { %v6752_v37 = vld [vmem:[%s12680_s7 + $0xd0] sm:$0xff] }
 0x5aa   :  { %v5817_v14 = vadd.f32 %v5816_v17, %v5747_v19  ;;  %v6732_v17 = vld [vmem:[%s12680_s7 + $0x30] sm:$0xff]  ;;  %v6734_v19 = vld [vmem:[%s12680_s7 + $0x40] sm:$0xff] }
 0x5ac   :  { %v5820_v53 = vmax.f32 %v5817_v14, 0.0 }
 0x5ae   :  { %v5821_v4 = vadd.f32 %v5820_v53, %v5329_v43 }
 0x5f7   :  { %v7697_v21 = vpop.f32.mrf.mxu1  ;;  %v7662_v41 = vpop.f32.mrf.mxu0 }
 0x5f9   :  { %v7698_v24 = vpop.f32.mrf.mxu1  ;;  %v7663_v60 = vpop.f32.mrf.mxu0 }
 0x5fa   :  { %v7664_v8 = vadd.f32 %v7663_v60, %v7662_v41  ;;  %v7699_v38 = vadd.f32 %v7698_v24, %v7697_v21 }
 0x5fc   :  { %v6511_v2 = vadd.f32 %v7664_v8, %v6406_v22 }
 0x5fd   :  { %v6720_v10 = vpop.f32.mrf.mxu1 }
 0x5fe   :  { %v6581_v20 = vadd.f32 %v7699_v38, %v6511_v2 }
 0x5ff   :  { %v7877_v57 = vpop.f32.mrf.mxu1 }
 0x617   :  { %v7732_v40 = vpop.f32.mrf.mxu0 }
 0x619   :  { %v7733_v36 = vpop.f32.mrf.mxu0 }
 0x61a   :  { %v7734_v39 = vadd.f32 %v7733_v36, %v7732_v40 }
 0x61c   :  { %v6651_v33 = vadd.f32 %v7734_v39, %v6581_v20 }
 0x61e   :  { %v6721_v0 = vadd.f32 %v6720_v10, %v6651_v33 }
 0x620   :  { %v6724_v6 = vmax.f32 %v6721_v0, 0.0 }
 0x622   :  { %v12505_v12 = vadd.f32 %v6724_v6, %v5821_v4  ;;  %v7163_v6 = vld [vmem:[%s12681_s8] sm:$0x1]  ;;  %s7944_s8 = smov [#allocation5]  }
 0x623   :  { %s12667_s16 = sshll.u32 %s7944_s8, 4  ;;  %s7287_s16 = int_to_ptr.vmem [resolvable:$true] %s12667_s16 }
 0x624   :  { %7400 = vmatmul.mubr.msk.f32.vlgmr.msra.gmra.mxu1 %vm13143_vm8, %v12505_v12  ;;  %7401 = vmatmul.mubr.msk.f32.vlgmr.msra.gmra.mxu0 %vm13144_vm9, %v12505_v12  ;;  %s7912_s11 = scalar_lea.vmem %s7287_s16, 8192  ;;  %p7917_p1 = scmp.lt.s32.totalorder %s7287_s16, %s7287_s16 }
 0x625   :  { %6960 = vmatpush1.msra.mxu1 %v6793_v48  ;;  %7031 = vmatpush1.msra.mxu0 %v6795_v7  ;;  %p7913_p0 = scmp.ne.s32.totalorder %s7287_s16, %s7912_s11  ;;  %p7918_p2 = scmp.lt.s32.totalorder %s7912_s11, %s7912_s11 }
 0x626   :  { %6961 = vmatprep.subr.mxu1 %v6785_v28  ;;  %7032 = vmatprep.subr.mxu0 %v6787_v44 }
 0x627   :  { %6962 = vmatpush1.msra.mxu1 %v6784_v25  ;;  %7033 = vmatpush1.msra.mxu0 %v6786_v51  ;;  %p7919_p3 = por %p7918_p2, %p7917_p1 }
 0x628   :  { %6963 = vmatprep.subr.mxu1 %v6776_v54  ;;  %7034 = vmatprep.subr.mxu0 %v6778_v34 }
 0x629   :  { %6964 = vmatpush1.msra.mxu1 %v6775_v30  ;;  %7035 = vmatpush1.msra.mxu0 %v6777_v23  ;;  %p7920_p4 = pnand %p7919_p3, %p7913_p0 }
 0x62a   :  { %6965 = vmatprep.subr.mxu1 %v6767_v35  ;;  %7036 = vmatprep.subr.mxu0 %v6769_v26 }
 0x62b   :  { %6966 = vmatpush1.msra.mxu1 %v6766_v50  ;;  %7037 = vmatpush1.msra.mxu0 %v6768_v27 }
 0x62c   :  { %6967 = vmatprep.subr.mxu1 %v6758_v62  ;;  %7038 = vmatprep.subr.mxu0 %v6760_v42 }
 0x62d   :  { %6968 = vmatpush1.msra.mxu1 %v6757_v56  ;;  %7039 = vmatpush1.msra.mxu0 %v6759_v52 }
 0x62e   :  { %6969 = vmatprep.subr.mxu1 %v6749_v3  ;;  %7040 = vmatprep.subr.mxu0 %v6751_v1 }
 0x62f   :  { %6970 = vmatpush1.msra.mxu1 %v6748_v9  ;;  %7041 = vmatpush1.msra.mxu0 %v6750_v45 }
 0x630   :  { %6971 = vmatprep.subr.mxu1 %v6740_v59  ;;  %7042 = vmatprep.subr.mxu0 %v6742_v63 }
 0x631   :  { %6972 = vmatpush1.msra.mxu1 %v6739_v46  ;;  %7043 = vmatpush1.msra.mxu0 %v6741_v49 }
 0x632   :  { %6973 = vmatprep.subr.mxu1 %v6731_v32  ;;  %7044 = vmatprep.subr.mxu0 %v6733_v15 }
 0x633   :  { %6974 = vmatpush1.msra.mxu1 %v6730_v5  ;;  %7007 = vmatprep.mubr.f32.mxu1 %v13044_v55 }
 0x634   :  { %7045 = vmatpush1.msra.mxu0 %v6732_v17  ;;  %7078 = vmatprep.mubr.f32.mxu0 %v13044_v55 }
 0x635   :  { %7402 = vmatmul.mubr.msk.f32.vlgmr.msra.gmra.mxu1 %vm13145_vm15, %v12505_v12  ;;  %7403 = vmatmul.mubr.msk.f32.vlgmr.msra.gmra.mxu0 %vm13146_vm11, %v12505_v12 }
 0x636   :  { %7878 = vmatprep.subr.mxu1 %v13044_v55  ;;  %7894 = vmatprep.mubr.msk.f32.mxu1 %vm7935_vm0, %v13044_v55  ;;  %vm13147_vm0 = vmmov %vm13121_vm1 }
 0x637   :  { %7879 = vmatpush3.msra.mxu1 %v6797_v11 }
 0x638   :  { %7880 = vmatprep.subr.mxu1 %v13044_v55 }
 0x639   :  { %7881 = vmatpush3.msra.mxu1 %v6788_v47 }
 0x63a   :  { %7882 = vmatprep.subr.mxu1 %v13044_v55 }
 0x63b   :  { %7883 = vmatpush3.msra.mxu1 %v6779_v18 }
 0x63c   :  { %7884 = vmatprep.subr.mxu1 %v13044_v55 }
 0x63d   :  { %7885 = vmatpush3.msra.mxu1 %v6770_v13 }
 0x63e   :  { %7886 = vmatprep.subr.mxu1 %v13044_v55 }
 0x63f   :  { %7887 = vmatpush3.msra.mxu1 %v6761_v31 }
 0x640   :  { %7888 = vmatprep.subr.mxu1 %v13044_v55 }
 0x641   :  { %7889 = vmatpush3.msra.mxu1 %v6752_v37 }
 0x642   :  { %7890 = vmatprep.subr.mxu1 %v13044_v55 }
 0x643   :  { %7891 = vmatpush3.msra.mxu1 %v6743_v61 }
 0x644   :  { %7892 = vmatprep.subr.mxu1 %v13044_v55 }
 0x645   :  { %7893 = vmatpush3.msra.mxu1 %v6734_v19 }
 0x646   :  { %7895 = vmatmul.mubr.msk.f32.vlgmr.msra.gmra.mxu1 %vm13147_vm0, %v12505_v12 }
 0x6e4   :  { %v6867_v14 = vpop.f32.mrf.mxu1  ;;  %v6938_v4 = vpop.f32.mrf.mxu0 }
 0x6e6   :  { %v6869_v43 = vpop.f32.mrf.mxu1  ;;  %v6940_v24 = vpop.f32.mrf.mxu0 }
 0x6e7   :  { %v7155_v53 = vadd.f32 %v6869_v43, %v6867_v14  ;;  %v7167_v2 = vadd.f32 %v6940_v24, %v6867_v14 }
 0x6e9   :  { %v7156_v21 = vadd.f32 %v7155_v53, %v6938_v4 }
 0x6eb   :  { %v7157_v57 = vadd.f32 %v7156_v21, %v6940_v24 }
 0x6f5   :  { %v7009_v10 = vpop.f32.mrf.mxu1  ;;  %v7080_v22 = vpop.f32.mrf.mxu0 }
 0x6f6   :  { %v7158_v41 = vadd.f32 %v7157_v57, %v7009_v10  ;;  %v7168_v38 = vadd.f32 %v7167_v2, %v7080_v22 }
 0x6f7   :  { %v7011_v60 = vpop.f32.mrf.mxu1  ;;  %v7082_v55 = vpop.f32.mrf.mxu0 }
 0x6f8   :  { %v7159_v8 = vadd.f32 %v7158_v41, %v7011_v60  ;;  %v7169_v36 = vadd.f32 %v7011_v60, %v6938_v4  ;;  %v7194_v39 = vsub.f32 %v7168_v38, %v6867_v14  ;;  %v7219_v33 = vsub.f32 %v7168_v38, %v7080_v22 }
 0x6f9   :  { %v7174_v7 = vrot.slane %v7168_v38, %v13122_v29  ;;  %v7165_v28 = vadd.f32 %v7082_v55, %v7080_v22 }
 0x6fa   :  { %v7160_v40 = vadd.f32 %v7159_v8, %v7080_v22  ;;  %v7199_v30 = vrot.slane %v7194_v39, %v13122_v29  ;;  %v7224_v23 = vrot.slane %v7219_v33, %v13122_v29 }
 0x6fb   :  { %v7175_v42 = vsel %vm3563_vm4, %v7174_v7, 0.0 }
 0x6fc   :  { %v7161_v20 = vadd.f32 %v7160_v40, %v7082_v55  ;;  %v7200_v59 = vsel %vm3563_vm4, %v7199_v30, 0.0  ;;  %v7225_v63 = vsel %vm3563_vm4, %v7224_v23, 0.0 }
 0x706   :  { %v7151_v0 = vpop.f32.mrf.mxu1 }
 0x707   :  { %v7162_v12 = vadd.f32 %v7161_v20, %v7151_v0  ;;  %v7170_v48 = vadd.f32 %v7169_v36, %v7151_v0  ;;  %v7166_v35 = vadd.f32 %v7165_v28, %v7151_v0 }
 0x708   :  { %v7896_v44 = vpop.f32.mrf.mxu1 }
 0x709   :  { %v7164_v25 = vadd.f32 %v7163_v6, %v7162_v12  ;;  %v7186_v51 = vrot.slane %v7170_v48, %v13122_v29  ;;  %v7195_v54 = vsub.f32 %v7170_v48, %v6938_v4  ;;  %v7220_v34 = vsub.f32 %v7170_v48, %v7151_v0 }
 0x70b   :  { %v7180_v26 = vrot.slane %v7164_v25, %v13122_v29  ;;  %v7188_v50 = vsel %vm3566_vm12, %v7186_v51, 0.0  ;;  %v7193_v27 = vsub.f32 %v7164_v25, %v7156_v21  ;;  %v7211_v62 = vrot.slane %v7195_v54, %v13122_v29 }
 0x70c   :  { %v7218_v56 = vsub.f32 %v7164_v25, %v7166_v35  ;;  %v7236_v52 = vrot.slane %v7220_v34, %v13122_v29 }
 0x70d   :  { %v7181_v3 = vsub.f32 %v7180_v26, %v7175_v42  ;;  %v7190_v1 = vsub.f32 %v7180_v26, %v7188_v50  ;;  %v7205_v9 = vrot.slane %v7193_v27, %v13122_v29  ;;  %v7213_v45 = vsel %vm3566_vm12, %v7211_v62, 0.0 }
 0x70e   :  { %v7230_v46 = vrot.slane %v7218_v56, %v13122_v29  ;;  %v7238_v49 = vsel %vm3566_vm12, %v7236_v52, 0.0 }
 0x70f   :  { %v7191_v32 = vmax.f32 %v7181_v3, 0.0  ;;  %v7192_v15 = vmax.f32 %v7190_v1, 0.0  ;;  %v7206_v5 = vsub.f32 %v7205_v9, %v7200_v59  ;;  %v7215_v17 = vsub.f32 %v7205_v9, %v7213_v45 }
 0x710   :  { %v7231_v11 = vsub.f32 %v7230_v46, %v7225_v63  ;;  %v7240_v47 = vsub.f32 %v7230_v46, %v7238_v49 }
 0x711   :  { %v7216_v18 = vmax.f32 %v7206_v5, 0.0  ;;  %v7217_v13 = vmax.f32 %v7215_v17, 0.0  ;;  %7246 = vst [vmem:[#allocation5 + $0x110] sm:$0xff] %v7191_v32  ;;  %7247 = vst [vmem:[#allocation5 + $0x118] sm:$0xff] %v7192_v15 }
 0x712   :  { %7248 = vst [vmem:[#allocation5 + $0x120] sm:$0xff] %v7191_v32  ;;  %7249 = vst [vmem:[#allocation5 + $0x128] sm:$0xff] %v7192_v15  ;;  %v7241_v29 = vmax.f32 %v7231_v11, 0.0  ;;  %v7242_v58 = vmax.f32 %v7240_v47, 0.0 }
 0x713   :  { %7250 = vst [vmem:[#allocation5 + $0x130] sm:$0xff] %v7191_v32  ;;  %7251 = vst [vmem:[#allocation5 + $0x138] sm:$0xff] %v7192_v15 }
 0x714   :  { %7252 = vst [vmem:[#allocation5 + $0x140] sm:$0xff] %v7191_v32  ;;  %7253 = vst [vmem:[#allocation5 + $0x148] sm:$0xff] %v7192_v15 }
 0x715   :  { %7254 = vst [vmem:[#allocation5 + $0x150] sm:$0xff] %v7191_v32  ;;  %7255 = vst [vmem:[#allocation5 + $0x158] sm:$0xff] %v7192_v15 }
 0x716   :  { %7256 = vst [vmem:[#allocation5 + $0x160] sm:$0xff] %v7191_v32  ;;  %7257 = vst [vmem:[#allocation5 + $0x168] sm:$0xff] %v7192_v15 }
 0x717   :  { %7258 = vst [vmem:[#allocation5 + $0x170] sm:$0xff] %v7191_v32  ;;  %7259 = vst [vmem:[#allocation5 + $0x178] sm:$0xff] %v7192_v15 }
 0x718   :  { %7260 = vst [vmem:[#allocation5 + $0x180] sm:$0xff] %v7191_v32  ;;  %7261 = vst [vmem:[#allocation5 + $0x188] sm:$0xff] %v7192_v15 }
 0x719   :  { %7262 = vst [vmem:[#allocation5 + $0x190] sm:$0xff] %v7191_v32  ;;  %7263 = vst [vmem:[#allocation5 + $0x198] sm:$0xff] %v7192_v15 }
 0x71a   :  { %7264 = vst [vmem:[#allocation5 + $0x1a0] sm:$0xff] %v7191_v32  ;;  %7265 = vst [vmem:[#allocation5 + $0x1a8] sm:$0xff] %v7192_v15 }
 0x71b   :  { %7266 = vst [vmem:[#allocation5 + $0x1b0] sm:$0xff] %v7191_v32  ;;  %7267 = vst [vmem:[#allocation5 + $0x1b8] sm:$0xff] %v7192_v15 }
 0x71c   :  { %7268 = vst [vmem:[#allocation5 + $0x1c0] sm:$0xff] %v7191_v32  ;;  %7269 = vst [vmem:[#allocation5 + $0x1c8] sm:$0xff] %v7192_v15 }
 0x71d   :  { %7270 = vst [vmem:[#allocation5 + $0x1d0] sm:$0xff] %v7191_v32  ;;  %7271 = vst [vmem:[#allocation5 + $0x1d8] sm:$0xff] %v7192_v15 }
 0x71e   :  { %7272 = vst [vmem:[#allocation5 + $0x1e0] sm:$0xff] %v7191_v32  ;;  %7273 = vst [vmem:[#allocation5 + $0x1e8] sm:$0xff] %v7192_v15 }
 0x71f   :  { %7276 = vst [vmem:[#allocation5 + $0x100] sm:$0xff] %v7216_v18  ;;  %7277 = vst [vmem:[#allocation5 + $0x108] sm:$0xff] %v7217_v13 }
 0x720   :  { %7279 = vst [vmem:[#allocation5 + $0x1f0] sm:$0xff] %v7241_v29  ;;  %7280 = vst [vmem:[#allocation5 + $0x1f8] sm:$0xff] %v7242_v58 }
 0x721   :  { %7923 = shalt.err (!%p7920_p4)
}
 0x722   :  { %s7945_s17 = smov 128   ;;  %s7946_s3 = smov 8  }
 0x723   :  { %7292 = dma.vmem_to_hbm [thread:$0]  %s7287_s16, 8192, %s12682_s9, [#allocation6], %s7945_s17, %s7945_s17, %s7946_s3  }
 0x724   :  { %7932 = dma.done.wait [#allocation6], 8192  }
 0x725   :  { %7933 = vsyncadd [#allocation6], 4294959104 }
 0x726   :  { %7296 = vsyncpa [#allocation6], 1 }

</bundles_post_ra>
